<compile_context>
chip_gen: v7x
topology: tpu7x:2x2x1
jax: 0.10.0
libtpu: 0.0.40
codegen_flags: <defaults>
</compile_context>

<pallas_src>
import functools

import jax
import jax.numpy as jnp
from jax.experimental import pallas as pl
from jax.experimental.pallas import tpu as pltpu

CPAD = 128      # lane-padded channel dim used everywhere
HIDDEN = 1024   # fc1 width
BASE = 8        # sublane-aligned start of the flat activation layout
M_TILE = 128    # conv M-strip so acc + lhs + rhs stay in the vreg file


def _round8(n):
    return (n + 7) // 8 * 8


def _row_stride(win):
    # Row stride of the flat padded activation layout; padded image row y_p
    # starts at BASE + y_p*stride.  Rounded to 8 so pool stores land aligned.
    return _round8(win + 2)


def _conv_rows(hin, win):
    # Rows the shifted-matmul conv computes: covers every valid output
    # position j = BASE-1 + y*stride + x  (y < hin, x < win).
    return _round8(BASE - 1 + (hin - 1) * _row_stride(win) + win)


def _act_rows(hin, win):
    # Conv-input buffer rows: content incl. bottom halo block, plus a tail so
    # the largest shifted read (offset 2*stride+2) stays in bounds.
    rs = _row_stride(win)
    return _round8(max(BASE + (hin + 2) * rs,
                       _conv_rows(hin, win) + 2 * rs + 2))


def _make_cnn_kernel(height, width):
    H, W = height, width

    def kernel(x_ref, w1_ref, e1_ref, w2_ref, e2_ref, w3_ref, e3_ref,
               fc1w_ref, fc1b_ref, fc2w_ref, fc2b_ref,
               out_ref,
               c1_ref, a2_ref, c2_ref, a3_ref, c3_ref):
        # Halo / pad rows of the next-stage activation buffers must be zero;
        # interiors are fully overwritten by the pool stores below.  Re-init
        # every program so the kernel is correct under megacore "parallel".
        a2_ref[...] = jnp.zeros_like(a2_ref)
        a3_ref[...] = jnp.zeros_like(a3_ref)

        def conv_relu_bn(a_ref, w_ref, e_ref, c_ref, win):
            """Conv2d(3x3, pad=1) -> ReLU -> BatchNorm (inference), flat layout.

            M-tiled; taps paired into K=256 MXU dots.
            """
            rs = _row_stride(win)
            mc = c_ref.shape[0]
            shifts = [dh * rs + dw for dh in range(3) for dw in range(3)]
            bias, scale, shift = e_ref[0:1, :], e_ref[1:2, :], e_ref[2:3, :]
            for t0 in range(0, mc, M_TILE):
                tm = min(M_TILE, mc - t0)
                acc = jnp.zeros((tm, CPAD), jnp.float32)
                for p in range(5):                         # 9 taps -> 5 K=256 dots
                    s0 = shifts[2 * p]
                    s1 = shifts[2 * p + 1] if 2 * p + 1 < 9 else s0
                    lhs = jnp.concatenate(
                        [a_ref[t0 + s0:t0 + s0 + tm, :].astype(jnp.bfloat16),
                         a_ref[t0 + s1:t0 + s1 + tm, :].astype(jnp.bfloat16)],
                        axis=1)
                    acc = acc + jnp.dot(
                        lhs, w_ref[2 * p * CPAD:(2 * p + 2) * CPAD, :],
                        preferred_element_type=jnp.float32)
                # module order is Conv -> ReLU -> BatchNorm
                c_ref[t0:t0 + tm, :] = (
                    jnp.maximum(acc + bias, 0.0) * scale + shift)

        def maxpool2(c_ref, hin, win, emit):
            """2x2 / stride-2 max pool over the flat conv output."""
            rs = _row_stride(win)
            ho, wo = hin // 2, win // 2
            for r in range(ho):
                j0 = BASE - 1 + (2 * r) * rs               # conv out (2r, 0)
                e00 = c_ref[pl.ds(j0, wo, stride=2), :]
                e01 = c_ref[pl.ds(j0 + 1, wo, stride=2), :]
                e10 = c_ref[pl.ds(j0 + rs, wo, stride=2), :]
                e11 = c_ref[pl.ds(j0 + rs + 1, wo, stride=2), :]
                emit(r, jnp.maximum(jnp.maximum(e00, e01),
                                    jnp.maximum(e10, e11)))

        def into_padded(a_next_ref, win_next):
            rs_next = _row_stride(win_next)

            def emit(r, pooled):                           # pooled: [wo, CPAD] f32
                dst = BASE + (r + 1) * rs_next             # 8-aligned interior row
                a_next_ref[dst:dst + pooled.shape[0], :] = pooled.astype(
                    a_next_ref.dtype)
            return emit

        feat_chunks = []

        def emit_feats(r, pooled):
            # Feature lane order: (r*wo3 + k)*128 + channel  (NCHW flatten is
            # folded into fc1_w's row permutation at init).
            for k in range(pooled.shape[0]):
                feat_chunks.append(pooled[k:k + 1, :])

        # --- three conv blocks ---------------------------------------------
        conv_relu_bn(x_ref, w1_ref, e1_ref, c1_ref, W)
        maxpool2(c1_ref, H, W, into_padded(a2_ref, W // 2))
        conv_relu_bn(a2_ref, w2_ref, e2_ref, c2_ref, W // 2)
        maxpool2(c2_ref, H // 2, W // 2, into_padded(a3_ref, W // 4))
        conv_relu_bn(a3_ref, w3_ref, e3_ref, c3_ref, W // 4)
        maxpool2(c3_ref, H // 4, W // 4, emit_feats)

        # --- fc head: single K = 128*(H/8)*(W/8) dot per sample -------------
        # Dropout(0.5) is identity at inference.
        # TODO(synk): training-mode dropout (RNG mask + 2x scaling) not implemented.
        feats = jnp.concatenate(feat_chunks, axis=1)       # [1, P*128] f32
        h = jnp.dot(feats.astype(jnp.bfloat16), fc1w_ref[...],
                    preferred_element_type=jnp.float32) + fc1b_ref[...]
        h = jnp.maximum(h, 0.0)
        out_ref[...] = jnp.dot(h.astype(jnp.bfloat16), fc2w_ref[...],
                               preferred_element_type=jnp.float32) + fc2b_ref[...]

    return kernel


def cnn_forward(x_nchw, params, *, num_classes):
    B, C, H, W = x_nchw.shape
    assert H % 8 == 0 and W % 8 == 0 and C <= CPAD

    dims = [(H, W), (H // 2, W // 2), (H // 4, W // 4)]
    rs1 = _row_stride(W)
    hp = H + 2
    r_in = _act_rows(H, W)
    fc_in = CPAD * (H // 8) * (W // 8)

    # One-time input prep (tiny): NCHW -> NHWC, zero halo, channel lane-pad,
    # flatten into the kernel's sublane-aligned flat-row layout.
    x = jnp.transpose(x_nchw, (0, 2, 3, 1)).astype(jnp.float32)
    x = jnp.pad(x, ((0, 0), (1, 1), (1, 1), (0, CPAD - C)))       # [B,Hp,Wp,128]
    x = x[:, :, 1:, :]                                            # drop left halo col
    x = jnp.pad(x, ((0, 0), (0, 0), (0, rs1 - (W + 1)), (0, 0)))  # width -> stride
    x = x.reshape(B, hp * rs1, CPAD)
    x = jnp.pad(x, ((0, 0), (BASE, r_in - BASE - hp * rs1), (0, 0)))

    scratch = [
        pltpu.VMEM((_conv_rows(*dims[0]), CPAD), jnp.float32),    # conv1 out
        pltpu.VMEM((_act_rows(*dims[1]), CPAD), jnp.float32),     # conv2 in (padded)
        pltpu.VMEM((_conv_rows(*dims[1]), CPAD), jnp.float32),    # conv2 out
        pltpu.VMEM((_act_rows(*dims[2]), CPAD), jnp.float32),     # conv3 in (padded)
        pltpu.VMEM((_conv_rows(*dims[2]), CPAD), jnp.float32),    # conv3 out
    ]

    def full2(r, c):
        return pl.BlockSpec((r, c), lambda b: (0, 0))

    weight_keys = ("w1", "e1", "w2", "e2", "w3", "e3",
                   "fc1_w", "fc1_b", "fc2_w", "fc2_b")

    # VMEM budget derived from actual sizes (review): double-buffered input
    # blocks + scratch + headroom.
    def nbytes(a):
        return int(a.size) * a.dtype.itemsize
    block_bytes = nbytes(x) // B + sum(nbytes(params[k]) for k in weight_keys)
    scratch_bytes = (sum(_conv_rows(*d) for d in dims)
                     + sum(_act_rows(*d) for d in dims[1:])) * CPAD * 4
    vmem_limit = int(2 * block_bytes + scratch_bytes + (8 << 20))

    out = pl.pallas_call(
        _make_cnn_kernel(H, W),
        out_shape=jax.ShapeDtypeStruct((B, 1, CPAD), jnp.float32),
        grid_spec=pltpu.PrefetchScalarGridSpec(
            num_scalar_prefetch=0,
            grid=(B,),                                     # one sample per program
            in_specs=[
                pl.BlockSpec((None, r_in, CPAD), lambda b: (b, 0, 0)),  # x
                full2(10 * CPAD, CPAD),   # conv1 taps (paired layout, bf16)
                full2(3, CPAD),           # conv1 bias / bn scale / bn shift
                full2(10 * CPAD, CPAD),   # conv2 taps
                full2(3, CPAD),
                full2(10 * CPAD, CPAD),   # conv3 taps
                full2(3, CPAD),
                full2(fc_in, HIDDEN),     # fc1 weight (row-permuted, bf16)
                full2(1, HIDDEN),         # fc1 bias
                full2(HIDDEN, CPAD),      # fc2 weight (col-padded, bf16)
                full2(1, CPAD),           # fc2 bias (col-padded)
            ],
            out_specs=pl.BlockSpec((None, 1, CPAD), lambda b: (b, 0, 0)),
            scratch_shapes=scratch,
        ),
        compiler_params=pltpu.CompilerParams(
            dimension_semantics=("parallel",),             # v7x: one sample per core
            vmem_limit_bytes=vmem_limit,
        ),
    )(x, *[params[k] for k in weight_keys])
    return out[:, 0, :num_classes]


def init_params(key, num_classes, image_hw=16, hidden=HIDDEN):
    """Deterministic synthetic weights, pre-transformed to the kernel layout."""
    eps = 1e-5
    keys = jax.random.split(key, 4)
    params = {}
    for i, (cin, cout) in enumerate([(3, 32), (32, 64), (64, 128)]):
        kw, kb, kg, kbeta, kmean, kvar = jax.random.split(keys[i], 6)
        w = jax.random.normal(kw, (cout, cin, 3, 3), jnp.float32) * 0.1  # torch layout
        b = jax.random.normal(kb, (cout,), jnp.float32) * 0.1
        gamma = 1.0 + 0.1 * jax.random.normal(kg, (cout,), jnp.float32)
        beta = 0.1 * jax.random.normal(kbeta, (cout,), jnp.float32)
        mean = 0.1 * jax.random.normal(kmean, (cout,), jnp.float32)
        var = jax.random.uniform(kvar, (cout,), jnp.float32, 0.5, 1.5)
        scale = gamma / jnp.sqrt(var + eps)
        shift = beta - mean * scale
        # [Cout,Cin,3,3] -> per-tap [ci,co] blocks, lane-padded to 128x128, plus a
        # zero phantom 10th tap so pairs of taps form one [256,128] MXU operand.
        w_taps = jnp.transpose(w, (2, 3, 1, 0)).reshape(9, cin, cout)
        w_taps = jnp.pad(w_taps, ((0, 1), (0, CPAD - cin), (0, CPAD - cout)))
        params[f"w{i + 1}"] = w_taps.reshape(10 * CPAD, CPAD).astype(jnp.bfloat16)
        params[f"e{i + 1}"] = jnp.stack([jnp.pad(b, (0, CPAD - cout)),
                                         jnp.pad(scale, (0, CPAD - cout)),
                                         jnp.pad(shift, (0, CPAD - cout))])

    ho = wo = image_hw // 8
    P = ho * wo
    fc_in = CPAD * P
    k1w, k1b, k2w, k2b = jax.random.split(keys[3], 4)
    fc1_w = jax.random.normal(k1w, (fc_in, hidden), jnp.float32) * 0.02  # torch flatten order
    fc1_b = jax.random.normal(k1b, (1, hidden), jnp.float32) * 0.02
    # Fold the NCHW flatten (torch row = ch*P + p) into the kernel feature order
    # (row = p*128 + ch): a one-time, free row permutation of fc1_w.
    perm = (jnp.arange(CPAD)[None, :] * P + jnp.arange(P)[:, None]).reshape(-1)
    params["fc1_w"] = fc1_w[perm, :].astype(jnp.bfloat16)
    params["fc1_b"] = fc1_b

    fc2_w = jax.random.normal(k2w, (hidden, num_classes), jnp.float32) * 0.02
    fc2_b = jax.random.normal(k2b, (1, num_classes), jnp.float32) * 0.02
    params["fc2_w"] = jnp.pad(fc2_w, ((0, 0), (0, CPAD - num_classes))).astype(jnp.bfloat16)
    params["fc2_b"] = jnp.pad(fc2_b, ((0, 0), (0, CPAD - num_classes)))
    return params


if __name__ == "__main__":
    key = jax.random.PRNGKey(0)
    kx, kp = jax.random.split(key)

    # Small shapes consistent with the module: B=2, C=3, 16x16 spatial.
    # After 3 conv+pool blocks: [B,128,2,2] -> flatten 512 -> fc(512,1024) -> fc(1024,10)
    B, C, H, W = 2, 3, 16, 16
    num_classes = 10

    x = jax.random.normal(kx, (B, C, H, W), jnp.float32)
    params = init_params(kp, num_classes=num_classes, image_hw=H)

    fwd = jax.jit(functools.partial(cnn_forward, num_classes=num_classes))
    logits = fwd(x, params)
    jax.block_until_ready(logits)
    assert logits.shape == (B, num_classes), logits.shape
    print("KERNEL_OK")
</pallas_src>

<mosaic_0001>
module attributes {stable_mosaic.version = 11 : i64} {
  func.func @kernel(%arg0: i32, %arg1: memref<1x440x128xf32, #tpu.memory_space<vmem>>, %arg2: memref<1280x128xbf16, #tpu.memory_space<vmem>>, %arg3: memref<3x128xf32, #tpu.memory_space<vmem>>, %arg4: memref<1280x128xbf16, #tpu.memory_space<vmem>>, %arg5: memref<3x128xf32, #tpu.memory_space<vmem>>, %arg6: memref<1280x128xbf16, #tpu.memory_space<vmem>>, %arg7: memref<3x128xf32, #tpu.memory_space<vmem>>, %arg8: memref<512x1024xbf16, #tpu.memory_space<vmem>>, %arg9: memref<1x1024xf32, #tpu.memory_space<vmem>>, %arg10: memref<1024x128xbf16, #tpu.memory_space<vmem>>, %arg11: memref<1x128xf32, #tpu.memory_space<vmem>>, %arg12: memref<1x1x128xf32, #tpu.memory_space<vmem>>, %arg13: memref<384x128xf32, #tpu.memory_space<vmem>>, %arg14: memref<168x128xf32, #tpu.memory_space<vmem>>, %arg15: memref<128x128xf32, #tpu.memory_space<vmem>>, %arg16: memref<64x128xf32, #tpu.memory_space<vmem>>, %arg17: memref<40x128xf32, #tpu.memory_space<vmem>>) attributes {dimension_semantics = [#tpu.dimension_semantics<parallel>], iteration_bounds = array<i64: 2>, scalar_prefetch = 0 : i64, scratch_operands = 5 : i64, tpu.core_type = #tpu.core_type<tc>, window_params = [{transform_indices = @transform_0, window_bounds = array<i64: 1, 440, 128>}, {pipeline_mode = #tpu.pipeline_mode<synchronous>, transform_indices = @transform_1, window_bounds = array<i64: 1280, 128>}, {pipeline_mode = #tpu.pipeline_mode<synchronous>, transform_indices = @transform_2, window_bounds = array<i64: 3, 128>}, {pipeline_mode = #tpu.pipeline_mode<synchronous>, transform_indices = @transform_3, window_bounds = array<i64: 1280, 128>}, {pipeline_mode = #tpu.pipeline_mode<synchronous>, transform_indices = @transform_4, window_bounds = array<i64: 3, 128>}, {pipeline_mode = #tpu.pipeline_mode<synchronous>, transform_indices = @transform_5, window_bounds = array<i64: 1280, 128>}, {pipeline_mode = #tpu.pipeline_mode<synchronous>, transform_indices = @transform_6, window_bounds = array<i64: 3, 128>}, {pipeline_mode = #tpu.pipeline_mode<synchronous>, transform_indices = @transform_7, window_bounds = array<i64: 512, 1024>}, {pipeline_mode = #tpu.pipeline_mode<synchronous>, transform_indices = @transform_8, window_bounds = array<i64: 1, 1024>}, {pipeline_mode = #tpu.pipeline_mode<synchronous>, transform_indices = @transform_9, window_bounds = array<i64: 1024, 128>}, {pipeline_mode = #tpu.pipeline_mode<synchronous>, transform_indices = @transform_10, window_bounds = array<i64: 1, 128>}, {transform_indices = @transform_11, window_bounds = array<i64: 1, 1, 128>}]} {
    %cst = arith.constant 0.000000e+00 : f32
    %0 = vector.broadcast %cst : f32 to vector<168x128xf32>
    %c0 = arith.constant 0 : index
    %c0_0 = arith.constant 0 : index
    %1 = vector.load %arg14[%c0, %c0_0] : memref<168x128xf32, #tpu.memory_space<vmem>>, vector<168x128xf32>
    tpu.vector_store %arg14[%c0, %c0_0], %0 {strides = array<i32>} : memref<168x128xf32, #tpu.memory_space<vmem>>, vector<168x128xf32>,
    %cst_1 = arith.constant 0.000000e+00 : f32
    %2 = vector.broadcast %cst_1 : f32 to vector<64x128xf32>
    %c0_2 = arith.constant 0 : index
    %c0_3 = arith.constant 0 : index
    %3 = vector.load %arg16[%c0_2, %c0_3] : memref<64x128xf32, #tpu.memory_space<vmem>>, vector<64x128xf32>
    tpu.vector_store %arg16[%c0_2, %c0_3], %2 {strides = array<i32>} : memref<64x128xf32, #tpu.memory_space<vmem>>, vector<64x128xf32>,
    %c0_4 = arith.constant 0 : index
    %c0_5 = arith.constant 0 : index
    %4 = vector.load %arg3[%c0_4, %c0_5] : memref<3x128xf32, #tpu.memory_space<vmem>>, vector<1x128xf32>
    %c1 = arith.constant 1 : index
    %c0_6 = arith.constant 0 : index
    %5 = vector.load %arg3[%c1, %c0_6] : memref<3x128xf32, #tpu.memory_space<vmem>>, vector<1x128xf32>
    %c2 = arith.constant 2 : index
    %c0_7 = arith.constant 0 : index
    %6 = vector.load %arg3[%c2, %c0_7] : memref<3x128xf32, #tpu.memory_space<vmem>>, vector<1x128xf32>
    %cst_8 = arith.constant 0.000000e+00 : f32
    %7 = vector.broadcast %cst_8 : f32 to vector<128x128xf32>
    %c0_9 = arith.constant 0 : index
    %c0_10 = arith.constant 0 : index
    %c0_11 = arith.constant 0 : index
    %8 = vector.load %arg1[%c0_9, %c0_10, %c0_11] : memref<1x440x128xf32, #tpu.memory_space<vmem>>, vector<1x128x128xf32>
    %9 = vector.shape_cast %8 : vector<1x128x128xf32> to vector<128x128xf32>
    %10 = arith.truncf %9 : vector<128x128xf32> to vector<128x128xbf16>
    %c0_12 = arith.constant 0 : index
    %c1_13 = arith.constant 1 : index
    %c0_14 = arith.constant 0 : index
    %11 = vector.load %arg1[%c0_12, %c1_13, %c0_14] : memref<1x440x128xf32, #tpu.memory_space<vmem>>, vector<1x128x128xf32>
    %12 = vector.shape_cast %11 : vector<1x128x128xf32> to vector<128x128xf32>
    %13 = arith.truncf %12 : vector<128x128xf32> to vector<128x128xbf16>
    %14 = tpu.concatenate %10, %13 in 1 : vector<128x128xbf16>, vector<128x128xbf16> -> vector<128x256xbf16>
    %c0_15 = arith.constant 0 : index
    %c0_16 = arith.constant 0 : index
    %15 = vector.load %arg2[%c0_15, %c0_16] : memref<1280x128xbf16, #tpu.memory_space<vmem>>, vector<256x128xbf16>
    %cst_17 = arith.constant dense<0.000000e+00> : vector<128x128xf32>
    %16 = tpu.matmul %14, %15, %cst_17 {dimension_numbers = #tpu.dot_dimension_numbers<[1], [0], [0], [1], [0, 0, 1, 1], [], []>} : vector<128x256xbf16>, vector<256x128xbf16>, vector<128x128xf32> -> vector<128x128xf32>
    %17 = arith.addf %7, %16 : vector<128x128xf32>
    %c0_18 = arith.constant 0 : index
    %c2_19 = arith.constant 2 : index
    %c0_20 = arith.constant 0 : index
    %18 = vector.load %arg1[%c0_18, %c2_19, %c0_20] : memref<1x440x128xf32, #tpu.memory_space<vmem>>, vector<1x128x128xf32>
    %19 = vector.shape_cast %18 : vector<1x128x128xf32> to vector<128x128xf32>
    %20 = arith.truncf %19 : vector<128x128xf32> to vector<128x128xbf16>
    %c0_21 = arith.constant 0 : index
    %c24 = arith.constant 24 : index
    %c0_22 = arith.constant 0 : index
    %21 = vector.load %arg1[%c0_21, %c24, %c0_22] : memref<1x440x128xf32, #tpu.memory_space<vmem>>, vector<1x128x128xf32>
    %22 = vector.shape_cast %21 : vector<1x128x128xf32> to vector<128x128xf32>
    %23 = arith.truncf %22 : vector<128x128xf32> to vector<128x128xbf16>
    %24 = tpu.concatenate %20, %23 in 1 : vector<128x128xbf16>, vector<128x128xbf16> -> vector<128x256xbf16>
    %c256 = arith.constant 256 : index
    %c0_23 = arith.constant 0 : index
    %25 = vector.load %arg2[%c256, %c0_23] : memref<1280x128xbf16, #tpu.memory_space<vmem>>, vector<256x128xbf16>
    %cst_24 = arith.constant dense<0.000000e+00> : vector<128x128xf32>
    %26 = tpu.matmul %24, %25, %cst_24 {dimension_numbers = #tpu.dot_dimension_numbers<[1], [0], [0], [1], [0, 0, 1, 1], [], []>} : vector<128x256xbf16>, vector<256x128xbf16>, vector<128x128xf32> -> vector<128x128xf32>
    %27 = arith.addf %17, %26 : vector<128x128xf32>
    %c0_25 = arith.constant 0 : index
    %c25 = arith.constant 25 : index
    %c0_26 = arith.constant 0 : index
    %28 = vector.load %arg1[%c0_25, %c25, %c0_26] : memref<1x440x128xf32, #tpu.memory_space<vmem>>, vector<1x128x128xf32>
    %29 = vector.shape_cast %28 : vector<1x128x128xf32> to vector<128x128xf32>
    %30 = arith.truncf %29 : vector<128x128xf32> to vector<128x128xbf16>
    %c0_27 = arith.constant 0 : index
    %c26 = arith.constant 26 : index
    %c0_28 = arith.constant 0 : index
    %31 = vector.load %arg1[%c0_27, %c26, %c0_28] : memref<1x440x128xf32, #tpu.memory_space<vmem>>, vector<1x128x128xf32>
    %32 = vector.shape_cast %31 : vector<1x128x128xf32> to vector<128x128xf32>
    %33 = arith.truncf %32 : vector<128x128xf32> to vector<128x128xbf16>
    %34 = tpu.concatenate %30, %33 in 1 : vector<128x128xbf16>, vector<128x128xbf16> -> vector<128x256xbf16>
    %c512 = arith.constant 512 : index
    %c0_29 = arith.constant 0 : index
    %35 = vector.load %arg2[%c512, %c0_29] : memref<1280x128xbf16, #tpu.memory_space<vmem>>, vector<256x128xbf16>
    %cst_30 = arith.constant dense<0.000000e+00> : vector<128x128xf32>
    %36 = tpu.matmul %34, %35, %cst_30 {dimension_numbers = #tpu.dot_dimension_numbers<[1], [0], [0], [1], [0, 0, 1, 1], [], []>} : vector<128x256xbf16>, vector<256x128xbf16>, vector<128x128xf32> -> vector<128x128xf32>
    %37 = arith.addf %27, %36 : vector<128x128xf32>
    %c0_31 = arith.constant 0 : index
    %c48 = arith.constant 48 : index
    %c0_32 = arith.constant 0 : index
    %38 = vector.load %arg1[%c0_31, %c48, %c0_32] : memref<1x440x128xf32, #tpu.memory_space<vmem>>, vector<1x128x128xf32>
    %39 = vector.shape_cast %38 : vector<1x128x128xf32> to vector<128x128xf32>
    %40 = arith.truncf %39 : vector<128x128xf32> to vector<128x128xbf16>
    %c0_33 = arith.constant 0 : index
    %c49 = arith.constant 49 : index
    %c0_34 = arith.constant 0 : index
    %41 = vector.load %arg1[%c0_33, %c49, %c0_34] : memref<1x440x128xf32, #tpu.memory_space<vmem>>, vector<1x128x128xf32>
    %42 = vector.shape_cast %41 : vector<1x128x128xf32> to vector<128x128xf32>
    %43 = arith.truncf %42 : vector<128x128xf32> to vector<128x128xbf16>
    %44 = tpu.concatenate %40, %43 in 1 : vector<128x128xbf16>, vector<128x128xbf16> -> vector<128x256xbf16>
    %c768 = arith.constant 768 : index
    %c0_35 = arith.constant 0 : index
    %45 = vector.load %arg2[%c768, %c0_35] : memref<1280x128xbf16, #tpu.memory_space<vmem>>, vector<256x128xbf16>
    %cst_36 = arith.constant dense<0.000000e+00> : vector<128x128xf32>
    %46 = tpu.matmul %44, %45, %cst_36 {dimension_numbers = #tpu.dot_dimension_numbers<[1], [0], [0], [1], [0, 0, 1, 1], [], []>} : vector<128x256xbf16>, vector<256x128xbf16>, vector<128x128xf32> -> vector<128x128xf32>
    %47 = arith.addf %37, %46 : vector<128x128xf32>
    %c0_37 = arith.constant 0 : index
    %c50 = arith.constant 50 : index
    %c0_38 = arith.constant 0 : index
    %48 = vector.load %arg1[%c0_37, %c50, %c0_38] : memref<1x440x128xf32, #tpu.memory_space<vmem>>, vector<1x128x128xf32>
    %49 = vector.shape_cast %48 : vector<1x128x128xf32> to vector<128x128xf32>
    %50 = arith.truncf %49 : vector<128x128xf32> to vector<128x128xbf16>
    %c0_39 = arith.constant 0 : index
    %c50_40 = arith.constant 50 : index
    %c0_41 = arith.constant 0 : index
    %51 = vector.load %arg1[%c0_39, %c50_40, %c0_41] : memref<1x440x128xf32, #tpu.memory_space<vmem>>, vector<1x128x128xf32>
    %52 = vector.shape_cast %51 : vector<1x128x128xf32> to vector<128x128xf32>
    %53 = arith.truncf %52 : vector<128x128xf32> to vector<128x128xbf16>
    %54 = tpu.concatenate %50, %53 in 1 : vector<128x128xbf16>, vector<128x128xbf16> -> vector<128x256xbf16>
    %c1024 = arith.constant 1024 : index
    %c0_42 = arith.constant 0 : index
    %55 = vector.load %arg2[%c1024, %c0_42] : memref<1280x128xbf16, #tpu.memory_space<vmem>>, vector<256x128xbf16>
    %cst_43 = arith.constant dense<0.000000e+00> : vector<128x128xf32>
    %56 = tpu.matmul %54, %55, %cst_43 {dimension_numbers = #tpu.dot_dimension_numbers<[1], [0], [0], [1], [0, 0, 1, 1], [], []>} : vector<128x256xbf16>, vector<256x128xbf16>, vector<128x128xf32> -> vector<128x128xf32>
    %57 = arith.addf %47, %56 : vector<128x128xf32>
    %58 = vector.broadcast %4 : vector<1x128xf32> to vector<128x128xf32>
    %59 = arith.addf %57, %58 : vector<128x128xf32>
    %cst_44 = arith.constant 0.000000e+00 : f32
    %60 = vector.broadcast %cst_44 : f32 to vector<128x128xf32>
    %61 = arith.maximumf %59, %60 : vector<128x128xf32>
    %62 = vector.broadcast %5 : vector<1x128xf32> to vector<128x128xf32>
    %63 = arith.mulf %61, %62 : vector<128x128xf32>
    %64 = vector.broadcast %6 : vector<1x128xf32> to vector<128x128xf32>
    %65 = arith.addf %63, %64 : vector<128x128xf32>
    %c0_45 = arith.constant 0 : index
    %c0_46 = arith.constant 0 : index
    %66 = vector.load %arg13[%c0_45, %c0_46] : memref<384x128xf32, #tpu.memory_space<vmem>>, vector<128x128xf32>
    tpu.vector_store %arg13[%c0_45, %c0_46], %65 {strides = array<i32>} : memref<384x128xf32, #tpu.memory_space<vmem>>, vector<128x128xf32>,
    %cst_47 = arith.constant 0.000000e+00 : f32
    %67 = vector.broadcast %cst_47 : f32 to vector<128x128xf32>
    %c0_48 = arith.constant 0 : index
    %c128 = arith.constant 128 : index
    %c0_49 = arith.constant 0 : index
    %68 = vector.load %arg1[%c0_48, %c128, %c0_49] : memref<1x440x128xf32, #tpu.memory_space<vmem>>, vector<1x128x128xf32>
    %69 = vector.shape_cast %68 : vector<1x128x128xf32> to vector<128x128xf32>
    %70 = arith.truncf %69 : vector<128x128xf32> to vector<128x128xbf16>
    %c0_50 = arith.constant 0 : index
    %c129 = arith.constant 129 : index
    %c0_51 = arith.constant 0 : index
    %71 = vector.load %arg1[%c0_50, %c129, %c0_51] : memref<1x440x128xf32, #tpu.memory_space<vmem>>, vector<1x128x128xf32>
    %72 = vector.shape_cast %71 : vector<1x128x128xf32> to vector<128x128xf32>
    %73 = arith.truncf %72 : vector<128x128xf32> to vector<128x128xbf16>
    %74 = tpu.concatenate %70, %73 in 1 : vector<128x128xbf16>, vector<128x128xbf16> -> vector<128x256xbf16>
    %c0_52 = arith.constant 0 : index
    %c0_53 = arith.constant 0 : index
    %75 = vector.load %arg2[%c0_52, %c0_53] : memref<1280x128xbf16, #tpu.memory_space<vmem>>, vector<256x128xbf16>
    %cst_54 = arith.constant dense<0.000000e+00> : vector<128x128xf32>
    %76 = tpu.matmul %74, %75, %cst_54 {dimension_numbers = #tpu.dot_dimension_numbers<[1], [0], [0], [1], [0, 0, 1, 1], [], []>} : vector<128x256xbf16>, vector<256x128xbf16>, vector<128x128xf32> -> vector<128x128xf32>
    %77 = arith.addf %67, %76 : vector<128x128xf32>
    %c0_55 = arith.constant 0 : index
    %c130 = arith.constant 130 : index
    %c0_56 = arith.constant 0 : index
    %78 = vector.load %arg1[%c0_55, %c130, %c0_56] : memref<1x440x128xf32, #tpu.memory_space<vmem>>, vector<1x128x128xf32>
    %79 = vector.shape_cast %78 : vector<1x128x128xf32> to vector<128x128xf32>
    %80 = arith.truncf %79 : vector<128x128xf32> to vector<128x128xbf16>
    %c0_57 = arith.constant 0 : index
    %c152 = arith.constant 152 : index
    %c0_58 = arith.constant 0 : index
    %81 = vector.load %arg1[%c0_57, %c152, %c0_58] : memref<1x440x128xf32, #tpu.memory_space<vmem>>, vector<1x128x128xf32>
    %82 = vector.shape_cast %81 : vector<1x128x128xf32> to vector<128x128xf32>
    %83 = arith.truncf %82 : vector<128x128xf32> to vector<128x128xbf16>
    %84 = tpu.concatenate %80, %83 in 1 : vector<128x128xbf16>, vector<128x128xbf16> -> vector<128x256xbf16>
    %c256_59 = arith.constant 256 : index
    %c0_60 = arith.constant 0 : index
    %85 = vector.load %arg2[%c256_59, %c0_60] : memref<1280x128xbf16, #tpu.memory_space<vmem>>, vector<256x128xbf16>
    %cst_61 = arith.constant dense<0.000000e+00> : vector<128x128xf32>
    %86 = tpu.matmul %84, %85, %cst_61 {dimension_numbers = #tpu.dot_dimension_numbers<[1], [0], [0], [1], [0, 0, 1, 1], [], []>} : vector<128x256xbf16>, vector<256x128xbf16>, vector<128x128xf32> -> vector<128x128xf32>
    %87 = arith.addf %77, %86 : vector<128x128xf32>
    %c0_62 = arith.constant 0 : index
    %c153 = arith.constant 153 : index
    %c0_63 = arith.constant 0 : index
    %88 = vector.load %arg1[%c0_62, %c153, %c0_63] : memref<1x440x128xf32, #tpu.memory_space<vmem>>, vector<1x128x128xf32>
    %89 = vector.shape_cast %88 : vector<1x128x128xf32> to vector<128x128xf32>
    %90 = arith.truncf %89 : vector<128x128xf32> to vector<128x128xbf16>
    %c0_64 = arith.constant 0 : index
    %c154 = arith.constant 154 : index
    %c0_65 = arith.constant 0 : index
    %91 = vector.load %arg1[%c0_64, %c154, %c0_65] : memref<1x440x128xf32, #tpu.memory_space<vmem>>, vector<1x128x128xf32>
    %92 = vector.shape_cast %91 : vector<1x128x128xf32> to vector<128x128xf32>
    %93 = arith.truncf %92 : vector<128x128xf32> to vector<128x128xbf16>
    %94 = tpu.concatenate %90, %93 in 1 : vector<128x128xbf16>, vector<128x128xbf16> -> vector<128x256xbf16>
    %c512_66 = arith.constant 512 : index
    %c0_67 = arith.constant 0 : index
    %95 = vector.load %arg2[%c512_66, %c0_67] : memref<1280x128xbf16, #tpu.memory_space<vmem>>, vector<256x128xbf16>
    %cst_68 = arith.constant dense<0.000000e+00> : vector<128x128xf32>
    %96 = tpu.matmul %94, %95, %cst_68 {dimension_numbers = #tpu.dot_dimension_numbers<[1], [0], [0], [1], [0, 0, 1, 1], [], []>} : vector<128x256xbf16>, vector<256x128xbf16>, vector<128x128xf32> -> vector<128x128xf32>
    %97 = arith.addf %87, %96 : vector<128x128xf32>
    %c0_69 = arith.constant 0 : index
    %c176 = arith.constant 176 : index
    %c0_70 = arith.constant 0 : index
    %98 = vector.load %arg1[%c0_69, %c176, %c0_70] : memref<1x440x128xf32, #tpu.memory_space<vmem>>, vector<1x128x128xf32>
    %99 = vector.shape_cast %98 : vector<1x128x128xf32> to vector<128x128xf32>
    %100 = arith.truncf %99 : vector<128x128xf32> to vector<128x128xbf16>
    %c0_71 = arith.constant 0 : index
    %c177 = arith.constant 177 : index
    %c0_72 = arith.constant 0 : index
    %101 = vector.load %arg1[%c0_71, %c177, %c0_72] : memref<1x440x128xf32, #tpu.memory_space<vmem>>, vector<1x128x128xf32>
    %102 = vector.shape_cast %101 : vector<1x128x128xf32> to vector<128x128xf32>
    %103 = arith.truncf %102 : vector<128x128xf32> to vector<128x128xbf16>
    %104 = tpu.concatenate %100, %103 in 1 : vector<128x128xbf16>, vector<128x128xbf16> -> vector<128x256xbf16>
    %c768_73 = arith.constant 768 : index
    %c0_74 = arith.constant 0 : index
    %105 = vector.load %arg2[%c768_73, %c0_74] : memref<1280x128xbf16, #tpu.memory_space<vmem>>, vector<256x128xbf16>
    %cst_75 = arith.constant dense<0.000000e+00> : vector<128x128xf32>
    %106 = tpu.matmul %104, %105, %cst_75 {dimension_numbers = #tpu.dot_dimension_numbers<[1], [0], [0], [1], [0, 0, 1, 1], [], []>} : vector<128x256xbf16>, vector<256x128xbf16>, vector<128x128xf32> -> vector<128x128xf32>
    %107 = arith.addf %97, %106 : vector<128x128xf32>
    %c0_76 = arith.constant 0 : index
    %c178 = arith.constant 178 : index
    %c0_77 = arith.constant 0 : index
    %108 = vector.load %arg1[%c0_76, %c178, %c0_77] : memref<1x440x128xf32, #tpu.memory_space<vmem>>, vector<1x128x128xf32>
    %109 = vector.shape_cast %108 : vector<1x128x128xf32> to vector<128x128xf32>
    %110 = arith.truncf %109 : vector<128x128xf32> to vector<128x128xbf16>
    %c0_78 = arith.constant 0 : index
    %c178_79 = arith.constant 178 : index
    %c0_80 = arith.constant 0 : index
    %111 = vector.load %arg1[%c0_78, %c178_79, %c0_80] : memref<1x440x128xf32, #tpu.memory_space<vmem>>, vector<1x128x128xf32>
    %112 = vector.shape_cast %111 : vector<1x128x128xf32> to vector<128x128xf32>
    %113 = arith.truncf %112 : vector<128x128xf32> to vector<128x128xbf16>
    %114 = tpu.concatenate %110, %113 in 1 : vector<128x128xbf16>, vector<128x128xbf16> -> vector<128x256xbf16>
    %c1024_81 = arith.constant 1024 : index
    %c0_82 = arith.constant 0 : index
    %115 = vector.load %arg2[%c1024_81, %c0_82] : memref<1280x128xbf16, #tpu.memory_space<vmem>>, vector<256x128xbf16>
    %cst_83 = arith.constant dense<0.000000e+00> : vector<128x128xf32>
    %116 = tpu.matmul %114, %115, %cst_83 {dimension_numbers = #tpu.dot_dimension_numbers<[1], [0], [0], [1], [0, 0, 1, 1], [], []>} : vector<128x256xbf16>, vector<256x128xbf16>, vector<128x128xf32> -> vector<128x128xf32>
    %117 = arith.addf %107, %116 : vector<128x128xf32>
    %118 = vector.broadcast %4 : vector<1x128xf32> to vector<128x128xf32>
    %119 = arith.addf %117, %118 : vector<128x128xf32>
    %cst_84 = arith.constant 0.000000e+00 : f32
    %120 = vector.broadcast %cst_84 : f32 to vector<128x128xf32>
    %121 = arith.maximumf %119, %120 : vector<128x128xf32>
    %122 = vector.broadcast %5 : vector<1x128xf32> to vector<128x128xf32>
    %123 = arith.mulf %121, %122 : vector<128x128xf32>
    %124 = vector.broadcast %6 : vector<1x128xf32> to vector<128x128xf32>
    %125 = arith.addf %123, %124 : vector<128x128xf32>
    %c128_85 = arith.constant 128 : index
    %c0_86 = arith.constant 0 : index
    %126 = vector.load %arg13[%c128_85, %c0_86] : memref<384x128xf32, #tpu.memory_space<vmem>>, vector<128x128xf32>
    tpu.vector_store %arg13[%c128_85, %c0_86], %125 {strides = array<i32>} : memref<384x128xf32, #tpu.memory_space<vmem>>, vector<128x128xf32>,
    %cst_87 = arith.constant 0.000000e+00 : f32
    %127 = vector.broadcast %cst_87 : f32 to vector<128x128xf32>
    %c0_88 = arith.constant 0 : index
    %c256_89 = arith.constant 256 : index
    %c0_90 = arith.constant 0 : index
    %128 = vector.load %arg1[%c0_88, %c256_89, %c0_90] : memref<1x440x128xf32, #tpu.memory_space<vmem>>, vector<1x128x128xf32>
    %129 = vector.shape_cast %128 : vector<1x128x128xf32> to vector<128x128xf32>
    %130 = arith.truncf %129 : vector<128x128xf32> to vector<128x128xbf16>
    %c0_91 = arith.constant 0 : index
    %c257 = arith.constant 257 : index
    %c0_92 = arith.constant 0 : index
    %131 = vector.load %arg1[%c0_91, %c257, %c0_92] : memref<1x440x128xf32, #tpu.memory_space<vmem>>, vector<1x128x128xf32>
    %132 = vector.shape_cast %131 : vector<1x128x128xf32> to vector<128x128xf32>
    %133 = arith.truncf %132 : vector<128x128xf32> to vector<128x128xbf16>
    %134 = tpu.concatenate %130, %133 in 1 : vector<128x128xbf16>, vector<128x128xbf16> -> vector<128x256xbf16>
    %c0_93 = arith.constant 0 : index
    %c0_94 = arith.constant 0 : index
    %135 = vector.load %arg2[%c0_93, %c0_94] : memref<1280x128xbf16, #tpu.memory_space<vmem>>, vector<256x128xbf16>
    %cst_95 = arith.constant dense<0.000000e+00> : vector<128x128xf32>
    %136 = tpu.matmul %134, %135, %cst_95 {dimension_numbers = #tpu.dot_dimension_numbers<[1], [0], [0], [1], [0, 0, 1, 1], [], []>} : vector<128x256xbf16>, vector<256x128xbf16>, vector<128x128xf32> -> vector<128x128xf32>
    %137 = arith.addf %127, %136 : vector<128x128xf32>
    %c0_96 = arith.constant 0 : index
    %c258 = arith.constant 258 : index
    %c0_97 = arith.constant 0 : index
    %138 = vector.load %arg1[%c0_96, %c258, %c0_97] : memref<1x440x128xf32, #tpu.memory_space<vmem>>, vector<1x128x128xf32>
    %139 = vector.shape_cast %138 : vector<1x128x128xf32> to vector<128x128xf32>
    %140 = arith.truncf %139 : vector<128x128xf32> to vector<128x128xbf16>
    %c0_98 = arith.constant 0 : index
    %c280 = arith.constant 280 : index
    %c0_99 = arith.constant 0 : index
    %141 = vector.load %arg1[%c0_98, %c280, %c0_99] : memref<1x440x128xf32, #tpu.memory_space<vmem>>, vector<1x128x128xf32>
    %142 = vector.shape_cast %141 : vector<1x128x128xf32> to vector<128x128xf32>
    %143 = arith.truncf %142 : vector<128x128xf32> to vector<128x128xbf16>
    %144 = tpu.concatenate %140, %143 in 1 : vector<128x128xbf16>, vector<128x128xbf16> -> vector<128x256xbf16>
    %c256_100 = arith.constant 256 : index
    %c0_101 = arith.constant 0 : index
    %145 = vector.load %arg2[%c256_100, %c0_101] : memref<1280x128xbf16, #tpu.memory_space<vmem>>, vector<256x128xbf16>
    %cst_102 = arith.constant dense<0.000000e+00> : vector<128x128xf32>
    %146 = tpu.matmul %144, %145, %cst_102 {dimension_numbers = #tpu.dot_dimension_numbers<[1], [0], [0], [1], [0, 0, 1, 1], [], []>} : vector<128x256xbf16>, vector<256x128xbf16>, vector<128x128xf32> -> vector<128x128xf32>
    %147 = arith.addf %137, %146 : vector<128x128xf32>
    %c0_103 = arith.constant 0 : index
    %c281 = arith.constant 281 : index
    %c0_104 = arith.constant 0 : index
    %148 = vector.load %arg1[%c0_103, %c281, %c0_104] : memref<1x440x128xf32, #tpu.memory_space<vmem>>, vector<1x128x128xf32>
    %149 = vector.shape_cast %148 : vector<1x128x128xf32> to vector<128x128xf32>
    %150 = arith.truncf %149 : vector<128x128xf32> to vector<128x128xbf16>
    %c0_105 = arith.constant 0 : index
    %c282 = arith.constant 282 : index
    %c0_106 = arith.constant 0 : index
    %151 = vector.load %arg1[%c0_105, %c282, %c0_106] : memref<1x440x128xf32, #tpu.memory_space<vmem>>, vector<1x128x128xf32>
    %152 = vector.shape_cast %151 : vector<1x128x128xf32> to vector<128x128xf32>
    %153 = arith.truncf %152 : vector<128x128xf32> to vector<128x128xbf16>
    %154 = tpu.concatenate %150, %153 in 1 : vector<128x128xbf16>, vector<128x128xbf16> -> vector<128x256xbf16>
    %c512_107 = arith.constant 512 : index
    %c0_108 = arith.constant 0 : index
    %155 = vector.load %arg2[%c512_107, %c0_108] : memref<1280x128xbf16, #tpu.memory_space<vmem>>, vector<256x128xbf16>
    %cst_109 = arith.constant dense<0.000000e+00> : vector<128x128xf32>
    %156 = tpu.matmul %154, %155, %cst_109 {dimension_numbers = #tpu.dot_dimension_numbers<[1], [0], [0], [1], [0, 0, 1, 1], [], []>} : vector<128x256xbf16>, vector<256x128xbf16>, vector<128x128xf32> -> vector<128x128xf32>
    %157 = arith.addf %147, %156 : vector<128x128xf32>
    %c0_110 = arith.constant 0 : index
    %c304 = arith.constant 304 : index
    %c0_111 = arith.constant 0 : index
    %158 = vector.load %arg1[%c0_110, %c304, %c0_111] : memref<1x440x128xf32, #tpu.memory_space<vmem>>, vector<1x128x128xf32>
    %159 = vector.shape_cast %158 : vector<1x128x128xf32> to vector<128x128xf32>
    %160 = arith.truncf %159 : vector<128x128xf32> to vector<128x128xbf16>
    %c0_112 = arith.constant 0 : index
    %c305 = arith.constant 305 : index
    %c0_113 = arith.constant 0 : index
    %161 = vector.load %arg1[%c0_112, %c305, %c0_113] : memref<1x440x128xf32, #tpu.memory_space<vmem>>, vector<1x128x128xf32>
    %162 = vector.shape_cast %161 : vector<1x128x128xf32> to vector<128x128xf32>
    %163 = arith.truncf %162 : vector<128x128xf32> to vector<128x128xbf16>
    %164 = tpu.concatenate %160, %163 in 1 : vector<128x128xbf16>, vector<128x128xbf16> -> vector<128x256xbf16>
    %c768_114 = arith.constant 768 : index
    %c0_115 = arith.constant 0 : index
    %165 = vector.load %arg2[%c768_114, %c0_115] : memref<1280x128xbf16, #tpu.memory_space<vmem>>, vector<256x128xbf16>
    %cst_116 = arith.constant dense<0.000000e+00> : vector<128x128xf32>
    %166 = tpu.matmul %164, %165, %cst_116 {dimension_numbers = #tpu.dot_dimension_numbers<[1], [0], [0], [1], [0, 0, 1, 1], [], []>} : vector<128x256xbf16>, vector<256x128xbf16>, vector<128x128xf32> -> vector<128x128xf32>
    %167 = arith.addf %157, %166 : vector<128x128xf32>
    %c0_117 = arith.constant 0 : index
    %c306 = arith.constant 306 : index
    %c0_118 = arith.constant 0 : index
    %168 = vector.load %arg1[%c0_117, %c306, %c0_118] : memref<1x440x128xf32, #tpu.memory_space<vmem>>, vector<1x128x128xf32>
    %169 = vector.shape_cast %168 : vector<1x128x128xf32> to vector<128x128xf32>
    %170 = arith.truncf %169 : vector<128x128xf32> to vector<128x128xbf16>
    %c0_119 = arith.constant 0 : index
    %c306_120 = arith.constant 306 : index
    %c0_121 = arith.constant 0 : index
    %171 = vector.load %arg1[%c0_119, %c306_120, %c0_121] : memref<1x440x128xf32, #tpu.memory_space<vmem>>, vector<1x128x128xf32>
    %172 = vector.shape_cast %171 : vector<1x128x128xf32> to vector<128x128xf32>
    %173 = arith.truncf %172 : vector<128x128xf32> to vector<128x128xbf16>
    %174 = tpu.concatenate %170, %173 in 1 : vector<128x128xbf16>, vector<128x128xbf16> -> vector<128x256xbf16>
    %c1024_122 = arith.constant 1024 : index
    %c0_123 = arith.constant 0 : index
    %175 = vector.load %arg2[%c1024_122, %c0_123] : memref<1280x128xbf16, #tpu.memory_space<vmem>>, vector<256x128xbf16>
    %cst_124 = arith.constant dense<0.000000e+00> : vector<128x128xf32>
    %176 = tpu.matmul %174, %175, %cst_124 {dimension_numbers = #tpu.dot_dimension_numbers<[1], [0], [0], [1], [0, 0, 1, 1], [], []>} : vector<128x256xbf16>, vector<256x128xbf16>, vector<128x128xf32> -> vector<128x128xf32>
    %177 = arith.addf %167, %176 : vector<128x128xf32>
    %178 = vector.broadcast %4 : vector<1x128xf32> to vector<128x128xf32>
    %179 = arith.addf %177, %178 : vector<128x128xf32>
    %cst_125 = arith.constant 0.000000e+00 : f32
    %180 = vector.broadcast %cst_125 : f32 to vector<128x128xf32>
    %181 = arith.maximumf %179, %180 : vector<128x128xf32>
    %182 = vector.broadcast %5 : vector<1x128xf32> to vector<128x128xf32>
    %183 = arith.mulf %181, %182 : vector<128x128xf32>
    %184 = vector.broadcast %6 : vector<1x128xf32> to vector<128x128xf32>
    %185 = arith.addf %183, %184 : vector<128x128xf32>
    %c256_126 = arith.constant 256 : index
    %c0_127 = arith.constant 0 : index
    %186 = vector.load %arg13[%c256_126, %c0_127] : memref<384x128xf32, #tpu.memory_space<vmem>>, vector<128x128xf32>
    tpu.vector_store %arg13[%c256_126, %c0_127], %185 {strides = array<i32>} : memref<384x128xf32, #tpu.memory_space<vmem>>, vector<128x128xf32>,
    %c7 = arith.constant 7 : index
    %c0_128 = arith.constant 0 : index
    %187 = tpu.strided_load %arg13[%c7, %c0_128] {strides = array<i32: 2, 1>} : memref<384x128xf32, #tpu.memory_space<vmem>>, vector<8x128xf32>
    %c8 = arith.constant 8 : index
    %c0_129 = arith.constant 0 : index
    %188 = tpu.strided_load %arg13[%c8, %c0_129] {strides = array<i32: 2, 1>} : memref<384x128xf32, #tpu.memory_space<vmem>>, vector<8x128xf32>
    %c31 = arith.constant 31 : index
    %c0_130 = arith.constant 0 : index
    %189 = tpu.strided_load %arg13[%c31, %c0_130] {strides = array<i32: 2, 1>} : memref<384x128xf32, #tpu.memory_space<vmem>>, vector<8x128xf32>
    %c32 = arith.constant 32 : index
    %c0_131 = arith.constant 0 : index
    %190 = tpu.strided_load %arg13[%c32, %c0_131] {strides = array<i32: 2, 1>} : memref<384x128xf32, #tpu.memory_space<vmem>>, vector<8x128xf32>
    %191 = arith.maximumf %187, %188 : vector<8x128xf32>
    %192 = arith.maximumf %189, %190 : vector<8x128xf32>
    %193 = arith.maximumf %191, %192 : vector<8x128xf32>
    %c24_132 = arith.constant 24 : index
    %c0_133 = arith.constant 0 : index
    %194 = vector.load %arg14[%c24_132, %c0_133] : memref<168x128xf32, #tpu.memory_space<vmem>>, vector<8x128xf32>
    tpu.vector_store %arg14[%c24_132, %c0_133], %193 {strides = array<i32>} : memref<168x128xf32, #tpu.memory_space<vmem>>, vector<8x128xf32>,
    %c55 = arith.constant 55 : index
    %c0_134 = arith.constant 0 : index
    %195 = tpu.strided_load %arg13[%c55, %c0_134] {strides = array<i32: 2, 1>} : memref<384x128xf32, #tpu.memory_space<vmem>>, vector<8x128xf32>
    %c56 = arith.constant 56 : index
    %c0_135 = arith.constant 0 : index
    %196 = tpu.strided_load %arg13[%c56, %c0_135] {strides = array<i32: 2, 1>} : memref<384x128xf32, #tpu.memory_space<vmem>>, vector<8x128xf32>
    %c79 = arith.constant 79 : index
    %c0_136 = arith.constant 0 : index
    %197 = tpu.strided_load %arg13[%c79, %c0_136] {strides = array<i32: 2, 1>} : memref<384x128xf32, #tpu.memory_space<vmem>>, vector<8x128xf32>
    %c80 = arith.constant 80 : index
    %c0_137 = arith.constant 0 : index
    %198 = tpu.strided_load %arg13[%c80, %c0_137] {strides = array<i32: 2, 1>} : memref<384x128xf32, #tpu.memory_space<vmem>>, vector<8x128xf32>
    %199 = arith.maximumf %195, %196 : vector<8x128xf32>
    %200 = arith.maximumf %197, %198 : vector<8x128xf32>
    %201 = arith.maximumf %199, %200 : vector<8x128xf32>
    %c40 = arith.constant 40 : index
    %c0_138 = arith.constant 0 : index
    %202 = vector.load %arg14[%c40, %c0_138] : memref<168x128xf32, #tpu.memory_space<vmem>>, vector<8x128xf32>
    tpu.vector_store %arg14[%c40, %c0_138], %201 {strides = array<i32>} : memref<168x128xf32, #tpu.memory_space<vmem>>, vector<8x128xf32>,
    %c103 = arith.constant 103 : index
    %c0_139 = arith.constant 0 : index
    %203 = tpu.strided_load %arg13[%c103, %c0_139] {strides = array<i32: 2, 1>} : memref<384x128xf32, #tpu.memory_space<vmem>>, vector<8x128xf32>
    %c104 = arith.constant 104 : index
    %c0_140 = arith.constant 0 : index
    %204 = tpu.strided_load %arg13[%c104, %c0_140] {strides = array<i32: 2, 1>} : memref<384x128xf32, #tpu.memory_space<vmem>>, vector<8x128xf32>
    %c127 = arith.constant 127 : index
    %c0_141 = arith.constant 0 : index
    %205 = tpu.strided_load %arg13[%c127, %c0_141] {strides = array<i32: 2, 1>} : memref<384x128xf32, #tpu.memory_space<vmem>>, vector<8x128xf32>
    %c128_142 = arith.constant 128 : index
    %c0_143 = arith.constant 0 : index
    %206 = tpu.strided_load %arg13[%c128_142, %c0_143] {strides = array<i32: 2, 1>} : memref<384x128xf32, #tpu.memory_space<vmem>>, vector<8x128xf32>
    %207 = arith.maximumf %203, %204 : vector<8x128xf32>
    %208 = arith.maximumf %205, %206 : vector<8x128xf32>
    %209 = arith.maximumf %207, %208 : vector<8x128xf32>
    %c56_144 = arith.constant 56 : index
    %c0_145 = arith.constant 0 : index
    %210 = vector.load %arg14[%c56_144, %c0_145] : memref<168x128xf32, #tpu.memory_space<vmem>>, vector<8x128xf32>
    tpu.vector_store %arg14[%c56_144, %c0_145], %209 {strides = array<i32>} : memref<168x128xf32, #tpu.memory_space<vmem>>, vector<8x128xf32>,
    %c151 = arith.constant 151 : index
    %c0_146 = arith.constant 0 : index
    %211 = tpu.strided_load %arg13[%c151, %c0_146] {strides = array<i32: 2, 1>} : memref<384x128xf32, #tpu.memory_space<vmem>>, vector<8x128xf32>
    %c152_147 = arith.constant 152 : index
    %c0_148 = arith.constant 0 : index
    %212 = tpu.strided_load %arg13[%c152_147, %c0_148] {strides = array<i32: 2, 1>} : memref<384x128xf32, #tpu.memory_space<vmem>>, vector<8x128xf32>
    %c175 = arith.constant 175 : index
    %c0_149 = arith.constant 0 : index
    %213 = tpu.strided_load %arg13[%c175, %c0_149] {strides = array<i32: 2, 1>} : memref<384x128xf32, #tpu.memory_space<vmem>>, vector<8x128xf32>
    %c176_150 = arith.constant 176 : index
    %c0_151 = arith.constant 0 : index
    %214 = tpu.strided_load %arg13[%c176_150, %c0_151] {strides = array<i32: 2, 1>} : memref<384x128xf32, #tpu.memory_space<vmem>>, vector<8x128xf32>
    %215 = arith.maximumf %211, %212 : vector<8x128xf32>
    %216 = arith.maximumf %213, %214 : vector<8x128xf32>
    %217 = arith.maximumf %215, %216 : vector<8x128xf32>
    %c72 = arith.constant 72 : index
    %c0_152 = arith.constant 0 : index
    %218 = vector.load %arg14[%c72, %c0_152] : memref<168x128xf32, #tpu.memory_space<vmem>>, vector<8x128xf32>
    tpu.vector_store %arg14[%c72, %c0_152], %217 {strides = array<i32>} : memref<168x128xf32, #tpu.memory_space<vmem>>, vector<8x128xf32>,
    %c199 = arith.constant 199 : index
    %c0_153 = arith.constant 0 : index
    %219 = tpu.strided_load %arg13[%c199, %c0_153] {strides = array<i32: 2, 1>} : memref<384x128xf32, #tpu.memory_space<vmem>>, vector<8x128xf32>
    %c200 = arith.constant 200 : index
    %c0_154 = arith.constant 0 : index
    %220 = tpu.strided_load %arg13[%c200, %c0_154] {strides = array<i32: 2, 1>} : memref<384x128xf32, #tpu.memory_space<vmem>>, vector<8x128xf32>
    %c223 = arith.constant 223 : index
    %c0_155 = arith.constant 0 : index
    %221 = tpu.strided_load %arg13[%c223, %c0_155] {strides = array<i32: 2, 1>} : memref<384x128xf32, #tpu.memory_space<vmem>>, vector<8x128xf32>
    %c224 = arith.constant 224 : index
    %c0_156 = arith.constant 0 : index
    %222 = tpu.strided_load %arg13[%c224, %c0_156] {strides = array<i32: 2, 1>} : memref<384x128xf32, #tpu.memory_space<vmem>>, vector<8x128xf32>
    %223 = arith.maximumf %219, %220 : vector<8x128xf32>
    %224 = arith.maximumf %221, %222 : vector<8x128xf32>
    %225 = arith.maximumf %223, %224 : vector<8x128xf32>
    %c88 = arith.constant 88 : index
    %c0_157 = arith.constant 0 : index
    %226 = vector.load %arg14[%c88, %c0_157] : memref<168x128xf32, #tpu.memory_space<vmem>>, vector<8x128xf32>
    tpu.vector_store %arg14[%c88, %c0_157], %225 {strides = array<i32>} : memref<168x128xf32, #tpu.memory_space<vmem>>, vector<8x128xf32>,
    %c247 = arith.constant 247 : index
    %c0_158 = arith.constant 0 : index
    %227 = tpu.strided_load %arg13[%c247, %c0_158] {strides = array<i32: 2, 1>} : memref<384x128xf32, #tpu.memory_space<vmem>>, vector<8x128xf32>
    %c248 = arith.constant 248 : index
    %c0_159 = arith.constant 0 : index
    %228 = tpu.strided_load %arg13[%c248, %c0_159] {strides = array<i32: 2, 1>} : memref<384x128xf32, #tpu.memory_space<vmem>>, vector<8x128xf32>
    %c271 = arith.constant 271 : index
    %c0_160 = arith.constant 0 : index
    %229 = tpu.strided_load %arg13[%c271, %c0_160] {strides = array<i32: 2, 1>} : memref<384x128xf32, #tpu.memory_space<vmem>>, vector<8x128xf32>
    %c272 = arith.constant 272 : index
    %c0_161 = arith.constant 0 : index
    %230 = tpu.strided_load %arg13[%c272, %c0_161] {strides = array<i32: 2, 1>} : memref<384x128xf32, #tpu.memory_space<vmem>>, vector<8x128xf32>
    %231 = arith.maximumf %227, %228 : vector<8x128xf32>
    %232 = arith.maximumf %229, %230 : vector<8x128xf32>
    %233 = arith.maximumf %231, %232 : vector<8x128xf32>
    %c104_162 = arith.constant 104 : index
    %c0_163 = arith.constant 0 : index
    %234 = vector.load %arg14[%c104_162, %c0_163] : memref<168x128xf32, #tpu.memory_space<vmem>>, vector<8x128xf32>
    tpu.vector_store %arg14[%c104_162, %c0_163], %233 {strides = array<i32>} : memref<168x128xf32, #tpu.memory_space<vmem>>, vector<8x128xf32>,
    %c295 = arith.constant 295 : index
    %c0_164 = arith.constant 0 : index
    %235 = tpu.strided_load %arg13[%c295, %c0_164] {strides = array<i32: 2, 1>} : memref<384x128xf32, #tpu.memory_space<vmem>>, vector<8x128xf32>
    %c296 = arith.constant 296 : index
    %c0_165 = arith.constant 0 : index
    %236 = tpu.strided_load %arg13[%c296, %c0_165] {strides = array<i32: 2, 1>} : memref<384x128xf32, #tpu.memory_space<vmem>>, vector<8x128xf32>
    %c319 = arith.constant 319 : index
    %c0_166 = arith.constant 0 : index
    %237 = tpu.strided_load %arg13[%c319, %c0_166] {strides = array<i32: 2, 1>} : memref<384x128xf32, #tpu.memory_space<vmem>>, vector<8x128xf32>
    %c320 = arith.constant 320 : index
    %c0_167 = arith.constant 0 : index
    %238 = tpu.strided_load %arg13[%c320, %c0_167] {strides = array<i32: 2, 1>} : memref<384x128xf32, #tpu.memory_space<vmem>>, vector<8x128xf32>
    %239 = arith.maximumf %235, %236 : vector<8x128xf32>
    %240 = arith.maximumf %237, %238 : vector<8x128xf32>
    %241 = arith.maximumf %239, %240 : vector<8x128xf32>
    %c120 = arith.constant 120 : index
    %c0_168 = arith.constant 0 : index
    %242 = vector.load %arg14[%c120, %c0_168] : memref<168x128xf32, #tpu.memory_space<vmem>>, vector<8x128xf32>
    tpu.vector_store %arg14[%c120, %c0_168], %241 {strides = array<i32>} : memref<168x128xf32, #tpu.memory_space<vmem>>, vector<8x128xf32>,
    %c343 = arith.constant 343 : index
    %c0_169 = arith.constant 0 : index
    %243 = tpu.strided_load %arg13[%c343, %c0_169] {strides = array<i32: 2, 1>} : memref<384x128xf32, #tpu.memory_space<vmem>>, vector<8x128xf32>
    %c344 = arith.constant 344 : index
    %c0_170 = arith.constant 0 : index
    %244 = tpu.strided_load %arg13[%c344, %c0_170] {strides = array<i32: 2, 1>} : memref<384x128xf32, #tpu.memory_space<vmem>>, vector<8x128xf32>
    %c367 = arith.constant 367 : index
    %c0_171 = arith.constant 0 : index
    %245 = tpu.strided_load %arg13[%c367, %c0_171] {strides = array<i32: 2, 1>} : memref<384x128xf32, #tpu.memory_space<vmem>>, vector<8x128xf32>
    %c368 = arith.constant 368 : index
    %c0_172 = arith.constant 0 : index
    %246 = tpu.strided_load %arg13[%c368, %c0_172] {strides = array<i32: 2, 1>} : memref<384x128xf32, #tpu.memory_space<vmem>>, vector<8x128xf32>
    %247 = arith.maximumf %243, %244 : vector<8x128xf32>
    %248 = arith.maximumf %245, %246 : vector<8x128xf32>
    %249 = arith.maximumf %247, %248 : vector<8x128xf32>
    %c136 = arith.constant 136 : index
    %c0_173 = arith.constant 0 : index
    %250 = vector.load %arg14[%c136, %c0_173] : memref<168x128xf32, #tpu.memory_space<vmem>>, vector<8x128xf32>
    tpu.vector_store %arg14[%c136, %c0_173], %249 {strides = array<i32>} : memref<168x128xf32, #tpu.memory_space<vmem>>, vector<8x128xf32>,
    %c0_174 = arith.constant 0 : index
    %c0_175 = arith.constant 0 : index
    %251 = vector.load %arg5[%c0_174, %c0_175] : memref<3x128xf32, #tpu.memory_space<vmem>>, vector<1x128xf32>
    %c1_176 = arith.constant 1 : index
    %c0_177 = arith.constant 0 : index
    %252 = vector.load %arg5[%c1_176, %c0_177] : memref<3x128xf32, #tpu.memory_space<vmem>>, vector<1x128xf32>
    %c2_178 = arith.constant 2 : index
    %c0_179 = arith.constant 0 : index
    %253 = vector.load %arg5[%c2_178, %c0_179] : memref<3x128xf32, #tpu.memory_space<vmem>>, vector<1x128xf32>
    %cst_180 = arith.constant 0.000000e+00 : f32
    %254 = vector.broadcast %cst_180 : f32 to vector<128x128xf32>
    %c0_181 = arith.constant 0 : index
    %c0_182 = arith.constant 0 : index
    %255 = vector.load %arg14[%c0_181, %c0_182] : memref<168x128xf32, #tpu.memory_space<vmem>>, vector<128x128xf32>
    %256 = arith.truncf %255 : vector<128x128xf32> to vector<128x128xbf16>
    %c1_183 = arith.constant 1 : index
    %c0_184 = arith.constant 0 : index
    %257 = vector.load %arg14[%c1_183, %c0_184] : memref<168x128xf32, #tpu.memory_space<vmem>>, vector<128x128xf32>
    %258 = arith.truncf %257 : vector<128x128xf32> to vector<128x128xbf16>
    %259 = tpu.concatenate %256, %258 in 1 : vector<128x128xbf16>, vector<128x128xbf16> -> vector<128x256xbf16>
    %c0_185 = arith.constant 0 : index
    %c0_186 = arith.constant 0 : index
    %260 = vector.load %arg4[%c0_185, %c0_186] : memref<1280x128xbf16, #tpu.memory_space<vmem>>, vector<256x128xbf16>
    %cst_187 = arith.constant dense<0.000000e+00> : vector<128x128xf32>
    %261 = tpu.matmul %259, %260, %cst_187 {dimension_numbers = #tpu.dot_dimension_numbers<[1], [0], [0], [1], [0, 0, 1, 1], [], []>} : vector<128x256xbf16>, vector<256x128xbf16>, vector<128x128xf32> -> vector<128x128xf32>
    %262 = arith.addf %254, %261 : vector<128x128xf32>
    %c2_188 = arith.constant 2 : index
    %c0_189 = arith.constant 0 : index
    %263 = vector.load %arg14[%c2_188, %c0_189] : memref<168x128xf32, #tpu.memory_space<vmem>>, vector<128x128xf32>
    %264 = arith.truncf %263 : vector<128x128xf32> to vector<128x128xbf16>
    %c16 = arith.constant 16 : index
    %c0_190 = arith.constant 0 : index
    %265 = vector.load %arg14[%c16, %c0_190] : memref<168x128xf32, #tpu.memory_space<vmem>>, vector<128x128xf32>
    %266 = arith.truncf %265 : vector<128x128xf32> to vector<128x128xbf16>
    %267 = tpu.concatenate %264, %266 in 1 : vector<128x128xbf16>, vector<128x128xbf16> -> vector<128x256xbf16>
    %c256_191 = arith.constant 256 : index
    %c0_192 = arith.constant 0 : index
    %268 = vector.load %arg4[%c256_191, %c0_192] : memref<1280x128xbf16, #tpu.memory_space<vmem>>, vector<256x128xbf16>
    %cst_193 = arith.constant dense<0.000000e+00> : vector<128x128xf32>
    %269 = tpu.matmul %267, %268, %cst_193 {dimension_numbers = #tpu.dot_dimension_numbers<[1], [0], [0], [1], [0, 0, 1, 1], [], []>} : vector<128x256xbf16>, vector<256x128xbf16>, vector<128x128xf32> -> vector<128x128xf32>
    %270 = arith.addf %262, %269 : vector<128x128xf32>
    %c17 = arith.constant 17 : index
    %c0_194 = arith.constant 0 : index
    %271 = vector.load %arg14[%c17, %c0_194] : memref<168x128xf32, #tpu.memory_space<vmem>>, vector<128x128xf32>
    %272 = arith.truncf %271 : vector<128x128xf32> to vector<128x128xbf16>
    %c18 = arith.constant 18 : index
    %c0_195 = arith.constant 0 : index
    %273 = vector.load %arg14[%c18, %c0_195] : memref<168x128xf32, #tpu.memory_space<vmem>>, vector<128x128xf32>
    %274 = arith.truncf %273 : vector<128x128xf32> to vector<128x128xbf16>
    %275 = tpu.concatenate %272, %274 in 1 : vector<128x128xbf16>, vector<128x128xbf16> -> vector<128x256xbf16>
    %c512_196 = arith.constant 512 : index
    %c0_197 = arith.constant 0 : index
    %276 = vector.load %arg4[%c512_196, %c0_197] : memref<1280x128xbf16, #tpu.memory_space<vmem>>, vector<256x128xbf16>
    %cst_198 = arith.constant dense<0.000000e+00> : vector<128x128xf32>
    %277 = tpu.matmul %275, %276, %cst_198 {dimension_numbers = #tpu.dot_dimension_numbers<[1], [0], [0], [1], [0, 0, 1, 1], [], []>} : vector<128x256xbf16>, vector<256x128xbf16>, vector<128x128xf32> -> vector<128x128xf32>
    %278 = arith.addf %270, %277 : vector<128x128xf32>
    %c32_199 = arith.constant 32 : index
    %c0_200 = arith.constant 0 : index
    %279 = vector.load %arg14[%c32_199, %c0_200] : memref<168x128xf32, #tpu.memory_space<vmem>>, vector<128x128xf32>
    %280 = arith.truncf %279 : vector<128x128xf32> to vector<128x128xbf16>
    %c33 = arith.constant 33 : index
    %c0_201 = arith.constant 0 : index
    %281 = vector.load %arg14[%c33, %c0_201] : memref<168x128xf32, #tpu.memory_space<vmem>>, vector<128x128xf32>
    %282 = arith.truncf %281 : vector<128x128xf32> to vector<128x128xbf16>
    %283 = tpu.concatenate %280, %282 in 1 : vector<128x128xbf16>, vector<128x128xbf16> -> vector<128x256xbf16>
    %c768_202 = arith.constant 768 : index
    %c0_203 = arith.constant 0 : index
    %284 = vector.load %arg4[%c768_202, %c0_203] : memref<1280x128xbf16, #tpu.memory_space<vmem>>, vector<256x128xbf16>
    %cst_204 = arith.constant dense<0.000000e+00> : vector<128x128xf32>
    %285 = tpu.matmul %283, %284, %cst_204 {dimension_numbers = #tpu.dot_dimension_numbers<[1], [0], [0], [1], [0, 0, 1, 1], [], []>} : vector<128x256xbf16>, vector<256x128xbf16>, vector<128x128xf32> -> vector<128x128xf32>
    %286 = arith.addf %278, %285 : vector<128x128xf32>
    %c34 = arith.constant 34 : index
    %c0_205 = arith.constant 0 : index
    %287 = vector.load %arg14[%c34, %c0_205] : memref<168x128xf32, #tpu.memory_space<vmem>>, vector<128x128xf32>
    %288 = arith.truncf %287 : vector<128x128xf32> to vector<128x128xbf16>
    %c34_206 = arith.constant 34 : index
    %c0_207 = arith.constant 0 : index
    %289 = vector.load %arg14[%c34_206, %c0_207] : memref<168x128xf32, #tpu.memory_space<vmem>>, vector<128x128xf32>
    %290 = arith.truncf %289 : vector<128x128xf32> to vector<128x128xbf16>
    %291 = tpu.concatenate %288, %290 in 1 : vector<128x128xbf16>, vector<128x128xbf16> -> vector<128x256xbf16>
    %c1024_208 = arith.constant 1024 : index
    %c0_209 = arith.constant 0 : index
    %292 = vector.load %arg4[%c1024_208, %c0_209] : memref<1280x128xbf16, #tpu.memory_space<vmem>>, vector<256x128xbf16>
    %cst_210 = arith.constant dense<0.000000e+00> : vector<128x128xf32>
    %293 = tpu.matmul %291, %292, %cst_210 {dimension_numbers = #tpu.dot_dimension_numbers<[1], [0], [0], [1], [0, 0, 1, 1], [], []>} : vector<128x256xbf16>, vector<256x128xbf16>, vector<128x128xf32> -> vector<128x128xf32>
    %294 = arith.addf %286, %293 : vector<128x128xf32>
    %295 = vector.broadcast %251 : vector<1x128xf32> to vector<128x128xf32>
    %296 = arith.addf %294, %295 : vector<128x128xf32>
    %cst_211 = arith.constant 0.000000e+00 : f32
    %297 = vector.broadcast %cst_211 : f32 to vector<128x128xf32>
    %298 = arith.maximumf %296, %297 : vector<128x128xf32>
    %299 = vector.broadcast %252 : vector<1x128xf32> to vector<128x128xf32>
    %300 = arith.mulf %298, %299 : vector<128x128xf32>
    %301 = vector.broadcast %253 : vector<1x128xf32> to vector<128x128xf32>
    %302 = arith.addf %300, %301 : vector<128x128xf32>
    %c0_212 = arith.constant 0 : index
    %c0_213 = arith.constant 0 : index
    %303 = vector.load %arg15[%c0_212, %c0_213] : memref<128x128xf32, #tpu.memory_space<vmem>>, vector<128x128xf32>
    tpu.vector_store %arg15[%c0_212, %c0_213], %302 {strides = array<i32>} : memref<128x128xf32, #tpu.memory_space<vmem>>, vector<128x128xf32>,
    %c7_214 = arith.constant 7 : index
    %c0_215 = arith.constant 0 : index
    %304 = tpu.strided_load %arg15[%c7_214, %c0_215] {strides = array<i32: 2, 1>} : memref<128x128xf32, #tpu.memory_space<vmem>>, vector<4x128xf32>
    %c8_216 = arith.constant 8 : index
    %c0_217 = arith.constant 0 : index
    %305 = tpu.strided_load %arg15[%c8_216, %c0_217] {strides = array<i32: 2, 1>} : memref<128x128xf32, #tpu.memory_space<vmem>>, vector<4x128xf32>
    %c23 = arith.constant 23 : index
    %c0_218 = arith.constant 0 : index
    %306 = tpu.strided_load %arg15[%c23, %c0_218] {strides = array<i32: 2, 1>} : memref<128x128xf32, #tpu.memory_space<vmem>>, vector<4x128xf32>
    %c24_219 = arith.constant 24 : index
    %c0_220 = arith.constant 0 : index
    %307 = tpu.strided_load %arg15[%c24_219, %c0_220] {strides = array<i32: 2, 1>} : memref<128x128xf32, #tpu.memory_space<vmem>>, vector<4x128xf32>
    %308 = arith.maximumf %304, %305 : vector<4x128xf32>
    %309 = arith.maximumf %306, %307 : vector<4x128xf32>
    %310 = arith.maximumf %308, %309 : vector<4x128xf32>
    %c16_221 = arith.constant 16 : index
    %c0_222 = arith.constant 0 : index
    %311 = vector.load %arg16[%c16_221, %c0_222] : memref<64x128xf32, #tpu.memory_space<vmem>>, vector<4x128xf32>
    tpu.vector_store %arg16[%c16_221, %c0_222], %310 {strides = array<i32>} : memref<64x128xf32, #tpu.memory_space<vmem>>, vector<4x128xf32>,
    %c39 = arith.constant 39 : index
    %c0_223 = arith.constant 0 : index
    %312 = tpu.strided_load %arg15[%c39, %c0_223] {strides = array<i32: 2, 1>} : memref<128x128xf32, #tpu.memory_space<vmem>>, vector<4x128xf32>
    %c40_224 = arith.constant 40 : index
    %c0_225 = arith.constant 0 : index
    %313 = tpu.strided_load %arg15[%c40_224, %c0_225] {strides = array<i32: 2, 1>} : memref<128x128xf32, #tpu.memory_space<vmem>>, vector<4x128xf32>
    %c55_226 = arith.constant 55 : index
    %c0_227 = arith.constant 0 : index
    %314 = tpu.strided_load %arg15[%c55_226, %c0_227] {strides = array<i32: 2, 1>} : memref<128x128xf32, #tpu.memory_space<vmem>>, vector<4x128xf32>
    %c56_228 = arith.constant 56 : index
    %c0_229 = arith.constant 0 : index
    %315 = tpu.strided_load %arg15[%c56_228, %c0_229] {strides = array<i32: 2, 1>} : memref<128x128xf32, #tpu.memory_space<vmem>>, vector<4x128xf32>
    %316 = arith.maximumf %312, %313 : vector<4x128xf32>
    %317 = arith.maximumf %314, %315 : vector<4x128xf32>
    %318 = arith.maximumf %316, %317 : vector<4x128xf32>
    %c24_230 = arith.constant 24 : index
    %c0_231 = arith.constant 0 : index
    %319 = vector.load %arg16[%c24_230, %c0_231] : memref<64x128xf32, #tpu.memory_space<vmem>>, vector<4x128xf32>
    tpu.vector_store %arg16[%c24_230, %c0_231], %318 {strides = array<i32>} : memref<64x128xf32, #tpu.memory_space<vmem>>, vector<4x128xf32>,
    %c71 = arith.constant 71 : index
    %c0_232 = arith.constant 0 : index
    %320 = tpu.strided_load %arg15[%c71, %c0_232] {strides = array<i32: 2, 1>} : memref<128x128xf32, #tpu.memory_space<vmem>>, vector<4x128xf32>
    %c72_233 = arith.constant 72 : index
    %c0_234 = arith.constant 0 : index
    %321 = tpu.strided_load %arg15[%c72_233, %c0_234] {strides = array<i32: 2, 1>} : memref<128x128xf32, #tpu.memory_space<vmem>>, vector<4x128xf32>
    %c87 = arith.constant 87 : index
    %c0_235 = arith.constant 0 : index
    %322 = tpu.strided_load %arg15[%c87, %c0_235] {strides = array<i32: 2, 1>} : memref<128x128xf32, #tpu.memory_space<vmem>>, vector<4x128xf32>
    %c88_236 = arith.constant 88 : index
    %c0_237 = arith.constant 0 : index
    %323 = tpu.strided_load %arg15[%c88_236, %c0_237] {strides = array<i32: 2, 1>} : memref<128x128xf32, #tpu.memory_space<vmem>>, vector<4x128xf32>
    %324 = arith.maximumf %320, %321 : vector<4x128xf32>
    %325 = arith.maximumf %322, %323 : vector<4x128xf32>
    %326 = arith.maximumf %324, %325 : vector<4x128xf32>
    %c32_238 = arith.constant 32 : index
    %c0_239 = arith.constant 0 : index
    %327 = vector.load %arg16[%c32_238, %c0_239] : memref<64x128xf32, #tpu.memory_space<vmem>>, vector<4x128xf32>
    tpu.vector_store %arg16[%c32_238, %c0_239], %326 {strides = array<i32>} : memref<64x128xf32, #tpu.memory_space<vmem>>, vector<4x128xf32>,
    %c103_240 = arith.constant 103 : index
    %c0_241 = arith.constant 0 : index
    %328 = tpu.strided_load %arg15[%c103_240, %c0_241] {strides = array<i32: 2, 1>} : memref<128x128xf32, #tpu.memory_space<vmem>>, vector<4x128xf32>
    %c104_242 = arith.constant 104 : index
    %c0_243 = arith.constant 0 : index
    %329 = tpu.strided_load %arg15[%c104_242, %c0_243] {strides = array<i32: 2, 1>} : memref<128x128xf32, #tpu.memory_space<vmem>>, vector<4x128xf32>
    %c119 = arith.constant 119 : index
    %c0_244 = arith.constant 0 : index
    %330 = tpu.strided_load %arg15[%c119, %c0_244] {strides = array<i32: 2, 1>} : memref<128x128xf32, #tpu.memory_space<vmem>>, vector<4x128xf32>
    %c120_245 = arith.constant 120 : index
    %c0_246 = arith.constant 0 : index
    %331 = tpu.strided_load %arg15[%c120_245, %c0_246] {strides = array<i32: 2, 1>} : memref<128x128xf32, #tpu.memory_space<vmem>>, vector<4x128xf32>
    %332 = arith.maximumf %328, %329 : vector<4x128xf32>
    %333 = arith.maximumf %330, %331 : vector<4x128xf32>
    %334 = arith.maximumf %332, %333 : vector<4x128xf32>
    %c40_247 = arith.constant 40 : index
    %c0_248 = arith.constant 0 : index
    %335 = vector.load %arg16[%c40_247, %c0_248] : memref<64x128xf32, #tpu.memory_space<vmem>>, vector<4x128xf32>
    tpu.vector_store %arg16[%c40_247, %c0_248], %334 {strides = array<i32>} : memref<64x128xf32, #tpu.memory_space<vmem>>, vector<4x128xf32>,
    %c0_249 = arith.constant 0 : index
    %c0_250 = arith.constant 0 : index
    %336 = vector.load %arg7[%c0_249, %c0_250] : memref<3x128xf32, #tpu.memory_space<vmem>>, vector<1x128xf32>
    %c1_251 = arith.constant 1 : index
    %c0_252 = arith.constant 0 : index
    %337 = vector.load %arg7[%c1_251, %c0_252] : memref<3x128xf32, #tpu.memory_space<vmem>>, vector<1x128xf32>
    %c2_253 = arith.constant 2 : index
    %c0_254 = arith.constant 0 : index
    %338 = vector.load %arg7[%c2_253, %c0_254] : memref<3x128xf32, #tpu.memory_space<vmem>>, vector<1x128xf32>
    %cst_255 = arith.constant 0.000000e+00 : f32
    %339 = vector.broadcast %cst_255 : f32 to vector<40x128xf32>
    %c0_256 = arith.constant 0 : index
    %c0_257 = arith.constant 0 : index
    %340 = vector.load %arg16[%c0_256, %c0_257] : memref<64x128xf32, #tpu.memory_space<vmem>>, vector<40x128xf32>
    %341 = arith.truncf %340 : vector<40x128xf32> to vector<40x128xbf16>
    %c1_258 = arith.constant 1 : index
    %c0_259 = arith.constant 0 : index
    %342 = vector.load %arg16[%c1_258, %c0_259] : memref<64x128xf32, #tpu.memory_space<vmem>>, vector<40x128xf32>
    %343 = arith.truncf %342 : vector<40x128xf32> to vector<40x128xbf16>
    %344 = tpu.concatenate %341, %343 in 1 : vector<40x128xbf16>, vector<40x128xbf16> -> vector<40x256xbf16>
    %c0_260 = arith.constant 0 : index
    %c0_261 = arith.constant 0 : index
    %345 = vector.load %arg6[%c0_260, %c0_261] : memref<1280x128xbf16, #tpu.memory_space<vmem>>, vector<256x128xbf16>
    %cst_262 = arith.constant dense<0.000000e+00> : vector<40x128xf32>
    %346 = tpu.matmul %344, %345, %cst_262 {dimension_numbers = #tpu.dot_dimension_numbers<[1], [0], [0], [1], [0, 0, 1, 1], [], []>} : vector<40x256xbf16>, vector<256x128xbf16>, vector<40x128xf32> -> vector<40x128xf32>
    %347 = arith.addf %339, %346 : vector<40x128xf32>
    %c2_263 = arith.constant 2 : index
    %c0_264 = arith.constant 0 : index
    %348 = vector.load %arg16[%c2_263, %c0_264] : memref<64x128xf32, #tpu.memory_space<vmem>>, vector<40x128xf32>
    %349 = arith.truncf %348 : vector<40x128xf32> to vector<40x128xbf16>
    %c8_265 = arith.constant 8 : index
    %c0_266 = arith.constant 0 : index
    %350 = vector.load %arg16[%c8_265, %c0_266] : memref<64x128xf32, #tpu.memory_space<vmem>>, vector<40x128xf32>
    %351 = arith.truncf %350 : vector<40x128xf32> to vector<40x128xbf16>
    %352 = tpu.concatenate %349, %351 in 1 : vector<40x128xbf16>, vector<40x128xbf16> -> vector<40x256xbf16>
    %c256_267 = arith.constant 256 : index
    %c0_268 = arith.constant 0 : index
    %353 = vector.load %arg6[%c256_267, %c0_268] : memref<1280x128xbf16, #tpu.memory_space<vmem>>, vector<256x128xbf16>
    %cst_269 = arith.constant dense<0.000000e+00> : vector<40x128xf32>
    %354 = tpu.matmul %352, %353, %cst_269 {dimension_numbers = #tpu.dot_dimension_numbers<[1], [0], [0], [1], [0, 0, 1, 1], [], []>} : vector<40x256xbf16>, vector<256x128xbf16>, vector<40x128xf32> -> vector<40x128xf32>
    %355 = arith.addf %347, %354 : vector<40x128xf32>
    %c9 = arith.constant 9 : index
    %c0_270 = arith.constant 0 : index
    %356 = vector.load %arg16[%c9, %c0_270] : memref<64x128xf32, #tpu.memory_space<vmem>>, vector<40x128xf32>
    %357 = arith.truncf %356 : vector<40x128xf32> to vector<40x128xbf16>
    %c10 = arith.constant 10 : index
    %c0_271 = arith.constant 0 : index
    %358 = vector.load %arg16[%c10, %c0_271] : memref<64x128xf32, #tpu.memory_space<vmem>>, vector<40x128xf32>
    %359 = arith.truncf %358 : vector<40x128xf32> to vector<40x128xbf16>
    %360 = tpu.concatenate %357, %359 in 1 : vector<40x128xbf16>, vector<40x128xbf16> -> vector<40x256xbf16>
    %c512_272 = arith.constant 512 : index
    %c0_273 = arith.constant 0 : index
    %361 = vector.load %arg6[%c512_272, %c0_273] : memref<1280x128xbf16, #tpu.memory_space<vmem>>, vector<256x128xbf16>
    %cst_274 = arith.constant dense<0.000000e+00> : vector<40x128xf32>
    %362 = tpu.matmul %360, %361, %cst_274 {dimension_numbers = #tpu.dot_dimension_numbers<[1], [0], [0], [1], [0, 0, 1, 1], [], []>} : vector<40x256xbf16>, vector<256x128xbf16>, vector<40x128xf32> -> vector<40x128xf32>
    %363 = arith.addf %355, %362 : vector<40x128xf32>
    %c16_275 = arith.constant 16 : index
    %c0_276 = arith.constant 0 : index
    %364 = vector.load %arg16[%c16_275, %c0_276] : memref<64x128xf32, #tpu.memory_space<vmem>>, vector<40x128xf32>
    %365 = arith.truncf %364 : vector<40x128xf32> to vector<40x128xbf16>
    %c17_277 = arith.constant 17 : index
    %c0_278 = arith.constant 0 : index
    %366 = vector.load %arg16[%c17_277, %c0_278] : memref<64x128xf32, #tpu.memory_space<vmem>>, vector<40x128xf32>
    %367 = arith.truncf %366 : vector<40x128xf32> to vector<40x128xbf16>
    %368 = tpu.concatenate %365, %367 in 1 : vector<40x128xbf16>, vector<40x128xbf16> -> vector<40x256xbf16>
    %c768_279 = arith.constant 768 : index
    %c0_280 = arith.constant 0 : index
    %369 = vector.load %arg6[%c768_279, %c0_280] : memref<1280x128xbf16, #tpu.memory_space<vmem>>, vector<256x128xbf16>
    %cst_281 = arith.constant dense<0.000000e+00> : vector<40x128xf32>
    %370 = tpu.matmul %368, %369, %cst_281 {dimension_numbers = #tpu.dot_dimension_numbers<[1], [0], [0], [1], [0, 0, 1, 1], [], []>} : vector<40x256xbf16>, vector<256x128xbf16>, vector<40x128xf32> -> vector<40x128xf32>
    %371 = arith.addf %363, %370 : vector<40x128xf32>
    %c18_282 = arith.constant 18 : index
    %c0_283 = arith.constant 0 : index
    %372 = vector.load %arg16[%c18_282, %c0_283] : memref<64x128xf32, #tpu.memory_space<vmem>>, vector<40x128xf32>
    %373 = arith.truncf %372 : vector<40x128xf32> to vector<40x128xbf16>
    %c18_284 = arith.constant 18 : index
    %c0_285 = arith.constant 0 : index
    %374 = vector.load %arg16[%c18_284, %c0_285] : memref<64x128xf32, #tpu.memory_space<vmem>>, vector<40x128xf32>
    %375 = arith.truncf %374 : vector<40x128xf32> to vector<40x128xbf16>
    %376 = tpu.concatenate %373, %375 in 1 : vector<40x128xbf16>, vector<40x128xbf16> -> vector<40x256xbf16>
    %c1024_286 = arith.constant 1024 : index
    %c0_287 = arith.constant 0 : index
    %377 = vector.load %arg6[%c1024_286, %c0_287] : memref<1280x128xbf16, #tpu.memory_space<vmem>>, vector<256x128xbf16>
    %cst_288 = arith.constant dense<0.000000e+00> : vector<40x128xf32>
    %378 = tpu.matmul %376, %377, %cst_288 {dimension_numbers = #tpu.dot_dimension_numbers<[1], [0], [0], [1], [0, 0, 1, 1], [], []>} : vector<40x256xbf16>, vector<256x128xbf16>, vector<40x128xf32> -> vector<40x128xf32>
    %379 = arith.addf %371, %378 : vector<40x128xf32>
    %380 = vector.broadcast %336 : vector<1x128xf32> to vector<40x128xf32>
    %381 = arith.addf %379, %380 : vector<40x128xf32>
    %cst_289 = arith.constant 0.000000e+00 : f32
    %382 = vector.broadcast %cst_289 : f32 to vector<40x128xf32>
    %383 = arith.maximumf %381, %382 : vector<40x128xf32>
    %384 = vector.broadcast %337 : vector<1x128xf32> to vector<40x128xf32>
    %385 = arith.mulf %383, %384 : vector<40x128xf32>
    %386 = vector.broadcast %338 : vector<1x128xf32> to vector<40x128xf32>
    %387 = arith.addf %385, %386 : vector<40x128xf32>
    %c0_290 = arith.constant 0 : index
    %c0_291 = arith.constant 0 : index
    %388 = vector.load %arg17[%c0_290, %c0_291] : memref<40x128xf32, #tpu.memory_space<vmem>>, vector<40x128xf32>
    tpu.vector_store %arg17[%c0_290, %c0_291], %387 {strides = array<i32>} : memref<40x128xf32, #tpu.memory_space<vmem>>, vector<40x128xf32>,
    %c7_292 = arith.constant 7 : index
    %c0_293 = arith.constant 0 : index
    %389 = tpu.strided_load %arg17[%c7_292, %c0_293] {strides = array<i32: 2, 1>} : memref<40x128xf32, #tpu.memory_space<vmem>>, vector<2x128xf32>
    %c8_294 = arith.constant 8 : index
    %c0_295 = arith.constant 0 : index
    %390 = tpu.strided_load %arg17[%c8_294, %c0_295] {strides = array<i32: 2, 1>} : memref<40x128xf32, #tpu.memory_space<vmem>>, vector<2x128xf32>
    %c15 = arith.constant 15 : index
    %c0_296 = arith.constant 0 : index
    %391 = tpu.strided_load %arg17[%c15, %c0_296] {strides = array<i32: 2, 1>} : memref<40x128xf32, #tpu.memory_space<vmem>>, vector<2x128xf32>
    %c16_297 = arith.constant 16 : index
    %c0_298 = arith.constant 0 : index
    %392 = tpu.strided_load %arg17[%c16_297, %c0_298] {strides = array<i32: 2, 1>} : memref<40x128xf32, #tpu.memory_space<vmem>>, vector<2x128xf32>
    %393 = arith.maximumf %389, %390 : vector<2x128xf32>
    %394 = arith.maximumf %391, %392 : vector<2x128xf32>
    %395 = arith.maximumf %393, %394 : vector<2x128xf32>
    %396 = vector.extract_strided_slice %395 {offsets = [0, 0], sizes = [1, 128], strides = [1, 1]} : vector<2x128xf32> to vector<1x128xf32>
    %397 = vector.extract_strided_slice %395 {offsets = [1, 0], sizes = [1, 128], strides = [1, 1]} : vector<2x128xf32> to vector<1x128xf32>
    %c23_299 = arith.constant 23 : index
    %c0_300 = arith.constant 0 : index
    %398 = tpu.strided_load %arg17[%c23_299, %c0_300] {strides = array<i32: 2, 1>} : memref<40x128xf32, #tpu.memory_space<vmem>>, vector<2x128xf32>
    %c24_301 = arith.constant 24 : index
    %c0_302 = arith.constant 0 : index
    %399 = tpu.strided_load %arg17[%c24_301, %c0_302] {strides = array<i32: 2, 1>} : memref<40x128xf32, #tpu.memory_space<vmem>>, vector<2x128xf32>
    %c31_303 = arith.constant 31 : index
    %c0_304 = arith.constant 0 : index
    %400 = tpu.strided_load %arg17[%c31_303, %c0_304] {strides = array<i32: 2, 1>} : memref<40x128xf32, #tpu.memory_space<vmem>>, vector<2x128xf32>
    %c32_305 = arith.constant 32 : index
    %c0_306 = arith.constant 0 : index
    %401 = tpu.strided_load %arg17[%c32_305, %c0_306] {strides = array<i32: 2, 1>} : memref<40x128xf32, #tpu.memory_space<vmem>>, vector<2x128xf32>
    %402 = arith.maximumf %398, %399 : vector<2x128xf32>
    %403 = arith.maximumf %400, %401 : vector<2x128xf32>
    %404 = arith.maximumf %402, %403 : vector<2x128xf32>
    %405 = vector.extract_strided_slice %404 {offsets = [0, 0], sizes = [1, 128], strides = [1, 1]} : vector<2x128xf32> to vector<1x128xf32>
    %406 = vector.extract_strided_slice %404 {offsets = [1, 0], sizes = [1, 128], strides = [1, 1]} : vector<2x128xf32> to vector<1x128xf32>
    %407 = tpu.concatenate %396, %397, %405, %406 in 1 : vector<1x128xf32>, vector<1x128xf32>, vector<1x128xf32>, vector<1x128xf32> -> vector<1x512xf32>
    %408 = arith.truncf %407 : vector<1x512xf32> to vector<1x512xbf16>
    %c0_307 = arith.constant 0 : index
    %c0_308 = arith.constant 0 : index
    %409 = vector.load %arg8[%c0_307, %c0_308] : memref<512x1024xbf16, #tpu.memory_space<vmem>>, vector<512x1024xbf16>
    %cst_309 = arith.constant dense<0.000000e+00> : vector<1x1024xf32>
    %410 = tpu.matmul %408, %409, %cst_309 {dimension_numbers = #tpu.dot_dimension_numbers<[1], [0], [0], [1], [0, 0, 1, 1], [], []>} : vector<1x512xbf16>, vector<512x1024xbf16>, vector<1x1024xf32> -> vector<1x1024xf32>
    %c0_310 = arith.constant 0 : index
    %c0_311 = arith.constant 0 : index
    %411 = vector.load %arg9[%c0_310, %c0_311] : memref<1x1024xf32, #tpu.memory_space<vmem>>, vector<1x1024xf32>
    %412 = arith.addf %410, %411 : vector<1x1024xf32>
    %cst_312 = arith.constant 0.000000e+00 : f32
    %413 = vector.broadcast %cst_312 : f32 to vector<1x1024xf32>
    %414 = arith.maximumf %412, %413 : vector<1x1024xf32>
    %415 = arith.truncf %414 : vector<1x1024xf32> to vector<1x1024xbf16>
    %c0_313 = arith.constant 0 : index
    %c0_314 = arith.constant 0 : index
    %416 = vector.load %arg10[%c0_313, %c0_314] : memref<1024x128xbf16, #tpu.memory_space<vmem>>, vector<1024x128xbf16>
    %cst_315 = arith.constant dense<0.000000e+00> : vector<1x128xf32>
    %417 = tpu.matmul %415, %416, %cst_315 {dimension_numbers = #tpu.dot_dimension_numbers<[1], [0], [0], [1], [0, 0, 1, 1], [], []>} : vector<1x1024xbf16>, vector<1024x128xbf16>, vector<1x128xf32> -> vector<1x128xf32>
    %c0_316 = arith.constant 0 : index
    %c0_317 = arith.constant 0 : index
    %418 = vector.load %arg11[%c0_316, %c0_317] : memref<1x128xf32, #tpu.memory_space<vmem>>, vector<1x128xf32>
    %419 = arith.addf %417, %418 : vector<1x128xf32>
    %c0_318 = arith.constant 0 : index
    %c0_319 = arith.constant 0 : index
    %c0_320 = arith.constant 0 : index
    %420 = vector.load %arg12[%c0_318, %c0_319, %c0_320] : memref<1x1x128xf32, #tpu.memory_space<vmem>>, vector<1x1x128xf32>
    %421 = vector.shape_cast %420 : vector<1x1x128xf32> to vector<1x128xf32>
    %422 = vector.shape_cast %419 : vector<1x128xf32> to vector<1x1x128xf32>
    tpu.vector_store %arg12[%c0_318, %c0_319, %c0_320], %422 {strides = array<i32>} : memref<1x1x128xf32, #tpu.memory_space<vmem>>, vector<1x1x128xf32>,
    return
  }
  func.func @transform_0(%arg0: i32) -> (i32, i32, i32) {
    %c0_i32 = arith.constant 0 : i32
    %c0_i32_0 = arith.constant 0 : i32
    %c0_i32_1 = arith.constant 0 : i32
    return %arg0, %c0_i32, %c0_i32_0 : i32, i32, i32
  }
  func.func @transform_1(%arg0: i32) -> (i32, i32) {
    %c0_i32 = arith.constant 0 : i32
    %c0_i32_0 = arith.constant 0 : i32
    %c0_i32_1 = arith.constant 0 : i32
    return %c0_i32, %c0_i32_0 : i32, i32
  }
  func.func @transform_2(%arg0: i32) -> (i32, i32) {
    %c0_i32 = arith.constant 0 : i32
    %c0_i32_0 = arith.constant 0 : i32
    %c0_i32_1 = arith.constant 0 : i32
    return %c0_i32, %c0_i32_0 : i32, i32
  }
  func.func @transform_3(%arg0: i32) -> (i32, i32) {
    %c0_i32 = arith.constant 0 : i32
    %c0_i32_0 = arith.constant 0 : i32
    %c0_i32_1 = arith.constant 0 : i32
    return %c0_i32, %c0_i32_0 : i32, i32
  }
  func.func @transform_4(%arg0: i32) -> (i32, i32) {
    %c0_i32 = arith.constant 0 : i32
    %c0_i32_0 = arith.constant 0 : i32
    %c0_i32_1 = arith.constant 0 : i32
    return %c0_i32, %c0_i32_0 : i32, i32
  }
  func.func @transform_5(%arg0: i32) -> (i32, i32) {
    %c0_i32 = arith.constant 0 : i32
    %c0_i32_0 = arith.constant 0 : i32
    %c0_i32_1 = arith.constant 0 : i32
    return %c0_i32, %c0_i32_0 : i32, i32
  }
  func.func @transform_6(%arg0: i32) -> (i32, i32) {
    %c0_i32 = arith.constant 0 : i32
    %c0_i32_0 = arith.constant 0 : i32
    %c0_i32_1 = arith.constant 0 : i32
    return %c0_i32, %c0_i32_0 : i32, i32
  }
  func.func @transform_7(%arg0: i32) -> (i32, i32) {
    %c0_i32 = arith.constant 0 : i32
    %c0_i32_0 = arith.constant 0 : i32
    %c0_i32_1 = arith.constant 0 : i32
    return %c0_i32, %c0_i32_0 : i32, i32
  }
  func.func @transform_8(%arg0: i32) -> (i32, i32) {
    %c0_i32 = arith.constant 0 : i32
    %c0_i32_0 = arith.constant 0 : i32
    %c0_i32_1 = arith.constant 0 : i32
    return %c0_i32, %c0_i32_0 : i32, i32
  }
  func.func @transform_9(%arg0: i32) -> (i32, i32) {
    %c0_i32 = arith.constant 0 : i32
    %c0_i32_0 = arith.constant 0 : i32
    %c0_i32_1 = arith.constant 0 : i32
    return %c0_i32, %c0_i32_0 : i32, i32
  }
  func.func @transform_10(%arg0: i32) -> (i32, i32) {
    %c0_i32 = arith.constant 0 : i32
    %c0_i32_0 = arith.constant 0 : i32
    %c0_i32_1 = arith.constant 0 : i32
    return %c0_i32, %c0_i32_0 : i32, i32
  }
  func.func @transform_11(%arg0: i32) -> (i32, i32, i32) {
    %c0_i32 = arith.constant 0 : i32
    %c0_i32_0 = arith.constant 0 : i32
    %c0_i32_1 = arith.constant 0 : i32
    return %arg0, %c0_i32, %c0_i32_0 : i32, i32, i32
  }
}

</mosaic_0001>

<bundles_post_ra>
// kernel: cnn_forward.1
= control target key start
LH: loop header
LB: loop body
LE: loop exit
PB: predicated region body
PF: predicated region fallthrough
CT: control target
= control target key end

     0   :  { %16 = vsyncpa [#allocation8], 0  ;;  %s17120_s0 = inlined_call_operand.vmem [shape: f32[2,440,128], index: 0, kind: input, shape index: {}]   ;;  %s17121_s1 = inlined_call_operand.vmem [shape: bf16[1280,128], index: 1, kind: input, shape index: {}]   ;;  %s17122_s2 = inlined_call_operand.vmem [shape: f32[3,128], index: 2, kind: input, shape index: {}]   ;;  %s17123_s3 = inlined_call_operand.vmem [shape: bf16[1280,128], index: 3, kind: input, shape index: {}]   ;;  %s17124_s4 = inlined_call_operand.vmem [shape: f32[3,128], index: 4, kind: input, shape index: {}]   ;;  %s17125_s5 = inlined_call_operand.vmem [shape: bf16[1280,128], index: 5, kind: input, shape index: {}]   ;;  %s17126_s6 = inlined_call_operand.vmem [shape: f32[3,128], index: 6, kind: input, shape index: {}]   ;;  %s17127_s7 = inlined_call_operand.vmem [shape: bf16[512,1024], index: 7, kind: input, shape index: {}]   ;;  %s17128_s8 = inlined_call_operand.vmem [shape: f32[1,1024], index: 8, kind: input, shape index: {}]   ;;  %s17129_s9 = inlined_call_operand.vmem [shape: bf16[1024,128], index: 9, kind: input, shape index: {}]   ;;  %s17130_s10 = inlined_call_operand.vmem [shape: f32[1,128], index: 10, kind: input, shape index: {}]   ;;  %s17131_s11 = inlined_call_operand.hbm [shape: f32[2,1,128], index: 11, kind: output, shape index: {}]  }
   0x1   :  { %18 = vsyncpa [#allocation8 + $0x1], 0  ;;  %s13086_s17 = smov 0   ;;  %s13088_s18 = smov 0  }
   0x2   :  { %s13090_s19 = smov 0   ;;  %s13092_s20 = smov 0  }
   0x3 LB: > { %s13107_s21 = sadd.s32 4294967295, %s13022_s20   ;;  %s10143_s22 = sadd.s32 4294967294, %s13022_s20   ;;  %s13022_s20 = sphi %s13092_s20, %s17164_s20   ;;  %s13018_s19 = sphi %s13090_s19, %s17163_s19   ;;  %s13014_s18 = sphi %s13088_s18, %s17162_s18   ;;  %s13010_s17 = sphi %s13086_s17, %s17161_s17  }
   0x4   : > { %s13111_s23 = sadd.s32 1, %s13022_s20   ;;  %s267_s24 = sadd.s32 1, %s13018_s19 }
   0x5   : > { %s264_s25 = ssub.s32 %s13022_s20, %s13111_s23  ;;  %p277_p0 = scmp.ne.s32.totalorder %s13018_s19, %s13014_s18 }
   0x6   : > { %p265_p1 = scmp.eq.s32.totalorder %s264_s25, 0  ;;  %p278_p2 = scmp.eq.s32.totalorder %s13107_s21, 1 }
   0x7   : > { %p283_p3 = scmp.ne.s32.totalorder %s13014_s18, %s13010_s17  ;;  %p284_p4 = scmp.eq.s32.totalorder %s10143_s22, 1 }
   0x8   : > { %s13122_s26 = scalar_select %p265_p1, %s13018_s19, %s267_s24  }
   0x9   : > { %p13124_p5 = por %p278_p2, %p277_p0  ;;  %p13128_p6 = por %p284_p4, %p283_p3 }
   0xa   : > { %17137 = sst [smem:[#allocation10_spill]] %s13122_s26  ;;  %p10146_p7 = scmp.ge.s32.totalorder %s13022_s20, 1 }
   0xb   : > { %p340_p8 = scmp.lt.s32.totalorder %s13022_s20, 3 }
   0xd   : > { %p341_p9 = pnand %p10146_p7, %p340_p8 }
   0xf   : > { %344 = sbr.rel (%p341_p9) target bundleno = 2117 (0x845), region = 64 }
  0x16   : > { %v12483_v0 = vld [vmem:[%s17121_s1 + $0xc0] sm:$0xff]   ;;  %v12487_v4 = vld [vmem:[%s17121_s1 + $0xc8] sm:$0xff]   ;;  %v12491_v8 = vld [vmem:[%s17121_s1 + $0xd0] sm:$0xff]   ;;  %p379_p10 = scmp.lt.s32.totalorder %s13107_s21, 1  ;;  %s377_s15 = sand.u32 1, %s13014_s18  }
  0x17   : > { %v12484_v1 = vld [vmem:[%s17121_s1 + $0x40] sm:$0xff]   ;;  %10880 = vmatprep.subr.bf16.mxu0 %v12483_v0  ;;  %v12488_v5 = vld [vmem:[%s17121_s1 + $0x48] sm:$0xff]   ;;  %v12492_v9 = vld [vmem:[%s17121_s1 + $0x50] sm:$0xff]   ;;  %s10877_s16 = sshll.u32 %s13107_s21, 4  ;;  %s378_s22 = scalar_lea.vmem [#allocation7], %s377_s15 }
  0x18   : > { %v12485_v2 = vld [vmem:[%s17121_s1 + $0x80] sm:$0xff]   ;;  %10944 = vmatprep.subr.bf16.mxu1 %v12484_v1  ;;  %v12489_v6 = vld [vmem:[%s17121_s1 + $0x88] sm:$0xff]   ;;  %v12493_v10 = vld [vmem:[%s17121_s1 + $0x90] sm:$0xff]   ;;  %s380_s14 = scalar_select %p379_p10, %s13107_s21, 1 }
  0x19   : > { %v12486_v3 = vld [vmem:[%s17121_s1] sm:$0xff]   ;;  %10881 = vmatpush3.bf16.msra.mxu0 %v12485_v2  ;;  %v12490_v7 = vld [vmem:[%s17121_s1 + $0x8] sm:$0xff]   ;;  %v12494_v11 = vld [vmem:[%s17121_s1 + $0x10] sm:$0xff]   ;;  %s10088_s24 = sshll.u32 %s378_s22, 4  ;;  %s10076_s29 = scalar_lea.sflag [#allocation8], %s377_s15  ;;  %s17080_s24 = int_to_ptr.vmem [resolvable:$true] %s10088_s24 }
  0x1a   : > { %10945 = vmatpush3.bf16.msra.mxu1 %v12486_v3  ;;  %10882 = vmatprep.subr.bf16.mxu0 %v12487_v4  ;;  %v12495_v12 = vld [vmem:[%s17121_s1 + $0xd8] sm:$0xff]   ;;  %v12499_v16 = vld [vmem:[%s17121_s1 + $0xe0] sm:$0xff]   ;;  %v12503_v20 = vld [vmem:[%s17121_s1 + $0xe8] sm:$0xff]   ;;  %s12442_s13 = smul.u32 440, %s380_s14  ;;  %s12960_s30 = scalar_lea.vmem %s17080_s24, 16 }
  0x1b   : > { %10946 = vmatprep.subr.bf16.mxu1 %v12488_v5  ;;  %v12496_v13 = vld [vmem:[%s17121_s1 + $0x58] sm:$0xff]   ;;  %v12500_v17 = vld [vmem:[%s17121_s1 + $0x60] sm:$0xff]   ;;  %v12504_v21 = vld [vmem:[%s17121_s1 + $0x68] sm:$0xff]   ;;  %p12961_p11 = scmp.ne.s32.totalorder %s17080_s24, %s12960_s30  ;;  %s13025_s21 = smov [#allocation7]  }
  0x1c   : > { %v12497_v14 = vld [vmem:[%s17121_s1 + $0x98] sm:$0xff]   ;;  %v12501_v18 = vld [vmem:[%s17121_s1 + $0xa0] sm:$0xff]   ;;  %v12505_v22 = vld [vmem:[%s17121_s1 + $0xa8] sm:$0xff]   ;;  %s13229_s26 = scalar_lea.vmem %s17120_s0, %s12442_s13  ;;  %s12964_s14 = sshll.u32 %s13025_s21, 4  ;;  %s12965_s14 = int_to_ptr.vmem [resolvable:$false] %s12964_s14 }
  0x1d   : > { %10883 = vmatpush3.bf16.msra.mxu0 %v12489_v6  ;;  %v12498_v15 = vld [vmem:[%s17121_s1 + $0x18] sm:$0xff]   ;;  %v12502_v19 = vld [vmem:[%s17121_s1 + $0x20] sm:$0xff]   ;;  %v12506_v23 = vld [vmem:[%s17121_s1 + $0x28] sm:$0xff]   ;;  %p12962_p12 = pnand %p12961_p11, %p13124_p5  ;;  %s12966_s12 = scalar_lea.vmem %s12965_s14, 32 }
  0x1e   : > { %10947 = vmatpush3.bf16.msra.mxu1 %v12490_v7  ;;  %10884 = vmatprep.subr.bf16.mxu0 %v12491_v8  ;;  %v12507_v24 = vld [vmem:[%s17121_s1 + $0xf0] sm:$0xff]   ;;  %v12511_v28 = vld [vmem:[%s17121_s1 + $0xf8] sm:$0xff]   ;;  %v13239_v33 = vld [vmem:[%s13229_s26 + $0x20] sm:$0xff]  ;;  %p12967_p0 = scmp.lt.s32.totalorder %s17080_s24, %s12965_s14  ;;  %p12968_p1 = scmp.lt.s32.totalorder %s12966_s12, %s12960_s30 }
  0x1f   : > { %10948 = vmatprep.subr.bf16.mxu1 %v12492_v9  ;;  %v12508_v25 = vld [vmem:[%s17121_s1 + $0x70] sm:$0xff]   ;;  %v12512_v29 = vld [vmem:[%s17121_s1 + $0x78] sm:$0xff]   ;;  %v13242_v34 = vld [vmem:[%s13229_s26 + $0x28] sm:$0xff]  ;;  %p12963_p13 = pneg %p12962_p12 }
  0x20   : > { %v12509_v26 = vld [vmem:[%s17121_s1 + $0xb0] sm:$0xff]   ;;  %v12513_v30 = vld [vmem:[%s17121_s1 + $0xb8] sm:$0xff]   ;;  %v441_v36 = vld [vmem:[%s13229_s26 + $0x1] sm:$0xff]  ;;  %p12969_p2 = por %p12968_p1, %p12967_p0 }
  0x21   : > { %10885 = vmatpush3.bf16.msra.mxu0 %v12493_v10  ;;  %v12510_v27 = vld [vmem:[%s17121_s1 + $0x30] sm:$0xff]   ;;  %v12514_v31 = vld [vmem:[%s17121_s1 + $0x38] sm:$0xff]   ;;  %v497_v39 = vld [vmem:[%s13229_s26 + $0x2] sm:$0xff] }
  0x22   : > { %10949 = vmatpush3.bf16.msra.mxu1 %v12494_v11  ;;  %10886 = vmatprep.subr.bf16.mxu0 %v12495_v12  ;;  %v420_v32 = vld [vmem:[%s13229_s26 + $0x18] sm:$0xff]  ;;  %v442_v37 = vld [vmem:[%s13229_s26 + $0x9] sm:$0xff]  ;;  %v417_v41 = vld [vmem:[%s13229_s26] sm:$0xff]  ;;  %v435_v12 = vpack.c.bf16 %v13242_v34, %v13239_v33  ;;  %p12970_p3 = pnand %p12969_p2, %p12963_p13 }
  0x23   : > { %10950 = vmatprep.subr.bf16.mxu1 %v12496_v13  ;;  %v524_v35 = vpack.c.bf16 %v13239_v33, %v420_v32  ;;  %v457_v38 = vpack.c.bf16 %v442_v37, %v441_v36  ;;  %v498_v40 = vld [vmem:[%s13229_s26 + $0xa] sm:$0xff]  ;;  %v12515_v45 = vld [vmem:[%s17121_s1 + $0x140] sm:$0xff]   ;;  %v499_v52 = vld [vmem:[%s13229_s26 + $0x12] sm:$0xff] }
  0x24   : > { %v513_v42 = vpack.c.bf16 %v498_v40, %v497_v39  ;;  %v418_v43 = vld [vmem:[%s13229_s26 + $0x8] sm:$0xff]  ;;  %v419_v46 = vld [vmem:[%s13229_s26 + $0x10] sm:$0xff]  ;;  %v12516_v47 = vld [vmem:[%s17121_s1 + $0x100] sm:$0xff]  }
  0x25   : > { %10887 = vmatpush3.bf16.msra.mxu0 %v12497_v14  ;;  %692 = vmatprep.mubr.bf16.mxu0 %v524_v35  ;;  %v433_v44 = vpack.c.bf16 %v418_v43, %v417_v41  ;;  %v13259_v48 = vld [vmem:[%s13229_s26 + $0x30] sm:$0xff]  ;;  %v13265_v51 = vld [vmem:[%s13229_s26 + $0x19] sm:$0xff]  ;;  %v12517_v55 = vld [vmem:[%s17121_s1 + $0x148] sm:$0xff]   ;;  %v434_v61 = vpack.c.bf16 %v420_v32, %v419_v46 }
  0x26   : > { %10951 = vmatpush3.bf16.msra.mxu1 %v12498_v15  ;;  %10888 = vmatprep.subr.bf16.mxu0 %v12499_v16  ;;  %v443_v49 = vld [vmem:[%s13229_s26 + $0x11] sm:$0xff]  ;;  %v525_v50 = vpack.c.bf16 %v13259_v48, %v13242_v34  ;;  %v13269_v53 = vld [vmem:[%s13229_s26 + $0x1a] sm:$0xff]  ;;  %v12518_v56 = vld [vmem:[%s17121_s1 + $0x108] sm:$0xff]  }
  0x27   : > { %10952 = vmatprep.subr.bf16.mxu1 %v12500_v17  ;;  %885 = vmatprep.mubr.bf16.mxu1 %v457_v38  ;;  %v458_v54 = vpack.c.bf16 %v13265_v51, %v443_v49  ;;  %v514_v57 = vpack.c.bf16 %v13269_v53, %v499_v52  ;;  %v424_v58 = vld [vmem:[%s13229_s26 + $0x38] sm:$0xff]  ;;  %v13281_v59 = vld [vmem:[%s13229_s26 + $0x40] sm:$0xff]  ;;  %v13288_v63 = vld [vmem:[%s13229_s26 + $0x29] sm:$0xff] }
  0x28   : > { %v13284_v60 = vld [vmem:[%s13229_s26 + $0x21] sm:$0xff]  ;;  %v526_v62 = vpack.c.bf16 %v13281_v59, %v424_v58  ;;  %v12519_v1 = vld [vmem:[%s17121_s1 + $0x150] sm:$0xff]   ;;  %v13314_v8 = vld [vmem:[%s13229_s26 + $0x39] sm:$0xff] }
  0x29   : > { %10889 = vmatpush3.bf16.msra.mxu0 %v12501_v18  ;;  %v459_v0 = vpack.c.bf16 %v13288_v63, %v13284_v60  ;;  %v12520_v2 = vld [vmem:[%s17121_s1 + $0x110] sm:$0xff]   ;;  %v13299_v3 = vld [vmem:[%s13229_s26 + $0x22] sm:$0xff]  ;;  %v12521_v9 = vld [vmem:[%s17121_s1 + $0x158] sm:$0xff]  }
  0x2a   : > { %10953 = vmatpush3.bf16.msra.mxu1 %v12502_v19  ;;  %10890 = vmatprep.subr.bf16.mxu0 %v12503_v20  ;;  %v13302_v4 = vld [vmem:[%s13229_s26 + $0x2a] sm:$0xff]  ;;  %v12522_v10 = vld [vmem:[%s17121_s1 + $0x118] sm:$0xff]   ;;  %v12523_v15 = vld [vmem:[%s17121_s1 + $0x160] sm:$0xff]  }
  0x2b   : > { %10954 = vmatprep.subr.bf16.mxu1 %v12504_v21  ;;  %v13305_v5 = vld [vmem:[%s13229_s26 + $0x48] sm:$0xff]  ;;  %v13308_v6 = vld [vmem:[%s13229_s26 + $0x50] sm:$0xff]  ;;  %v515_v11 = vpack.c.bf16 %v13302_v4, %v13299_v3  ;;  %v13339_v17 = vld [vmem:[%s13229_s26 + $0x3a] sm:$0xff] }
  0x2c   : > { %v13311_v7 = vld [vmem:[%s13229_s26 + $0x31] sm:$0xff]  ;;  %v527_v13 = vpack.c.bf16 %v13308_v6, %v13305_v5  ;;  %v12524_v18 = vld [vmem:[%s17121_s1 + $0x1c0] sm:$0xff]   ;;  %v13396_v35 = vld [vmem:[%s13229_s26 + $0x68] sm:$0xff] }
  0x2d   : > { %10891 = vmatpush3.bf16.msra.mxu0 %v12505_v22  ;;  %v13330_v14 = vpack.c.bf16 %v13314_v8, %v13311_v7  ;;  %v13336_v16 = vld [vmem:[%s13229_s26 + $0x32] sm:$0xff]  ;;  %v13348_v20 = vld [vmem:[%s13229_s26 + $0x60] sm:$0xff]  ;;  %v13389_v33 = vld [vmem:[%s13229_s26 + $0x4a] sm:$0xff] }
  0x2e   : > { %10955 = vmatpush3.bf16.msra.mxu1 %v12506_v23  ;;  %10892 = vmatprep.subr.bf16.mxu0 %v12507_v24  ;;  %v13345_v19 = vld [vmem:[%s13229_s26 + $0x58] sm:$0xff]  ;;  %v12525_v21 = vld [vmem:[%s17121_s1 + $0x120] sm:$0xff]   ;;  %v13357_v23 = vld [vmem:[%s13229_s26 + $0x49] sm:$0xff] }
  0x2f   : > { %10956 = vmatprep.subr.bf16.mxu1 %v12508_v25  ;;  %v13354_v22 = vld [vmem:[%s13229_s26 + $0x41] sm:$0xff]  ;;  %v12530_v34 = vld [vmem:[%s17121_s1 + $0x1d0] sm:$0xff]   ;;  %v13409_v39 = vld [vmem:[%s13229_s26 + $0x59] sm:$0xff] }
  0x30   : > { %v12526_v24 = vld [vmem:[%s17121_s1 + $0x180] sm:$0xff]   ;;  %v12527_v25 = vld [vmem:[%s17121_s1 + $0x1c8] sm:$0xff]   ;;  %v13399_v36 = vld [vmem:[%s13229_s26 + $0x70] sm:$0xff] }
  0x31   : > { %10893 = vmatpush3.bf16.msra.mxu0 %v12509_v26  ;;  %v12528_v26 = vld [vmem:[%s17121_s1 + $0x188] sm:$0xff]   ;;  %v13406_v38 = vld [vmem:[%s13229_s26 + $0x51] sm:$0xff]  ;;  %v13442_v49 = vld [vmem:[%s13229_s26 + $0x5a] sm:$0xff] }
  0x32   : > { %10957 = vmatpush3.bf16.msra.mxu1 %v12510_v27  ;;  %10894 = vmatprep.subr.bf16.mxu0 %v12511_v28  ;;  %v13371_v27 = vpack.c.bf16 %v13339_v17, %v13336_v16  ;;  %v13374_v28 = vpack.c.bf16 %v424_v58, %v13259_v48  ;;  %v13386_v32 = vld [vmem:[%s13229_s26 + $0x42] sm:$0xff]  ;;  %v12532_v40 = vld [vmem:[%s17121_s1 + $0x190] sm:$0xff]   ;;  %v12533_v41 = vld [vmem:[%s17121_s1 + $0x1d8] sm:$0xff]   ;;  %v13433_v46 = vpack.c.bf16 %v13409_v39, %v13406_v38 }
  0x33   : > { %10958 = vmatprep.subr.bf16.mxu1 %v12512_v29  ;;  %v528_v29 = vpack.c.bf16 %v13348_v20, %v13345_v19  ;;  %v12531_v37 = vld [vmem:[%s17121_s1 + $0x128] sm:$0xff]   ;;  %v13423_v43 = vpack.c.bf16 %v13389_v33, %v13386_v32  ;;  %v13439_v48 = vld [vmem:[%s13229_s26 + $0x52] sm:$0xff]  ;;  %v12538_v58 = vld [vmem:[%s17121_s1 + $0x1a0] sm:$0xff]  }
  0x34   : > { %v432_v52 = vld [vmem:[%s13229_s26 + $0x78] sm:$0xff] }
  0x35   : > { %10895 = vmatpush3.bf16.msra.mxu0 %v12513_v30  ;;  %v13380_v30 = vpack.c.bf16 %v13357_v23, %v13354_v22 }
  0x36   : > { %10959 = vmatpush3.bf16.msra.mxu1 %v12514_v31  ;;  %11008 = vmatprep.subr.bf16.mxu0 %v12515_v45  ;;  %v12529_v31 = vld [vmem:[%s17121_s1 + $0x168] sm:$0xff]   ;;  %v529_v45 = vpack.c.bf16 %v13399_v36, %v13396_v35 }
  0x37   : > { %11072 = vmatprep.subr.bf16.mxu1 %v12524_v18  ;;  %v13512_v18 = vld [vmem:[%s13229_s26 + $0x79] sm:$0xff] }
  0x38   : > { %693 = vmatmul.mubr.bf16.vlgmr.msra.gmra.mrb[0].mxu0 %v513_v42  ;;  %v12534_v42 = vld [vmem:[%s17121_s1 + $0x198] sm:$0xff]  }
  0x39   : > { %886 = vmatmul.mubr.bf16.vlgmr.msra.gmra.mrb[0].mxu1 %v433_v44  ;;  %11009 = vmatpush3.bf16.msra.mxu0 %v12516_v47  ;;  %v13427_v44 = vpack.c.bf16 %v13305_v5, %v13281_v59  ;;  %v12535_v47 = vld [vmem:[%s17121_s1 + $0x170] sm:$0xff]   ;;  %v12539_v59 = vld [vmem:[%s17121_s1 + $0x1e8] sm:$0xff]   ;;  %v12541_v5 = vld [vmem:[%s17121_s1 + $0x178] sm:$0xff]  }
  0x3a   : > { %700 = vmatprep.mubr.bf16.mxu0 %v525_v50  ;;  %893 = vmatprep.mubr.bf16.mxu1 %v458_v54  ;;  %v12536_v50 = vld [vmem:[%s17121_s1 + $0x1e0] sm:$0xff]  }
  0x3b   : > { %11010 = vmatprep.subr.bf16.mxu0 %v12517_v55  ;;  %11073 = vmatpush3.bf16.msra.mxu1 %v12526_v24  ;;  %v13450_v54 = vld [vmem:[%s13229_s26 + $0x80] sm:$0xff]  ;;  %v12537_v55 = vld [vmem:[%s17121_s1 + $0x130] sm:$0xff]   ;;  %v12546_v24 = vld [vmem:[%s17121_s1 + $0x1b8] sm:$0xff]  }
  0x3c   : > { %11074 = vmatprep.subr.bf16.mxu1 %v12527_v25 }
  0x3d   : > { %11011 = vmatpush3.bf16.msra.mxu0 %v12518_v56  ;;  %v13457_v56 = vld [vmem:[%s13229_s26 + $0x61] sm:$0xff] }
  0x3e   : > { %11012 = vmatprep.subr.bf16.mxu0 %v12519_v1  ;;  %v530_v1 = vpack.c.bf16 %v13450_v54, %v432_v52 }
  0x3f   : > { %11075 = vmatpush3.bf16.msra.mxu1 %v12528_v26  ;;  %v12547_v26 = vld [vmem:[%s17121_s1 + $0x240] sm:$0xff]  }
  0x40   : > { %701 = vmatmul.mubr.bf16.gmra.mrb[4].mxu0 %v514_v57  ;;  %11076 = vmatprep.subr.bf16.mxu1 %v12530_v34  ;;  %v13460_v57 = vld [vmem:[%s13229_s26 + $0x69] sm:$0xff] }
  0x41   : > { %894 = vmatmul.mubr.bf16.gmra.mrb[4].mxu1 %v434_v61  ;;  %708 = vmatprep.mubr.bf16.mxu0 %v526_v62  ;;  %v12540_v61 = vld [vmem:[%s17121_s1 + $0x1a8] sm:$0xff]   ;;  %v13474_v62 = vpack.c.bf16 %v13442_v49, %v13439_v48 }
  0x42   : > { %901 = vmatprep.mubr.bf16.mxu1 %v459_v0  ;;  %11013 = vmatpush3.bf16.msra.mxu0 %v12520_v2  ;;  %v13478_v0 = vpack.c.bf16 %v13345_v19, %v13308_v6  ;;  %v13483_v2 = vpack.c.bf16 %v13460_v57, %v13457_v56  ;;  %v12542_v6 = vld [vmem:[%s17121_s1 + $0x1f0] sm:$0xff]  }
  0x43   : > { %11014 = vmatprep.subr.bf16.mxu0 %v12521_v9  ;;  %11077 = vmatpush3.bf16.msra.mxu1 %v12532_v40  ;;  %v13489_v9 = vld [vmem:[%s13229_s26 + $0x62] sm:$0xff]  ;;  %v12544_v19 = vld [vmem:[%s17121_s1 + $0x1b0] sm:$0xff]   ;;  %v13547_v40 = vld [vmem:[%s13229_s26 + $0x7a] sm:$0xff] }
  0x44   : > { %11078 = vmatprep.subr.bf16.mxu1 %v12533_v41  ;;  %v990_v41 = vpack.c.bf16 %v13299_v3, %v13269_v53  ;;  %v991_v53 = vpack.c.bf16 %v13336_v16, %v13302_v4  ;;  %v12549_v3 = vld [vmem:[%s17121_s1 + $0x248] sm:$0xff]   ;;  %v12551_v4 = vld [vmem:[%s17121_s1 + $0x250] sm:$0xff]   ;;  %v967_v16 = vpack.c.bf16 %v13311_v7, %v13288_v63  ;;  %v12565_v7 = vld [vmem:[%s17121_s1 + $0xd8] sm:$0xff]  }
  0x45   : > { %v12564_v63 = vld [vmem:[%s17121_s1 + $0x90] sm:$0xff]  }
  0x46   : > { %11015 = vmatpush3.bf16.msra.mxu0 %v12522_v10  ;;  %v13492_v10 = vld [vmem:[%s13229_s26 + $0x6a] sm:$0xff] }
  0x47   : > { %11016 = vmatprep.subr.bf16.mxu0 %v12523_v15  ;;  %11079 = vmatpush3.bf16.msra.mxu1 %v12534_v42  ;;  %v13509_v15 = vld [vmem:[%s13229_s26 + $0x71] sm:$0xff]  ;;  %v13526_v25 = vpack.c.bf16 %v13492_v10, %v13489_v9  ;;  %v12556_v42 = vld [vmem:[%s17121_s1 + $0xc0] sm:$0xff]  }
  0x48   : > { %709 = vmatmul.mubr.bf16.gmra.mrb[8].mxu0 %v515_v11  ;;  %11080 = vmatprep.subr.bf16.mxu1 %v12536_v50  ;;  %v13499_v11 = vld [vmem:[%s13229_s26 + $0x88] sm:$0xff]  ;;  %v13539_v34 = vpack.c.bf16 %v13512_v18, %v13509_v15  ;;  %v12552_v50 = vld [vmem:[%s17121_s1 + $0x210] sm:$0xff]  }
  0x49   : > { %902 = vmatmul.mubr.bf16.gmra.mrb[8].mxu1 %v435_v12  ;;  %716 = vmatprep.mubr.bf16.mxu0 %v527_v13  ;;  %v13502_v12 = vld [vmem:[%s13229_s26 + $0x90] sm:$0xff]  ;;  %v12543_v13 = vld [vmem:[%s17121_s1 + $0x138] sm:$0xff]  }
  0x4a   : > { %909 = vmatprep.mubr.bf16.mxu1 %v13330_v14  ;;  %11017 = vmatpush3.bf16.msra.mxu0 %v12525_v21  ;;  %v12545_v21 = vld [vmem:[%s17121_s1 + $0x1f8] sm:$0xff]  }
  0x4b   : > { %11018 = vmatprep.subr.bf16.mxu0 %v12529_v31  ;;  %11081 = vmatpush3.bf16.msra.mxu1 %v12538_v58  ;;  %v531_v31 = vpack.c.bf16 %v13502_v12, %v13499_v11 }
  0x4c   : > { %11082 = vmatprep.subr.bf16.mxu1 %v12539_v59  ;;  %v12555_v59 = vld [vmem:[%s17121_s1 + $0x260] sm:$0xff]  }
  0x4e   : > { %11019 = vmatpush3.bf16.msra.mxu0 %v12531_v37  ;;  %v13543_v37 = vld [vmem:[%s13229_s26 + $0x72] sm:$0xff] }
  0x4f   : > { %11020 = vmatprep.subr.bf16.mxu0 %v12535_v47  ;;  %11083 = vmatpush3.bf16.msra.mxu1 %v12540_v61  ;;  %v12558_v47 = vld [vmem:[%s17121_s1 + $0x80] sm:$0xff]   ;;  %v968_v61 = vpack.c.bf16 %v13354_v22, %v13314_v8  ;;  %v12571_v22 = vld [vmem:[%s17121_s1 + $0xe8] sm:$0xff]  }
  0x50   : > { %717 = vmatmul.mubr.bf16.gmra.mrb[12].mxu0 %v13371_v27  ;;  %11084 = vmatprep.subr.bf16.mxu1 %v12542_v6  ;;  %v12561_v6 = vld [vmem:[%s17121_s1 + $0x268] sm:$0xff]   ;;  %v12570_v8 = vld [vmem:[%s17121_s1 + $0xa0] sm:$0xff]  }
  0x51   : > { %910 = vmatmul.mubr.bf16.gmra.mrb[12].mxu1 %v13374_v28  ;;  %724 = vmatprep.mubr.bf16.mxu0 %v528_v29  ;;  %v13533_v29 = vpack.c.bf16 %v13396_v35, %v13348_v20  ;;  %v13552_v20 = vpack.c.bf16 %v13547_v40, %v13543_v37  ;;  %v13555_v35 = vpack.c.bf16 %v432_v52, %v13399_v36  ;;  %v12548_v36 = vld [vmem:[%s17121_s1 + $0x200] sm:$0xff]   ;;  %v12553_v52 = vld [vmem:[%s17121_s1 + $0x258] sm:$0xff]  }
  0x52   : > { %917 = vmatprep.mubr.bf16.mxu1 %v13380_v30  ;;  %11021 = vmatpush3.bf16.msra.mxu0 %v12537_v55  ;;  %v12554_v55 = vld [vmem:[%s17121_s1 + $0x218] sm:$0xff]  }
  0x53   : > { %11022 = vmatprep.subr.bf16.mxu0 %v12541_v5  ;;  %11085 = vmatpush3.bf16.msra.mxu1 %v12544_v19  ;;  %v12557_v5 = vld [vmem:[%s17121_s1 + $0x220] sm:$0xff]   ;;  %v994_v19 = vpack.c.bf16 %v13489_v9, %v13442_v49  ;;  %v12577_v9 = vld [vmem:[%s17121_s1 + $0xf8] sm:$0xff]  }
  0x54   : > { %11086 = vmatprep.subr.bf16.mxu1 %v12545_v21  ;;  %v12569_v21 = vld [vmem:[%s17121_s1 + $0x230] sm:$0xff]  }
  0x56   : > { %11023 = vmatpush3.bf16.msra.mxu0 %v12543_v13  ;;  %v12572_v13 = vld [vmem:[%s17121_s1 + $0xa8] sm:$0xff]  }
  0x57   : > { %11136 = vmatprep.subr.bf16.mxu0 %v12547_v26  ;;  %11087 = vmatpush3.bf16.msra.mxu1 %v12546_v24  ;;  %v12573_v24 = vld [vmem:[%s17121_s1 + $0x278] sm:$0xff]   ;;  %v13674_v26 = vld [vmem:[%s13229_s26 + $0xb0] sm:$0xff] }
  0x58   : > { %725 = vmatmul.mubr.bf16.gmra.mrb[16].mxu0 %v13423_v43  ;;  %11200 = vmatprep.subr.bf16.mxu1 %v12556_v42  ;;  %v1274_v42 = vld [vmem:[%s13229_s26 + $0x89] sm:$0xff] }
  0x59   : > { %918 = vmatmul.mubr.bf16.gmra.mrb[16].mxu1 %v13427_v44  ;;  %732 = vmatprep.mubr.bf16.mxu0 %v529_v45  ;;  %v966_v45 = vpack.c.bf16 %v13284_v60, %v13265_v51  ;;  %v12559_v51 = vld [vmem:[%s17121_s1 + $0xc8] sm:$0xff]  }
  0x5a   : > { %925 = vmatprep.mubr.bf16.mxu1 %v13433_v46  ;;  %v12550_v60 = vld [vmem:[%s17121_s1 + $0x208] sm:$0xff]  }
  0x60   : > { %733 = vmatmul.mubr.bf16.gmra.mrb[20].mxu0 %v13474_v62 }
  0x61   : > { %926 = vmatmul.mubr.bf16.gmra.mrb[20].mxu1 %v13478_v0  ;;  %740 = vmatprep.mubr.bf16.mxu0 %v530_v1  ;;  %v12568_v1 = vld [vmem:[%s17121_s1 + $0xe0] sm:$0xff]  }
  0x62   : > { %933 = vmatprep.mubr.bf16.mxu1 %v13483_v2 }
  0x68   : > { %741 = vmatmul.mubr.bf16.gmra.mrb[24].mxu0 %v13526_v25 }
  0x69   : > { %934 = vmatmul.mubr.bf16.gmra.mrb[24].mxu1 %v13533_v29  ;;  %748 = vmatprep.mubr.bf16.mxu0 %v531_v31  ;;  %v1273_v31 = vld [vmem:[%s13229_s26 + $0x81] sm:$0xff] }
  0x6a   : > { %941 = vmatprep.mubr.bf16.mxu1 %v13539_v34 }
  0x70   : > { %749 = vmatmul.mubr.bf16.gmra.mrb[28].mxu0 %v13552_v20 }
  0x71   : > { %942 = vmatmul.mubr.bf16.gmra.mrb[28].mxu1 %v13555_v35  ;;  %1158 = vmatprep.mubr.bf16.mxu0 %v990_v41  ;;  %v12575_v41 = vld [vmem:[%s17121_s1 + $0x238] sm:$0xff]  }
  0x72   : > { %1447 = vmatprep.mubr.bf16.mxu1 %v13330_v14  ;;  %v12560_v14 = vld [vmem:[%s17121_s1 + $0x88] sm:$0xff]  }
  0x78   : > { %1159 = vmatmul.mubr.bf16.vlgmr.msra.gmra.mrb[32].mxu0 %v966_v45  ;;  %v12578_v45 = vld [vmem:[%s17121_s1 + $0xb8] sm:$0xff]  }
  0x79   : > { %1448 = vmatmul.mubr.bf16.vlgmr.msra.gmra.mrb[32].mxu1 %v13374_v28  ;;  %11137 = vmatpush3.bf16.msra.mxu0 %v12548_v36  ;;  %v12562_v28 = vld [vmem:[%s17121_s1 + $0xd0] sm:$0xff]   ;;  %v970_v36 = vpack.c.bf16 %v13457_v56, %v13409_v39  ;;  %v987_v56 = vld [vmem:[%s13229_s26 + $0x82] sm:$0xff] }
  0x7a   : > { %1166 = vmatprep.mubr.bf16.mxu0 %v991_v53  ;;  %1455 = vmatprep.mubr.bf16.mxu1 %v13380_v30  ;;  %v992_v30 = vpack.c.bf16 %v13386_v32, %v13339_v17  ;;  %v13612_v17 = vld [vmem:[%s13229_s26 + $0x99] sm:$0xff]  ;;  %v13615_v32 = vld [vmem:[%s13229_s26 + $0xa1] sm:$0xff]  ;;  %v995_v53 = vpack.c.bf16 %v13543_v37, %v13492_v10  ;;  %v1275_v10 = vld [vmem:[%s13229_s26 + $0x91] sm:$0xff]  ;;  %v971_v37 = vpack.c.bf16 %v13509_v15, %v13460_v57 }
  0x7b   : > { %11138 = vmatprep.subr.bf16.mxu0 %v12549_v3  ;;  %11201 = vmatpush3.bf16.msra.mxu1 %v12558_v47  ;;  %v2434_v58 = vpack.c.bf16 %v13615_v32, %v13612_v17  ;;  %v13708_v3 = vld [vmem:[%s13229_s26 + $0xc8] sm:$0xff]  ;;  %v13710_v47 = vpack.c.bf16 %v1274_v42, %v1273_v31 }
  0x7c   : > { %11202 = vmatprep.subr.bf16.mxu1 %v12559_v51  ;;  %v12588_v51 = vld [vmem:[%s17121_s1 + $0x140] sm:$0xff]   ;;  %v988_v57 = vld [vmem:[%s13229_s26 + $0x8a] sm:$0xff] }
  0x7d   : > { %11139 = vmatpush3.bf16.msra.mxu0 %v12550_v60  ;;  %v1260_v60 = vpack.c.bf16 %v13499_v11, %v13450_v54  ;;  %v13739_v54 = vld [vmem:[%s13229_s26 + $0x98] sm:$0xff]  ;;  %v13744_v15 = vld [vmem:[%s13229_s26 + $0xa9] sm:$0xff] }
  0x7e   : > { %11140 = vmatprep.subr.bf16.mxu0 %v12551_v4  ;;  %v996_v4 = vpack.c.bf16 %v987_v56, %v13547_v40  ;;  %v989_v11 = vld [vmem:[%s13229_s26 + $0x92] sm:$0xff]  ;;  %v972_v40 = vpack.c.bf16 %v1273_v31, %v13512_v18  ;;  %v1253_v18 = vld [vmem:[%s13229_s26 + $0xa0] sm:$0xff] }
  0x7f   : > { %11203 = vmatpush3.bf16.msra.mxu1 %v12560_v14  ;;  %v13727_v14 = vld [vmem:[%s13229_s26 + $0xd0] sm:$0xff]  ;;  %v12585_v31 = vld [vmem:[%s17121_s1 + $0x58] sm:$0xff]  }
  0x80   : > { %1167 = vmatmul.mubr.bf16.gmra.mrb[36].mxu0 %v967_v16  ;;  %11204 = vmatprep.subr.bf16.mxu1 %v12562_v28  ;;  %v13733_v16 = vld [vmem:[%s13229_s26 + $0xd8] sm:$0xff] }
  0x81   : > { %1456 = vmatmul.mubr.bf16.gmra.mrb[36].mxu1 %v13427_v44  ;;  %1174 = vmatprep.mubr.bf16.mxu0 %v992_v30  ;;  %v12566_v44 = vld [vmem:[%s17121_s1 + $0x98] sm:$0xff]   ;;  %v1906_v28 = vpack.c.bf16 %v13733_v16, %v13727_v14  ;;  %v1261_v30 = vpack.c.bf16 %v13739_v54, %v13502_v12  ;;  %v1254_v12 = vld [vmem:[%s13229_s26 + $0xa8] sm:$0xff] }
  0x82   : > { %1463 = vmatprep.mubr.bf16.mxu1 %v13433_v46  ;;  %11141 = vmatpush3.bf16.msra.mxu0 %v12552_v50  ;;  %v993_v46 = vpack.c.bf16 %v13439_v48, %v13389_v33  ;;  %v12563_v33 = vld [vmem:[%s17121_s1 + $0x228] sm:$0xff]   ;;  %v12567_v48 = vld [vmem:[%s17121_s1 + $0x270] sm:$0xff]   ;;  %v997_v50 = vpack.c.bf16 %v989_v11, %v988_v57 }
  0x83   : > { %11142 = vmatprep.subr.bf16.mxu0 %v12553_v52  ;;  %11205 = vmatpush3.bf16.msra.mxu1 %v12564_v63  ;;  %v13750_v52 = vld [vmem:[%s13229_s26 + $0xe0] sm:$0xff]  ;;  %v13754_v63 = vpack.c.bf16 %v13744_v15, %v13615_v32 }
  0x84   : > { %11206 = vmatprep.subr.bf16.mxu1 %v12565_v7  ;;  %v13757_v7 = vld [vmem:[%s13229_s26 + $0xe8] sm:$0xff] }
  0x86   : > { %11143 = vmatpush3.bf16.msra.mxu0 %v12554_v55  ;;  %v1907_v55 = vpack.c.bf16 %v13757_v7, %v13750_v52 }
  0x87   : > { %11144 = vmatprep.subr.bf16.mxu0 %v12555_v59  ;;  %11207 = vmatpush3.bf16.msra.mxu1 %v12566_v44  ;;  %v973_v59 = vpack.c.bf16 %v1275_v10, %v1274_v42  ;;  %v13764_v44 = vpack.c.bf16 %v1254_v12, %v1253_v18  ;;  %v13826_v42 = vld [vmem:[%s13229_s26 + $0xa2] sm:$0xff] }
  0x88   : > { %1175 = vmatmul.mubr.bf16.gmra.mrb[40].mxu0 %v968_v61  ;;  %11208 = vmatprep.subr.bf16.mxu1 %v12568_v1  ;;  %v13767_v61 = vld [vmem:[%s13229_s26 + $0xf0] sm:$0xff]  ;;  %v1992_v1 = vpack.c.bf16 %v1253_v18, %v13739_v54 }
  0x89   : > { %1464 = vmatmul.mubr.bf16.gmra.mrb[40].mxu1 %v13478_v0  ;;  %1182 = vmatprep.mubr.bf16.mxu0 %v993_v46  ;;  %v969_v0 = vpack.c.bf16 %v13406_v38, %v13357_v23  ;;  %v13677_v23 = vld [vmem:[%s13229_s26 + $0xb8] sm:$0xff]  ;;  %v12576_v38 = vld [vmem:[%s17121_s1 + $0xb0] sm:$0xff]  }
  0x8a   : > { %1471 = vmatprep.mubr.bf16.mxu1 %v13483_v2  ;;  %11145 = vmatpush3.bf16.msra.mxu0 %v12557_v5  ;;  %v12574_v2 = vld [vmem:[%s17121_s1 + $0xf0] sm:$0xff]   ;;  %v1904_v49 = vpack.c.bf16 %v13677_v23, %v13674_v26  ;;  %v13771_v46 = vld [vmem:[%s13229_s26 + $0xf8] sm:$0xff] }
  0x8b   : > { %11146 = vmatprep.subr.bf16.mxu0 %v12561_v6  ;;  %11209 = vmatpush3.bf16.msra.mxu1 %v12570_v8  ;;  %v1908_v5 = vpack.c.bf16 %v13771_v46, %v13767_v61  ;;  %v13777_v6 = vpack.c.bf16 %v988_v57, %v987_v56  ;;  %v12580_v8 = vld [vmem:[%s17121_s1] sm:$0xff]   ;;  %v13865_v57 = vld [vmem:[%s13229_s26 + $0xb2] sm:$0xff] }
  0x8c   : > { %11210 = vmatprep.subr.bf16.mxu1 %v12571_v22  ;;  %v1993_v22 = vpack.c.bf16 %v13674_v26, %v1254_v12  ;;  %v12606_v18 = vld [vmem:[%s17121_s1 + $0x170] sm:$0xff]  }
  0x8e   : > { %11147 = vmatpush3.bf16.msra.mxu0 %v12563_v33  ;;  %v12581_v33 = vld [vmem:[%s17121_s1 + $0x48] sm:$0xff]  }
  0x8f   : > { %11148 = vmatprep.subr.bf16.mxu0 %v12567_v48  ;;  %11211 = vmatpush3.bf16.msra.mxu1 %v12572_v13  ;;  %v12590_v48 = vld [vmem:[%s17121_s1 + $0x100] sm:$0xff]  }
  0x90   : > { %1183 = vmatmul.mubr.bf16.gmra.mrb[44].mxu0 %v969_v0  ;;  %11212 = vmatprep.subr.bf16.mxu1 %v12574_v2  ;;  %v13791_v13 = vld [vmem:[%s13229_s26 + $0x9a] sm:$0xff]  ;;  %v12591_v0 = vld [vmem:[%s17121_s1 + $0x148] sm:$0xff]  }
  0x91   : > { %1472 = vmatmul.mubr.bf16.gmra.mrb[44].mxu1 %v13533_v29  ;;  %1190 = vmatprep.mubr.bf16.mxu0 %v994_v19  ;;  %v12579_v29 = vld [vmem:[%s17121_s1 + $0x40] sm:$0xff]   ;;  %v12582_v2 = vld [vmem:[%s17121_s1 + $0x8] sm:$0xff]  }
  0x92   : > { %1479 = vmatprep.mubr.bf16.mxu1 %v13539_v34  ;;  %11149 = vmatpush3.bf16.msra.mxu0 %v12569_v21  ;;  %v13703_v34 = vld [vmem:[%s13229_s26 + $0xc0] sm:$0xff]  ;;  %v12592_v19 = vld [vmem:[%s17121_s1 + $0x108] sm:$0xff]   ;;  %v12594_v21 = vld [vmem:[%s17121_s1 + $0x150] sm:$0xff]  }
  0x93   : > { %11150 = vmatprep.subr.bf16.mxu0 %v12573_v24  ;;  %11213 = vmatpush3.bf16.msra.mxu1 %v12576_v38  ;;  %v1905_v39 = vpack.c.bf16 %v13708_v3, %v13703_v34  ;;  %v13811_v24 = vpack.c.bf16 %v13791_v13, %v989_v11  ;;  %v12584_v38 = vld [vmem:[%s17121_s1 + $0x10] sm:$0xff]   ;;  %v12603_v11 = vld [vmem:[%s17121_s1 + $0x168] sm:$0xff]  }
  0x94   : > { %11214 = vmatprep.subr.bf16.mxu1 %v12577_v9  ;;  %v1994_v9 = vpack.c.bf16 %v13703_v34, %v13677_v23 }
  0x96   : > { %11151 = vmatpush3.bf16.msra.mxu0 %v12575_v41  ;;  %v12596_v41 = vld [vmem:[%s17121_s1 + $0x110] sm:$0xff]  }
  0x97   : > { %11215 = vmatpush3.bf16.msra.mxu1 %v12578_v45  ;;  %11264 = vmatprep.subr.bf16.mxu0 %v12579_v29  ;;  %v12597_v45 = vld [vmem:[%s17121_s1 + $0x158] sm:$0xff]   ;;  %v13834_v29 = vld [vmem:[%s13229_s26 + $0xaa] sm:$0xff] }
  0x98   : > { %1191 = vmatmul.mubr.bf16.gmra.mrb[48].mxu0 %v970_v36  ;;  %11328 = vmatprep.subr.bf16.mxu1 %v12588_v51  ;;  %v12586_v36 = vld [vmem:[%s17121_s1 + $0x18] sm:$0xff]   ;;  %v12600_v51 = vld [vmem:[%s17121_s1 + $0x160] sm:$0xff]   ;;  %v13850_v56 = vpack.c.bf16 %v13834_v29, %v13826_v42 }
  0x99   : > { %1480 = vmatmul.mubr.bf16.gmra.mrb[48].mxu1 %v13555_v35  ;;  %1198 = vmatprep.mubr.bf16.mxu0 %v995_v53  ;;  %v13730_v35 = vpack.c.bf16 %v13612_v17, %v1275_v10  ;;  %v12598_v53 = vld [vmem:[%s17121_s1 + $0x118] sm:$0xff]   ;;  %v12589_v10 = vld [vmem:[%s17121_s1 + $0x20] sm:$0xff]   ;;  %v12624_v17 = vld [vmem:[%s17121_s1 + $0x208] sm:$0xff]  }
  0x9a   : > { %1487 = vmatprep.mubr.bf16.mxu1 %v13710_v47 }
  0xa0   : > { %1199 = vmatmul.mubr.bf16.gmra.mrb[52].mxu0 %v971_v37  ;;  %v1995_v37 = vpack.c.bf16 %v13727_v14, %v13708_v3 }
  0xa1   : > { %1488 = vmatmul.mubr.bf16.gmra.mrb[52].mxu1 %v1260_v60  ;;  %1206 = vmatprep.mubr.bf16.mxu0 %v996_v4  ;;  %v12593_v60 = vld [vmem:[%s17121_s1 + $0x68] sm:$0xff]   ;;  %v12602_v4 = vld [vmem:[%s17121_s1 + $0x120] sm:$0xff]  }
  0xa2   : > { %1495 = vmatprep.mubr.bf16.mxu1 %v13730_v35 }
  0xa8   : > { %1207 = vmatmul.mubr.bf16.gmra.mrb[56].mxu0 %v972_v40  ;;  %v13873_v40 = vld [vmem:[%s13229_s26 + $0xba] sm:$0xff] }
  0xa9   : > { %1496 = vmatmul.mubr.bf16.gmra.mrb[56].mxu1 %v1261_v30  ;;  %1214 = vmatprep.mubr.bf16.mxu0 %v997_v50  ;;  %v12595_v30 = vld [vmem:[%s17121_s1 + $0x28] sm:$0xff]   ;;  %v13889_v12 = vpack.c.bf16 %v13873_v40, %v13865_v57 }
  0xaa   : > { %1503 = vmatprep.mubr.bf16.mxu1 %v13754_v63  ;;  %v12604_v50 = vld [vmem:[%s17121_s1 + $0x128] sm:$0xff]  }
  0xb0   : > { %1215 = vmatmul.mubr.bf16.gmra.mrb[60].mxu0 %v973_v59  ;;  %v1996_v59 = vpack.c.bf16 %v13750_v52, %v13733_v16 }
  0xb1   : > { %1504 = vmatmul.mubr.bf16.gmra.mrb[60].mxu1 %v13764_v44  ;;  %1712 = vmatprep.mubr.bf16.mxu0 %v13371_v27 }
  0xb2   : > { %2160 = vmatprep.mubr.bf16.mxu1 %v1992_v1  ;;  %v12601_v1 = vld [vmem:[%s17121_s1 + $0x30] sm:$0xff]  }
  0xb8   : > { %1713 = vmatmul.mubr.bf16.vlgmr.msra.gmra.mrb[64].mxu0 %v13371_v27  ;;  %v12583_v27 = vld [vmem:[%s17121_s1 + $0x50] sm:$0xff]  }
  0xb9   : > { %2161 = vmatmul.mubr.bf16.vlgmr.msra.gmra.mrb[64].mxu1 %v13777_v6  ;;  %11265 = vmatpush3.bf16.msra.mxu0 %v12580_v8  ;;  %v12605_v8 = vld [vmem:[%s17121_s1 + $0x78] sm:$0xff]  }
  0xba   : > { %1720 = vmatprep.mubr.bf16.mxu0 %v13423_v43  ;;  %2168 = vmatprep.mubr.bf16.mxu1 %v1993_v22  ;;  %v12608_v22 = vld [vmem:[%s17121_s1 + $0x130] sm:$0xff]  }
  0xbb   : > { %11266 = vmatprep.subr.bf16.mxu0 %v12581_v33  ;;  %11329 = vmatpush3.bf16.msra.mxu1 %v12590_v48  ;;  %v13904_v33 = vld [vmem:[%s13229_s26 + $0xc2] sm:$0xff]  ;;  %v13907_v48 = vld [vmem:[%s13229_s26 + $0xca] sm:$0xff] }
  0xbc   : > { %11330 = vmatprep.subr.bf16.mxu1 %v12591_v0  ;;  %v12609_v0 = vld [vmem:[%s17121_s1 + $0x178] sm:$0xff]  }
  0xbd   : > { %11267 = vmatpush3.bf16.msra.mxu0 %v12582_v2  ;;  %v12607_v2 = vld [vmem:[%s17121_s1 + $0x38] sm:$0xff]  }
  0xbe   : > { %11268 = vmatprep.subr.bf16.mxu0 %v12583_v27  ;;  %v12611_v27 = vld [vmem:[%s17121_s1 + $0x1c0] sm:$0xff]  }
  0xbf   : > { %11331 = vmatpush3.bf16.msra.mxu1 %v12592_v19  ;;  %v12620_v19 = vld [vmem:[%s17121_s1 + $0x240] sm:$0xff]  }
  0xc0   : > { %1721 = vmatmul.mubr.bf16.gmra.mrb[68].mxu0 %v13423_v43  ;;  %11332 = vmatprep.subr.bf16.mxu1 %v12594_v21  ;;  %v12587_v43 = vld [vmem:[%s17121_s1 + $0x60] sm:$0xff]   ;;  %v13928_v21 = vpack.c.bf16 %v13907_v48, %v13904_v33 }
  0xc1   : > { %2169 = vmatmul.mubr.bf16.gmra.mrb[68].mxu1 %v13811_v24  ;;  %1728 = vmatprep.mubr.bf16.mxu0 %v13474_v62 }
  0xc2   : > { %2176 = vmatprep.mubr.bf16.mxu1 %v1994_v9  ;;  %11269 = vmatpush3.bf16.msra.mxu0 %v12584_v38  ;;  %v1997_v38 = vpack.c.bf16 %v13767_v61, %v13757_v7  ;;  %v13936_v9 = vld [vmem:[%s13229_s26 + $0xd2] sm:$0xff]  ;;  %v12644_v61 = vld [vmem:[%s17121_s1 + $0x80] sm:$0xff]  }
  0xc3   : > { %11270 = vmatprep.subr.bf16.mxu0 %v12585_v31  ;;  %11333 = vmatpush3.bf16.msra.mxu1 %v12596_v41  ;;  %v13939_v31 = vld [vmem:[%s13229_s26 + $0xda] sm:$0xff] }
  0xc4   : > { %11334 = vmatprep.subr.bf16.mxu1 %v12597_v45  ;;  %v1989_v41 = vld [vmem:[%s13229_s26 + $0x100] sm:$0xff]  ;;  %v13944_v45 = vpack.c.bf16 %v13939_v31, %v13936_v9 }
  0xc6   : > { %11271 = vmatpush3.bf16.msra.mxu0 %v12586_v36  ;;  %v13951_v36 = vld [vmem:[%s13229_s26 + $0xe2] sm:$0xff] }
  0xc7   : > { %11272 = vmatprep.subr.bf16.mxu0 %v12587_v43  ;;  %11335 = vmatpush3.bf16.msra.mxu1 %v12598_v53  ;;  %v13954_v43 = vld [vmem:[%s13229_s26 + $0xea] sm:$0xff] }
  0xc8   : > { %1729 = vmatmul.mubr.bf16.gmra.mrb[72].mxu0 %v13474_v62  ;;  %11336 = vmatprep.subr.bf16.mxu1 %v12600_v51  ;;  %v12599_v62 = vld [vmem:[%s17121_s1 + $0x70] sm:$0xff]   ;;  %v1990_v53 = vld [vmem:[%s13229_s26 + $0x108] sm:$0xff] }
  0xc9   : > { %2177 = vmatmul.mubr.bf16.gmra.mrb[72].mxu1 %v13850_v56  ;;  %1736 = vmatprep.mubr.bf16.mxu0 %v13526_v25  ;;  %v1991_v51 = vld [vmem:[%s13229_s26 + $0x110] sm:$0xff] }
  0xca   : > { %2184 = vmatprep.mubr.bf16.mxu1 %v1995_v37  ;;  %11273 = vmatpush3.bf16.msra.mxu0 %v12589_v10  ;;  %v13960_v10 = vpack.c.bf16 %v13954_v43, %v13951_v36  ;;  %v1999_v37 = vpack.c.bf16 %v1991_v51, %v1990_v53  ;;  %v2461_v53 = vpack.c.bf16 %v13936_v9, %v13907_v48  ;;  %v12635_v51 = vld [vmem:[%s17121_s1 + $0x268] sm:$0xff]   ;;  %v12631_v9 = vld [vmem:[%s17121_s1 + $0x1f0] sm:$0xff]  }
  0xcb   : > { %11274 = vmatprep.subr.bf16.mxu0 %v12593_v60  ;;  %11337 = vmatpush3.bf16.msra.mxu1 %v12602_v4  ;;  %v13969_v60 = vld [vmem:[%s13229_s26 + $0xfa] sm:$0xff] }
  0xcc   : > { %11338 = vmatprep.subr.bf16.mxu1 %v12603_v11  ;;  %v2458_v11 = vpack.c.bf16 %v13826_v42, %v13791_v13  ;;  %v12613_v13 = vld [vmem:[%s17121_s1 + $0x1c8] sm:$0xff]   ;;  %v12622_v42 = vld [vmem:[%s17121_s1 + $0x200] sm:$0xff]  }
  0xce   : > { %11275 = vmatpush3.bf16.msra.mxu0 %v12595_v30  ;;  %v1886_v30 = vld [vmem:[%s13229_s26 + $0x88] sm:$0xff] }
  0xcf   : > { %11276 = vmatprep.subr.bf16.mxu0 %v12599_v62  ;;  %11339 = vmatpush3.bf16.msra.mxu1 %v12604_v50  ;;  %v12612_v50 = vld [vmem:[%s17121_s1 + $0x180] sm:$0xff]  }
  0xd0   : > { %1737 = vmatmul.mubr.bf16.gmra.mrb[76].mxu0 %v13526_v25  ;;  %11340 = vmatprep.subr.bf16.mxu1 %v12606_v18  ;;  %v12610_v25 = vld [vmem:[%s17121_s1 + $0x138] sm:$0xff]   ;;  %v2459_v18 = vpack.c.bf16 %v13865_v57, %v13834_v29  ;;  %v12614_v29 = vld [vmem:[%s17121_s1 + $0x188] sm:$0xff]   ;;  %v12615_v57 = vld [vmem:[%s17121_s1 + $0x1d0] sm:$0xff]  }
  0xd1   : > { %2185 = vmatmul.mubr.bf16.gmra.mrb[76].mxu1 %v13889_v12  ;;  %1744 = vmatprep.mubr.bf16.mxu0 %v13552_v20 }
  0xd2   : > { %2192 = vmatprep.mubr.bf16.mxu1 %v1996_v59  ;;  %11277 = vmatpush3.bf16.msra.mxu0 %v12601_v1  ;;  %v1887_v59 = vld [vmem:[%s13229_s26 + $0x90] sm:$0xff] }
  0xd3   : > { %11278 = vmatprep.subr.bf16.mxu0 %v12605_v8  ;;  %11341 = vmatpush3.bf16.msra.mxu1 %v12608_v22  ;;  %v1902_v32 = vpack.c.bf16 %v13739_v54, %v1887_v59  ;;  %v12616_v1 = vld [vmem:[%s17121_s1 + $0x190] sm:$0xff]   ;;  %v2460_v8 = vpack.c.bf16 %v13904_v33, %v13873_v40  ;;  %v12617_v54 = vld [vmem:[%s17121_s1 + $0x1d8] sm:$0xff]   ;;  %v12619_v33 = vld [vmem:[%s17121_s1 + $0x1e0] sm:$0xff]  }
  0xd4   : > { %11342 = vmatprep.subr.bf16.mxu1 %v12609_v0  ;;  %v12628_v22 = vld [vmem:[%s17121_s1 + $0x210] sm:$0xff]   ;;  %v2423_v0 = vld [vmem:[%s13229_s26 + $0xc1] sm:$0xff]  ;;  %v12629_v40 = vld [vmem:[%s17121_s1 + $0x258] sm:$0xff]  }
  0xd6   : > { %11279 = vmatpush3.bf16.msra.mxu0 %v12607_v2  ;;  %v12618_v2 = vld [vmem:[%s17121_s1 + $0x198] sm:$0xff]  }
  0xd7   : > { %11343 = vmatpush3.bf16.msra.mxu1 %v12610_v25  ;;  %11392 = vmatprep.subr.bf16.mxu0 %v12611_v27  ;;  %v12630_v25 = vld [vmem:[%s17121_s1 + $0x218] sm:$0xff]   ;;  %v12632_v27 = vld [vmem:[%s17121_s1 + $0x260] sm:$0xff]  }
  0xd8   : > { %1745 = vmatmul.mubr.bf16.gmra.mrb[80].mxu0 %v13552_v20  ;;  %11456 = vmatprep.subr.bf16.mxu1 %v12620_v19  ;;  %v1998_v20 = vpack.c.bf16 %v1989_v41, %v13771_v46  ;;  %v12625_v41 = vld [vmem:[%s17121_s1 + $0x1e8] sm:$0xff]  }
  0xd9   : > { %2193 = vmatmul.mubr.bf16.gmra.mrb[80].mxu1 %v13928_v21  ;;  %1752 = vmatprep.mubr.bf16.mxu0 %v13777_v6 }
  0xda   : > { %2200 = vmatprep.mubr.bf16.mxu1 %v1997_v38 }
  0xe0   : > { %1753 = vmatmul.mubr.bf16.gmra.mrb[84].mxu0 %v13777_v6  ;;  %v13966_v6 = vld [vmem:[%s13229_s26 + $0xf2] sm:$0xff] }
  0xe1   : > { %2201 = vmatmul.mubr.bf16.gmra.mrb[84].mxu1 %v13944_v45  ;;  %1760 = vmatprep.mubr.bf16.mxu0 %v13811_v24  ;;  %v13973_v4 = vpack.c.bf16 %v13969_v60, %v13966_v6 }
  0xe2   : > { %2208 = vmatprep.mubr.bf16.mxu1 %v1998_v20  ;;  %v12634_v20 = vld [vmem:[%s17121_s1 + $0x220] sm:$0xff]  }
  0xe8   : > { %1761 = vmatmul.mubr.bf16.gmra.mrb[88].mxu0 %v13811_v24  ;;  %v1885_v24 = vld [vmem:[%s13229_s26 + $0x80] sm:$0xff] }
  0xe9   : > { %2209 = vmatmul.mubr.bf16.gmra.mrb[88].mxu1 %v13960_v10  ;;  %1768 = vmatprep.mubr.bf16.mxu0 %v13850_v56  ;;  %v1901_v62 = vpack.c.bf16 %v1886_v30, %v1885_v24  ;;  %v12627_v24 = vld [vmem:[%s17121_s1 + $0x1a8] sm:$0xff]  }
  0xea   : > { %2216 = vmatprep.mubr.bf16.mxu1 %v1999_v37  ;;  %v2424_v37 = vld [vmem:[%s13229_s26 + $0xc9] sm:$0xff] }
  0xf0   : > { %1769 = vmatmul.mubr.bf16.gmra.mrb[92].mxu0 %v13850_v56  ;;  %v12623_v56 = vld [vmem:[%s17121_s1 + $0x248] sm:$0xff]  }
  0xf1   : > { %2217 = vmatmul.mubr.bf16.gmra.mrb[92].mxu1 %v13973_v4  ;;  %2353 = vmatprep.mubr.bf16.mxu0 %v13710_v47  ;;  %v2421_v47 = vld [vmem:[%s13229_s26 + $0xb1] sm:$0xff] }
  0xf2   : > { %2626 = vmatprep.mubr.bf16.mxu1 %v2458_v11  ;;  %v2425_v11 = vld [vmem:[%s13229_s26 + $0xd1] sm:$0xff] }
  0xf8   : > { %2354 = vmatmul.mubr.bf16.vlgmr.msra.gmra.mrb[96].mxu0 %v1901_v62 }
  0xf9   : > { %2627 = vmatmul.mubr.bf16.vlgmr.msra.gmra.mrb[96].mxu1 %v2434_v58  ;;  %11393 = vmatpush3.bf16.msra.mxu0 %v12612_v50  ;;  %v12626_v58 = vld [vmem:[%s17121_s1 + $0x250] sm:$0xff]  }
  0xfa   : > { %2361 = vmatprep.mubr.bf16.mxu0 %v13730_v35  ;;  %2634 = vmatprep.mubr.bf16.mxu1 %v2459_v18  ;;  %v2435_v35 = vpack.c.bf16 %v2421_v47, %v13744_v15  ;;  %v2422_v15 = vld [vmem:[%s13229_s26 + $0xb9] sm:$0xff]  ;;  %v12638_v50 = vld [vmem:[%s17121_s1 + $0x270] sm:$0xff]  }
  0xfb   : > { %11394 = vmatprep.subr.bf16.mxu0 %v12613_v13  ;;  %11457 = vmatpush3.bf16.msra.mxu1 %v12622_v42  ;;  %v2436_v19 = vpack.c.bf16 %v2423_v0, %v2422_v15  ;;  %v14048_v38 = vpack.c.bf16 %v2422_v15, %v2421_v47  ;;  %v2437_v42 = vpack.c.bf16 %v2425_v11, %v2424_v37  ;;  %v2427_v15 = vld [vmem:[%s13229_s26 + $0xe1] sm:$0xff] }
  0xfc   : > { %11458 = vmatprep.subr.bf16.mxu1 %v12623_v56  ;;  %v14077_v47 = vpack.c.bf16 %v2424_v37, %v2423_v0  ;;  %v12639_v0 = vld [vmem:[%s17121_s1 + $0x1b8] sm:$0xff]  }
  0xfd   : > { %11395 = vmatpush3.bf16.msra.mxu0 %v12614_v29 }
  0xfe   : > { %11396 = vmatprep.subr.bf16.mxu0 %v12615_v57 }
  0xff   : > { %11459 = vmatpush3.bf16.msra.mxu1 %v12624_v17  ;;  %v2462_v17 = vpack.c.bf16 %v13951_v36, %v13939_v31  ;;  %v12641_v31 = vld [vmem:[%s17121_s1 + $0x278] sm:$0xff]  }
 0x100   : > { %2362 = vmatmul.mubr.bf16.gmra.mrb[100].mxu0 %v1902_v32  ;;  %11460 = vmatprep.subr.bf16.mxu1 %v12626_v58  ;;  %v12633_v32 = vld [vmem:[%s17121_s1 + $0x1b0] sm:$0xff]   ;;  %v12637_v58 = vld [vmem:[%s17121_s1 + $0x1f8] sm:$0xff]  }
 0x101   : > { %2635 = vmatmul.mubr.bf16.gmra.mrb[100].mxu1 %v2435_v35  ;;  %2369 = vmatprep.mubr.bf16.mxu0 %v13754_v63  ;;  %v12621_v63 = vld [vmem:[%s17121_s1 + $0x1a0] sm:$0xff]   ;;  %v12640_v35 = vld [vmem:[%s17121_s1 + $0x230] sm:$0xff]  }
 0x102   : > { %2642 = vmatprep.mubr.bf16.mxu1 %v2460_v8  ;;  %11397 = vmatpush3.bf16.msra.mxu0 %v12616_v1 }
 0x103   : > { %11398 = vmatprep.subr.bf16.mxu0 %v12617_v54  ;;  %11461 = vmatpush3.bf16.msra.mxu1 %v12628_v22  ;;  %v2426_v22 = vld [vmem:[%s13229_s26 + $0xd9] sm:$0xff] }
 0x104   : > { %11462 = vmatprep.subr.bf16.mxu1 %v12629_v40  ;;  %v12643_v40 = vld [vmem:[%s17121_s1 + $0xc0] sm:$0xff]  }
 0x106   : > { %11399 = vmatpush3.bf16.msra.mxu0 %v12618_v2  ;;  %v12642_v2 = vld [vmem:[%s17121_s1 + $0x238] sm:$0xff]  }
 0x107   : > { %11400 = vmatprep.subr.bf16.mxu0 %v12619_v33  ;;  %11463 = vmatpush3.bf16.msra.mxu1 %v12630_v25 }
 0x108   : > { %2370 = vmatmul.mubr.bf16.gmra.mrb[104].mxu0 %v13764_v44  ;;  %11464 = vmatprep.subr.bf16.mxu1 %v12632_v27  ;;  %v12636_v44 = vld [vmem:[%s17121_s1 + $0x228] sm:$0xff]  }
 0x109   : > { %2643 = vmatmul.mubr.bf16.gmra.mrb[104].mxu1 %v2436_v19  ;;  %2377 = vmatprep.mubr.bf16.mxu0 %v14048_v38 }
 0x10a   : > { %2650 = vmatprep.mubr.bf16.mxu1 %v2461_v53  ;;  %11401 = vmatpush3.bf16.msra.mxu0 %v12621_v63 }
 0x10b   : > { %v10896_v48 = vpop.f32.mrb[0].mxu0  ;;  %11402 = vmatprep.subr.bf16.mxu0 %v12625_v41  ;;  %11465 = vmatpush3.bf16.msra.mxu1 %v12634_v20  ;;  %v2438_v41 = vpack.c.bf16 %v2427_v15, %v2426_v22  ;;  %v14115_v20 = vpack.c.bf16 %v2426_v22, %v2425_v11  ;;  %v2428_v11 = vld [vmem:[%s13229_s26 + $0xe9] sm:$0xff] }
 0x10c   : > { %v10960_v30 = vpop.f32.mrb[0].mxu1  ;;  %v10897_v62 = vpop.f32.mrb[1].mxu0  ;;  %11466 = vmatprep.subr.bf16.mxu1 %v12635_v51 }
 0x10d   : > { %v10898_v18 = vadd.f32 %v10897_v62, %v10896_v48  ;;  %v10961_v59 = vpop.f32.mrb[1].mxu1  ;;  %v10899_v13 = vpop.f32.mrb[2].mxu0  ;;  %v2429_v62 = vld [vmem:[%s13229_s26 + $0xf1] sm:$0xff] }
 0x10e   : > { %v10962_v56 = vadd.f32 %v10961_v59, %v10960_v30  ;;  %v10963_v29 = vpop.f32.mrb[2].mxu1  ;;  %v10900_v57 = vpop.f32.mrb[3].mxu0  ;;  %11403 = vmatpush3.bf16.msra.mxu0 %v12627_v24  ;;  %v2463_v24 = vpack.c.bf16 %v13966_v6, %v13954_v43  ;;  %v2439_v3 = vpack.c.bf16 %v2429_v62, %v2428_v11 }
 0x10f   : > { %v10901_v1 = vadd.f32 %v10900_v57, %v10899_v13  ;;  %v10964_v8 = vpop.f32.mrb[3].mxu1  ;;  %11404 = vmatprep.subr.bf16.mxu0 %v12631_v9  ;;  %11467 = vmatpush3.bf16.msra.mxu1 %v12636_v44 }
 0x110   : > { %v14093_v36 = vadd.f32 %v10962_v56, %v10898_v18  ;;  %v10965_v54 = vadd.f32 %v10964_v8, %v10963_v29  ;;  %2378 = vmatmul.mubr.bf16.gmra.mrb[108].mxu0 %v1904_v49  ;;  %11468 = vmatprep.subr.bf16.mxu1 %v12638_v50  ;;  %v12652_v49 = vld [vmem:[%s17121_s1 + $0x40] sm:$0xff]  }
 0x111   : > { %2651 = vmatmul.mubr.bf16.gmra.mrb[108].mxu1 %v2437_v42  ;;  %2385 = vmatprep.mubr.bf16.mxu0 %v14077_v47  ;;  %v14130_v50 = vld [vmem:[%s13229_s26 + $0x102] sm:$0xff]  ;;  %v2430_v8 = vld [vmem:[%s13229_s26 + $0xf9] sm:$0xff] }
 0x112   : > { %v14110_v26 = vadd.f32 %v10965_v54, %v10901_v1  ;;  %2658 = vmatprep.mubr.bf16.mxu1 %v2462_v17  ;;  %11405 = vmatpush3.bf16.msra.mxu0 %v12633_v32  ;;  %v2464_v17 = vpack.c.bf16 %v14130_v50, %v13969_v60  ;;  %v14149_v60 = vld [vmem:[%s13229_s26 + $0x10a] sm:$0xff] }
 0x113   : > { %v10902_v23 = vpop.f32.mrb[4].mxu0  ;;  %11406 = vmatprep.subr.bf16.mxu0 %v12637_v58  ;;  %11469 = vmatpush3.bf16.msra.mxu1 %v12640_v35 }
 0x114   : > { %v10966_v33 = vpop.f32.mrb[4].mxu1  ;;  %v10903_v25 = vpop.f32.mrb[5].mxu0  ;;  %11470 = vmatprep.subr.bf16.mxu1 %v12641_v31  ;;  %v14143_v31 = vld [vmem:[%s13229_s26 + $0x101] sm:$0xff] }
 0x115   : > { %v10904_v27 = vadd.f32 %v10903_v25, %v10902_v23  ;;  %v10967_v63 = vpop.f32.mrb[5].mxu1  ;;  %v10905_v19 = vpop.f32.mrb[6].mxu0  ;;  %v14155_v23 = vpack.c.bf16 %v2430_v8, %v2429_v62 }
 0x116   : > { %v10968_v53 = vadd.f32 %v10967_v63, %v10966_v33  ;;  %v10969_v51 = vpop.f32.mrb[6].mxu1  ;;  %v10906_v37 = vpop.f32.mrb[7].mxu0  ;;  %11407 = vmatpush3.bf16.msra.mxu0 %v12639_v0 }
 0x117   : > { %v10907_v48 = vadd.f32 %v10906_v37, %v10905_v19  ;;  %v10970_v9 = vpop.f32.mrb[7].mxu1  ;;  %11471 = vmatpush3.bf16.msra.mxu1 %v12642_v2  ;;  %11520 = vmatprep.subr.bf16.mxu0 %v12643_v40  ;;  %v2440_v40 = vpack.c.bf16 %v14143_v31, %v2430_v8  ;;  %v14168_v37 = vld [vmem:[%s13229_s26 + $0x111] sm:$0xff] }
 0x118   : > { %v14119_v44 = vadd.f32 %v10968_v53, %v10904_v27  ;;  %v10971_v30 = vadd.f32 %v10970_v9, %v10969_v51  ;;  %2386 = vmatmul.mubr.bf16.gmra.mrb[112].mxu0 %v1905_v39  ;;  %11584 = vmatprep.subr.bf16.mxu1 %v12652_v49  ;;  %v14132_v39 = vpack.c.bf16 %v2428_v11, %v2427_v15  ;;  %v14152_v15 = vld [vmem:[%s13229_s26 + $0x112] sm:$0xff]  ;;  %v14165_v51 = vld [vmem:[%s13229_s26 + $0x109] sm:$0xff] }
 0x119   : > { %2659 = vmatmul.mubr.bf16.gmra.mrb[112].mxu1 %v2438_v41  ;;  %2393 = vmatprep.mubr.bf16.mxu0 %v14115_v20  ;;  %v2465_v27 = vpack.c.bf16 %v14152_v15, %v14149_v60  ;;  %v2441_v52 = vpack.c.bf16 %v14168_v37, %v14165_v51 }
 0x11a   : > { %v14127_v43 = vadd.f32 %v10971_v30, %v10907_v48  ;;  %2666 = vmatprep.mubr.bf16.mxu1 %v2463_v24 }
 0x11b   : > { %v10908_v6 = vpop.f32.mrb[8].mxu0 }
 0x11c   : > { %v10972_v18 = vpop.f32.mrb[8].mxu1  ;;  %v10909_v59 = vpop.f32.mrb[9].mxu0 }
 0x11d   : > { %v10910_v13 = vadd.f32 %v10909_v59, %v10908_v6  ;;  %v10973_v42 = vpop.f32.mrb[9].mxu1  ;;  %v10911_v34 = vpop.f32.mrb[10].mxu0 }
 0x11e   : > { %v10974_v56 = vadd.f32 %v10973_v42, %v10972_v18  ;;  %v10975_v29 = vpop.f32.mrb[10].mxu1  ;;  %v10912_v57 = vpop.f32.mrb[11].mxu0 }
 0x11f   : > { %v10913_v32 = vadd.f32 %v10912_v57, %v10911_v34  ;;  %v10976_v58 = vpop.f32.mrb[11].mxu1 }
 0x120   : > { %v14136_v35 = vadd.f32 %v10974_v56, %v10910_v13  ;;  %v10977_v1 = vadd.f32 %v10976_v58, %v10975_v29  ;;  %2394 = vmatmul.mubr.bf16.gmra.mrb[116].mxu0 %v1906_v28  ;;  %v2708_v56 = vld [vmem:[%s13229_s26 + $0xb8] sm:$0xff] }
 0x121   : > { %2667 = vmatmul.mubr.bf16.gmra.mrb[116].mxu1 %v2439_v3  ;;  %2401 = vmatprep.mubr.bf16.mxu0 %v14132_v39  ;;  %v2707_v3 = vld [vmem:[%s13229_s26 + $0xb0] sm:$0xff] }
 0x122   : > { %v14146_v54 = vadd.f32 %v10977_v1, %v10913_v32  ;;  %2674 = vmatprep.mubr.bf16.mxu1 %v2464_v17  ;;  %v2723_v58 = vpack.c.bf16 %v2708_v56, %v2707_v3 }
 0x123   : > { %v10914_v22 = vpop.f32.mrb[12].mxu0 }
 0x124   : > { %v10978_v0 = vpop.f32.mrb[12].mxu1  ;;  %v10915_v2 = vpop.f32.mrb[13].mxu0 }
 0x125   : > { %v10916_v14 = vadd.f32 %v10915_v2, %v10914_v22  ;;  %v10979_v16 = vpop.f32.mrb[13].mxu1  ;;  %v10917_v28 = vpop.f32.mrb[14].mxu0  ;;  %v12654_v2 = vld [vmem:[%s17121_s1] sm:$0xff]  }
 0x126   : > { %v10980_v49 = vadd.f32 %v10979_v16, %v10978_v0  ;;  %v10981_v33 = vpop.f32.mrb[14].mxu1  ;;  %v10918_v25 = vpop.f32.mrb[15].mxu0 }
 0x127   : > { %v10919_v63 = vadd.f32 %v10918_v25, %v10917_v28  ;;  %v10982_v19 = vpop.f32.mrb[15].mxu1 }
 0x128   : > { %v14159_v41 = vadd.f32 %v10980_v49, %v10916_v14  ;;  %v10983_v53 = vadd.f32 %v10982_v19, %v10981_v33  ;;  %2402 = vmatmul.mubr.bf16.gmra.mrb[120].mxu0 %v1907_v55  ;;  %v12655_v14 = vld [vmem:[%s17121_s1 + $0x48] sm:$0xff]   ;;  %v13024_v19 = vmov 0.0  }
 0x129   : > { %2675 = vmatmul.mubr.bf16.gmra.mrb[120].mxu1 %v2440_v40  ;;  %2409 = vmatprep.mubr.bf16.mxu0 %v14155_v23  ;;  %v2709_v40 = vld [vmem:[%s13229_s26 + $0xc0] sm:$0xff]  ;;  %v2710_v49 = vld [vmem:[%s13229_s26 + $0xc8] sm:$0xff]  ;;  %387 = vst [vmem:[#allocation3 + $0x10] sm:$0xff] %v13024_v19  ;;  %385 = vst [vmem:[#allocation3] sm:$0xff] %v13024_v19 }
 0x12a   : > { %v14171_v24 = vadd.f32 %v10983_v53, %v10919_v63  ;;  %2682 = vmatprep.mubr.bf16.mxu1 %v2465_v27  ;;  %v12646_v33 = vld [vmem:[%s17121_s1 + $0x88] sm:$0xff]   ;;  %v12647_v63 = vld [vmem:[%s17121_s1 + $0xd0] sm:$0xff]   ;;  %386 = vst [vmem:[#allocation3 + $0x8] sm:$0xff] %v13024_v19  ;;  %389 = vst [vmem:[#allocation3 + $0x20] sm:$0xff] %v13024_v19 }
 0x12b   : > { %v10920_v48 = vpop.f32.mrb[16].mxu0  ;;  %391 = vst [vmem:[#allocation3 + $0x30] sm:$0xff] %v13024_v19  ;;  %393 = vst [vmem:[#allocation3 + $0x40] sm:$0xff] %v13024_v19  ;;  %v12656_v53 = vld [vmem:[%s17121_s1 + $0x8] sm:$0xff]  }
 0x12c   : > { %v10984_v9 = vpop.f32.mrb[16].mxu1  ;;  %v10921_v30 = vpop.f32.mrb[17].mxu0  ;;  %395 = vst [vmem:[#allocation3 + $0x50] sm:$0xff] %v13024_v19  ;;  %397 = vst [vmem:[#allocation3 + $0x60] sm:$0xff] %v13024_v19 }
 0x12d   : > { %v10922_v11 = vadd.f32 %v10921_v30, %v10920_v48  ;;  %v10985_v62 = vpop.f32.mrb[17].mxu1  ;;  %v10923_v6 = vpop.f32.mrb[18].mxu0  ;;  %399 = vst [vmem:[#allocation3 + $0x70] sm:$0xff] %v13024_v19  ;;  %401 = vst [vmem:[#allocation3 + $0x80] sm:$0xff] %v13024_v19  ;;  %v12658_v30 = vld [vmem:[%s17121_s1 + $0x50] sm:$0xff]  }
 0x12e   : > { %v10986_v7 = vadd.f32 %v10985_v62, %v10984_v9  ;;  %v10987_v55 = vpop.f32.mrb[18].mxu1  ;;  %v10924_v18 = vpop.f32.mrb[19].mxu0  ;;  %403 = vst [vmem:[#allocation3 + $0x90] sm:$0xff] %v13024_v19  ;;  %404 = vst [vmem:[#allocation3 + $0x98] sm:$0xff] %v13024_v19  ;;  %v2724_v62 = vpack.c.bf16 %v2710_v49, %v2709_v40  ;;  %v12657_v40 = vld [vmem:[%s17121_s1 + $0xe8] sm:$0xff]   ;;  %v12666_v49 = vld [vmem:[%s17121_s1 + $0x20] sm:$0xff]  }
 0x12f   : > { %v10925_v59 = vadd.f32 %v10924_v18, %v10923_v6  ;;  %v10988_v13 = vpop.f32.mrb[19].mxu1  ;;  %405 = vst [vmem:[#allocation3 + $0xa0] sm:$0xff] %v13024_v19  ;;  %406 = vst [vmem:[#allocation5] sm:$0xff] %v13024_v19  ;;  %v12648_v6 = vld [vmem:[%s17121_s1 + $0x90] sm:$0xff]  }
 0x130   : > { %v14175_v42 = vadd.f32 %v10986_v7, %v10922_v11  ;;  %v10989_v34 = vadd.f32 %v10988_v13, %v10987_v55  ;;  %2410 = vmatmul.mubr.bf16.gmra.mrb[124].mxu0 %v1908_v5  ;;  %407 = vst [vmem:[#allocation5 + $0x8] sm:$0xff] %v13024_v19  ;;  %408 = vst [vmem:[#allocation5 + $0x10] sm:$0xff] %v13024_v19  ;;  %v12649_v13 = vld [vmem:[%s17121_s1 + $0xd8] sm:$0xff]  }
 0x131   : > { %2683 = vmatmul.mubr.bf16.gmra.mrb[124].mxu1 %v2441_v52  ;;  %2915 = vmatprep.mubr.bf16.mxu0 %v14048_v38  ;;  %v12645_v38 = vld [vmem:[%s17121_s1 + $0xc8] sm:$0xff]   ;;  %409 = vst [vmem:[#allocation5 + $0x18] sm:$0xff] %v13024_v19  ;;  %410 = vst [vmem:[#allocation5 + $0x20] sm:$0xff] %v13024_v19 }
 0x132   : > { %v14183_v29 = vadd.f32 %v10989_v34, %v10925_v59  ;;  %3180 = vmatprep.mubr.bf16.mxu1 %v13889_v12  ;;  %411 = vst [vmem:[#allocation5 + $0x28] sm:$0xff] %v13024_v19  ;;  %412 = vst [vmem:[#allocation5 + $0x30] sm:$0xff] %v13024_v19  ;;  %v12660_v34 = vld [vmem:[%s17121_s1 + $0x10] sm:$0xff]  }
 0x133   : > { %v10926_v57 = vpop.f32.mrb[20].mxu0  ;;  %413 = vst [vmem:[#allocation5 + $0x38] sm:$0xff] %v13024_v19 }
 0x134   : > { %v10990_v17 = vpop.f32.mrb[20].mxu1  ;;  %v10927_v32 = vpop.f32.mrb[21].mxu0 }
 0x135   : > { %v10928_v46 = vadd.f32 %v10927_v32, %v10926_v57  ;;  %v10991_v5 = vpop.f32.mrb[21].mxu1  ;;  %v10929_v1 = vpop.f32.mrb[22].mxu0  ;;  %v2711_v57 = vld [vmem:[%s13229_s26 + $0xd0] sm:$0xff]  ;;  %v12661_v32 = vld [vmem:[%s17121_s1 + $0x58] sm:$0xff]  }
 0x136   : > { %v10992_v8 = vadd.f32 %v10991_v5, %v10990_v17  ;;  %v10993_v22 = vpop.f32.mrb[22].mxu1  ;;  %v10930_v0 = vpop.f32.mrb[23].mxu0  ;;  %v2712_v17 = vld [vmem:[%s13229_s26 + $0xd8] sm:$0xff]  ;;  %v12651_v5 = vld [vmem:[%s17121_s1 + $0xe0] sm:$0xff]  }
 0x137   : > { %v10931_v16 = vadd.f32 %v10930_v0, %v10929_v1  ;;  %v10994_v28 = vpop.f32.mrb[23].mxu1  ;;  %v2725_v0 = vpack.c.bf16 %v2712_v17, %v2711_v57  ;;  %v12669_v57 = vld [vmem:[%s17121_s1 + $0xf8] sm:$0xff]   ;;  %v12672_v17 = vld [vmem:[%s17121_s1 + $0x30] sm:$0xff]  }
 0x138   : > { %v14203_v25 = vadd.f32 %v10992_v8, %v10928_v46  ;;  %v10995_v27 = vadd.f32 %v10994_v28, %v10993_v22  ;;  %2916 = vmatmul.mubr.bf16.vlgmr.msra.gmra.mrb[128].mxu0 %v2723_v58  ;;  %v12650_v46 = vld [vmem:[%s17121_s1 + $0x98] sm:$0xff]  }
 0x139   : > { %3181 = vmatmul.mubr.bf16.vlgmr.msra.gmra.mrb[128].mxu1 %v13889_v12  ;;  %11521 = vmatpush3.bf16.msra.mxu0 %v12644_v61  ;;  %v12662_v8 = vld [vmem:[%s17121_s1 + $0x18] sm:$0xff]  }
 0x13a   : > { %v14212_v48 = vadd.f32 %v10995_v27, %v10931_v16  ;;  %2923 = vmatprep.mubr.bf16.mxu0 %v14077_v47  ;;  %3188 = vmatprep.mubr.bf16.mxu1 %v13928_v21 }
 0x13b   : > { %v10932_v9 = vpop.f32.mrb[24].mxu0  ;;  %11522 = vmatprep.subr.bf16.mxu0 %v12645_v38  ;;  %11585 = vmatpush3.bf16.msra.mxu1 %v12654_v2  ;;  %v12653_v2 = vld [vmem:[%s17121_s1 + $0xa0] sm:$0xff]  }
 0x13c   : > { %v10996_v11 = vpop.f32.mrb[24].mxu1  ;;  %v10933_v12 = vpop.f32.mrb[25].mxu0  ;;  %11586 = vmatprep.subr.bf16.mxu1 %v12655_v14 }
 0x13d   : > { %v10934_v47 = vadd.f32 %v10933_v12, %v10932_v9  ;;  %v10997_v52 = vpop.f32.mrb[25].mxu1  ;;  %v10935_v7 = vpop.f32.mrb[26].mxu0  ;;  %11523 = vmatpush3.bf16.msra.mxu0 %v12646_v33  ;;  %v2713_v9 = vld [vmem:[%s13229_s26 + $0xe0] sm:$0xff] }
 0x13e   : > { %v10998_v55 = vadd.f32 %v10997_v52, %v10996_v11  ;;  %v10999_v18 = vpop.f32.mrb[26].mxu1  ;;  %v10936_v59 = vpop.f32.mrb[27].mxu0  ;;  %11524 = vmatprep.subr.bf16.mxu0 %v12647_v63  ;;  %v12667_v11 = vld [vmem:[%s17121_s1 + $0x68] sm:$0xff]  }
 0x13f   : > { %v10937_v3 = vadd.f32 %v10936_v59, %v10935_v7  ;;  %v11000_v56 = vpop.f32.mrb[27].mxu1  ;;  %11587 = vmatpush3.bf16.msra.mxu1 %v12656_v53 }
 0x140   : > { %v14233_v58 = vadd.f32 %v10998_v55, %v10934_v47  ;;  %v11001_v61 = vadd.f32 %v11000_v56, %v10999_v18  ;;  %2924 = vmatmul.mubr.bf16.gmra.mrb[132].mxu0 %v2724_v62  ;;  %11588 = vmatprep.subr.bf16.mxu1 %v12658_v30  ;;  %v2714_v30 = vld [vmem:[%s13229_s26 + $0xe8] sm:$0xff]  ;;  %v12663_v47 = vld [vmem:[%s17121_s1 + $0xf0] sm:$0xff]  }
 0x141   : > { %3189 = vmatmul.mubr.bf16.gmra.mrb[132].mxu1 %v13928_v21  ;;  %2931 = vmatprep.mubr.bf16.mxu0 %v14115_v20  ;;  %v12664_v21 = vld [vmem:[%s17121_s1 + $0x60] sm:$0xff]   ;;  %v12668_v55 = vld [vmem:[%s17121_s1 + $0x28] sm:$0xff]   ;;  %v2726_v59 = vpack.c.bf16 %v2714_v30, %v2713_v9 }
 0x142   : > { %v14243_v1 = vadd.f32 %v11001_v61, %v10937_v3  ;;  %3196 = vmatprep.mubr.bf16.mxu1 %v13944_v45  ;;  %11525 = vmatpush3.bf16.msra.mxu0 %v12648_v6  ;;  %v12659_v6 = vld [vmem:[%s17121_s1 + $0xa8] sm:$0xff]  }
 0x143   : > { %v10938_v38 = vpop.f32.mrb[28].mxu0  ;;  %11526 = vmatprep.subr.bf16.mxu0 %v12649_v13  ;;  %11589 = vmatpush3.bf16.msra.mxu1 %v12660_v34  ;;  %v12665_v13 = vld [vmem:[%s17121_s1 + $0xb0] sm:$0xff]  }
 0x144   : > { %v11002_v20 = vpop.f32.mrb[28].mxu1  ;;  %v10939_v22 = vpop.f32.mrb[29].mxu0  ;;  %11590 = vmatprep.subr.bf16.mxu1 %v12661_v32 }
 0x145   : > { %v10940_v14 = vadd.f32 %v10939_v22, %v10938_v38  ;;  %v11003_v16 = vpop.f32.mrb[29].mxu1  ;;  %v10941_v28 = vpop.f32.mrb[30].mxu0  ;;  %v12673_v22 = vld [vmem:[%s17121_s1 + $0x78] sm:$0xff]  }
 0x146   : > { %v11004_v33 = vadd.f32 %v11003_v16, %v11002_v20  ;;  %v11005_v27 = vpop.f32.mrb[30].mxu1  ;;  %v10942_v63 = vpop.f32.mrb[31].mxu0  ;;  %11527 = vmatpush3.bf16.msra.mxu0 %v12650_v46  ;;  %v2716_v20 = vld [vmem:[%s13229_s26 + $0xf8] sm:$0xff] }
 0x147   : > { %v10943_v19 = vadd.f32 %v10942_v63, %v10941_v28  ;;  %v11006_v53 = vpop.f32.mrb[31].mxu1  ;;  %11528 = vmatprep.subr.bf16.mxu0 %v12651_v5  ;;  %11591 = vmatpush3.bf16.msra.mxu1 %v12662_v8 }
 0x148   : > { %v14266_v12 = vadd.f32 %v11004_v33, %v10940_v14  ;;  %v11007_v62 = vadd.f32 %v11006_v53, %v11005_v27  ;;  %2932 = vmatmul.mubr.bf16.gmra.mrb[136].mxu0 %v2725_v0  ;;  %11592 = vmatprep.subr.bf16.mxu1 %v12664_v21  ;;  %v2715_v21 = vld [vmem:[%s13229_s26 + $0xf0] sm:$0xff]  ;;  %v14322_v53 = vpack.c.bf16 %v14165_v51, %v14143_v31  ;;  %v2717_v31 = vld [vmem:[%s13229_s26 + $0x100] sm:$0xff] }
 0x149   : > { %3197 = vmatmul.mubr.bf16.gmra.mrb[136].mxu1 %v13944_v45  ;;  %2939 = vmatprep.mubr.bf16.mxu0 %v14132_v39  ;;  %v12670_v45 = vld [vmem:[%s17121_s1 + $0x70] sm:$0xff]   ;;  %v2727_v33 = vpack.c.bf16 %v2716_v20, %v2715_v21  ;;  %v2720_v21 = vld [vmem:[%s13229_s26 + $0x118] sm:$0xff] }
 0x14a   : > { %v14276_v52 = vadd.f32 %v11007_v62, %v10943_v19  ;;  %3204 = vmatprep.mubr.bf16.mxu1 %v13960_v10  ;;  %11529 = vmatpush3.bf16.msra.mxu0 %v12653_v2  ;;  %v12671_v2 = vld [vmem:[%s17121_s1 + $0xb8] sm:$0xff]   ;;  %v14326_v62 = vpack.c.bf16 %v14149_v60, %v14130_v50  ;;  %v2718_v50 = vld [vmem:[%s13229_s26 + $0x108] sm:$0xff] }
 0x14b   : > { %v11024_v7 = vpop.f32.mrb[32].mxu0  ;;  %11530 = vmatprep.subr.bf16.mxu0 %v12657_v40  ;;  %11593 = vmatpush3.bf16.msra.mxu1 %v12666_v49  ;;  %v12674_v40 = vld [vmem:[%s17121_s1 + $0x38] sm:$0xff]  }
 0x14c   : > { %v11025_v39 = vpop.f32.mrb[33].mxu0  ;;  %v11088_v18 = vpop.f32.mrb[32].mxu1  ;;  %11594 = vmatprep.subr.bf16.mxu1 %v12667_v11  ;;  %v2744_v60 = vld [vmem:[%s13229_s26 + $0x119] sm:$0xff] }
 0x14d   : > { %v11026_v34 = vadd.f32 %v11025_v39, %v11024_v7  ;;  %v11027_v3 = vpop.f32.mrb[34].mxu0  ;;  %v11089_v56 = vpop.f32.mrb[33].mxu1 }
 0x14e   : > { %v11028_v32 = vpop.f32.mrb[35].mxu0  ;;  %v11090_v61 = vadd.f32 %v11089_v56, %v11088_v18  ;;  %v11091_v46 = vpop.f32.mrb[34].mxu1  ;;  %11531 = vmatpush3.bf16.msra.mxu0 %v12659_v6  ;;  %v3009_v18 = vld [vmem:[%s13229_s26 + $0x11a] sm:$0xff]  ;;  %v14344_v56 = vpack.c.bf16 %v2744_v60, %v14168_v37  ;;  %v2746_v37 = vld [vmem:[%s13229_s26 + $0x129] sm:$0xff] }
 0x14f   : > { %v1223_v5 = vadd.f32 %v11026_v34, %v14093_v36  ;;  %v11029_v38 = vadd.f32 %v11028_v32, %v11027_v3  ;;  %v11092_v8 = vpop.f32.mrb[35].mxu1  ;;  %11532 = vmatprep.subr.bf16.mxu0 %v12663_v47  ;;  %11595 = vmatpush3.bf16.msra.mxu1 %v12668_v55  ;;  %v14341_v34 = vpack.c.bf16 %v2718_v50, %v2717_v31 }
 0x150   : > { %v11093_v0 = vadd.f32 %v11092_v8, %v11091_v46  ;;  %2940 = vmatmul.mubr.bf16.gmra.mrb[140].mxu0 %v2726_v59  ;;  %11596 = vmatprep.subr.bf16.mxu1 %v12670_v45  ;;  %v2719_v8 = vld [vmem:[%s13229_s26 + $0x110] sm:$0xff] }
 0x151   : > { %v1224_v14 = vadd.f32 %v11029_v38, %v14110_v26  ;;  %v14304_v36 = vadd.f32 %v11090_v61, %v1223_v5  ;;  %3205 = vmatmul.mubr.bf16.gmra.mrb[140].mxu1 %v13960_v10  ;;  %2947 = vmatprep.mubr.bf16.mxu0 %v14155_v23  ;;  %v12675_v26 = vld [vmem:[%s17121_s1 + $0x140] sm:$0xff]   ;;  %v14347_v61 = vpack.c.bf16 %v3009_v18, %v14152_v15 }
 0x152   : > { %3212 = vmatprep.mubr.bf16.mxu1 %v13973_v4  ;;  %11533 = vmatpush3.bf16.msra.mxu0 %v12665_v13  ;;  %v12684_v23 = vld [vmem:[%s17121_s1 + $0x1c0] sm:$0xff]  }
 0x153   : > { %v14309_v16 = vadd.f32 %v11093_v0, %v1224_v14  ;;  %v11030_v28 = vpop.f32.mrb[36].mxu0  ;;  %11534 = vmatprep.subr.bf16.mxu0 %v12669_v57  ;;  %11597 = vmatpush3.bf16.msra.mxu1 %v12672_v17  ;;  %v14364_v14 = vld [vmem:[%s13229_s26 + $0x122] sm:$0xff] }
 0x154   : > { %v11031_v49 = vpop.f32.mrb[37].mxu0  ;;  %v11094_v10 = vpop.f32.mrb[36].mxu1  ;;  %11598 = vmatprep.subr.bf16.mxu1 %v12673_v22  ;;  %v2745_v22 = vld [vmem:[%s13229_s26 + $0x121] sm:$0xff] }
 0x155   : > { %v11032_v27 = vadd.f32 %v11031_v49, %v11030_v28  ;;  %v11033_v63 = vpop.f32.mrb[38].mxu0  ;;  %v11095_v19 = vpop.f32.mrb[37].mxu1  ;;  %v3011_v28 = vld [vmem:[%s13229_s26 + $0x12a] sm:$0xff]  ;;  %v14367_v49 = vpack.c.bf16 %v2720_v21, %v2719_v8 }
 0x156   : > { %v11034_v9 = vpop.f32.mrb[39].mxu0  ;;  %v11096_v30 = vadd.f32 %v11095_v19, %v11094_v10  ;;  %v11097_v11 = vpop.f32.mrb[38].mxu1  ;;  %11535 = vmatpush3.bf16.msra.mxu0 %v12671_v2 }
 0x157   : > { %v1225_v6 = vadd.f32 %v11032_v27, %v14119_v44  ;;  %v11035_v47 = vadd.f32 %v11034_v9, %v11033_v63  ;;  %v11098_v7 = vpop.f32.mrb[39].mxu1  ;;  %11599 = vmatpush3.bf16.msra.mxu1 %v12674_v40  ;;  %11648 = vmatprep.subr.bf16.mxu0 %v12675_v26  ;;  %v14372_v9 = vpack.c.bf16 %v3011_v28, %v14364_v14 }
 0x158   : > { %v11099_v55 = vadd.f32 %v11098_v7, %v11097_v11  ;;  %2948 = vmatmul.mubr.bf16.gmra.mrb[144].mxu0 %v2727_v33  ;;  %11712 = vmatprep.subr.bf16.mxu1 %v12684_v23  ;;  %v14369_v23 = vpack.c.bf16 %v2746_v37, %v2745_v22  ;;  %v14398_v22 = vld [vmem:[%s13229_s26 + $0x130] sm:$0xff] }
 0x159   : > { %v1226_v51 = vadd.f32 %v11035_v47, %v14127_v43  ;;  %v14331_v45 = vadd.f32 %v11096_v30, %v1225_v6  ;;  %3213 = vmatmul.mubr.bf16.gmra.mrb[144].mxu1 %v13973_v4  ;;  %2955 = vmatprep.mubr.bf16.mxu0 %v14322_v53  ;;  %v2721_v47 = vld [vmem:[%s13229_s26 + $0x120] sm:$0xff] }
 0x15a   : > { %3220 = vmatprep.mubr.bf16.mxu1 %v14326_v62 }
 0x15b   : > { %v14338_v44 = vadd.f32 %v11099_v55, %v1226_v51  ;;  %v11036_v39 = vpop.f32.mrb[40].mxu0  ;;  %v2722_v55 = vld [vmem:[%s13229_s26 + $0x128] sm:$0xff] }
 0x15c   : > { %v11037_v59 = vpop.f32.mrb[41].mxu0  ;;  %v11100_v13 = vpop.f32.mrb[40].mxu1  ;;  %v14386_v18 = vpack.c.bf16 %v2722_v55, %v2721_v47 }
 0x15d   : > { %v11038_v43 = vadd.f32 %v11037_v59, %v11036_v39  ;;  %v11039_v4 = vpop.f32.mrb[42].mxu0  ;;  %v11101_v3 = vpop.f32.mrb[41].mxu1 }
 0x15e   : > { %v11040_v57 = vpop.f32.mrb[43].mxu0  ;;  %v11102_v17 = vadd.f32 %v11101_v3, %v11100_v13  ;;  %v11103_v32 = vpop.f32.mrb[42].mxu1 }
 0x15f   : > { %v1227_v46 = vadd.f32 %v11038_v43, %v14136_v35  ;;  %v11041_v5 = vadd.f32 %v11040_v57, %v11039_v4  ;;  %v11104_v38 = vpop.f32.mrb[43].mxu1  ;;  %v3448_v4 = vpack.c.bf16 %v2721_v47, %v2720_v21  ;;  %v14419_v47 = vld [vmem:[%s13229_s26 + $0x138] sm:$0xff] }
 0x160   : > { %v11105_v20 = vadd.f32 %v11104_v38, %v11103_v32  ;;  %2956 = vmatmul.mubr.bf16.gmra.mrb[148].mxu0 %v14341_v34 }
 0x161   : > { %v1228_v0 = vadd.f32 %v11041_v5, %v14146_v54  ;;  %v14356_v2 = vadd.f32 %v11102_v17, %v1227_v46  ;;  %3221 = vmatmul.mubr.bf16.gmra.mrb[148].mxu1 %v14326_v62  ;;  %2963 = vmatprep.mubr.bf16.mxu0 %v14344_v56 }
 0x162   : > { %3228 = vmatprep.mubr.bf16.mxu1 %v14347_v61 }
 0x163   : > { %v14361_v35 = vadd.f32 %v11105_v20, %v1228_v0  ;;  %v11042_v15 = vpop.f32.mrb[44].mxu0 }
 0x164   : > { %v11043_v40 = vpop.f32.mrb[45].mxu0  ;;  %v11106_v26 = vpop.f32.mrb[44].mxu1 }
 0x165   : > { %v11044_v54 = vadd.f32 %v11043_v40, %v11042_v15  ;;  %v11045_v10 = vpop.f32.mrb[46].mxu0  ;;  %v11107_v33 = vpop.f32.mrb[45].mxu1 }
 0x166   : > { %v11046_v27 = vpop.f32.mrb[47].mxu0  ;;  %v11108_v63 = vadd.f32 %v11107_v33, %v11106_v26  ;;  %v11109_v19 = vpop.f32.mrb[46].mxu1  ;;  %v12686_v33 = vld [vmem:[%s17121_s1 + $0x180] sm:$0xff]  }
 0x167   : > { %v1229_v30 = vadd.f32 %v11044_v54, %v14159_v41  ;;  %v11047_v11 = vadd.f32 %v11046_v27, %v11045_v10  ;;  %v11110_v6 = vpop.f32.mrb[47].mxu1  ;;  %v12677_v10 = vld [vmem:[%s17121_s1 + $0x148] sm:$0xff]  }
 0x168   : > { %v11111_v7 = vadd.f32 %v11110_v6, %v11109_v19  ;;  %2964 = vmatmul.mubr.bf16.gmra.mrb[152].mxu0 %v14367_v49 }
 0x169   : > { %v1230_v31 = vadd.f32 %v11047_v11, %v14171_v24  ;;  %v14379_v51 = vadd.f32 %v11108_v63, %v1229_v30  ;;  %3229 = vmatmul.mubr.bf16.gmra.mrb[152].mxu1 %v14347_v61  ;;  %2971 = vmatprep.mubr.bf16.mxu0 %v14369_v23  ;;  %v12678_v30 = vld [vmem:[%s17121_s1 + $0x108] sm:$0xff]  }
 0x16a   : > { %3236 = vmatprep.mubr.bf16.mxu1 %v14372_v9  ;;  %v12687_v11 = vld [vmem:[%s17121_s1 + $0x1c8] sm:$0xff]  }
 0x16b   : > { %v14384_v50 = vadd.f32 %v11111_v7, %v1230_v31  ;;  %v11048_v41 = vpop.f32.mrb[48].mxu0  ;;  %v14422_v7 = vld [vmem:[%s13229_s26 + $0x140] sm:$0xff] }
 0x16c   : > { %v11049_v60 = vpop.f32.mrb[49].mxu0  ;;  %v11112_v39 = vpop.f32.mrb[48].mxu1 }
 0x16d   : > { %v11050_v59 = vadd.f32 %v11049_v60, %v11048_v41  ;;  %v11051_v13 = vpop.f32.mrb[50].mxu0  ;;  %v11113_v43 = vpop.f32.mrb[49].mxu1  ;;  %v12688_v41 = vld [vmem:[%s17121_s1 + $0x188] sm:$0xff]  }
 0x16e   : > { %v11052_v24 = vpop.f32.mrb[51].mxu0  ;;  %v11114_v3 = vadd.f32 %v11113_v43, %v11112_v39  ;;  %v11115_v57 = vpop.f32.mrb[50].mxu1 }
 0x16f   : > { %v1231_v17 = vadd.f32 %v11050_v59, %v14175_v42  ;;  %v11053_v32 = vadd.f32 %v11052_v24, %v11051_v13  ;;  %v11116_v46 = vpop.f32.mrb[51].mxu1  ;;  %v12681_v24 = vld [vmem:[%s17121_s1 + $0x158] sm:$0xff]  }
 0x170   : > { %v11117_v5 = vadd.f32 %v11116_v46, %v11115_v57  ;;  %2972 = vmatmul.mubr.bf16.gmra.mrb[156].mxu0 %v14386_v18 }
 0x171   : > { %v1232_v38 = vadd.f32 %v11053_v32, %v14183_v29  ;;  %v14391_v8 = vadd.f32 %v11114_v3, %v1231_v17  ;;  %3237 = vmatmul.mubr.bf16.gmra.mrb[156].mxu1 %v14372_v9  ;;  %3616 = vmatprep.mubr.bf16.mxu0 %v3448_v4  ;;  %v12676_v29 = vld [vmem:[%s17121_s1 + $0x100] sm:$0xff]   ;;  %v12692_v3 = vld [vmem:[%s17121_s1 + $0x190] sm:$0xff]  }
 0x172   : > { %3809 = vmatprep.mubr.bf16.mxu1 %v14322_v53  ;;  %v3449_v53 = vpack.c.bf16 %v14398_v22, %v2722_v55 }
 0x173   : > { %v14395_v21 = vadd.f32 %v11117_v5, %v1232_v38  ;;  %v11054_v20 = vpop.f32.mrb[52].mxu0 }
 0x174   : > { %v11055_v42 = vpop.f32.mrb[53].mxu0  ;;  %v11118_v37 = vpop.f32.mrb[52].mxu1 }
 0x175   : > { %v11056_v0 = vadd.f32 %v11055_v42, %v11054_v20  ;;  %v11057_v15 = vpop.f32.mrb[54].mxu0  ;;  %v11119_v28 = vpop.f32.mrb[53].mxu1  ;;  %v12693_v20 = vld [vmem:[%s17121_s1 + $0x1d8] sm:$0xff]  }
 0x176   : > { %v11058_v40 = vpop.f32.mrb[55].mxu0  ;;  %v11120_v26 = vadd.f32 %v11119_v28, %v11118_v37  ;;  %v11121_v54 = vpop.f32.mrb[54].mxu1  ;;  %v14457_v37 = vld [vmem:[%s13229_s26 + $0x148] sm:$0xff] }
 0x177   : > { %v1233_v27 = vadd.f32 %v11056_v0, %v14203_v25  ;;  %v11059_v63 = vadd.f32 %v11058_v40, %v11057_v15  ;;  %v11122_v19 = vpop.f32.mrb[55].mxu1  ;;  %v12679_v25 = vld [vmem:[%s17121_s1 + $0x150] sm:$0xff]   ;;  %v12682_v15 = vld [vmem:[%s17121_s1 + $0x118] sm:$0xff]  }
 0x178   : > { %v11123_v6 = vadd.f32 %v11122_v19, %v11121_v54  ;;  %3617 = vmatmul.mubr.bf16.vlgmr.msra.gmra.mrb[160].mxu0 %v14326_v62  ;;  %v14460_v0 = vld [vmem:[%s13229_s26 + $0x150] sm:$0xff]  ;;  %v14473_v40 = vld [vmem:[%s13229_s26 + $0x139] sm:$0xff] }
 0x179   : > { %v1234_v55 = vadd.f32 %v11059_v63, %v14212_v48  ;;  %v14428_v31 = vadd.f32 %v11120_v26, %v1233_v27  ;;  %3810 = vmatmul.mubr.bf16.vlgmr.msra.gmra.mrb[160].mxu1 %v14341_v34  ;;  %11649 = vmatpush3.bf16.msra.mxu0 %v12676_v29  ;;  %v12690_v48 = vld [vmem:[%s17121_s1 + $0x1d0] sm:$0xff]   ;;  %v12694_v26 = vld [vmem:[%s17121_s1 + $0x198] sm:$0xff]   ;;  %v3451_v19 = vpack.c.bf16 %v14460_v0, %v14457_v37 }
 0x17a   : > { %3624 = vmatprep.mubr.bf16.mxu0 %v3449_v53  ;;  %3817 = vmatprep.mubr.bf16.mxu1 %v14344_v56  ;;  %v12680_v34 = vld [vmem:[%s17121_s1 + $0x110] sm:$0xff]   ;;  %v3450_v56 = vpack.c.bf16 %v14422_v7, %v14419_v47 }
 0x17b   : > { %v14435_v62 = vadd.f32 %v11123_v6, %v1234_v55  ;;  %v11060_v60 = vpop.f32.mrb[56].mxu0  ;;  %11650 = vmatprep.subr.bf16.mxu0 %v12677_v10  ;;  %11713 = vmatpush3.bf16.msra.mxu1 %v12686_v33  ;;  %v14470_v29 = vld [vmem:[%s13229_s26 + $0x131] sm:$0xff]  ;;  %v12685_v33 = vld [vmem:[%s17121_s1 + $0x120] sm:$0xff]  }
 0x17c   : > { %v11061_v39 = vpop.f32.mrb[57].mxu0  ;;  %v11124_v59 = vpop.f32.mrb[56].mxu1  ;;  %11714 = vmatprep.subr.bf16.mxu1 %v12687_v11  ;;  %v12698_v11 = vld [vmem:[%s17121_s1 + $0x1a0] sm:$0xff]  }
 0x17d   : > { %v11062_v13 = vadd.f32 %v11061_v39, %v11060_v60  ;;  %v11063_v43 = vpop.f32.mrb[58].mxu0  ;;  %v11125_v4 = vpop.f32.mrb[57].mxu1  ;;  %11651 = vmatpush3.bf16.msra.mxu0 %v12678_v30  ;;  %v12689_v30 = vld [vmem:[%s17121_s1 + $0x168] sm:$0xff]  }
 0x17e   : > { %v11064_v57 = vpop.f32.mrb[59].mxu0  ;;  %v11126_v17 = vadd.f32 %v11125_v4, %v11124_v59  ;;  %v11127_v32 = vpop.f32.mrb[58].mxu1  ;;  %11652 = vmatprep.subr.bf16.mxu0 %v12679_v25  ;;  %v14504_v59 = vld [vmem:[%s13229_s26 + $0x132] sm:$0xff] }
 0x17f   : > { %v1235_v46 = vadd.f32 %v11062_v13, %v14233_v58  ;;  %v11065_v5 = vadd.f32 %v11064_v57, %v11063_v43  ;;  %v11128_v38 = vpop.f32.mrb[59].mxu1  ;;  %11715 = vmatpush3.bf16.msra.mxu1 %v12688_v41  ;;  %v14500_v41 = vpack.c.bf16 %v14473_v40, %v14470_v29  ;;  %v12699_v13 = vld [vmem:[%s17121_s1 + $0x1e8] sm:$0xff]   ;;  %v14514_v4 = vld [vmem:[%s13229_s26 + $0x158] sm:$0xff] }
 0x180   : > { %v11129_v42 = vadd.f32 %v11128_v38, %v11127_v32  ;;  %3625 = vmatmul.mubr.bf16.gmra.mrb[164].mxu0 %v14347_v61  ;;  %11716 = vmatprep.subr.bf16.mxu1 %v12690_v48  ;;  %v12683_v61 = vld [vmem:[%s17121_s1 + $0x160] sm:$0xff]   ;;  %v12700_v32 = vld [vmem:[%s17121_s1 + $0x1a8] sm:$0xff]  }
 0x181   : > { %v1236_v58 = vadd.f32 %v11065_v5, %v14243_v1  ;;  %v14466_v28 = vadd.f32 %v11126_v17, %v1235_v46  ;;  %3818 = vmatmul.mubr.bf16.gmra.mrb[164].mxu1 %v14367_v49  ;;  %3632 = vmatprep.mubr.bf16.mxu0 %v3450_v56  ;;  %v12696_v49 = vld [vmem:[%s17121_s1 + $0x1e0] sm:$0xff]   ;;  %v12691_v56 = vld [vmem:[%s17121_s1 + $0x128] sm:$0xff]  }
 0x182   : > { %3825 = vmatprep.mubr.bf16.mxu1 %v14369_v23  ;;  %11653 = vmatpush3.bf16.msra.mxu0 %v12680_v34  ;;  %v14507_v34 = vld [vmem:[%s13229_s26 + $0x13a] sm:$0xff]  ;;  %v14530_v17 = vld [vmem:[%s13229_s26 + $0x149] sm:$0xff] }
 0x183   : > { %v14482_v1 = vadd.f32 %v11129_v42, %v1236_v58  ;;  %v11066_v54 = vpop.f32.mrb[60].mxu0  ;;  %11654 = vmatprep.subr.bf16.mxu0 %v12681_v24  ;;  %11717 = vmatpush3.bf16.msra.mxu1 %v12692_v3  ;;  %v14527_v57 = vld [vmem:[%s13229_s26 + $0x141] sm:$0xff]  ;;  %v14547_v5 = vld [vmem:[%s17122_s2] ss:$0 sm:$0xff]  ;;  %v12697_v42 = vld [vmem:[%s17121_s1 + $0x130] sm:$0xff]  }
 0x184   : > { %v11067_v53 = vpop.f32.mrb[61].mxu0  ;;  %v11130_v10 = vpop.f32.mrb[60].mxu1  ;;  %11718 = vmatprep.subr.bf16.mxu1 %v12693_v20  ;;  %v3440_v20 = vpack.c.bf16 %v14507_v34, %v14504_v59 }
 0x185   : > { %v11068_v23 = vadd.f32 %v11067_v53, %v11066_v54  ;;  %v11069_v27 = vpop.f32.mrb[62].mxu0  ;;  %v11131_v63 = vpop.f32.mrb[61].mxu1  ;;  %v12701_v53 = vld [vmem:[%s17121_s1 + $0x178] sm:$0xff]  }
 0x186   : > { %v11070_v6 = vpop.f32.mrb[63].mxu0  ;;  %v11132_v25 = vadd.f32 %v11131_v63, %v11130_v10  ;;  %v11133_v55 = vpop.f32.mrb[62].mxu1  ;;  %11655 = vmatpush3.bf16.msra.mxu0 %v12682_v15  ;;  %v12704_v10 = vld [vmem:[%s17121_s1 + $0x1b0] sm:$0xff]  }
 0x187   : > { %v1237_v60 = vadd.f32 %v11068_v23, %v14266_v12  ;;  %v11071_v48 = vadd.f32 %v11070_v6, %v11069_v27  ;;  %v11134_v39 = vpop.f32.mrb[63].mxu1  ;;  %11656 = vmatprep.subr.bf16.mxu0 %v12683_v61  ;;  %11719 = vmatpush3.bf16.msra.mxu1 %v12694_v26  ;;  %v14517_v12 = vld [vmem:[%s13229_s26 + $0x160] sm:$0xff]  ;;  %v14556_v26 = vpack.c.bf16 %v14419_v47, %v14398_v22  ;;  %v12705_v6 = vld [vmem:[%s17121_s1 + $0x1f8] sm:$0xff]  }
 0x188   : > { %v11135_v43 = vadd.f32 %v11134_v39, %v11133_v55  ;;  %3633 = vmatmul.mubr.bf16.gmra.mrb[168].mxu0 %v14372_v9  ;;  %11720 = vmatprep.subr.bf16.mxu1 %v12696_v49  ;;  %v12695_v9 = vld [vmem:[%s17121_s1 + $0x170] sm:$0xff]   ;;  %v3452_v54 = vpack.c.bf16 %v14517_v12, %v14514_v4  ;;  %v14568_v23 = vpack.c.bf16 %v14530_v17, %v14527_v57 }
 0x189   : > { %v1238_v24 = vadd.f32 %v11071_v48, %v14276_v52  ;;  %v14523_v3 = vadd.f32 %v11132_v25, %v1237_v60  ;;  %3826 = vmatmul.mubr.bf16.gmra.mrb[168].mxu1 %v14386_v18  ;;  %3640 = vmatprep.mubr.bf16.mxu0 %v3451_v19  ;;  %v12702_v18 = vld [vmem:[%s17121_s1 + $0x1f0] sm:$0xff]   ;;  %v14574_v19 = vld [vmem:[%s13229_s26 + $0x142] sm:$0xff]  ;;  %v14585_v25 = vld [vmem:[%s17122_s2 + $0x1] ss:$0 sm:$0xff] }
 0x18a   : > { %3833 = vmatprep.mubr.bf16.mxu1 %v14500_v41  ;;  %11657 = vmatpush3.bf16.msra.mxu0 %v12685_v33  ;;  %v14591_v55 = vld [vmem:[%s13229_s26 + $0x170] sm:$0xff]  ;;  %v12703_v48 = vld [vmem:[%s17121_s1 + $0x138] sm:$0xff]  }
 0x18b   : > { %v14539_v52 = vadd.f32 %v11135_v43, %v1238_v24  ;;  %v11152_v46 = vpop.f32.mrb[64].mxu0  ;;  %11658 = vmatprep.subr.bf16.mxu0 %v12689_v30  ;;  %11721 = vmatpush3.bf16.msra.mxu1 %v12698_v11  ;;  %v14577_v30 = vld [vmem:[%s13229_s26 + $0x14a] sm:$0xff]  ;;  %v12706_v24 = vld [vmem:[%s17121_s1 + $0x1b8] sm:$0xff]  }
 0x18c   : > { %v11153_v38 = vpop.f32.mrb[65].mxu0  ;;  %11722 = vmatprep.subr.bf16.mxu1 %v12699_v13  ;;  %v11216_v15 = vpop.f32.mrb[64].mxu1  ;;  %v14602_v43 = vld [vmem:[%s13229_s26 + $0x151] sm:$0xff] }
 0x18d   : > { %v11154_v58 = vadd.f32 %v11153_v38, %v11152_v46  ;;  %v11155_v61 = vpop.f32.mrb[66].mxu0  ;;  %v11217_v49 = vpop.f32.mrb[65].mxu1 }
 0x18e   : > { %v11156_v33 = vpop.f32.mrb[67].mxu0  ;;  %11659 = vmatpush3.bf16.msra.mxu0 %v12691_v56  ;;  %v14570_v22 = vadd.f32 %v11217_v49, %v11216_v15  ;;  %v11219_v47 = vpop.f32.mrb[66].mxu1  ;;  %v14605_v56 = vld [vmem:[%s13229_s26 + $0x159] sm:$0xff]  ;;  %v14624_v15 = vpack.c.bf16 %v14457_v37, %v14422_v7 }
 0x18f   : > { %v1777_v27 = vadd.f32 %v11154_v58, %v14304_v36  ;;  %v11157_v63 = vadd.f32 %v11156_v33, %v11155_v61  ;;  %11660 = vmatprep.subr.bf16.mxu0 %v12695_v9  ;;  %11723 = vmatpush3.bf16.msra.mxu1 %v12700_v32  ;;  %v11220_v11 = vpop.f32.mrb[67].mxu1  ;;  %v14588_v36 = vld [vmem:[%s13229_s26 + $0x168] sm:$0xff]  ;;  %v14613_v9 = vld [vmem:[%s17122_s2 + $0x2] ss:$0 sm:$0xff]  ;;  %v14634_v37 = vpack.c.bf16 %v14605_v56, %v14602_v43 }
 0x190   : > { %3641 = vmatmul.mubr.bf16.gmra.mrb[172].mxu0 %v3440_v20  ;;  %v14593_v60 = vadd.f32 %v11220_v11, %v11219_v47  ;;  %11724 = vmatprep.subr.bf16.mxu1 %v12702_v18  ;;  %v3441_v20 = vpack.c.bf16 %v14577_v30, %v14574_v19  ;;  %v12716_v33 = vld [vmem:[%s17123_s3 + $0xc0] sm:$0xff]  }
 0x191   : > { %v1797_v39 = vadd.f32 %v14547_v5, %v1777_v27  ;;  %v1778_v13 = vadd.f32 %v11157_v63, %v14309_v16  ;;  %3834 = vmatmul.mubr.bf16.gmra.mrb[172].mxu1 %v14556_v26  ;;  %3648 = vmatprep.mubr.bf16.mxu0 %v3452_v54  ;;  %v12707_v16 = vld [vmem:[%s17121_s1 + $0x240] sm:$0xff]  }
 0x192   : > { %3841 = vmatprep.mubr.bf16.mxu1 %v14568_v23  ;;  %11661 = vmatpush3.bf16.msra.mxu0 %v12697_v42 }
 0x193   : > { %v1813_v32 = vmax.f32 %v1797_v39, 0.0  ;;  %v1798_v46 = vadd.f32 %v14547_v5, %v1778_v13  ;;  %v11158_v18 = vpop.f32.mrb[68].mxu0  ;;  %11662 = vmatprep.subr.bf16.mxu0 %v12701_v53  ;;  %11725 = vmatpush3.bf16.msra.mxu1 %v12704_v10  ;;  %v3453_v53 = vpack.c.bf16 %v14591_v55, %v14588_v36  ;;  %v14642_v13 = vld [vmem:[%s13229_s26 + $0x152] sm:$0xff] }
 0x194   : > { %v11159_v38 = vpop.f32.mrb[69].mxu0  ;;  %v11222_v58 = vpop.f32.mrb[68].mxu1  ;;  %11726 = vmatprep.subr.bf16.mxu1 %v12705_v6 }
 0x195   : > { %v1833_v42 = vmul.f32 %v14585_v25, %v1813_v32  ;;  %v1814_v61 = vmax.f32 %v1798_v46, 0.0  ;;  %v11160_v54 = vadd.f32 %v11159_v38, %v11158_v18  ;;  %v11161_v49 = vpop.f32.mrb[70].mxu0  ;;  %v11223_v10 = vpop.f32.mrb[69].mxu1  ;;  %v14645_v32 = vld [vmem:[%s13229_s26 + $0x15a] sm:$0xff] }
 0x196   : > { %v11162_v7 = vpop.f32.mrb[71].mxu0  ;;  %11663 = vmatpush3.bf16.msra.mxu0 %v12703_v48  ;;  %v14636_v47 = vadd.f32 %v11223_v10, %v11222_v58  ;;  %v11225_v27 = vpop.f32.mrb[70].mxu1  ;;  %v14648_v18 = vld [vmem:[%s13229_s26 + $0x178] sm:$0xff]  ;;  %v14651_v48 = vld [vmem:[%s13229_s26 + $0x180] sm:$0xff]  ;;  %v3442_v10 = vpack.c.bf16 %v14645_v32, %v14642_v13 }
 0x197   : > { %v1853_v63 = vadd.f32 %v14613_v9, %v1833_v42  ;;  %v1834_v11 = vmul.f32 %v14585_v25, %v1814_v61  ;;  %v1779_v6 = vadd.f32 %v11160_v54, %v14331_v45  ;;  %v11163_v39 = vadd.f32 %v11162_v7, %v11161_v49  ;;  %v11226_v46 = vpop.f32.mrb[71].mxu1  ;;  %11727 = vmatpush3.bf16.msra.mxu1 %v12706_v24  ;;  %v14662_v54 = vld [vmem:[%s13229_s26 + $0x161] sm:$0xff] }
 0x198   : > { %3649 = vmatmul.mubr.bf16.gmra.mrb[176].mxu0 %v3441_v20  ;;  %17140 = vst [vmem:[#allocation11_spill] sm:$0xff] %v14651_v48  ;;  %v14653_v38 = vadd.f32 %v11226_v46, %v11225_v27  ;;  %11776 = vmatprep.subr.bf16.mxu0 %v12707_v16  ;;  %v14665_v16 = vld [vmem:[%s13229_s26 + $0x169] sm:$0xff] }
 0x199   : > { %1869 = vst [vmem:[#allocation2] sm:$0xff] %v1853_v63  ;;  %v1854_v45 = vadd.f32 %v14613_v9, %v1834_v11  ;;  %v1799_v58 = vadd.f32 %v14547_v5, %v1779_v6  ;;  %v1780_v42 = vadd.f32 %v11163_v39, %v14338_v44  ;;  %3842 = vmatmul.mubr.bf16.gmra.mrb[176].mxu1 %v14624_v15  ;;  %17142 = vst [vmem:[#allocation13_spill] sm:$0xff] %v14665_v16 }
 0x19a   : > { %17141 = vst [vmem:[#allocation12_spill] sm:$0xff] %v14653_v38  ;;  %3656 = vmatprep.mubr.bf16.mxu0 %v3453_v53  ;;  %3849 = vmatprep.mubr.bf16.mxu1 %v14634_v37  ;;  %v14671_v44 = vpack.c.bf16 %v14514_v4, %v14460_v0  ;;  %v3454_v11 = vpack.c.bf16 %v14651_v48, %v14648_v18  ;;  %v14692_v48 = vld [vmem:[%s13229_s26 + $0x188] sm:$0xff]  ;;  %v14730_v38 = vld [vmem:[%s13229_s26 + $0x172] sm:$0xff] }
 0x19b   : > { %11840 = vmatprep.subr.bf16.mxu1 %v12716_v33  ;;  %1870 = vst [vmem:[#allocation2 + $0x8] sm:$0xff] %v1854_v45  ;;  %v1815_v24 = vmax.f32 %v1799_v58, 0.0  ;;  %v1800_v20 = vadd.f32 %v14547_v5, %v1780_v42  ;;  %v11164_v61 = vpop.f32.mrb[72].mxu0  ;;  %v14678_v46 = vpack.c.bf16 %v14665_v16, %v14662_v54  ;;  %17144 = vst [vmem:[#allocation15_spill] sm:$0xff] %v14692_v48 }
 0x19c   : > { %v11165_v49 = vpop.f32.mrb[73].mxu0  ;;  %v11228_v53 = vpop.f32.mrb[72].mxu1 }
 0x19d   : > { %v1835_v33 = vmul.f32 %v14585_v25, %v1815_v24  ;;  %v1816_v7 = vmax.f32 %v1800_v20, 0.0  ;;  %v11166_v27 = vadd.f32 %v11165_v49, %v11164_v61  ;;  %v11167_v63 = vpop.f32.mrb[74].mxu0  ;;  %v11229_v6 = vpop.f32.mrb[73].mxu1  ;;  %v14686_v20 = vld [vmem:[%s13229_s26 + $0x162] sm:$0xff]  ;;  %v14689_v61 = vld [vmem:[%s13229_s26 + $0x16a] sm:$0xff] }
 0x19e   : > { %v11168_v39 = vpop.f32.mrb[75].mxu0  ;;  %v14680_v0 = vadd.f32 %v11229_v6, %v11228_v53  ;;  %v11231_v4 = vpop.f32.mrb[74].mxu1  ;;  %v14695_v53 = vld [vmem:[%s13229_s26 + $0x190] sm:$0xff] }
 0x19f   : > { %v1855_v45 = vadd.f32 %v14613_v9, %v1835_v33  ;;  %v1836_v58 = vmul.f32 %v14585_v25, %v1816_v7  ;;  %v1781_v42 = vadd.f32 %v11166_v27, %v14356_v2  ;;  %v11169_v24 = vadd.f32 %v11168_v39, %v11167_v63  ;;  %v11232_v49 = vpop.f32.mrb[75].mxu1  ;;  %17145 = vst [vmem:[#allocation16_spill] sm:$0xff] %v14695_v53  ;;  %v14706_v39 = vld [vmem:[%s13229_s26 + $0x171] sm:$0xff] }
 0x1a0   : > { %17143 = vst [vmem:[#allocation14_spill] sm:$0xff] %v14680_v0  ;;  %3657 = vmatmul.mubr.bf16.gmra.mrb[180].mxu0 %v3442_v10  ;;  %v14697_v6 = vadd.f32 %v11232_v49, %v11231_v4  ;;  %v14709_v4 = vld [vmem:[%s13229_s26 + $0x179] sm:$0xff] }
 0x1a1   : > { %1871 = vst [vmem:[#allocation2 + $0x10] sm:$0xff] %v1855_v45  ;;  %v1856_v33 = vadd.f32 %v14613_v9, %v1836_v58  ;;  %v1801_v2 = vadd.f32 %v14547_v5, %v1781_v42  ;;  %v1782_v7 = vadd.f32 %v11169_v24, %v14361_v35  ;;  %3850 = vmatmul.mubr.bf16.gmra.mrb[180].mxu1 %v14671_v44  ;;  %17147 = vst [vmem:[#allocation18_spill] sm:$0xff] %v14709_v4 }
 0x1a2   : > { %17146 = vst [vmem:[#allocation17_spill] sm:$0xff] %v14697_v6  ;;  %3664 = vmatprep.mubr.bf16.mxu0 %v3454_v11  ;;  %3857 = vmatprep.mubr.bf16.mxu1 %v14678_v46  ;;  %v3443_v58 = vpack.c.bf16 %v14689_v61, %v14686_v20  ;;  %v14715_v35 = vpack.c.bf16 %v14588_v36, %v14517_v12 }
 0x1a3   : > { %1872 = vst [vmem:[#allocation2 + $0x18] sm:$0xff] %v1856_v33  ;;  %v1817_v10 = vmax.f32 %v1801_v2, 0.0  ;;  %v1802_v27 = vadd.f32 %v14547_v5, %v1782_v7  ;;  %v11170_v63 = vpop.f32.mrb[76].mxu0  ;;  %v3455_v2 = vpack.c.bf16 %v14695_v53, %v14692_v48  ;;  %v14722_v0 = vpack.c.bf16 %v14709_v4, %v14706_v39  ;;  %v14733_v53 = vld [vmem:[%s13229_s26 + $0x17a] sm:$0xff] }
 0x1a4   : > { %v11171_v45 = vpop.f32.mrb[77].mxu0  ;;  %v11234_v11 = vpop.f32.mrb[76].mxu1 }
 0x1a5   : > { %v1837_v42 = vmul.f32 %v14585_v25, %v1817_v10  ;;  %v1818_v24 = vmax.f32 %v1802_v27, 0.0  ;;  %v11172_v49 = vadd.f32 %v11171_v45, %v11170_v63  ;;  %v11173_v33 = vpop.f32.mrb[78].mxu0  ;;  %v11235_v7 = vpop.f32.mrb[77].mxu1 }
 0x1a6   : > { %v11174_v6 = vpop.f32.mrb[79].mxu0  ;;  %v14724_v16 = vadd.f32 %v11235_v7, %v11234_v11  ;;  %v11237_v12 = vpop.f32.mrb[78].mxu1 }
 0x1a7   : > { %v1857_v36 = vadd.f32 %v14613_v9, %v1837_v42  ;;  %v1838_v10 = vmul.f32 %v14585_v25, %v1818_v24  ;;  %v1783_v27 = vadd.f32 %v11172_v49, %v14379_v51  ;;  %v11175_v63 = vadd.f32 %v11174_v6, %v11173_v33  ;;  %v11238_v45 = vpop.f32.mrb[79].mxu1 }
 0x1a8   : > { %17148 = vst [vmem:[#allocation19_spill] sm:$0xff] %v14724_v16  ;;  %3665 = vmatmul.mubr.bf16.gmra.mrb[184].mxu0 %v3443_v58  ;;  %v14735_v48 = vadd.f32 %v11238_v45, %v11237_v12  ;;  %v3444_v49 = vpack.c.bf16 %v14733_v53, %v14730_v38  ;;  %v14747_v33 = vpack.c.bf16 %v14648_v18, %v14591_v55 }
 0x1a9   : > { %1873 = vst [vmem:[#allocation2 + $0x20] sm:$0xff] %v1857_v36  ;;  %v1858_v11 = vadd.f32 %v14613_v9, %v1838_v10  ;;  %v1803_v7 = vadd.f32 %v14547_v5, %v1783_v27  ;;  %v1784_v42 = vadd.f32 %v11175_v63, %v14384_v50  ;;  %3858 = vmatmul.mubr.bf16.gmra.mrb[184].mxu1 %v14715_v35  ;;  %v12947_v27 = vld [vmem:[%s13229_s26 + $0x11a] sm:$0xff] }
 0x1aa   : > { %17149 = vst [vmem:[#allocation20_spill] sm:$0xff] %v14735_v48  ;;  %3672 = vmatprep.mubr.bf16.mxu0 %v3455_v2  ;;  %3865 = vmatprep.mubr.bf16.mxu1 %v14722_v0  ;;  %v3914_v63 = vpack.c.bf16 %v14364_v14, %v12947_v27  ;;  %v4798_v48 = vld [vmem:[#allocation2 + $0x7] ss:$2 sm:$0xff] }
 0x1ab   : > { %1874 = vst [vmem:[#allocation2 + $0x28] sm:$0xff] %v1858_v11  ;;  %v1819_v51 = vmax.f32 %v1803_v7, 0.0  ;;  %v1804_v6 = vadd.f32 %v14547_v5, %v1784_v42  ;;  %v11176_v58 = vpop.f32.mrb[80].mxu0 }
 0x1ac   : > { %v11177_v24 = vpop.f32.mrb[81].mxu0  ;;  %v11240_v50 = vpop.f32.mrb[80].mxu1 }
 0x1ad   : > { %v1839_v12 = vmul.f32 %v14585_v25, %v1819_v51  ;;  %v1820_v2 = vmax.f32 %v1804_v6, 0.0  ;;  %v11178_v36 = vadd.f32 %v11177_v24, %v11176_v58  ;;  %v11179_v10 = vpop.f32.mrb[82].mxu0  ;;  %v11241_v45 = vpop.f32.mrb[81].mxu1  ;;  %v3874_v51 = vld [vmem:[%s13229_s26 + $0x119] sm:$0xff]  ;;  %v4800_v24 = vld [vmem:[#allocation2 + $0x8] ss:$2 sm:$0xff] }
 0x1ae   : > { %v11180_v11 = vpop.f32.mrb[83].mxu0  ;;  %v14752_v7 = vadd.f32 %v11241_v45, %v11240_v50  ;;  %v11243_v42 = vpop.f32.mrb[82].mxu1 }
 0x1af   : > { %v1859_v16 = vadd.f32 %v14613_v9, %v1839_v12  ;;  %v1840_v55 = vmul.f32 %v14585_v25, %v1820_v2  ;;  %v1785_v18 = vadd.f32 %v11178_v36, %v14391_v8  ;;  %v11181_v4 = vadd.f32 %v11180_v11, %v11179_v10  ;;  %v11244_v6 = vpop.f32.mrb[83].mxu1  ;;  %v12948_v11 = vld [vmem:[%s13229_s26 + $0x121] sm:$0xff] }
 0x1b0   : > { %3673 = vmatmul.mubr.bf16.gmra.mrb[188].mxu0 %v3444_v49  ;;  %v14758_v58 = vadd.f32 %v11244_v6, %v11243_v42  ;;  %v3890_v42 = vpack.c.bf16 %v12948_v11, %v3874_v51  ;;  %v12718_v51 = vld [vmem:[%s17123_s3 + $0x80] sm:$0xff]   ;;  %v3876_v11 = vld [vmem:[%s13229_s26 + $0x129] sm:$0xff] }
 0x1b1   : > { %1875 = vst [vmem:[#allocation2 + $0x30] sm:$0xff] %v1859_v16  ;;  %v1860_v14 = vadd.f32 %v14613_v9, %v1840_v55  ;;  %v1805_v50 = vadd.f32 %v14547_v5, %v1785_v18  ;;  %v1786_v27 = vadd.f32 %v11181_v4, %v14395_v21  ;;  %3866 = vmatmul.mubr.bf16.gmra.mrb[188].mxu1 %v14747_v33  ;;  %v12708_v18 = vld [vmem:[%s17121_s1 + $0x200] sm:$0xff]  }
 0x1b2   : > { %4082 = vmatprep.mubr.bf16.mxu0 %v3914_v63  ;;  %4371 = vmatprep.mubr.bf16.mxu1 %v14500_v41  ;;  %v4802_v8 = vld [vmem:[#allocation2 + $0x1f] ss:$2 sm:$0xff]  ;;  %v4804_v12 = vld [vmem:[#allocation2 + $0x20] ss:$2 sm:$0xff]  ;;  %v4805_v16 = vmax.f32 %v4798_v48, %v4800_v24 }
 0x1b3   : > { %1876 = vst [vmem:[#allocation2 + $0x38] sm:$0xff] %v1860_v14  ;;  %v1821_v49 = vmax.f32 %v1805_v50, 0.0  ;;  %v1806_v2 = vadd.f32 %v14547_v5, %v1786_v27  ;;  %v11182_v36 = vpop.f32.mrb[84].mxu0  ;;  %v4806_v10 = vmax.f32 %v4802_v8, %v4804_v12  ;;  %v12709_v48 = vld [vmem:[%s17121_s1 + $0x248] sm:$0xff]  }
 0x1b4   : > { %v11183_v45 = vpop.f32.mrb[85].mxu0  ;;  %v11246_v55 = vpop.f32.mrb[84].mxu1  ;;  %v12949_v50 = vld [vmem:[%s13229_s26 + $0x12a] sm:$0xff] }
 0x1b5   : > { %v1841_v21 = vmul.f32 %v14585_v25, %v1821_v49  ;;  %v1822_v4 = vmax.f32 %v1806_v2, 0.0  ;;  %v11184_v63 = vadd.f32 %v11183_v45, %v11182_v36  ;;  %v11185_v41 = vpop.f32.mrb[86].mxu0  ;;  %v11247_v6 = vpop.f32.mrb[85].mxu1  ;;  %v14777_v24 = vmax.f32 %v4805_v16, %v4806_v10  ;;  %v12710_v16 = vld [vmem:[%s17121_s1 + $0x208] sm:$0xff]  }
 0x1b6   : > { %v11186_v14 = vpop.f32.mrb[87].mxu0  ;;  %v3915_v27 = vpack.c.bf16 %v14504_v59, %v12949_v50  ;;  %v14781_v8 = vadd.f32 %v11247_v6, %v11246_v55  ;;  %v11249_v12 = vpop.f32.mrb[86].mxu1  ;;  %v12719_v59 = vld [vmem:[%s17123_s3 + $0xc8] sm:$0xff]  }
 0x1b7   : > { %v1861_v49 = vadd.f32 %v14613_v9, %v1841_v21  ;;  %v1842_v2 = vmul.f32 %v14585_v25, %v1822_v4  ;;  %v1787_v36 = vadd.f32 %v11184_v63, %v14428_v31  ;;  %v11187_v45 = vadd.f32 %v11186_v14, %v11185_v41  ;;  %v11250_v10 = vpop.f32.mrb[87].mxu1  ;;  %4808 = vst [vmem:[#allocation3 + $0x18] sm:$0xff] %v14777_v24  ;;  %v12711_v31 = vld [vmem:[%s17121_s1 + $0x250] sm:$0xff]  }
 0x1b8   : > { %4083 = vmatmul.mubr.bf16.vlgmr.msra.gmra.mrb[192].mxu0 %v3890_v42  ;;  %v14794_v55 = vadd.f32 %v11250_v10, %v11249_v12  ;;  %v12720_v42 = vld [vmem:[%s17123_s3 + $0x88] sm:$0xff]   ;;  %v12722_v41 = vld [vmem:[%s17123_s3 + $0xd0] sm:$0xff]  }
 0x1b9   : > { %1877 = vst [vmem:[#allocation2 + $0x40] sm:$0xff] %v1861_v49  ;;  %v1862_v21 = vadd.f32 %v14613_v9, %v1842_v2  ;;  %v1807_v4 = vadd.f32 %v14547_v5, %v1787_v36  ;;  %v1788_v63 = vadd.f32 %v11187_v45, %v14435_v62  ;;  %4372 = vmatmul.mubr.bf16.vlgmr.msra.gmra.mrb[192].mxu1 %v14556_v26 }
 0x1ba   : > { %11777 = vmatpush3.bf16.msra.mxu0 %v12708_v18  ;;  %4090 = vmatprep.mubr.bf16.mxu0 %v3915_v27  ;;  %v3891_v26 = vpack.c.bf16 %v14470_v29, %v3876_v11  ;;  %v3916_v36 = vpack.c.bf16 %v14574_v19, %v14507_v34  ;;  %v12713_v34 = vld [vmem:[%s17121_s1 + $0x258] sm:$0xff]   ;;  %v12724_v19 = vld [vmem:[%s17123_s3 + $0x90] sm:$0xff]  }
 0x1bb   : > { %4379 = vmatprep.mubr.bf16.mxu1 %v14568_v23  ;;  %1878 = vst [vmem:[#allocation2 + $0x48] sm:$0xff] %v1862_v21  ;;  %v1823_v6 = vmax.f32 %v1807_v4, 0.0  ;;  %v1808_v14 = vadd.f32 %v14547_v5, %v1788_v63  ;;  %v11188_v50 = vpop.f32.mrb[88].mxu0  ;;  %11778 = vmatprep.subr.bf16.mxu0 %v12709_v48  ;;  %v12712_v48 = vld [vmem:[%s17121_s1 + $0x210] sm:$0xff]  }
 0x1bc   : > { %11841 = vmatpush3.bf16.msra.mxu1 %v12718_v51  ;;  %v11189_v62 = vpop.f32.mrb[89].mxu0  ;;  %v11252_v18 = vpop.f32.mrb[88].mxu1 }
 0x1bd   : > { %11842 = vmatprep.subr.bf16.mxu1 %v12719_v59  ;;  %v1843_v27 = vmul.f32 %v14585_v25, %v1823_v6  ;;  %v1824_v12 = vmax.f32 %v1808_v14, 0.0  ;;  %v11190_v23 = vadd.f32 %v11189_v62, %v11188_v50  ;;  %v11191_v49 = vpop.f32.mrb[90].mxu0  ;;  %v11253_v2 = vpop.f32.mrb[89].mxu1  ;;  %v12726_v14 = vld [vmem:[%s17123_s3 + $0x98] sm:$0xff]  }
 0x1be   : > { %11779 = vmatpush3.bf16.msra.mxu0 %v12710_v16  ;;  %v11192_v45 = vpop.f32.mrb[91].mxu0  ;;  %v11255_v10 = vpop.f32.mrb[90].mxu1  ;;  %v14818_v29 = vadd.f32 %v11253_v2, %v11252_v18 }
 0x1bf   : > { %11780 = vmatprep.subr.bf16.mxu0 %v12711_v31  ;;  %v1863_v51 = vadd.f32 %v14613_v9, %v1843_v27  ;;  %v1844_v11 = vmul.f32 %v14585_v25, %v1824_v12  ;;  %v1789_v59 = vadd.f32 %v11190_v23, %v14466_v28  ;;  %v11193_v16 = vadd.f32 %v11192_v45, %v11191_v49  ;;  %v11256_v21 = vpop.f32.mrb[91].mxu1  ;;  %v12714_v31 = vld [vmem:[%s17121_s1 + $0x218] sm:$0xff]   ;;  %v12721_v45 = vld [vmem:[%s17121_s1 + $0x268] sm:$0xff]  }
 0x1c0   : > { %11843 = vmatpush3.bf16.msra.mxu1 %v12720_v42  ;;  %4091 = vmatmul.mubr.bf16.gmra.mrb[196].mxu0 %v3891_v26  ;;  %v12725_v28 = vld [vmem:[%s17123_s3 + $0xd8] sm:$0xff]   ;;  %v14835_v4 = vadd.f32 %v11256_v21, %v11255_v10 }
 0x1c1   : > { %11844 = vmatprep.subr.bf16.mxu1 %v12722_v41  ;;  %1879 = vst [vmem:[#allocation2 + $0x50] sm:$0xff] %v1863_v51  ;;  %v1864_v63 = vadd.f32 %v14613_v9, %v1844_v11  ;;  %v1809_v42 = vadd.f32 %v14547_v5, %v1789_v59  ;;  %v1790_v6 = vadd.f32 %v11193_v16, %v14482_v1  ;;  %v12715_v41 = vld [vmem:[%s17121_s1 + $0x260] sm:$0xff]  }
 0x1c2   : > { %4380 = vmatmul.mubr.bf16.gmra.mrb[196].mxu1 %v14624_v15  ;;  %4098 = vmatprep.mubr.bf16.mxu0 %v3916_v36  ;;  %v3892_v15 = vpack.c.bf16 %v14527_v57, %v14473_v40  ;;  %v3917_v36 = vpack.c.bf16 %v14642_v13, %v14577_v30  ;;  %v12728_v40 = vld [vmem:[%s17123_s3 + $0xe0] sm:$0xff]  }
 0x1c3   : > { %4387 = vmatprep.mubr.bf16.mxu1 %v14634_v37  ;;  %11781 = vmatpush3.bf16.msra.mxu0 %v12712_v48  ;;  %1880 = vst [vmem:[#allocation2 + $0x58] sm:$0xff] %v1864_v63  ;;  %v1825_v50 = vmax.f32 %v1809_v42, 0.0  ;;  %v1810_v62 = vadd.f32 %v14547_v5, %v1790_v6  ;;  %v11194_v26 = vpop.f32.mrb[92].mxu0  ;;  %v12717_v37 = vld [vmem:[%s17121_s1 + $0x220] sm:$0xff]   ;;  %v12727_v6 = vld [vmem:[%s17121_s1 + $0x270] sm:$0xff]  }
 0x1c4   : > { %11782 = vmatprep.subr.bf16.mxu0 %v12713_v34  ;;  %11845 = vmatpush3.bf16.msra.mxu1 %v12724_v19  ;;  %v11195_v1 = vpop.f32.mrb[93].mxu0  ;;  %v11258_v18 = vpop.f32.mrb[92].mxu1  ;;  %v12730_v48 = vld [vmem:[%s17123_s3 + $0xa0] sm:$0xff]   ;;  %v12731_v19 = vld [vmem:[%s17123_s3 + $0xe8] sm:$0xff]  }
 0x1c5   : > { %11846 = vmatprep.subr.bf16.mxu1 %v12725_v28  ;;  %v1845_v27 = vmul.f32 %v14585_v25, %v1825_v50  ;;  %v1826_v12 = vmax.f32 %v1810_v62, 0.0  ;;  %v11196_v23 = vadd.f32 %v11195_v1, %v11194_v26  ;;  %v11197_v49 = vpop.f32.mrb[94].mxu0  ;;  %v11259_v2 = vpop.f32.mrb[93].mxu1  ;;  %v4810_v51 = vld [vmem:[#allocation2 + $0x37] ss:$2 sm:$0xff] }
 0x1c6   : > { %v11198_v57 = vpop.f32.mrb[95].mxu0  ;;  %v11261_v10 = vpop.f32.mrb[94].mxu1  ;;  %v4812_v11 = vld [vmem:[#allocation2 + $0x38] ss:$2 sm:$0xff]  ;;  %v14866_v59 = vadd.f32 %v11259_v2, %v11258_v18 }
 0x1c7   : > { %11783 = vmatpush3.bf16.msra.mxu0 %v12714_v31  ;;  %v1865_v30 = vadd.f32 %v14613_v9, %v1845_v27  ;;  %v1846_v13 = vmul.f32 %v14585_v25, %v1826_v12  ;;  %v1791_v16 = vadd.f32 %v11196_v23, %v14523_v3  ;;  %v11199_v21 = vadd.f32 %v11198_v57, %v11197_v49  ;;  %v11262_v34 = vpop.f32.mrb[95].mxu1  ;;  %v12723_v31 = vld [vmem:[%s17121_s1 + $0x228] sm:$0xff]   ;;  %v12729_v27 = vld [vmem:[%s17121_s1 + $0x230] sm:$0xff]  }
 0x1c8   : > { %11784 = vmatprep.subr.bf16.mxu0 %v12715_v41  ;;  %4099 = vmatmul.mubr.bf16.gmra.mrb[200].mxu0 %v3892_v15  ;;  %v14877_v28 = vadd.f32 %v11262_v34, %v11261_v10  ;;  %v12732_v41 = vld [vmem:[%s17123_s3 + $0xa8] sm:$0xff]  }
 0x1c9   : > { %11847 = vmatpush3.bf16.msra.mxu1 %v12726_v14  ;;  %1881 = vst [vmem:[#allocation2 + $0x60] sm:$0xff] %v1865_v30  ;;  %v1866_v63 = vadd.f32 %v14613_v9, %v1846_v13  ;;  %v1811_v3 = vadd.f32 %v14547_v5, %v1791_v16  ;;  %v1792_v42 = vadd.f32 %v11199_v21, %v14539_v52  ;;  %v12737_v30 = vld [vmem:[%s17123_s3 + $0xf8] sm:$0xff]   ;;  %v14924_v21 = vld [vmem:[%s13229_s26 + $0x181] sm:$0xff]  ;;  %v14927_v34 = vld [vmem:[%s13229_s26 + $0x189] sm:$0xff] }
 0x1ca   : > { %4388 = vmatmul.mubr.bf16.gmra.mrb[200].mxu1 %v14671_v44  ;;  %4106 = vmatprep.mubr.bf16.mxu0 %v3917_v36  ;;  %v4814_v14 = vld [vmem:[#allocation2 + $0x4f] ss:$2 sm:$0xff]  ;;  %v4816_v50 = vld [vmem:[#allocation2 + $0x50] ss:$2 sm:$0xff]  ;;  %v4817_v44 = vmax.f32 %v4810_v51, %v4812_v11 }
 0x1cb   : > { %4395 = vmatprep.mubr.bf16.mxu1 %v14678_v46  ;;  %11785 = vmatpush3.bf16.msra.mxu0 %v12717_v37  ;;  %1882 = vst [vmem:[#allocation2 + $0x68] sm:$0xff] %v1866_v63  ;;  %v1827_v62 = vmax.f32 %v1811_v3, 0.0  ;;  %v1812_v52 = vadd.f32 %v14547_v5, %v1792_v42  ;;  %v11280_v26 = vpop.f32.mrb[96].mxu0  ;;  %v4818_v1 = vmax.f32 %v4814_v14, %v4816_v50  ;;  %v12733_v36 = vld [vmem:[%s17121_s1 + $0x278] sm:$0xff]  }
 0x1cc   : > { %11786 = vmatprep.subr.bf16.mxu0 %v12721_v45  ;;  %11848 = vmatprep.subr.bf16.mxu1 %v12728_v40  ;;  %v11281_v15 = vpop.f32.mrb[97].mxu0  ;;  %v11344_v18 = vpop.f32.mrb[96].mxu1  ;;  %v3893_v46 = vpack.c.bf16 %v14602_v43, %v14530_v17  ;;  %v3918_v37 = vpack.c.bf16 %v14686_v20, %v14645_v32  ;;  %v12734_v17 = vld [vmem:[%s17123_s3 + $0xf0] sm:$0xff]   ;;  %v3919_v14 = vpack.c.bf16 %v14730_v38, %v14689_v61  ;;  %v14949_v38 = vld [vmem:[%s13229_s26 + $0x182] sm:$0xff] }
 0x1cd   : > { %11849 = vmatpush3.bf16.msra.mxu1 %v12730_v48  ;;  %v1847_v5 = vmul.f32 %v14585_v25, %v1827_v62  ;;  %v1828_v12 = vmax.f32 %v1812_v52, 0.0  ;;  %v11282_v23 = vadd.f32 %v11281_v15, %v11280_v26  ;;  %v11283_v49 = vpop.f32.mrb[98].mxu0  ;;  %v11345_v2 = vpop.f32.mrb[97].mxu1  ;;  %v14905_v43 = vmax.f32 %v4817_v44, %v4818_v1  ;;  %v12736_v40 = vld [vmem:[%s17123_s3 + $0xb0] sm:$0xff]  }
 0x1ce   : > { %11850 = vmatprep.subr.bf16.mxu1 %v12731_v19  ;;  %v11284_v32 = vpop.f32.mrb[99].mxu0  ;;  %v11346_v20 = vadd.f32 %v11345_v2, %v11344_v18  ;;  %v11347_v45 = vpop.f32.mrb[98].mxu1  ;;  %v4208_v26 = vpack.c.bf16 %v14927_v34, %v14924_v21  ;;  %v14952_v61 = vld [vmem:[%s13229_s26 + $0x191] sm:$0xff]  ;;  %v17150_v18 = vld [vmem:[#allocation12_spill] sm:$0xff] }
 0x1cf   : > { %11787 = vmatpush3.bf16.msra.mxu0 %v12723_v31  ;;  %v1867_v57 = vadd.f32 %v14613_v9, %v1847_v5  ;;  %v1848_v10 = vmul.f32 %v14585_v25, %v1828_v12  ;;  %v2356_v48 = vadd.f32 %v11282_v23, %v14570_v22  ;;  %v11285_v51 = vadd.f32 %v11284_v32, %v11283_v49  ;;  %v11348_v11 = vpop.f32.mrb[99].mxu1  ;;  %v12735_v25 = vld [vmem:[%s17121_s1 + $0x238] sm:$0xff]   ;;  %v17151_v23 = vld [vmem:[#allocation13_spill] sm:$0xff] }
 0x1d0   : > { %11788 = vmatprep.subr.bf16.mxu0 %v12727_v6  ;;  %4820 = vst [vmem:[#allocation3 + $0x28] sm:$0xff] %v14905_v43  ;;  %v11349_v13 = vadd.f32 %v11348_v11, %v11347_v45  ;;  %4107 = vmatmul.mubr.bf16.gmra.mrb[204].mxu0 %v3893_v46  ;;  %v12738_v31 = vld [vmem:[%s17123_s3 + $0xb8] sm:$0xff]   ;;  %v3920_v45 = vpack.c.bf16 %v14949_v38, %v14733_v53  ;;  %v17154_v11 = vld [vmem:[#allocation14_spill] sm:$0xff]  ;;  %v17155_v53 = vld [vmem:[#allocation17_spill] sm:$0xff] }
 0x1d1   : > { %11851 = vmatpush3.bf16.msra.mxu1 %v12732_v41  ;;  %1883 = vst [vmem:[#allocation2 + $0x70] sm:$0xff] %v1867_v57  ;;  %v1868_v22 = vadd.f32 %v14613_v9, %v1848_v10  ;;  %v2359_v16 = vadd.f32 %v11285_v51, %v14593_v60  ;;  %4114 = vmatprep.mubr.bf16.mxu0 %v3918_v37  ;;  %v17153_v32 = vld [vmem:[#allocation15_spill] sm:$0xff] }
 0x1d2   : > { %4396 = vmatmul.mubr.bf16.gmra.mrb[204].mxu1 %v14715_v35  ;;  %v14929_v19 = vadd.f32 %v11346_v20, %v2356_v48  ;;  %11852 = vmatprep.subr.bf16.mxu1 %v12734_v17  ;;  %v12739_v35 = vld [vmem:[%s17123_s3 + $0x40] sm:$0xff]   ;;  %v17152_v17 = vld [vmem:[#allocation11_spill] sm:$0xff] }
 0x1d3   : > { %4403 = vmatprep.mubr.bf16.mxu1 %v14722_v0  ;;  %11789 = vmatpush3.bf16.msra.mxu0 %v12729_v27  ;;  %1884 = vst [vmem:[#allocation2 + $0x78] sm:$0xff] %v1868_v22  ;;  %v11286_v9 = vpop.f32.mrb[100].mxu0  ;;  %v14935_v60 = vadd.f32 %v11349_v13, %v2359_v16  ;;  %v3894_v0 = vpack.c.bf16 %v14662_v54, %v14605_v56  ;;  %v4200_v27 = vld [vmem:[%s13229_s26 + $0x199] sm:$0xff]  ;;  %v14970_v22 = vld [vmem:[%s13229_s26 + $0x18a] sm:$0xff] }
 0x1d4   : > { %11790 = vmatprep.subr.bf16.mxu0 %v12733_v36  ;;  %v11287_v63 = vpop.f32.mrb[101].mxu0  ;;  %v11350_v3 = vpop.f32.mrb[100].mxu1  ;;  %v4184_v20 = vpack.c.bf16 %v17153_v32, %v17152_v17  ;;  %v4209_v48 = vpack.c.bf16 %v4200_v27, %v14952_v61  ;;  %v14973_v16 = vld [vmem:[%s13229_s26 + $0x192] sm:$0xff]  ;;  %v17159_v17 = vld [vmem:[#allocation20_spill] sm:$0xff] }
 0x1d5   : > { %11853 = vmatpush3.bf16.msra.mxu1 %v12736_v40  ;;  %v11288_v42 = vadd.f32 %v11287_v63, %v11286_v9  ;;  %v11289_v6 = vpop.f32.mrb[102].mxu0  ;;  %v11351_v41 = vpop.f32.mrb[101].mxu1  ;;  %v17158_v27 = vld [vmem:[#allocation19_spill] sm:$0xff] }
 0x1d6   : > { %11854 = vmatprep.subr.bf16.mxu1 %v12737_v30  ;;  %v11290_v50 = vpop.f32.mrb[103].mxu0  ;;  %v11352_v62 = vadd.f32 %v11351_v41, %v11350_v3  ;;  %v11353_v52 = vpop.f32.mrb[102].mxu1  ;;  %v17156_v41 = vld [vmem:[#allocation18_spill] sm:$0xff] }
 0x1d7   : > { %11791 = vmatpush3.bf16.msra.mxu0 %v12735_v25  ;;  %v11291_v44 = vadd.f32 %v11290_v50, %v11289_v6  ;;  %v11354_v56 = vpop.f32.mrb[103].mxu1  ;;  %v2364_v54 = vadd.f32 %v11288_v42, %v14636_v47  ;;  %v4176_v25 = vld [vmem:[%s13229_s26 + $0x198] sm:$0xff] }
 0x1d8   : > { %11904 = vmatprep.subr.bf16.mxu0 %v12739_v35  ;;  %v11355_v1 = vadd.f32 %v11354_v56, %v11353_v52  ;;  %4115 = vmatmul.mubr.bf16.gmra.mrb[208].mxu0 %v3894_v0  ;;  %v4201_v35 = vld [vmem:[%s13229_s26 + $0x1a1] sm:$0xff]  ;;  %v4202_v0 = vld [vmem:[%s13229_s26 + $0x1a9] sm:$0xff]  ;;  %v3921_v56 = vpack.c.bf16 %v14973_v16, %v14970_v22 }
 0x1d9   : > { %11855 = vmatpush3.bf16.msra.mxu1 %v12738_v31  ;;  %4122 = vmatprep.mubr.bf16.mxu0 %v3919_v14  ;;  %v14954_v15 = vadd.f32 %v11352_v62, %v2364_v54  ;;  %v2367_v46 = vadd.f32 %v11291_v44, %v17150_v18  ;;  %v3896_v14 = vpack.c.bf16 %v14924_v21, %v17156_v41  ;;  %v4454_v41 = vld [vmem:[%s13229_s26 + $0x142] sm:$0xff] }
 0x1da   : > { %4404 = vmatmul.mubr.bf16.gmra.mrb[208].mxu1 %v14747_v33  ;;  %v3895_v33 = vpack.c.bf16 %v14706_v39, %v17151_v23  ;;  %v4177_v23 = vld [vmem:[%s13229_s26 + $0x1a0] sm:$0xff] }
 0x1db   : > { %4411 = vmatprep.mubr.bf16.mxu1 %v4208_v26  ;;  %v11292_v37 = vpop.f32.mrb[104].mxu0  ;;  %v14958_v5 = vadd.f32 %v11355_v1, %v2367_v46  ;;  %v17157_v26 = vld [vmem:[#allocation16_spill] sm:$0xff]  ;;  %v4210_v46 = vpack.c.bf16 %v4202_v0, %v4201_v35 }
 0x1dc   : > { %v11293_v47 = vpop.f32.mrb[105].mxu0  ;;  %v11356_v12 = vpop.f32.mrb[104].mxu1  ;;  %v4185_v44 = vpack.c.bf16 %v4176_v25, %v17157_v26 }
 0x1dd   : > { %v11294_v49 = vadd.f32 %v11293_v47, %v11292_v37  ;;  %v11295_v2 = vpop.f32.mrb[106].mxu0  ;;  %v11357_v36 = vpop.f32.mrb[105].mxu1 }
 0x1de   : > { %v11296_v40 = vpop.f32.mrb[107].mxu0  ;;  %v11358_v57 = vadd.f32 %v11357_v36, %v11356_v12  ;;  %v11359_v10 = vpop.f32.mrb[106].mxu1 }
 0x1df   : > { %v11297_v51 = vadd.f32 %v11296_v40, %v11295_v2  ;;  %v2372_v39 = vadd.f32 %v11294_v49, %v17154_v11  ;;  %v11360_v30 = vpop.f32.mrb[107].mxu1  ;;  %v4452_v49 = vld [vmem:[%s13229_s26 + $0x132] sm:$0xff]  ;;  %v4453_v2 = vld [vmem:[%s13229_s26 + $0x13a] sm:$0xff] }
 0x1e0   : > { %v11361_v13 = vadd.f32 %v11360_v30, %v11359_v10  ;;  %4123 = vmatmul.mubr.bf16.gmra.mrb[212].mxu0 %v3895_v33  ;;  %v4178_v33 = vld [vmem:[%s13229_s26 + $0x1a8] sm:$0xff]  ;;  %v3897_v10 = vpack.c.bf16 %v14952_v61, %v14927_v34  ;;  %v4468_v30 = vpack.c.bf16 %v4453_v2, %v4452_v49  ;;  %v4456_v2 = vld [vmem:[%s13229_s26 + $0x152] sm:$0xff] }
 0x1e1   : > { %v14975_v31 = vadd.f32 %v11358_v57, %v2372_v39  ;;  %v2375_v9 = vadd.f32 %v11297_v51, %v17155_v53  ;;  %4130 = vmatprep.mubr.bf16.mxu0 %v3920_v45  ;;  %v4186_v39 = vpack.c.bf16 %v4178_v33, %v4177_v23  ;;  %v4976_v61 = vld [vmem:[#allocation3 + $0x2] sm:$0xff] }
 0x1e2   : > { %4412 = vmatmul.mubr.bf16.gmra.mrb[212].mxu1 %v4184_v20  ;;  %v12741_v23 = vld [vmem:[%s17123_s3 + $0x48] sm:$0xff]  }
 0x1e3   : > { %4419 = vmatprep.mubr.bf16.mxu1 %v4209_v48  ;;  %v14979_v63 = vadd.f32 %v11361_v13, %v2375_v9  ;;  %v11298_v3 = vpop.f32.mrb[108].mxu0 }
 0x1e4   : > { %v11299_v42 = vpop.f32.mrb[109].mxu0  ;;  %v11362_v6 = vpop.f32.mrb[108].mxu1 }
 0x1e5   : > { %v11300_v50 = vadd.f32 %v11299_v42, %v11298_v3  ;;  %v11301_v62 = vpop.f32.mrb[110].mxu0  ;;  %v11363_v52 = vpop.f32.mrb[109].mxu1  ;;  %v15000_v42 = vld [vmem:[#allocation3 + $0x10] sm:$0xff] }
 0x1e6   : > { %v11302_v54 = vpop.f32.mrb[111].mxu0  ;;  %v11364_v1 = vadd.f32 %v11363_v52, %v11362_v6  ;;  %v11365_v18 = vpop.f32.mrb[110].mxu1  ;;  %v15004_v34 = vpack.c.bf16 %v14777_v24, %v15000_v42  ;;  %v4977_v6 = vld [vmem:[#allocation3 + $0xa] sm:$0xff]  ;;  %v12740_v24 = vld [vmem:[%s17123_s3] sm:$0xff]   ;;  %v15023_v49 = vpack.c.bf16 %v14905_v43, %v15000_v42  ;;  %v4978_v43 = vld [vmem:[#allocation3 + $0x12] sm:$0xff] }
 0x1e7   : > { %v11303_v37 = vadd.f32 %v11302_v54, %v11301_v62  ;;  %v2380_v47 = vadd.f32 %v11300_v50, %v17158_v27  ;;  %v11366_v12 = vpop.f32.mrb[111].mxu1 }
 0x1e8   : > { %v11367_v21 = vadd.f32 %v11366_v12, %v11365_v18  ;;  %4131 = vmatmul.mubr.bf16.gmra.mrb[216].mxu0 %v3896_v14  ;;  %v4455_v14 = vld [vmem:[%s13229_s26 + $0x14a] sm:$0xff]  ;;  %v4992_v18 = vpack.c.bf16 %v4977_v6, %v4976_v61 }
 0x1e9   : > { %v14992_v36 = vadd.f32 %v11364_v1, %v2380_v47  ;;  %v2383_v32 = vadd.f32 %v11303_v37, %v17159_v17  ;;  %4138 = vmatprep.mubr.bf16.mxu0 %v3921_v56  ;;  %v4457_v17 = vld [vmem:[%s13229_s26 + $0x15a] sm:$0xff] }
 0x1ea   : > { %4420 = vmatmul.mubr.bf16.gmra.mrb[216].mxu1 %v4185_v44 }
 0x1eb   : > { %4427 = vmatprep.mubr.bf16.mxu1 %v4210_v46  ;;  %v14995_v20 = vadd.f32 %v11367_v21, %v2383_v32  ;;  %v11304_v45 = vpop.f32.mrb[112].mxu0  ;;  %v12742_v32 = vld [vmem:[%s17123_s3 + $0x8] sm:$0xff]  }
 0x1ec   : > { %v11305_v40 = vpop.f32.mrb[113].mxu0  ;;  %v11368_v57 = vpop.f32.mrb[112].mxu1 }
 0x1ed   : > { %v11306_v48 = vadd.f32 %v11305_v40, %v11304_v45  ;;  %v11307_v51 = vpop.f32.mrb[114].mxu0  ;;  %v11369_v11 = vpop.f32.mrb[113].mxu1  ;;  %v12743_v40 = vld [vmem:[%s17123_s3 + $0x50] sm:$0xff]  }
 0x1ee   : > { %v11308_v13 = vpop.f32.mrb[115].mxu0  ;;  %v11370_v25 = vadd.f32 %v11369_v11, %v11368_v57  ;;  %v11371_v53 = vpop.f32.mrb[114].mxu1 }
 0x1ef   : > { %v11309_v9 = vadd.f32 %v11308_v13, %v11307_v51  ;;  %v2388_v35 = vadd.f32 %v11306_v48, %v14752_v7  ;;  %v11372_v3 = vpop.f32.mrb[115].mxu1  ;;  %v4979_v48 = vld [vmem:[#allocation3 + $0x1a] sm:$0xff] }
 0x1f0   : > { %v11373_v0 = vadd.f32 %v11372_v3, %v11371_v53  ;;  %4139 = vmatmul.mubr.bf16.gmra.mrb[220].mxu0 %v3897_v10  ;;  %v4993_v6 = vpack.c.bf16 %v4979_v48, %v4978_v43  ;;  %v12750_v43 = vld [vmem:[%s17123_s3 + $0x28] sm:$0xff]  }
 0x1f1   : > { %v15008_v50 = vadd.f32 %v11370_v25, %v2388_v35  ;;  %v2391_v62 = vadd.f32 %v11309_v9, %v14758_v58  ;;  %4636 = vmatprep.mubr.bf16.mxu0 %v4468_v30  ;;  %v4469_v58 = vpack.c.bf16 %v4455_v14, %v4454_v41  ;;  %v4470_v25 = vpack.c.bf16 %v4457_v17, %v4456_v2  ;;  %v12745_v41 = vld [vmem:[%s17123_s3 + $0x58] sm:$0xff]   ;;  %v12749_v17 = vld [vmem:[%s17123_s3 + $0x68] sm:$0xff]  }
 0x1f2   : > { %4428 = vmatmul.mubr.bf16.gmra.mrb[220].mxu1 %v4186_v39 }
 0x1f3   : > { %5163 = vmatprep.mubr.bf16.mxu1 %v15004_v34  ;;  %v15012_v7 = vadd.f32 %v11373_v0, %v2391_v62  ;;  %v11310_v52 = vpop.f32.mrb[116].mxu0  ;;  %v4458_v62 = vld [vmem:[%s13229_s26 + $0x162] sm:$0xff] }
 0x1f4   : > { %v11311_v26 = vpop.f32.mrb[117].mxu0  ;;  %v11374_v44 = vpop.f32.mrb[116].mxu1 }
 0x1f5   : > { %v11312_v56 = vadd.f32 %v11311_v26, %v11310_v52  ;;  %v11313_v54 = vpop.f32.mrb[118].mxu0  ;;  %v11375_v1 = vpop.f32.mrb[117].mxu1  ;;  %v4459_v52 = vld [vmem:[%s13229_s26 + $0x16a] sm:$0xff]  ;;  %v12746_v26 = vld [vmem:[%s17123_s3 + $0x18] sm:$0xff]  }
 0x1f6   : > { %v11314_v46 = vpop.f32.mrb[119].mxu0  ;;  %v11376_v37 = vadd.f32 %v11375_v1, %v11374_v44  ;;  %v11377_v27 = vpop.f32.mrb[118].mxu1 }
 0x1f7   : > { %v2396_v47 = vadd.f32 %v11312_v56, %v14781_v8  ;;  %v11315_v12 = vadd.f32 %v11314_v46, %v11313_v54  ;;  %v11378_v21 = vpop.f32.mrb[119].mxu1  ;;  %v12747_v54 = vld [vmem:[%s17123_s3 + $0x60] sm:$0xff]  }
 0x1f8   : > { %v11379_v33 = vadd.f32 %v11378_v21, %v11377_v27  ;;  %4637 = vmatmul.mubr.bf16.vlgmr.msra.gmra.mrb[224].mxu0 %v4468_v30  ;;  %v4471_v27 = vpack.c.bf16 %v4459_v52, %v4458_v62  ;;  %v12754_v62 = vld [vmem:[%s17123_s3 + $0x38] sm:$0xff]  }
 0x1f9   : > { %v2399_v8 = vadd.f32 %v11315_v12, %v14794_v55  ;;  %v15031_v45 = vadd.f32 %v11376_v37, %v2396_v47  ;;  %4644 = vmatprep.mubr.bf16.mxu0 %v4469_v58  ;;  %11905 = vmatpush3.bf16.msra.mxu0 %v12740_v24  ;;  %v12744_v55 = vld [vmem:[%s17123_s3 + $0x10] sm:$0xff]  }
 0x1fa   : > { %5164 = vmatmul.mubr.bf16.vlgmr.msra.gmra.mrb[224].mxu1 %v4992_v18  ;;  %11906 = vmatprep.subr.bf16.mxu0 %v12741_v23 }
 0x1fb   : > { %5171 = vmatprep.mubr.bf16.mxu1 %v15023_v49  ;;  %v15037_v57 = vadd.f32 %v11379_v33, %v2399_v8  ;;  %v11316_v10 = vpop.f32.mrb[120].mxu0  ;;  %v4460_v8 = vld [vmem:[%s13229_s26 + $0x172] sm:$0xff] }
 0x1fc   : > { %v11317_v51 = vpop.f32.mrb[121].mxu0  ;;  %v11380_v11 = vpop.f32.mrb[120].mxu1 }
 0x1fd   : > { %v11318_v39 = vadd.f32 %v11317_v51, %v11316_v10  ;;  %v11319_v30 = vpop.f32.mrb[122].mxu0  ;;  %v11381_v13 = vpop.f32.mrb[121].mxu1  ;;  %11907 = vmatpush3.bf16.msra.mxu0 %v12742_v32 }
 0x1fe   : > { %v11320_v53 = vpop.f32.mrb[123].mxu0  ;;  %v11382_v9 = vadd.f32 %v11381_v13, %v11380_v11  ;;  %v11383_v35 = vpop.f32.mrb[122].mxu1  ;;  %11908 = vmatprep.subr.bf16.mxu0 %v12743_v40  ;;  %v4461_v40 = vld [vmem:[%s13229_s26 + $0x17a] sm:$0xff]  ;;  %v12751_v11 = vld [vmem:[%s17123_s3 + $0x70] sm:$0xff]  }
 0x1ff   : > { %v2404_v3 = vadd.f32 %v11318_v39, %v14818_v29  ;;  %v11321_v0 = vadd.f32 %v11320_v53, %v11319_v30  ;;  %v11384_v61 = vpop.f32.mrb[123].mxu1  ;;  %v12752_v30 = vld [vmem:[%s17123_s3 + $0x30] sm:$0xff]   ;;  %v4472_v53 = vpack.c.bf16 %v4461_v40, %v4460_v8 }
 0x200   : > { %v11385_v14 = vadd.f32 %v11384_v61, %v11383_v35  ;;  %4645 = vmatmul.mubr.bf16.gmra.mrb[228].mxu0 %v4469_v58  ;;  %v12748_v58 = vld [vmem:[%s17123_s3 + $0x20] sm:$0xff]  }
 0x201   : > { %v2407_v44 = vadd.f32 %v11321_v0, %v14835_v4  ;;  %v15052_v24 = vadd.f32 %v11382_v9, %v2404_v3  ;;  %4652 = vmatprep.mubr.bf16.mxu0 %v4470_v25  ;;  %11909 = vmatpush3.bf16.msra.mxu0 %v12744_v55 }
 0x202   : > { %5172 = vmatmul.mubr.bf16.gmra.mrb[228].mxu1 %v4993_v6  ;;  %11910 = vmatprep.subr.bf16.mxu0 %v12745_v41  ;;  %v12753_v41 = vld [vmem:[%s17123_s3 + $0x78] sm:$0xff]  }
 0x203   : > { %v15054_v29 = vadd.f32 %v11385_v14, %v2407_v44  ;;  %v11322_v56 = vpop.f32.mrb[124].mxu0 }
 0x204   : > { %v11323_v1 = vpop.f32.mrb[125].mxu0  ;;  %v11386_v18 = vpop.f32.mrb[124].mxu1 }
 0x205   : > { %v11324_v4 = vadd.f32 %v11323_v1, %v11322_v56  ;;  %v11325_v46 = vpop.f32.mrb[126].mxu0  ;;  %v11387_v37 = vpop.f32.mrb[125].mxu1  ;;  %11911 = vmatpush3.bf16.msra.mxu0 %v12746_v26 }
 0x206   : > { %v11326_v47 = vpop.f32.mrb[127].mxu0  ;;  %v11388_v12 = vadd.f32 %v11387_v37, %v11386_v18  ;;  %v11389_v21 = vpop.f32.mrb[126].mxu1  ;;  %11912 = vmatprep.subr.bf16.mxu0 %v12747_v54 }
 0x207   : > { %v2412_v23 = vadd.f32 %v11324_v4, %v14866_v59  ;;  %v11327_v33 = vadd.f32 %v11326_v47, %v11325_v46  ;;  %v11390_v2 = vpop.f32.mrb[127].mxu1 }
 0x208   : > { %v11391_v32 = vadd.f32 %v11390_v2, %v11389_v21  ;;  %4653 = vmatmul.mubr.bf16.gmra.mrb[232].mxu0 %v4470_v25 }
 0x209   : > { %v2415_v10 = vadd.f32 %v11327_v33, %v14877_v28  ;;  %v15072_v48 = vadd.f32 %v11388_v12, %v2412_v23  ;;  %4660 = vmatprep.mubr.bf16.mxu0 %v4471_v27  ;;  %11913 = vmatpush3.bf16.msra.mxu0 %v12748_v58  ;;  %v15102_v23 = vld [vmem:[%s17122_s2 + $0x1] ss:$0 sm:$0xff] }
 0x20a   : > { %11914 = vmatprep.subr.bf16.mxu0 %v12749_v17 }
 0x20b   : > { %v15074_v59 = vadd.f32 %v11391_v32, %v2415_v10  ;;  %v11408_v51 = vpop.f32.mrb[128].mxu0 }
 0x20c   : > { %v11409_v55 = vpop.f32.mrb[129].mxu0  ;;  %v11472_v39 = vpop.f32.mrb[128].mxu1 }
 0x20d   : > { %v11410_v13 = vadd.f32 %v11409_v55, %v11408_v51  ;;  %v11411_v28 = vpop.f32.mrb[130].mxu0  ;;  %v11473_v25 = vpop.f32.mrb[129].mxu1  ;;  %11915 = vmatpush3.bf16.msra.mxu0 %v12750_v43 }
 0x20e   : > { %v11412_v9 = vpop.f32.mrb[131].mxu0  ;;  %v11474_v35 = vadd.f32 %v11473_v25, %v11472_v39  ;;  %v11475_v3 = vpop.f32.mrb[130].mxu1  ;;  %11916 = vmatprep.subr.bf16.mxu0 %v12751_v11  ;;  %v4465_v11 = vld [vmem:[%s13229_s26 + $0x19a] sm:$0xff] }
 0x20f   : > { %v2980_v0 = vadd.f32 %v11410_v13, %v14929_v19  ;;  %v11413_v61 = vadd.f32 %v11412_v9, %v11411_v28  ;;  %v11476_v6 = vpop.f32.mrb[131].mxu1  ;;  %v15093_v19 = vld [vmem:[%s17122_s2] ss:$0 sm:$0xff] }
 0x210   : > { %v11477_v14 = vadd.f32 %v11476_v6, %v11475_v3  ;;  %4661 = vmatmul.mubr.bf16.gmra.mrb[236].mxu0 %v4471_v27  ;;  %v4473_v27 = vpack.c.bf16 %v14970_v22, %v14949_v38  ;;  %v15109_v38 = vld [vmem:[%s17122_s2 + $0x2] ss:$0 sm:$0xff] }
 0x211   : > { %v2981_v52 = vadd.f32 %v11413_v61, %v14935_v60  ;;  %v3245_v26 = vadd.f32 %v11474_v35, %v2980_v0  ;;  %4668 = vmatprep.mubr.bf16.mxu0 %v4472_v53  ;;  %11917 = vmatpush3.bf16.msra.mxu0 %v12752_v30 }
 0x212   : > { %11918 = vmatprep.subr.bf16.mxu0 %v12753_v41 }
 0x213   : > { %v3261_v44 = vadd.f32 %v15093_v19, %v3245_v26  ;;  %v3246_v56 = vadd.f32 %v11477_v14, %v2981_v52  ;;  %v11414_v54 = vpop.f32.mrb[132].mxu0 }
 0x214   : > { %v11415_v1 = vpop.f32.mrb[133].mxu0  ;;  %v11478_v18 = vpop.f32.mrb[132].mxu1 }
 0x215   : > { %v3277_v58 = vmax.f32 %v3261_v44, 0.0  ;;  %v3262_v4 = vadd.f32 %v15093_v19, %v3246_v56  ;;  %v11416_v46 = vadd.f32 %v11415_v1, %v11414_v54  ;;  %v11417_v60 = vpop.f32.mrb[134].mxu0  ;;  %v11479_v37 = vpop.f32.mrb[133].mxu1  ;;  %11919 = vmatpush3.bf16.msra.mxu0 %v12754_v62 }
 0x216   : > { %v11418_v47 = vpop.f32.mrb[135].mxu0  ;;  %v11480_v12 = vadd.f32 %v11479_v37, %v11478_v18  ;;  %v11481_v21 = vpop.f32.mrb[134].mxu1  ;;  %v4466_v18 = vld [vmem:[%s13229_s26 + $0x1a2] sm:$0xff] }
 0x217   : > { %v3293_v33 = vmul.f32 %v15102_v23, %v3277_v58  ;;  %v3278_v2 = vmax.f32 %v3262_v4, 0.0  ;;  %v2982_v17 = vadd.f32 %v11416_v46, %v14954_v15  ;;  %v11419_v32 = vadd.f32 %v11418_v47, %v11417_v60  ;;  %v11482_v8 = vpop.f32.mrb[135].mxu1  ;;  %v4467_v58 = vld [vmem:[%s13229_s26 + $0x1aa] sm:$0xff]  ;;  %s17078_s26 = scalar_lea.hbm %s17131_s11, %s10877_s16 }
 0x218   : > { %v11483_v40 = vadd.f32 %v11482_v8, %v11481_v21  ;;  %4669 = vmatmul.mubr.bf16.gmra.mrb[240].mxu0 %v4472_v53  ;;  %v4822_v37 = vld [vmem:[#allocation2 + $0x67] ss:$2 sm:$0xff]  ;;  %v4824_v47 = vld [vmem:[#allocation2 + $0x68] ss:$2 sm:$0xff] }
 0x219   : > { %v3309_v22 = vadd.f32 %v15109_v38, %v3293_v33  ;;  %v3294_v43 = vmul.f32 %v15102_v23, %v3278_v2  ;;  %v2983_v10 = vadd.f32 %v11419_v32, %v14958_v5  ;;  %v3247_v51 = vadd.f32 %v11480_v12, %v2982_v17  ;;  %4676 = vmatprep.mubr.bf16.mxu0 %v4473_v27 }
 0x21a   : > { %v4474_v5 = vpack.c.bf16 %v4465_v11, %v14973_v16  ;;  %v4475_v2 = vpack.c.bf16 %v4467_v58, %v4466_v18  ;;  %v4829_v11 = vmax.f32 %v4822_v37, %v4824_v47 }
 0x21b   : > { %3325 = vst [vmem:[#allocation2 + $0x80] sm:$0xff] %v3309_v22  ;;  %v3310_v15 = vadd.f32 %v15109_v38, %v3294_v43  ;;  %v3263_v55 = vadd.f32 %v15093_v19, %v3247_v51  ;;  %v3248_v39 = vadd.f32 %v11483_v40, %v2983_v10  ;;  %v11420_v30 = vpop.f32.mrb[136].mxu0 }
 0x21c   : > { %v11421_v13 = vpop.f32.mrb[137].mxu0  ;;  %v11484_v28 = vpop.f32.mrb[136].mxu1 }
 0x21d   : > { %3326 = vst [vmem:[#allocation2 + $0x88] sm:$0xff] %v3310_v15  ;;  %v3279_v25 = vmax.f32 %v3263_v55, 0.0  ;;  %v3264_v53 = vadd.f32 %v15093_v19, %v3248_v39  ;;  %v11422_v9 = vadd.f32 %v11421_v13, %v11420_v30  ;;  %v11423_v35 = vpop.f32.mrb[138].mxu0  ;;  %v11485_v3 = vpop.f32.mrb[137].mxu1 }
 0x21e   : > { %v11424_v0 = vpop.f32.mrb[139].mxu0  ;;  %v11486_v61 = vadd.f32 %v11485_v3, %v11484_v28  ;;  %v11487_v6 = vpop.f32.mrb[138].mxu1 }
 0x21f   : > { %v3295_v41 = vmul.f32 %v15102_v23, %v3279_v25  ;;  %v3280_v14 = vmax.f32 %v3264_v53, 0.0  ;;  %v2984_v62 = vadd.f32 %v11422_v9, %v14975_v31  ;;  %v11425_v52 = vadd.f32 %v11424_v0, %v11423_v35  ;;  %v11488_v26 = vpop.f32.mrb[139].mxu1  ;;  %v4980_v53 = vld [vmem:[#allocation3 + $0x22] sm:$0xff]  ;;  %v4981_v9 = vld [vmem:[#allocation3 + $0x2a] sm:$0xff] }
 0x220   : > { %v11489_v44 = vadd.f32 %v11488_v26, %v11487_v6  ;;  %4677 = vmatmul.mubr.bf16.gmra.mrb[244].mxu0 %v4473_v27  ;;  %v4994_v26 = vpack.c.bf16 %v4981_v9, %v4980_v53 }
 0x221   : > { %v3311_v56 = vadd.f32 %v15109_v38, %v3295_v41  ;;  %v3296_v54 = vmul.f32 %v15102_v23, %v3280_v14  ;;  %v2985_v16 = vadd.f32 %v11425_v52, %v14979_v63  ;;  %v3249_v1 = vadd.f32 %v11486_v61, %v2984_v62  ;;  %4684 = vmatprep.mubr.bf16.mxu0 %v4474_v5  ;;  %v4921_v41 = vld [vmem:[#allocation3 + $0x9] sm:$0xff] }
 0x223   : > { %3327 = vst [vmem:[#allocation2 + $0x90] sm:$0xff] %v3311_v56  ;;  %v3312_v4 = vadd.f32 %v15109_v38, %v3296_v54  ;;  %v3265_v46 = vadd.f32 %v15093_v19, %v3249_v1  ;;  %v3250_v31 = vadd.f32 %v11489_v44, %v2985_v16  ;;  %v11426_v60 = vpop.f32.mrb[140].mxu0 }
 0x224   : > { %v4826_v27 = vld [vmem:[#allocation2 + $0x7f] ss:$2 sm:$0xff]  ;;  %v4828_v12 = vld [vmem:[#allocation2 + $0x80] ss:$2 sm:$0xff]  ;;  %v11427_v21 = vpop.f32.mrb[141].mxu0  ;;  %v11490_v33 = vpop.f32.mrb[140].mxu1 }
 0x225   : > { %3328 = vst [vmem:[#allocation2 + $0x98] sm:$0xff] %v3312_v4  ;;  %v3281_v63 = vmax.f32 %v3265_v46, 0.0  ;;  %v3266_v17 = vadd.f32 %v15093_v19, %v3250_v31  ;;  %v11428_v32 = vadd.f32 %v11427_v21, %v11426_v60  ;;  %v11429_v8 = vpop.f32.mrb[142].mxu0  ;;  %v11491_v40 = vpop.f32.mrb[141].mxu1  ;;  %v4830_v22 = vmax.f32 %v4826_v27, %v4828_v12 }
 0x226   : > { %v11430_v43 = vpop.f32.mrb[143].mxu0  ;;  %v11492_v10 = vadd.f32 %v11491_v40, %v11490_v33  ;;  %v11493_v51 = vpop.f32.mrb[142].mxu1 }
 0x227   : > { %v3297_v15 = vmul.f32 %v15102_v23, %v3281_v63  ;;  %v3282_v55 = vmax.f32 %v3266_v17, 0.0  ;;  %v2986_v39 = vadd.f32 %v11428_v32, %v14992_v36  ;;  %v11431_v30 = vadd.f32 %v11430_v43, %v11429_v8  ;;  %v11494_v13 = vpop.f32.mrb[143].mxu1  ;;  %v4920_v36 = vld [vmem:[#allocation3 + $0x1] sm:$0xff] }
 0x228   : > { %v11495_v28 = vadd.f32 %v11494_v13, %v11493_v51  ;;  %4685 = vmatmul.mubr.bf16.gmra.mrb[248].mxu0 %v4474_v5  ;;  %v4831_v25 = vmax.f32 %v4829_v11, %v4830_v22  ;;  %v4936_v58 = vpack.c.bf16 %v4921_v41, %v4920_v36 }
 0x229   : > { %v3313_v35 = vadd.f32 %v15109_v38, %v3297_v15  ;;  %v3298_v3 = vmul.f32 %v15102_v23, %v3282_v55  ;;  %v2987_v0 = vadd.f32 %v11431_v30, %v14995_v20  ;;  %v3251_v61 = vadd.f32 %v11492_v10, %v2986_v39  ;;  %4692 = vmatprep.mubr.bf16.mxu0 %v4475_v2  ;;  %v4923_v10 = vld [vmem:[#allocation3 + $0x19] sm:$0xff] }
 0x22a   : > { %4832 = vst [vmem:[#allocation3 + $0x38] sm:$0xff] %v4831_v25  ;;  %v15135_v6 = vpack.c.bf16 %v4831_v25, %v15000_v42 }
 0x22b   : > { %3329 = vst [vmem:[#allocation2 + $0xa0] sm:$0xff] %v3313_v35  ;;  %v3314_v5 = vadd.f32 %v15109_v38, %v3298_v3  ;;  %v3267_v14 = vadd.f32 %v15093_v19, %v3251_v61  ;;  %v3252_v62 = vadd.f32 %v11495_v28, %v2987_v0  ;;  %v11432_v52 = vpop.f32.mrb[144].mxu0 }
 0x22c   : > { %v11433_v44 = vpop.f32.mrb[145].mxu0  ;;  %v11496_v56 = vpop.f32.mrb[144].mxu1  ;;  %5179 = vmatprep.mubr.bf16.mxu1 %v15135_v6 }
 0x22d   : > { %3330 = vst [vmem:[#allocation2 + $0xa8] sm:$0xff] %v3314_v5  ;;  %v3283_v20 = vmax.f32 %v3267_v14, 0.0  ;;  %v3268_v54 = vadd.f32 %v15093_v19, %v3252_v62  ;;  %v11434_v16 = vadd.f32 %v11433_v44, %v11432_v52  ;;  %v11435_v1 = vpop.f32.mrb[146].mxu0  ;;  %v11497_v18 = vpop.f32.mrb[145].mxu1  ;;  %5180 = vmatmul.mubr.bf16.gmra.mrb[232].mxu1 %v4994_v26  ;;  %v4924_v52 = vld [vmem:[#allocation3 + $0x21] sm:$0xff] }
 0x22e   : > { %v11436_v4 = vpop.f32.mrb[147].mxu0  ;;  %v11498_v46 = vadd.f32 %v11497_v18, %v11496_v56  ;;  %v11499_v31 = vpop.f32.mrb[146].mxu1 }
 0x22f   : > { %v3299_v60 = vmul.f32 %v15102_v23, %v3283_v20  ;;  %v3284_v37 = vmax.f32 %v3268_v54, 0.0  ;;  %v2988_v47 = vadd.f32 %v11434_v16, %v15008_v50  ;;  %v11437_v27 = vadd.f32 %v11436_v4, %v11435_v1  ;;  %v11500_v12 = vpop.f32.mrb[147].mxu1  ;;  %v4922_v50 = vld [vmem:[#allocation3 + $0x11] sm:$0xff]  ;;  %v4925_v16 = vld [vmem:[#allocation3 + $0x29] sm:$0xff] }
 0x230   : > { %v11501_v21 = vadd.f32 %v11500_v12, %v11499_v31  ;;  %4693 = vmatmul.mubr.bf16.gmra.mrb[252].mxu0 %v4475_v2  ;;  %v4912_v2 = vpack.c.bf16 %v15000_v42, %v15000_v42  ;;  %v4937_v53 = vpack.c.bf16 %v4923_v10, %v4922_v50 }
 0x231   : > { %v3315_v33 = vadd.f32 %v15109_v38, %v3299_v60  ;;  %v3300_v63 = vmul.f32 %v15102_v23, %v3284_v37  ;;  %v2989_v17 = vadd.f32 %v11437_v27, %v15012_v7  ;;  %v3253_v32 = vadd.f32 %v11498_v46, %v2988_v47  ;;  %5356 = vmatprep.mubr.bf16.mxu0 %v4936_v58  ;;  %v4982_v10 = vld [vmem:[#allocation3 + $0x32] sm:$0xff] }
 0x232   : > { %v4834_v26 = vld [vmem:[#allocation2 + $0x97] ss:$2 sm:$0xff]  ;;  %v4836_v44 = vld [vmem:[#allocation2 + $0x98] ss:$2 sm:$0xff] }
 0x233   : > { %3331 = vst [vmem:[#allocation2 + $0xb0] sm:$0xff] %v3315_v33  ;;  %v3316_v8 = vadd.f32 %v15109_v38, %v3300_v63  ;;  %v3269_v40 = vadd.f32 %v15093_v19, %v3253_v32  ;;  %v3254_v22 = vadd.f32 %v11501_v21, %v2989_v17  ;;  %v11438_v43 = vpop.f32.mrb[148].mxu0  ;;  %v4938_v33 = vpack.c.bf16 %v4925_v16, %v4924_v52 }
 0x234   : > { %v11439_v51 = vpop.f32.mrb[149].mxu0  ;;  %v11502_v11 = vpop.f32.mrb[148].mxu1  ;;  %v4841_v63 = vmax.f32 %v4834_v26, %v4836_v44 }
 0x235   : > { %3332 = vst [vmem:[#allocation2 + $0xb8] sm:$0xff] %v3316_v8  ;;  %v3285_v15 = vmax.f32 %v3269_v40, 0.0  ;;  %v3270_v7 = vadd.f32 %v15093_v19, %v3254_v22  ;;  %v11440_v55 = vadd.f32 %v11439_v51, %v11438_v43  ;;  %v11441_v39 = vpop.f32.mrb[150].mxu0  ;;  %v11503_v30 = vpop.f32.mrb[149].mxu1  ;;  %v4983_v51 = vld [vmem:[#allocation3 + $0x3a] sm:$0xff] }
 0x236   : > { %v11442_v13 = vpop.f32.mrb[151].mxu0  ;;  %v11504_v28 = vadd.f32 %v11503_v30, %v11502_v11  ;;  %v11505_v25 = vpop.f32.mrb[150].mxu1 }
 0x237   : > { %v3301_v9 = vmul.f32 %v15102_v23, %v3285_v15  ;;  %v3286_v35 = vmax.f32 %v3270_v7, 0.0  ;;  %v2990_v3 = vadd.f32 %v11440_v55, %v15031_v45  ;;  %v11443_v0 = vadd.f32 %v11442_v13, %v11441_v39  ;;  %v11506_v61 = vpop.f32.mrb[151].mxu1  ;;  %v4926_v13 = vld [vmem:[#allocation3 + $0x31] sm:$0xff] }
 0x238   : > { %v11507_v36 = vadd.f32 %v11506_v61, %v11505_v25  ;;  %5357 = vmatmul.mubr.bf16.vlgmr.msra.gmra.mrb[0].mxu0 %v4912_v2  ;;  %v4995_v25 = vpack.c.bf16 %v4983_v51, %v4982_v10 }
 0x239   : > { %v3317_v41 = vadd.f32 %v15109_v38, %v3301_v9  ;;  %v3302_v5 = vmul.f32 %v15102_v23, %v3286_v35  ;;  %v2991_v14 = vadd.f32 %v11443_v0, %v15037_v57  ;;  %v3255_v62 = vadd.f32 %v11504_v28, %v2990_v3  ;;  %5364 = vmatprep.mubr.bf16.mxu0 %v4937_v53  ;;  %v4927_v28 = vld [vmem:[#allocation3 + $0x39] sm:$0xff] }
 0x23b   : > { %3333 = vst [vmem:[#allocation2 + $0xc0] sm:$0xff] %v3317_v41  ;;  %v3318_v56 = vadd.f32 %v15109_v38, %v3302_v5  ;;  %v3271_v45 = vadd.f32 %v15093_v19, %v3255_v62  ;;  %v3256_v20 = vadd.f32 %v11507_v36, %v2991_v14  ;;  %v11444_v54 = vpop.f32.mrb[152].mxu0  ;;  %v4939_v5 = vpack.c.bf16 %v4927_v28, %v4926_v13 }
 0x23c   : > { %v4838_v1 = vld [vmem:[#allocation2 + $0xaf] ss:$2 sm:$0xff]  ;;  %v4840_v18 = vld [vmem:[#allocation2 + $0xb0] ss:$2 sm:$0xff]  ;;  %v11445_v58 = vpop.f32.mrb[153].mxu0  ;;  %v11508_v4 = vpop.f32.mrb[152].mxu1 }
 0x23d   : > { %3334 = vst [vmem:[#allocation2 + $0xc8] sm:$0xff] %v3318_v56  ;;  %v3287_v46 = vmax.f32 %v3271_v45, 0.0  ;;  %v3272_v57 = vadd.f32 %v15093_v19, %v3256_v20  ;;  %v11446_v31 = vadd.f32 %v11445_v58, %v11444_v54  ;;  %v11447_v60 = vpop.f32.mrb[154].mxu0  ;;  %v11509_v37 = vpop.f32.mrb[153].mxu1  ;;  %v4842_v47 = vmax.f32 %v4838_v1, %v4840_v18 }
 0x23e   : > { %v11448_v27 = vpop.f32.mrb[155].mxu0  ;;  %v11510_v12 = vadd.f32 %v11509_v37, %v11508_v4  ;;  %v11511_v21 = vpop.f32.mrb[154].mxu1 }
 0x23f   : > { %v3303_v17 = vmul.f32 %v15102_v23, %v3287_v46  ;;  %v3288_v32 = vmax.f32 %v3272_v57, 0.0  ;;  %v2992_v8 = vadd.f32 %v11446_v31, %v15052_v24  ;;  %v11449_v40 = vadd.f32 %v11448_v27, %v11447_v60  ;;  %v11512_v22 = vpop.f32.mrb[155].mxu1 }
 0x240   : > { %v11513_v43 = vadd.f32 %v11512_v22, %v11511_v21  ;;  %5365 = vmatmul.mubr.bf16.gmra.mrb[4].mxu0 %v15004_v34  ;;  %v4843_v50 = vmax.f32 %v4841_v63, %v4842_v47 }
 0x241   : > { %v3319_v11 = vadd.f32 %v15109_v38, %v3303_v17  ;;  %v3304_v2 = vmul.f32 %v15102_v23, %v3288_v32  ;;  %v2993_v15 = vadd.f32 %v11449_v40, %v15054_v29  ;;  %v3257_v7 = vadd.f32 %v11510_v12, %v2992_v8  ;;  %5372 = vmatprep.mubr.bf16.mxu0 %v4938_v33 }
 0x242   : > { %4844 = vst [vmem:[#allocation3 + $0x48] sm:$0xff] %v4843_v50  ;;  %v15166_v55 = vpack.c.bf16 %v4843_v50, %v15000_v42 }
 0x243   : > { %3335 = vst [vmem:[#allocation2 + $0xd0] sm:$0xff] %v3319_v11  ;;  %v3320_v24 = vadd.f32 %v15109_v38, %v3304_v2  ;;  %v3273_v34 = vadd.f32 %v15093_v19, %v3257_v7  ;;  %v3258_v39 = vadd.f32 %v11513_v43, %v2993_v15  ;;  %v11450_v30 = vpop.f32.mrb[156].mxu0 }
 0x244   : > { %v11451_v53 = vpop.f32.mrb[157].mxu0  ;;  %v11514_v9 = vpop.f32.mrb[156].mxu1  ;;  %5187 = vmatprep.mubr.bf16.mxu1 %v15166_v55 }
 0x245   : > { %3336 = vst [vmem:[#allocation2 + $0xd8] sm:$0xff] %v3320_v24  ;;  %v3289_v29 = vmax.f32 %v3273_v34, 0.0  ;;  %v3274_v35 = vadd.f32 %v15093_v19, %v3258_v39  ;;  %v11452_v42 = vadd.f32 %v11451_v53, %v11450_v30  ;;  %v11453_v3 = vpop.f32.mrb[158].mxu0  ;;  %v11515_v0 = vpop.f32.mrb[157].mxu1  ;;  %5188 = vmatmul.mubr.bf16.gmra.mrb[236].mxu1 %v4995_v25 }
 0x246   : > { %v11454_v61 = vpop.f32.mrb[159].mxu0  ;;  %v11516_v36 = vadd.f32 %v11515_v0, %v11514_v9  ;;  %v11517_v41 = vpop.f32.mrb[158].mxu1 }
 0x247   : > { %v3305_v14 = vmul.f32 %v15102_v23, %v3289_v29  ;;  %v3290_v62 = vmax.f32 %v3274_v35, 0.0  ;;  %v2994_v52 = vadd.f32 %v11452_v42, %v15072_v48  ;;  %v11455_v26 = vadd.f32 %v11454_v61, %v11453_v3  ;;  %v11518_v44 = vpop.f32.mrb[159].mxu1  ;;  %v15193_v61 = vld [vmem:[#allocation3 + $0x10] sm:$0xff] }
 0x248   : > { %v11519_v56 = vadd.f32 %v11518_v44, %v11517_v41  ;;  %5373 = vmatmul.mubr.bf16.gmra.mrb[8].mxu0 %v15023_v49 }
 0x249   : > { %v3321_v45 = vadd.f32 %v15109_v38, %v3305_v14  ;;  %v3306_v20 = vmul.f32 %v15102_v23, %v3290_v62  ;;  %v2995_v54 = vadd.f32 %v11455_v26, %v15074_v59  ;;  %v3259_v16 = vadd.f32 %v11516_v36, %v2994_v52  ;;  %5380 = vmatprep.mubr.bf16.mxu0 %v4939_v5  ;;  %v4928_v57 = vld [vmem:[#allocation3 + $0x41] sm:$0xff]  ;;  %v4929_v31 = vld [vmem:[#allocation3 + $0x49] sm:$0xff] }
 0x24a   : > { %v4940_v8 = vpack.c.bf16 %v4929_v31, %v4928_v57  ;;  %v4846_v50 = vld [vmem:[#allocation2 + $0xc7] ss:$2 sm:$0xff]  ;;  %v4848_v10 = vld [vmem:[#allocation2 + $0xc8] ss:$2 sm:$0xff] }
 0x24b   : > { %3337 = vst [vmem:[#allocation2 + $0xe0] sm:$0xff] %v3321_v45  ;;  %v3322_v1 = vadd.f32 %v15109_v38, %v3306_v20  ;;  %v3275_v18 = vadd.f32 %v15093_v19, %v3259_v16  ;;  %v3260_v58 = vadd.f32 %v11519_v56, %v2995_v54  ;;  %v11536_v48 = vpop.f32.mrb[160].mxu0  ;;  %v4853_v13 = vmax.f32 %v4846_v50, %v4848_v10  ;;  %v4984_v42 = vld [vmem:[#allocation3 + $0x42] sm:$0xff]  ;;  %v4985_v3 = vld [vmem:[#allocation3 + $0x4a] sm:$0xff] }
 0x24c   : > { %v11600_v4 = vpop.f32.mrb[160].mxu1  ;;  %v11537_v46 = vpop.f32.mrb[161].mxu0  ;;  %v4996_v5 = vpack.c.bf16 %v4985_v3, %v4984_v42 }
 0x24d   : > { %3338 = vst [vmem:[#allocation2 + $0xe8] sm:$0xff] %v3322_v1  ;;  %v3291_v49 = vmax.f32 %v3275_v18, 0.0  ;;  %v3276_v60 = vadd.f32 %v15093_v19, %v3260_v58  ;;  %v11538_v37 = vadd.f32 %v11537_v46, %v11536_v48  ;;  %v11601_v47 = vpop.f32.mrb[161].mxu1  ;;  %v11539_v59 = vpop.f32.mrb[162].mxu0 }
 0x24e   : > { %v11602_v27 = vadd.f32 %v11601_v47, %v11600_v4  ;;  %v11603_v12 = vpop.f32.mrb[162].mxu1  ;;  %v11540_v21 = vpop.f32.mrb[163].mxu0 }
 0x24f   : > { %v3307_v33 = vmul.f32 %v15102_v23, %v3291_v49  ;;  %v3292_v63 = vmax.f32 %v3276_v60, 0.0  ;;  %v11541_v17 = vadd.f32 %v11540_v21, %v11539_v59  ;;  %v11604_v32 = vpop.f32.mrb[163].mxu1 }
 0x250   : > { %v15182_v40 = vadd.f32 %v11602_v27, %v11538_v37  ;;  %v11605_v22 = vadd.f32 %v11604_v32, %v11603_v12  ;;  %5381 = vmatmul.mubr.bf16.gmra.mrb[12].mxu0 %v15135_v6 }
 0x251   : > { %v3323_v43 = vadd.f32 %v15109_v38, %v3307_v33  ;;  %v3308_v19 = vmul.f32 %v15102_v23, %v3292_v63  ;;  %5388 = vmatprep.mubr.bf16.mxu0 %v4940_v8 }
 0x252   : > { %v15187_v51 = vadd.f32 %v11605_v22, %v11541_v17 }
 0x253   : > { %3339 = vst [vmem:[#allocation2 + $0xf0] sm:$0xff] %v3323_v43  ;;  %v3324_v11 = vadd.f32 %v15109_v38, %v3308_v19  ;;  %v11542_v2 = vpop.f32.mrb[164].mxu0 }
 0x254   : > { %v4850_v15 = vld [vmem:[#allocation2 + $0xdf] ss:$2 sm:$0xff]  ;;  %v4852_v7 = vld [vmem:[#allocation2 + $0xe0] ss:$2 sm:$0xff]  ;;  %v11606_v24 = vpop.f32.mrb[164].mxu1  ;;  %v11543_v34 = vpop.f32.mrb[165].mxu0 }
 0x255   : > { %3340 = vst [vmem:[#allocation2 + $0xf8] sm:$0xff] %v3324_v11  ;;  %v11544_v39 = vadd.f32 %v11543_v34, %v11542_v2  ;;  %v11607_v6 = vpop.f32.mrb[165].mxu1  ;;  %v11545_v30 = vpop.f32.mrb[166].mxu0  ;;  %v4854_v28 = vmax.f32 %v4850_v15, %v4852_v7 }
 0x256   : > { %v11608_v23 = vadd.f32 %v11607_v6, %v11606_v24  ;;  %v11609_v25 = vpop.f32.mrb[166].mxu1  ;;  %v11546_v53 = vpop.f32.mrb[167].mxu0 }
 0x257   : > { %v11547_v9 = vadd.f32 %v11546_v53, %v11545_v30  ;;  %v11610_v29 = vpop.f32.mrb[167].mxu1  ;;  %v4855_v35 = vmax.f32 %v4853_v13, %v4854_v28 }
 0x258   : > { %v15190_v38 = vadd.f32 %v11608_v23, %v11544_v39  ;;  %v11611_v0 = vadd.f32 %v11610_v29, %v11609_v25  ;;  %5389 = vmatmul.mubr.bf16.gmra.mrb[16].mxu0 %v15166_v55 }
 0x259   : > { %4856 = vst [vmem:[#allocation3 + $0x58] sm:$0xff] %v4855_v35  ;;  %v4917_v36 = vpack.c.bf16 %v4855_v35, %v15193_v61 }
 0x25a   : > { %v15196_v41 = vadd.f32 %v11611_v0, %v11547_v9 }
 0x25b   : > { %v11548_v14 = vpop.f32.mrb[168].mxu0  ;;  %5195 = vmatprep.mubr.bf16.mxu1 %v4917_v36 }
 0x25c   : > { %v11612_v62 = vpop.f32.mrb[168].mxu1  ;;  %v11549_v52 = vpop.f32.mrb[169].mxu0  ;;  %5196 = vmatmul.mubr.bf16.gmra.mrb[240].mxu1 %v4996_v5 }
 0x25d   : > { %v11550_v26 = vadd.f32 %v11549_v52, %v11548_v14  ;;  %v11613_v44 = vpop.f32.mrb[169].mxu1  ;;  %v11551_v56 = vpop.f32.mrb[170].mxu0 }
 0x25e   : > { %v11614_v45 = vadd.f32 %v11613_v44, %v11612_v62  ;;  %v11615_v20 = vpop.f32.mrb[170].mxu1  ;;  %v11552_v54 = vpop.f32.mrb[171].mxu0  ;;  %v12758_v62 = vld [vmem:[%s17123_s3 + $0x1c0] sm:$0xff]  }
 0x25f   : > { %v11553_v55 = vadd.f32 %v11552_v54, %v11551_v56  ;;  %v11616_v16 = vpop.f32.mrb[171].mxu1  ;;  %v12760_v44 = vld [vmem:[%s17123_s3 + $0x180] sm:$0xff]   ;;  %12032 = vmatprep.subr.bf16.mxu0 %v12758_v62 }
 0x260   : > { %v15198_v1 = vadd.f32 %v11614_v45, %v11550_v26  ;;  %v11617_v18 = vadd.f32 %v11616_v16, %v11615_v20  ;;  %v4930_v58 = vld [vmem:[#allocation3 + $0x51] sm:$0xff]  ;;  %v4931_v48 = vld [vmem:[#allocation3 + $0x59] sm:$0xff]  ;;  %12033 = vmatpush3.bf16.msra.mxu0 %v12760_v44 }
 0x261   : > { %v4941_v4 = vpack.c.bf16 %v4931_v48, %v4930_v58  ;;  %v12761_v48 = vld [vmem:[%s17123_s3 + $0x1c8] sm:$0xff]  }
 0x262   : > { %v15200_v46 = vadd.f32 %v11617_v18, %v11553_v55  ;;  %12034 = vmatprep.subr.bf16.mxu0 %v12761_v48 }
 0x263   : > { %v11554_v57 = vpop.f32.mrb[172].mxu0  ;;  %5396 = vmatprep.mubr.bf16.mxu0 %v4941_v4 }
 0x264   : > { %v11618_v31 = vpop.f32.mrb[172].mxu1  ;;  %v11555_v49 = vpop.f32.mrb[173].mxu0  ;;  %5397 = vmatmul.mubr.bf16.gmra.mrb[20].mxu0 %v4917_v36 }
 0x265   : > { %v11556_v60 = vadd.f32 %v11555_v49, %v11554_v57  ;;  %v11619_v37 = vpop.f32.mrb[173].mxu1  ;;  %v11557_v47 = vpop.f32.mrb[174].mxu0 }
 0x266   : > { %v11620_v59 = vadd.f32 %v11619_v37, %v11618_v31  ;;  %v11621_v27 = vpop.f32.mrb[174].mxu1  ;;  %v11558_v12 = vpop.f32.mrb[175].mxu0  ;;  %v12762_v31 = vld [vmem:[%s17123_s3 + $0x188] sm:$0xff]   ;;  %v12756_v37 = vld [vmem:[%s17123_s3 + $0x100] sm:$0xff]  }
 0x267   : > { %v11559_v21 = vadd.f32 %v11558_v12, %v11557_v47  ;;  %v11622_v33 = vpop.f32.mrb[175].mxu1  ;;  %12035 = vmatpush3.bf16.msra.mxu0 %v12762_v31 }
 0x268   : > { %v15202_v63 = vadd.f32 %v11620_v59, %v11556_v60  ;;  %v11623_v17 = vadd.f32 %v11622_v33, %v11621_v27  ;;  %v12755_v60 = vld [vmem:[%s17123_s3 + $0x140] sm:$0xff]   ;;  %v12757_v59 = vld [vmem:[%s17123_s3 + $0x148] sm:$0xff]   ;;  %v12764_v27 = vld [vmem:[%s17123_s3 + $0x1d0] sm:$0xff]  }
 0x269   : > { %11968 = vmatprep.subr.bf16.mxu1 %v12755_v60  ;;  %v12766_v33 = vld [vmem:[%s17123_s3 + $0x190] sm:$0xff]   ;;  %12036 = vmatprep.subr.bf16.mxu0 %v12764_v27 }
 0x26a   : > { %v15204_v32 = vadd.f32 %v11623_v17, %v11559_v21  ;;  %11969 = vmatpush3.bf16.msra.mxu1 %v12756_v37 }
 0x26b   : > { %v11560_v8 = vpop.f32.mrb[176].mxu0  ;;  %11970 = vmatprep.subr.bf16.mxu1 %v12757_v59  ;;  %12037 = vmatpush3.bf16.msra.mxu0 %v12766_v33  ;;  %v12769_v33 = vld [vmem:[%s17123_s3 + $0x158] sm:$0xff]  }
 0x26c   : > { %v11624_v22 = vpop.f32.mrb[176].mxu1  ;;  %v11561_v43 = vpop.f32.mrb[177].mxu0 }
 0x26d   : > { %v11562_v19 = vadd.f32 %v11561_v43, %v11560_v8  ;;  %v11625_v50 = vpop.f32.mrb[177].mxu1  ;;  %v11563_v10 = vpop.f32.mrb[178].mxu0  ;;  %v12759_v43 = vld [vmem:[%s17123_s3 + $0x108] sm:$0xff]  }
 0x26e   : > { %v11626_v11 = vadd.f32 %v11625_v50, %v11624_v22  ;;  %v11627_v2 = vpop.f32.mrb[178].mxu1  ;;  %v11564_v15 = vpop.f32.mrb[179].mxu0  ;;  %11971 = vmatpush3.bf16.msra.mxu1 %v12759_v43  ;;  %v12780_v43 = vld [vmem:[%s17123_s3 + $0x1b8] sm:$0xff]  }
 0x26f   : > { %v11565_v7 = vadd.f32 %v11564_v15, %v11563_v10  ;;  %v11628_v24 = vpop.f32.mrb[179].mxu1  ;;  %v12767_v15 = vld [vmem:[%s17123_s3 + $0x1d8] sm:$0xff]  }
 0x270   : > { %v15206_v34 = vadd.f32 %v11626_v11, %v11562_v19  ;;  %v11629_v39 = vadd.f32 %v11628_v24, %v11627_v2  ;;  %12038 = vmatprep.subr.bf16.mxu0 %v12767_v15 }
 0x272   : > { %v15208_v6 = vadd.f32 %v11629_v39, %v11565_v7  ;;  %v12768_v39 = vld [vmem:[%s17123_s3 + $0x198] sm:$0xff]  }
 0x273   : > { %v11566_v30 = vpop.f32.mrb[180].mxu0  ;;  %12039 = vmatpush3.bf16.msra.mxu0 %v12768_v39 }
 0x274   : > { %v11630_v13 = vpop.f32.mrb[180].mxu1  ;;  %v11567_v28 = vpop.f32.mrb[181].mxu0 }
 0x275   : > { %v11568_v23 = vadd.f32 %v11567_v28, %v11566_v30  ;;  %v11631_v25 = vpop.f32.mrb[181].mxu1  ;;  %v11569_v53 = vpop.f32.mrb[182].mxu0  ;;  %v12770_v28 = vld [vmem:[%s17123_s3 + $0x1e0] sm:$0xff]  }
 0x276   : > { %v11632_v9 = vadd.f32 %v11631_v25, %v11630_v13  ;;  %v11633_v29 = vpop.f32.mrb[182].mxu1  ;;  %v11570_v35 = vpop.f32.mrb[183].mxu0  ;;  %12040 = vmatprep.subr.bf16.mxu0 %v12770_v28 }
 0x277   : > { %v11571_v42 = vadd.f32 %v11570_v35, %v11569_v53  ;;  %v11634_v3 = vpop.f32.mrb[183].mxu1  ;;  %v12772_v53 = vld [vmem:[%s17123_s3 + $0x1a0] sm:$0xff]  }
 0x278   : > { %v15210_v0 = vadd.f32 %v11632_v9, %v11568_v23  ;;  %v11635_v36 = vadd.f32 %v11634_v3, %v11633_v29  ;;  %12041 = vmatpush3.bf16.msra.mxu0 %v12772_v53 }
 0x27a   : > { %v15212_v5 = vadd.f32 %v11635_v36, %v11571_v42 }
 0x27b   : > { %v11572_v14 = vpop.f32.mrb[184].mxu0 }
 0x27c   : > { %v11636_v52 = vpop.f32.mrb[184].mxu1  ;;  %v11573_v26 = vpop.f32.mrb[185].mxu0 }
 0x27d   : > { %v11574_v56 = vadd.f32 %v11573_v26, %v11572_v14  ;;  %v11637_v45 = vpop.f32.mrb[185].mxu1  ;;  %v11575_v20 = vpop.f32.mrb[186].mxu0  ;;  %v12773_v26 = vld [vmem:[%s17123_s3 + $0x1e8] sm:$0xff]  }
 0x27e   : > { %v11638_v54 = vadd.f32 %v11637_v45, %v11636_v52  ;;  %v11639_v55 = vpop.f32.mrb[186].mxu1  ;;  %v11576_v16 = vpop.f32.mrb[187].mxu0  ;;  %v12765_v45 = vld [vmem:[%s17123_s3 + $0x110] sm:$0xff]   ;;  %12042 = vmatprep.subr.bf16.mxu0 %v12773_v26 }
 0x27f   : > { %v11577_v18 = vadd.f32 %v11576_v16, %v11575_v20  ;;  %v11640_v58 = vpop.f32.mrb[187].mxu1  ;;  %v12774_v20 = vld [vmem:[%s17123_s3 + $0x1a8] sm:$0xff]  }
 0x280   : > { %v15223_v4 = vadd.f32 %v11638_v54, %v11574_v56  ;;  %v11641_v57 = vadd.f32 %v11640_v58, %v11639_v55  ;;  %v12763_v56 = vld [vmem:[%s17123_s3 + $0x150] sm:$0xff]   ;;  %12043 = vmatpush3.bf16.msra.mxu0 %v12774_v20 }
 0x281   : > { %11972 = vmatprep.subr.bf16.mxu1 %v12763_v56 }
 0x282   : > { %v15228_v49 = vadd.f32 %v11641_v57, %v11577_v18  ;;  %11973 = vmatpush3.bf16.msra.mxu1 %v12765_v45  ;;  %v12776_v18 = vld [vmem:[%s17123_s3 + $0x1f0] sm:$0xff]  }
 0x283   : > { %v11578_v47 = vpop.f32.mrb[188].mxu0  ;;  %v12778_v57 = vld [vmem:[%s17123_s3 + $0x1b0] sm:$0xff]   ;;  %12044 = vmatprep.subr.bf16.mxu0 %v12776_v18  ;;  %11974 = vmatprep.subr.bf16.mxu1 %v12769_v33 }
 0x284   : > { %v11642_v12 = vpop.f32.mrb[188].mxu1  ;;  %v11579_v21 = vpop.f32.mrb[189].mxu0  ;;  %12045 = vmatpush3.bf16.msra.mxu0 %v12778_v57 }
 0x285   : > { %v11580_v17 = vadd.f32 %v11579_v21, %v11578_v47  ;;  %v11643_v8 = vpop.f32.mrb[189].mxu1  ;;  %v11581_v22 = vpop.f32.mrb[190].mxu0 }
 0x286   : > { %v11644_v19 = vadd.f32 %v11643_v8, %v11642_v12  ;;  %v11645_v50 = vpop.f32.mrb[190].mxu1  ;;  %v11582_v10 = vpop.f32.mrb[191].mxu0 }
 0x287   : > { %v11583_v11 = vadd.f32 %v11582_v10, %v11581_v22  ;;  %v11646_v2 = vpop.f32.mrb[191].mxu1  ;;  %v12771_v22 = vld [vmem:[%s17123_s3 + $0x118] sm:$0xff]   ;;  %v12777_v10 = vld [vmem:[%s17123_s3 + $0x120] sm:$0xff]  }
 0x288   : > { %v15251_v7 = vadd.f32 %v11644_v19, %v11580_v17  ;;  %v11647_v24 = vadd.f32 %v11646_v2, %v11645_v50  ;;  %v12779_v17 = vld [vmem:[%s17123_s3 + $0x1f8] sm:$0xff]   ;;  %11975 = vmatpush3.bf16.msra.mxu1 %v12771_v22  ;;  %v12775_v50 = vld [vmem:[%s17123_s3 + $0x160] sm:$0xff]  }
 0x289   : > { %12046 = vmatprep.subr.bf16.mxu0 %v12779_v17  ;;  %11976 = vmatprep.subr.bf16.mxu1 %v12775_v50 }
 0x28a   : > { %v15256_v30 = vadd.f32 %v11647_v24, %v11583_v11  ;;  %12047 = vmatpush3.bf16.msra.mxu0 %v12780_v43 }
 0x28b   : > { %v11664_v13 = vpop.f32.mrb[192].mxu0 }
 0x28c   : > { %v11665_v23 = vpop.f32.mrb[193].mxu0  ;;  %v11728_v25 = vpop.f32.mrb[192].mxu1  ;;  %11977 = vmatpush3.bf16.msra.mxu1 %v12777_v10 }
 0x28d   : > { %v11666_v9 = vadd.f32 %v11665_v23, %v11664_v13  ;;  %v11667_v29 = vpop.f32.mrb[194].mxu0  ;;  %v11729_v35 = vpop.f32.mrb[193].mxu1 }
 0x28e   : > { %v11668_v42 = vpop.f32.mrb[195].mxu0  ;;  %v11730_v3 = vadd.f32 %v11729_v35, %v11728_v25  ;;  %v11731_v36 = vpop.f32.mrb[194].mxu1 }
 0x28f   : > { %v4147_v14 = vadd.f32 %v11666_v9, %v15182_v40  ;;  %v11669_v62 = vadd.f32 %v11668_v42, %v11667_v29  ;;  %v11732_v52 = vpop.f32.mrb[195].mxu1  ;;  %v12782_v9 = vld [vmem:[%s17123_s3 + $0x128] sm:$0xff]  }
 0x290   : > { %v11733_v44 = vadd.f32 %v11732_v52, %v11731_v36 }
 0x291   : > { %v4148_v40 = vadd.f32 %v11669_v62, %v15187_v51  ;;  %v15278_v54 = vadd.f32 %v11730_v3, %v4147_v14  ;;  %v12783_v62 = vld [vmem:[%s17123_s3 + $0x170] sm:$0xff]  }
 0x293   : > { %v15280_v55 = vadd.f32 %v11733_v44, %v4148_v40  ;;  %v11670_v16 = vpop.f32.mrb[196].mxu0 }
 0x294   : > { %v11671_v58 = vpop.f32.mrb[197].mxu0 }
 0x295   : > { %v11734_v48 = vpop.f32.mrb[196].mxu1  ;;  %v11672_v51 = vadd.f32 %v11671_v58, %v11670_v16  ;;  %v11673_v31 = vpop.f32.mrb[198].mxu0 }
 0x296   : > { %v11735_v60 = vpop.f32.mrb[197].mxu1  ;;  %v11674_v37 = vpop.f32.mrb[199].mxu0 }
 0x297   : > { %v11736_v47 = vadd.f32 %v11735_v60, %v11734_v48  ;;  %v11737_v59 = vpop.f32.mrb[198].mxu1  ;;  %v4149_v27 = vadd.f32 %v11672_v51, %v15190_v38  ;;  %v11675_v12 = vadd.f32 %v11674_v37, %v11673_v31  ;;  %v12785_v51 = vld [vmem:[%s17123_s3 + $0x178] sm:$0xff]  }
 0x298   : > { %v11738_v21 = vpop.f32.mrb[199].mxu1  ;;  %v12786_v60 = vld [vmem:[%s17123_s3 + $0x138] sm:$0xff]  }
 0x299   : > { %v11739_v8 = vadd.f32 %v11738_v21, %v11737_v59  ;;  %v4150_v38 = vadd.f32 %v11675_v12, %v15196_v41  ;;  %v15302_v19 = vadd.f32 %v11736_v47, %v4149_v27  ;;  %v12781_v41 = vld [vmem:[%s17123_s3 + $0x168] sm:$0xff]  }
 0x29a   : > { %11978 = vmatprep.subr.bf16.mxu1 %v12781_v41 }
 0x29b   : > { %v15310_v11 = vadd.f32 %v11739_v8, %v4150_v38  ;;  %v11676_v2 = vpop.f32.mrb[200].mxu0  ;;  %11979 = vmatpush3.bf16.msra.mxu1 %v12782_v9 }
 0x29c   : > { %v11677_v15 = vpop.f32.mrb[201].mxu0  ;;  %11980 = vmatprep.subr.bf16.mxu1 %v12783_v62 }
 0x29d   : > { %v11740_v24 = vpop.f32.mrb[200].mxu1  ;;  %v11678_v39 = vadd.f32 %v11677_v15, %v11676_v2  ;;  %v11679_v13 = vpop.f32.mrb[202].mxu0  ;;  %v12787_v15 = vld [vmem:[%s17123_s3 + $0x240] sm:$0xff]  }
 0x29e   : > { %v11741_v28 = vpop.f32.mrb[201].mxu1  ;;  %v11680_v23 = vpop.f32.mrb[203].mxu0 }
 0x29f   : > { %v11742_v25 = vadd.f32 %v11741_v28, %v11740_v24  ;;  %v11743_v53 = vpop.f32.mrb[202].mxu1  ;;  %v4151_v29 = vadd.f32 %v11678_v39, %v15198_v1  ;;  %v11681_v35 = vadd.f32 %v11680_v23, %v11679_v13  ;;  %v12784_v1 = vld [vmem:[%s17123_s3 + $0x130] sm:$0xff]  }
 0x2a0   : > { %v11744_v42 = vpop.f32.mrb[203].mxu1  ;;  %11981 = vmatpush3.bf16.msra.mxu1 %v12784_v1 }
 0x2a1   : > { %v11745_v3 = vadd.f32 %v11744_v42, %v11743_v53  ;;  %v4152_v36 = vadd.f32 %v11681_v35, %v15200_v46  ;;  %v15320_v14 = vadd.f32 %v11742_v25, %v4151_v29  ;;  %11982 = vmatprep.subr.bf16.mxu1 %v12785_v51 }
 0x2a3   : > { %v15325_v52 = vadd.f32 %v11745_v3, %v4152_v36  ;;  %v11682_v26 = vpop.f32.mrb[204].mxu0 }
 0x2a4   : > { %v11683_v44 = vpop.f32.mrb[205].mxu0  ;;  %11983 = vmatpush3.bf16.msra.mxu1 %v12786_v60 }
 0x2a5   : > { %v11746_v56 = vpop.f32.mrb[204].mxu1  ;;  %v11684_v45 = vadd.f32 %v11683_v44, %v11682_v26  ;;  %v11685_v20 = vpop.f32.mrb[206].mxu0  ;;  %12096 = vmatprep.subr.bf16.mxu1 %v12787_v15 }
 0x2a6   : > { %v11747_v46 = vpop.f32.mrb[205].mxu1  ;;  %v11686_v40 = vpop.f32.mrb[207].mxu0 }
 0x2a7   : > { %v11748_v16 = vadd.f32 %v11747_v46, %v11746_v56  ;;  %v11749_v18 = vpop.f32.mrb[206].mxu1  ;;  %v4153_v58 = vadd.f32 %v11684_v45, %v15202_v63  ;;  %v11687_v48 = vadd.f32 %v11686_v40, %v11685_v20 }
 0x2a8   : > { %v11750_v57 = vpop.f32.mrb[207].mxu1 }
 0x2a9   : > { %v11751_v31 = vadd.f32 %v11750_v57, %v11749_v18  ;;  %v4154_v37 = vadd.f32 %v11687_v48, %v15204_v32  ;;  %v15338_v47 = vadd.f32 %v11748_v16, %v4153_v58 }
 0x2ab   : > { %v15340_v59 = vadd.f32 %v11751_v31, %v4154_v37  ;;  %v11688_v63 = vpop.f32.mrb[208].mxu0 }
 0x2ac   : > { %v11689_v27 = vpop.f32.mrb[209].mxu0 }
 0x2ad   : > { %v11752_v12 = vpop.f32.mrb[208].mxu1  ;;  %v11690_v21 = vadd.f32 %v11689_v27, %v11688_v63  ;;  %v11691_v33 = vpop.f32.mrb[210].mxu0 }
 0x2ae   : > { %v11753_v17 = vpop.f32.mrb[209].mxu1  ;;  %v11692_v8 = vpop.f32.mrb[211].mxu0 }
 0x2af   : > { %v11754_v22 = vadd.f32 %v11753_v17, %v11752_v12  ;;  %v11755_v43 = vpop.f32.mrb[210].mxu1  ;;  %v4155_v38 = vadd.f32 %v11690_v21, %v15206_v34  ;;  %v11693_v50 = vadd.f32 %v11692_v8, %v11691_v33 }
 0x2b0   : > { %v11756_v10 = vpop.f32.mrb[211].mxu1 }
 0x2b1   : > { %v11757_v32 = vadd.f32 %v11756_v10, %v11755_v43  ;;  %v4156_v2 = vadd.f32 %v11693_v50, %v15208_v6  ;;  %v15344_v41 = vadd.f32 %v11754_v22, %v4155_v38 }
 0x2b3   : > { %v15349_v24 = vadd.f32 %v11757_v32, %v4156_v2  ;;  %v11694_v39 = vpop.f32.mrb[212].mxu0 }
 0x2b4   : > { %v11695_v13 = vpop.f32.mrb[213].mxu0 }
 0x2b5   : > { %v11758_v28 = vpop.f32.mrb[212].mxu1  ;;  %v11696_v23 = vadd.f32 %v11695_v13, %v11694_v39  ;;  %v11697_v25 = vpop.f32.mrb[214].mxu0 }
 0x2b6   : > { %v11759_v34 = vpop.f32.mrb[213].mxu1  ;;  %v11698_v53 = vpop.f32.mrb[215].mxu0 }
 0x2b7   : > { %v11760_v9 = vadd.f32 %v11759_v34, %v11758_v28  ;;  %v11761_v29 = vpop.f32.mrb[214].mxu1  ;;  %v4157_v6 = vadd.f32 %v11696_v23, %v15210_v0  ;;  %v11699_v35 = vadd.f32 %v11698_v53, %v11697_v25 }
 0x2b8   : > { %v11762_v42 = vpop.f32.mrb[215].mxu1 }
 0x2b9   : > { %v11763_v3 = vadd.f32 %v11762_v42, %v11761_v29  ;;  %v4158_v36 = vadd.f32 %v11699_v35, %v15212_v5  ;;  %v15353_v62 = vadd.f32 %v11760_v9, %v4157_v6 }
 0x2bb   : > { %v15355_v26 = vadd.f32 %v11763_v3, %v4158_v36  ;;  %v11700_v1 = vpop.f32.mrb[216].mxu0 }
 0x2bc   : > { %v11701_v44 = vpop.f32.mrb[217].mxu0 }
 0x2bd   : > { %v11764_v56 = vpop.f32.mrb[216].mxu1  ;;  %v11702_v45 = vadd.f32 %v11701_v44, %v11700_v1  ;;  %v11703_v20 = vpop.f32.mrb[218].mxu0 }
 0x2be   : > { %v11765_v46 = vpop.f32.mrb[217].mxu1  ;;  %v11704_v40 = vpop.f32.mrb[219].mxu0 }
 0x2bf   : > { %v11766_v16 = vadd.f32 %v11765_v46, %v11764_v56  ;;  %v11767_v18 = vpop.f32.mrb[218].mxu1  ;;  %v4159_v0 = vadd.f32 %v11702_v45, %v15223_v4  ;;  %v11705_v58 = vadd.f32 %v11704_v40, %v11703_v20 }
 0x2c0   : > { %v11768_v48 = vpop.f32.mrb[219].mxu1 }
 0x2c1   : > { %v11769_v57 = vadd.f32 %v11768_v48, %v11767_v18  ;;  %v4160_v5 = vadd.f32 %v11705_v58, %v15228_v49  ;;  %v15359_v51 = vadd.f32 %v11766_v16, %v4159_v0  ;;  %v15393_v0 = vld [vmem:[%s17122_s2 + $0x2] ss:$0 sm:$0xff] }
 0x2c3   : > { %v15361_v31 = vadd.f32 %v11769_v57, %v4160_v5  ;;  %v11706_v60 = vpop.f32.mrb[220].mxu0 }
 0x2c4   : > { %v11707_v37 = vpop.f32.mrb[221].mxu0 }
 0x2c5   : > { %v11770_v63 = vpop.f32.mrb[220].mxu1  ;;  %v11708_v27 = vadd.f32 %v11707_v37, %v11706_v60  ;;  %v11709_v12 = vpop.f32.mrb[222].mxu0 }
 0x2c6   : > { %v11771_v21 = vpop.f32.mrb[221].mxu1  ;;  %v11710_v33 = vpop.f32.mrb[223].mxu0 }
 0x2c7   : > { %v11772_v17 = vadd.f32 %v11771_v21, %v11770_v63  ;;  %v11773_v8 = vpop.f32.mrb[222].mxu1  ;;  %v4161_v4 = vadd.f32 %v11708_v27, %v15251_v7  ;;  %v11711_v22 = vadd.f32 %v11710_v33, %v11709_v12 }
 0x2c8   : > { %v11774_v43 = vpop.f32.mrb[223].mxu1 }
 0x2c9   : > { %v11775_v38 = vadd.f32 %v11774_v43, %v11773_v8  ;;  %v4162_v49 = vadd.f32 %v11711_v22, %v15256_v30  ;;  %v15365_v50 = vadd.f32 %v11772_v17, %v4161_v4  ;;  %v15377_v30 = vld [vmem:[%s17122_s2] ss:$0 sm:$0xff] }
 0x2cb   : > { %v15367_v10 = vadd.f32 %v11775_v38, %v4162_v49  ;;  %v11792_v32 = vpop.f32.mrb[224].mxu0 }
 0x2cc   : > { %v11793_v2 = vpop.f32.mrb[225].mxu0 }
 0x2cd   : > { %v11856_v15 = vpop.f32.mrb[224].mxu1  ;;  %v11794_v39 = vadd.f32 %v11793_v2, %v11792_v32  ;;  %v11795_v13 = vpop.f32.mrb[226].mxu0 }
 0x2ce   : > { %v11857_v28 = vpop.f32.mrb[225].mxu1  ;;  %v11796_v23 = vpop.f32.mrb[227].mxu0 }
 0x2cf   : > { %v15369_v25 = vadd.f32 %v11857_v28, %v11856_v15  ;;  %v11859_v34 = vpop.f32.mrb[226].mxu1  ;;  %v4701_v7 = vadd.f32 %v11794_v39, %v15278_v54  ;;  %v11797_v53 = vadd.f32 %v11796_v23, %v11795_v13  ;;  %v15385_v54 = vld [vmem:[%s17122_s2 + $0x1] ss:$0 sm:$0xff] }
 0x2d0   : > { %v11860_v9 = vpop.f32.mrb[227].mxu1 }
 0x2d1   : > { %v15372_v29 = vadd.f32 %v11860_v9, %v11859_v34  ;;  %v4717_v6 = vadd.f32 %v15377_v30, %v4701_v7  ;;  %v4702_v35 = vadd.f32 %v11797_v53, %v15280_v55 }
 0x2d3   : > { %v4733_v42 = vmax.f32 %v4717_v6, 0.0  ;;  %v4718_v3 = vadd.f32 %v15377_v30, %v4702_v35  ;;  %v11798_v36 = vpop.f32.mrb[228].mxu0 }
 0x2d4   : > { %v11799_v44 = vpop.f32.mrb[229].mxu0 }
 0x2d5   : > { %v11862_v1 = vpop.f32.mrb[228].mxu1  ;;  %v4749_v56 = vmul.f32 %v15385_v54, %v4733_v42  ;;  %v4734_v45 = vmax.f32 %v4718_v3, 0.0  ;;  %v11800_v20 = vadd.f32 %v11799_v44, %v11798_v36  ;;  %v11801_v40 = vpop.f32.mrb[230].mxu0 }
 0x2d6   : > { %v11863_v46 = vpop.f32.mrb[229].mxu1  ;;  %v11802_v18 = vpop.f32.mrb[231].mxu0 }
 0x2d7   : > { %v15388_v16 = vadd.f32 %v11863_v46, %v11862_v1  ;;  %v11865_v55 = vpop.f32.mrb[230].mxu1  ;;  %v4765_v58 = vadd.f32 %v15393_v0, %v4749_v56  ;;  %v4750_v48 = vmul.f32 %v15385_v54, %v4734_v45  ;;  %v4703_v57 = vadd.f32 %v11800_v20, %v15302_v19 }
 0x2d8   : > { %v11803_v5 = vadd.f32 %v11802_v18, %v11801_v40  ;;  %v11866_v60 = vpop.f32.mrb[231].mxu1 }
 0x2d9   : > { %v15398_v37 = vadd.f32 %v11866_v60, %v11865_v55  ;;  %4781 = vst [vmem:[#allocation2 + $0x100] sm:$0xff] %v4765_v58  ;;  %v4766_v63 = vadd.f32 %v15393_v0, %v4750_v48  ;;  %v4719_v27 = vadd.f32 %v15377_v30, %v4703_v57 }
 0x2da   : > { %v4704_v12 = vadd.f32 %v11803_v5, %v15310_v11 }
 0x2db   : > { %4782 = vst [vmem:[#allocation2 + $0x108] sm:$0xff] %v4766_v63  ;;  %v4735_v21 = vmax.f32 %v4719_v27, 0.0  ;;  %v11804_v17 = vpop.f32.mrb[232].mxu0 }
 0x2dc   : > { %v4720_v33 = vadd.f32 %v15377_v30, %v4704_v12  ;;  %v11805_v8 = vpop.f32.mrb[233].mxu0 }
 0x2dd   : > { %v4751_v4 = vmul.f32 %v15385_v54, %v4735_v21  ;;  %v11806_v22 = vadd.f32 %v11805_v8, %v11804_v17  ;;  %v11807_v43 = vpop.f32.mrb[234].mxu0  ;;  %v4987_v17 = vld [vmem:[#allocation3 + $0x5a] sm:$0xff] }
 0x2de   : > { %v4736_v19 = vmax.f32 %v4720_v33, 0.0  ;;  %v11808_v38 = vpop.f32.mrb[235].mxu0  ;;  %v4986_v33 = vld [vmem:[#allocation3 + $0x52] sm:$0xff] }
 0x2df   : > { %v4767_v49 = vadd.f32 %v15393_v0, %v4751_v4  ;;  %v4705_v2 = vadd.f32 %v11806_v22, %v15320_v14  ;;  %v11809_v15 = vadd.f32 %v11808_v38, %v11807_v43 }
 0x2e0   : > { %v4752_v32 = vmul.f32 %v15385_v54, %v4736_v19  ;;  %v4860_v44 = vld [vmem:[#allocation2 + $0xf8] ss:$2 sm:$0xff] }
 0x2e1   : > { %4783 = vst [vmem:[#allocation2 + $0x110] sm:$0xff] %v4767_v49  ;;  %v4721_v39 = vadd.f32 %v15377_v30, %v4705_v2  ;;  %v4706_v13 = vadd.f32 %v11809_v15, %v15325_v52  ;;  %v4858_v52 = vld [vmem:[#allocation2 + $0xf7] ss:$2 sm:$0xff] }
 0x2e2   : > { %v4768_v11 = vadd.f32 %v15393_v0, %v4752_v32  ;;  %v4865_v48 = vmax.f32 %v4858_v52, %v4860_v44  ;;  %v15430_v32 = vpack.c.bf16 %v4987_v17, %v4986_v33 }
 0x2e3   : > { %v4737_v28 = vmax.f32 %v4721_v39, 0.0  ;;  %v4722_v23 = vadd.f32 %v15377_v30, %v4706_v13  ;;  %v11810_v34 = vpop.f32.mrb[236].mxu0 }
 0x2e4   : > { %4784 = vst [vmem:[#allocation2 + $0x118] sm:$0xff] %v4768_v11  ;;  %v11811_v7 = vpop.f32.mrb[237].mxu0 }
 0x2e5   : > { %v4753_v53 = vmul.f32 %v15385_v54, %v4737_v28  ;;  %v4738_v9 = vmax.f32 %v4722_v23, 0.0  ;;  %v11812_v6 = vadd.f32 %v11811_v7, %v11810_v34  ;;  %v11813_v35 = vpop.f32.mrb[238].mxu0 }
 0x2e6   : > { %v11814_v14 = vpop.f32.mrb[239].mxu0 }
 0x2e7   : > { %v4769_v42 = vadd.f32 %v15393_v0, %v4753_v53  ;;  %v4754_v3 = vmul.f32 %v15385_v54, %v4738_v9  ;;  %v4707_v36 = vadd.f32 %v11812_v6, %v15338_v47  ;;  %v11815_v1 = vadd.f32 %v11814_v14, %v11813_v35 }
 0x2e9   : > { %4785 = vst [vmem:[#allocation2 + $0x120] sm:$0xff] %v4769_v42  ;;  %v4770_v56 = vadd.f32 %v15393_v0, %v4754_v3  ;;  %v4723_v45 = vadd.f32 %v15377_v30, %v4707_v36  ;;  %v4708_v20 = vadd.f32 %v11815_v1, %v15340_v59 }
 0x2eb   : > { %v4862_v46 = vld [vmem:[#allocation2 + $0x10f] ss:$2 sm:$0xff]  ;;  %v4864_v40 = vld [vmem:[#allocation2 + $0x110] ss:$2 sm:$0xff]  ;;  %4786 = vst [vmem:[#allocation2 + $0x128] sm:$0xff] %v4770_v56  ;;  %v4739_v55 = vmax.f32 %v4723_v45, 0.0  ;;  %v4724_v18 = vadd.f32 %v15377_v30, %v4708_v20 }
 0x2ec   : > { %v11816_v58 = vpop.f32.mrb[240].mxu0  ;;  %v4866_v57 = vmax.f32 %v4862_v46, %v4864_v40 }
 0x2ed   : > { %v11817_v47 = vpop.f32.mrb[241].mxu0  ;;  %v4755_v5 = vmul.f32 %v15385_v54, %v4739_v55  ;;  %v4740_v60 = vmax.f32 %v4724_v18, 0.0 }
 0x2ee   : > { %v11818_v63 = vadd.f32 %v11817_v47, %v11816_v58  ;;  %v11819_v27 = vpop.f32.mrb[242].mxu0  ;;  %v4867_v12 = vmax.f32 %v4865_v48, %v4866_v57 }
 0x2ef   : > { %v11820_v21 = vpop.f32.mrb[243].mxu0  ;;  %v4771_v59 = vadd.f32 %v15393_v0, %v4755_v5  ;;  %v4756_v8 = vmul.f32 %v15385_v54, %v4740_v60 }
 0x2f0   : > { %v4709_v4 = vadd.f32 %v11818_v63, %v15344_v41  ;;  %v11821_v19 = vadd.f32 %v11820_v21, %v11819_v27  ;;  %4868 = vst [vmem:[#allocation3 + $0x68] sm:$0xff] %v4867_v12  ;;  %v15425_v22 = vpack.c.bf16 %v4867_v12, %v15193_v61 }
 0x2f1   : > { %4787 = vst [vmem:[#allocation2 + $0x130] sm:$0xff] %v4771_v59  ;;  %v4772_v43 = vadd.f32 %v15393_v0, %v4756_v8 }
 0x2f2   : > { %v4725_v38 = vadd.f32 %v15377_v30, %v4709_v4  ;;  %v4710_v49 = vadd.f32 %v11821_v19, %v15349_v24  ;;  %5203 = vmatprep.mubr.bf16.mxu1 %v15425_v22 }
 0x2f3   : > { %4788 = vst [vmem:[#allocation2 + $0x138] sm:$0xff] %v4772_v43  ;;  %v11822_v15 = vpop.f32.mrb[244].mxu0  ;;  %5204 = vmatmul.mubr.bf16.gmra.mrb[244].mxu1 %v15430_v32 }
 0x2f4   : > { %v4741_v2 = vmax.f32 %v4725_v38, 0.0  ;;  %v4726_v41 = vadd.f32 %v15377_v30, %v4710_v49  ;;  %v11823_v11 = vpop.f32.mrb[245].mxu0 }
 0x2f5   : > { %v11824_v28 = vadd.f32 %v11823_v11, %v11822_v15  ;;  %v11825_v23 = vpop.f32.mrb[246].mxu0 }
 0x2f6   : > { %v4757_v39 = vmul.f32 %v15385_v54, %v4741_v2  ;;  %v4742_v13 = vmax.f32 %v4726_v41, 0.0  ;;  %v11826_v34 = vpop.f32.mrb[247].mxu0 }
 0x2f7   : > { %v4932_v7 = vld [vmem:[#allocation3 + $0x61] sm:$0xff]  ;;  %v4933_v24 = vld [vmem:[#allocation3 + $0x69] sm:$0xff]  ;;  %v4711_v6 = vadd.f32 %v11824_v28, %v15353_v62  ;;  %v11827_v35 = vadd.f32 %v11826_v34, %v11825_v23 }
 0x2f8   : > { %v4773_v53 = vadd.f32 %v15393_v0, %v4757_v39  ;;  %v4758_v9 = vmul.f32 %v15385_v54, %v4742_v13  ;;  %v15439_v14 = vpack.c.bf16 %v4933_v24, %v4932_v7  ;;  %v4870_v48 = vld [vmem:[#allocation2 + $0x127] ss:$2 sm:$0xff]  ;;  %v4872_v57 = vld [vmem:[#allocation2 + $0x128] ss:$2 sm:$0xff] }
 0x2f9   : > { %v4727_v3 = vadd.f32 %v15377_v30, %v4711_v6  ;;  %v4712_v36 = vadd.f32 %v11827_v35, %v15355_v26  ;;  %v4877_v19 = vmax.f32 %v4870_v48, %v4872_v57  ;;  %v4988_v13 = vld [vmem:[#allocation3 + $0x62] sm:$0xff]  ;;  %v4989_v28 = vld [vmem:[#allocation3 + $0x6a] sm:$0xff] }
 0x2fa   : > { %4789 = vst [vmem:[#allocation2 + $0x140] sm:$0xff] %v4773_v53  ;;  %v4774_v42 = vadd.f32 %v15393_v0, %v4758_v9  ;;  %5404 = vmatprep.mubr.bf16.mxu0 %v15439_v14 }
 0x2fb   : > { %v4743_v1 = vmax.f32 %v4727_v3, 0.0  ;;  %v4728_v52 = vadd.f32 %v15377_v30, %v4712_v36  ;;  %5405 = vmatmul.mubr.bf16.gmra.mrb[24].mxu0 %v15425_v22  ;;  %v11828_v44 = vpop.f32.mrb[248].mxu0 }
 0x2fc   : > { %4790 = vst [vmem:[#allocation2 + $0x148] sm:$0xff] %v4774_v42  ;;  %v11829_v62 = vpop.f32.mrb[249].mxu0  ;;  %v15469_v42 = vpack.c.bf16 %v4989_v28, %v4988_v13 }
 0x2fd   : > { %v4759_v56 = vmul.f32 %v15385_v54, %v4743_v1  ;;  %v4744_v45 = vmax.f32 %v4728_v52, 0.0  ;;  %v11830_v20 = vadd.f32 %v11829_v62, %v11828_v44  ;;  %v11831_v46 = vpop.f32.mrb[250].mxu0 }
 0x2fe   : > { %v11832_v40 = vpop.f32.mrb[251].mxu0 }
 0x2ff   : > { %v4775_v55 = vadd.f32 %v15393_v0, %v4759_v56  ;;  %v4760_v26 = vmul.f32 %v15385_v54, %v4744_v45  ;;  %v4713_v18 = vadd.f32 %v11830_v20, %v15359_v51  ;;  %v11833_v58 = vadd.f32 %v11832_v40, %v11831_v46  ;;  %v5734_v56 = vld [vmem:[#allocation3 + $0x21] sm:$0xff]  ;;  %v5735_v46 = vld [vmem:[#allocation3 + $0x29] sm:$0xff] }
 0x300   : > { %v11868_v47 = vpop.f32.mrb[232].mxu1  ;;  %v15484_v48 = vpack.c.bf16 %v5735_v46, %v5734_v56  ;;  %v5421_v46 = vld [vmem:[#allocation3 + $0x11] sm:$0xff] }
 0x301   : > { %4791 = vst [vmem:[#allocation2 + $0x150] sm:$0xff] %v4775_v55  ;;  %v4776_v5 = vadd.f32 %v15393_v0, %v4760_v26  ;;  %v4729_v60 = vadd.f32 %v15377_v30, %v4713_v18  ;;  %v4714_v63 = vadd.f32 %v11833_v58, %v15361_v31  ;;  %v11869_v27 = vpop.f32.mrb[233].mxu1 }
 0x302   : > { %v15454_v33 = vadd.f32 %v11869_v27, %v11868_v47  ;;  %v11871_v17 = vpop.f32.mrb[234].mxu1  ;;  %v5736_v27 = vld [vmem:[#allocation3 + $0x31] sm:$0xff] }
 0x303   : > { %v4874_v12 = vld [vmem:[#allocation2 + $0x13f] ss:$2 sm:$0xff]  ;;  %v4876_v21 = vld [vmem:[#allocation2 + $0x140] ss:$2 sm:$0xff]  ;;  %4792 = vst [vmem:[#allocation2 + $0x158] sm:$0xff] %v4776_v5  ;;  %v4745_v59 = vmax.f32 %v4729_v60, 0.0  ;;  %v4730_v51 = vadd.f32 %v15377_v30, %v4714_v63 }
 0x304   : > { %v11834_v8 = vpop.f32.mrb[252].mxu0  ;;  %v11872_v4 = vpop.f32.mrb[235].mxu1  ;;  %v4878_v43 = vmax.f32 %v4874_v12, %v4876_v21  ;;  %v5711_v60 = vld [vmem:[#allocation3 + $0x28] sm:$0xff] }
 0x305   : > { %v11835_v38 = vpop.f32.mrb[253].mxu0  ;;  %v15457_v49 = vadd.f32 %v11872_v4, %v11871_v17  ;;  %v4761_v2 = vmul.f32 %v15385_v54, %v4745_v59  ;;  %v4746_v31 = vmax.f32 %v4730_v51, 0.0  ;;  %v15494_v59 = vld [vmem:[#allocation3 + $0x10] sm:$0xff] }
 0x306   : > { %v11836_v41 = vadd.f32 %v11835_v38, %v11834_v8  ;;  %v11837_v15 = vpop.f32.mrb[254].mxu0  ;;  %v4879_v11 = vmax.f32 %v4877_v19, %v4878_v43  ;;  %v5726_v51 = vpack.c.bf16 %v5711_v60, %v15494_v59 }
 0x307   : > { %v11838_v39 = vpop.f32.mrb[255].mxu0  ;;  %v4777_v23 = vadd.f32 %v15393_v0, %v4761_v2  ;;  %v4762_v34 = vmul.f32 %v15385_v54, %v4746_v31 }
 0x308   : > { %v4715_v7 = vadd.f32 %v11836_v41, %v15365_v50  ;;  %v11839_v24 = vadd.f32 %v11838_v39, %v11837_v15  ;;  %4880 = vst [vmem:[#allocation3 + $0x78] sm:$0xff] %v4879_v11  ;;  %v15464_v53 = vpack.c.bf16 %v4879_v11, %v15193_v61 }
 0x309   : > { %4793 = vst [vmem:[#allocation2 + $0x160] sm:$0xff] %v4777_v23  ;;  %v4778_v9 = vadd.f32 %v15393_v0, %v4762_v34  ;;  %v5445_v23 = vld [vmem:[#allocation3 + $0x12] sm:$0xff] }
 0x30a   : > { %v4731_v6 = vadd.f32 %v15377_v30, %v4715_v7  ;;  %v4716_v35 = vadd.f32 %v11839_v24, %v15367_v10  ;;  %5211 = vmatprep.mubr.bf16.mxu1 %v15464_v53  ;;  %v5713_v7 = vld [vmem:[#allocation3 + $0x38] sm:$0xff] }
 0x30b   : > { %4794 = vst [vmem:[#allocation2 + $0x168] sm:$0xff] %v4778_v9  ;;  %v11920_v36 = vpop.f32.mrb[0].mxu0  ;;  %5212 = vmatmul.mubr.bf16.gmra.mrb[248].mxu1 %v15469_v42 }
 0x30c   : > { %v4747_v3 = vmax.f32 %v4731_v6, 0.0  ;;  %v4732_v50 = vadd.f32 %v15377_v30, %v4716_v35  ;;  %v11921_v61 = vpop.f32.mrb[1].mxu0 }
 0x30d   : > { %v11922_v44 = vadd.f32 %v11921_v61, %v11920_v36  ;;  %v11923_v62 = vpop.f32.mrb[2].mxu0  ;;  %v5446_v36 = vld [vmem:[#allocation3 + $0x1a] sm:$0xff] }
 0x30e   : > { %v4763_v1 = vmul.f32 %v15385_v54, %v4747_v3  ;;  %v4748_v52 = vmax.f32 %v4732_v50, 0.0  ;;  %v11924_v20 = vpop.f32.mrb[3].mxu0  ;;  %v5738_v3 = vld [vmem:[#allocation3 + $0x41] sm:$0xff]  ;;  %v5739_v50 = vld [vmem:[#allocation3 + $0x49] sm:$0xff] }
 0x30f   : > { %v4934_v45 = vld [vmem:[#allocation3 + $0x71] sm:$0xff]  ;;  %v4935_v10 = vld [vmem:[#allocation3 + $0x79] sm:$0xff]  ;;  %v15478_v30 = vadd.f32 %v11922_v44, %v15369_v25  ;;  %v11925_v18 = vadd.f32 %v11924_v20, %v11923_v62  ;;  %v5727_v44 = vpack.c.bf16 %v5713_v7, %v15494_v59 }
 0x310   : > { %v4779_v40 = vadd.f32 %v15393_v0, %v4763_v1  ;;  %v4764_v55 = vmul.f32 %v15385_v54, %v4748_v52  ;;  %v15480_v26 = vpack.c.bf16 %v4935_v10, %v4934_v45  ;;  %v4882_v17 = vld [vmem:[#allocation2 + $0x157] ss:$2 sm:$0xff]  ;;  %v15515_v45 = vpack.c.bf16 %v5739_v50, %v5738_v3 }
 0x311   : > { %v15487_v57 = vadd.f32 %v11925_v18, %v15372_v29  ;;  %v4884_v29 = vld [vmem:[#allocation2 + $0x158] ss:$2 sm:$0xff]  ;;  %v5461_v10 = vpack.c.bf16 %v5446_v36, %v5445_v23  ;;  %v5715_v18 = vld [vmem:[#allocation3 + $0x48] sm:$0xff]  ;;  %v12792_v7 = vld [vmem:[%s17123_s3 + $0x210] sm:$0xff]  }
 0x312   : > { %4795 = vst [vmem:[#allocation2 + $0x170] sm:$0xff] %v4779_v40  ;;  %v4780_v58 = vadd.f32 %v15393_v0, %v4764_v55  ;;  %5412 = vmatprep.mubr.bf16.mxu0 %v15480_v26  ;;  %v5737_v0 = vld [vmem:[#allocation3 + $0x39] sm:$0xff]  ;;  %v4889_v11 = vmax.f32 %v4882_v17, %v4884_v29 }
 0x313   : > { %5413 = vmatmul.mubr.bf16.gmra.mrb[28].mxu0 %v15464_v53  ;;  %v11926_v54 = vpop.f32.mrb[4].mxu0  ;;  %v15500_v19 = vpack.c.bf16 %v5737_v0, %v5736_v27  ;;  %v4990_v9 = vld [vmem:[#allocation3 + $0x72] sm:$0xff]  ;;  %v4991_v6 = vld [vmem:[#allocation3 + $0x7a] sm:$0xff]  ;;  %v5728_v27 = vpack.c.bf16 %v5715_v18, %v15494_v59 }
 0x314   : > { %4796 = vst [vmem:[#allocation2 + $0x178] sm:$0xff] %v4780_v58  ;;  %5918 = vmatprep.mubr.bf16.mxu0 %v15484_v48  ;;  %v11927_v25 = vpop.f32.mrb[5].mxu0  ;;  %v15510_v62 = vpack.c.bf16 %v4991_v6, %v4990_v9  ;;  %v5422_v58 = vld [vmem:[#allocation3 + $0x19] sm:$0xff] }
 0x315   : > { %v11928_v47 = vadd.f32 %v11927_v25, %v11926_v54  ;;  %v11929_v5 = vpop.f32.mrb[6].mxu0  ;;  %v5740_v25 = vld [vmem:[#allocation3 + $0x51] sm:$0xff]  ;;  %v5437_v0 = vpack.c.bf16 %v5422_v58, %v5421_v46 }
 0x316   : > { %v11930_v63 = vpop.f32.mrb[7].mxu0 }
 0x317   : > { %v15492_v12 = vadd.f32 %v11928_v47, %v15388_v16  ;;  %v11931_v21 = vadd.f32 %v11930_v63, %v11929_v5  ;;  %v5741_v47 = vld [vmem:[#allocation3 + $0x59] sm:$0xff]  ;;  %v5448_v5 = vld [vmem:[#allocation3 + $0x2a] sm:$0xff] }
 0x318   : > { %v11874_v8 = vpop.f32.mrb[236].mxu1  ;;  %v15528_v29 = vpack.c.bf16 %v5741_v47, %v5740_v25  ;;  %v12798_v47 = vld [vmem:[%s17123_s3 + $0x228] sm:$0xff]  }
 0x319   : > { %v15498_v4 = vadd.f32 %v11931_v21, %v15398_v37  ;;  %v11875_v43 = vpop.f32.mrb[237].mxu1  ;;  %v12788_v21 = vld [vmem:[%s17123_s3 + $0x200] sm:$0xff]  }
 0x31a   : > { %v11876_v31 = vadd.f32 %v11875_v43, %v11874_v8  ;;  %v11877_v16 = vpop.f32.mrb[238].mxu1  ;;  %v12789_v8 = vld [vmem:[%s17123_s3 + $0x248] sm:$0xff]  }
 0x31b   : > { %v4886_v38 = vld [vmem:[#allocation2 + $0x16f] ss:$2 sm:$0xff]  ;;  %v4888_v2 = vld [vmem:[#allocation2 + $0x170] ss:$2 sm:$0xff]  ;;  %5919 = vmatmul.mubr.bf16.vlgmr.msra.gmra.mrb[32].mxu0 %v5726_v51  ;;  %v11932_v41 = vpop.f32.mrb[8].mxu0  ;;  %v11878_v15 = vpop.f32.mrb[239].mxu1 }
 0x31c   : > { %5926 = vmatprep.mubr.bf16.mxu0 %v15500_v19  ;;  %v4890_v39 = vmax.f32 %v4886_v38, %v4888_v2  ;;  %v11933_v13 = vpop.f32.mrb[9].mxu0  ;;  %v11879_v28 = vadd.f32 %v11878_v15, %v11877_v16  ;;  %v12790_v2 = vld [vmem:[%s17123_s3 + $0x208] sm:$0xff]   ;;  %v12791_v15 = vld [vmem:[%s17123_s3 + $0x250] sm:$0xff]  }
 0x31d   : > { %v11934_v34 = vadd.f32 %v11933_v13, %v11932_v41  ;;  %v11935_v37 = vpop.f32.mrb[10].mxu0  ;;  %v5717_v41 = vld [vmem:[#allocation3 + $0x58] sm:$0xff] }
 0x31e   : > { %v4891_v24 = vmax.f32 %v4889_v11, %v4890_v39  ;;  %v11936_v35 = vpop.f32.mrb[11].mxu0  ;;  %v5449_v39 = vld [vmem:[#allocation3 + $0x32] sm:$0xff]  ;;  %v5450_v13 = vld [vmem:[#allocation3 + $0x3a] sm:$0xff] }
 0x31f   : > { %v15504_v61 = vadd.f32 %v11934_v34, %v15454_v33  ;;  %v11937_v1 = vadd.f32 %v11936_v35, %v11935_v37  ;;  %v5729_v34 = vpack.c.bf16 %v5717_v41, %v15494_v59  ;;  %v15547_v6 = vpack.c.bf16 %v5450_v13, %v5449_v39  ;;  %v12793_v35 = vld [vmem:[%s17123_s3 + $0x258] sm:$0xff]   ;;  %v12806_v39 = vld [vmem:[%s17125_s5 + $0x40] sm:$0xff]  }
 0x320   : > { %4892 = vst [vmem:[#allocation3 + $0x88] sm:$0xff] %v4891_v24  ;;  %v15507_v52 = vpack.c.bf16 %v4891_v24, %v15494_v59 }
 0x321   : > { %v15513_v56 = vadd.f32 %v11937_v1, %v15457_v49  ;;  %v5447_v49 = vld [vmem:[#allocation3 + $0x22] sm:$0xff]  ;;  %v12794_v1 = vld [vmem:[%s17123_s3 + $0x218] sm:$0xff]  }
 0x322   : > { %5219 = vmatprep.mubr.bf16.mxu1 %v15507_v52  ;;  %v15530_v51 = vpack.c.bf16 %v5448_v5, %v5447_v49  ;;  %v12797_v49 = vld [vmem:[%s17123_s3 + $0x268] sm:$0xff]   ;;  %v12799_v5 = vld [vmem:[%s17123_s3 + $0x270] sm:$0xff]  }
 0x323   : > { %5927 = vmatmul.mubr.bf16.gmra.mrb[36].mxu0 %v5727_v44  ;;  %5220 = vmatmul.mubr.bf16.gmra.mrb[252].mxu1 %v15510_v62  ;;  %v11938_v33 = vpop.f32.mrb[12].mxu0 }
 0x324   : > { %5934 = vmatprep.mubr.bf16.mxu0 %v15515_v45  ;;  %5629 = vmatprep.mubr.bf16.mxu1 %v5461_v10  ;;  %v11939_v20 = vpop.f32.mrb[13].mxu0  ;;  %v12795_v10 = vld [vmem:[%s17123_s3 + $0x260] sm:$0xff]  }
 0x325   : > { %v11940_v40 = vadd.f32 %v11939_v20, %v11938_v33  ;;  %v11941_v55 = vpop.f32.mrb[14].mxu0  ;;  %v5452_v33 = vld [vmem:[#allocation3 + $0x4a] sm:$0xff] }
 0x326   : > { %v11942_v54 = vpop.f32.mrb[15].mxu0 }
 0x327   : > { %v15520_v60 = vadd.f32 %v11940_v40, %v11876_v31  ;;  %v11943_v63 = vadd.f32 %v11942_v54, %v11941_v55  ;;  %v12796_v40 = vld [vmem:[%s17123_s3 + $0x220] sm:$0xff]  }
 0x329   : > { %v15526_v17 = vadd.f32 %v11943_v63, %v11879_v28  ;;  %v5746_v63 = vld [vmem:[#allocation3 + $0x81] sm:$0xff] }
 0x32b   : > { %5935 = vmatmul.mubr.bf16.gmra.mrb[40].mxu0 %v5728_v27  ;;  %5630 = vmatmul.mubr.bf16.vlgmr.msra.gmra.mrb[0].mxu1 %v5437_v0  ;;  %v11944_v43 = vpop.f32.mrb[16].mxu0  ;;  %v5747_v27 = vld [vmem:[#allocation3 + $0x89] sm:$0xff]  ;;  %v12801_v0 = vld [vmem:[%s17123_s3 + $0x278] sm:$0xff]  }
 0x32c   : > { %5942 = vmatprep.mubr.bf16.mxu0 %v15528_v29  ;;  %5637 = vmatprep.mubr.bf16.mxu1 %v15530_v51  ;;  %v11945_v38 = vpop.f32.mrb[17].mxu0 }
 0x32d   : > { %12097 = vmatpush3.bf16.msra.mxu1 %v12788_v21  ;;  %v11946_v31 = vadd.f32 %v11945_v38, %v11944_v43  ;;  %v11947_v16 = vpop.f32.mrb[18].mxu0  ;;  %v5748_v21 = vld [vmem:[#allocation3 + $0x91] sm:$0xff] }
 0x32e   : > { %12098 = vmatprep.subr.bf16.mxu1 %v12789_v8  ;;  %v11948_v11 = vpop.f32.mrb[19].mxu0  ;;  %v5749_v8 = vld [vmem:[#allocation3 + $0x99] sm:$0xff] }
 0x32f   : > { %v11949_v28 = vadd.f32 %v11948_v11, %v11947_v16  ;;  %v11880_v23 = vpop.f32.mrb[240].mxu1  ;;  %v12802_v43 = vld [vmem:[%s17123_s3 + $0x238] sm:$0xff]   ;;  %v5757_v38 = vpack.c.bf16 %v5749_v8, %v5748_v21  ;;  %v12803_v11 = vld [vmem:[%s17125_s5 + $0xc0] sm:$0xff]   ;;  %v12825_v21 = vld [vmem:[%s17125_s5 + $0xa8] sm:$0xff]  }
 0x330   : > { %v11881_v37 = vpop.f32.mrb[241].mxu1  ;;  %12160 = vmatprep.subr.bf16.mxu0 %v12803_v11  ;;  %v12826_v8 = vld [vmem:[%s17125_s5 + $0x28] sm:$0xff]  }
 0x331   : > { %12099 = vmatpush3.bf16.msra.mxu1 %v12790_v2  ;;  %v11882_v24 = vadd.f32 %v11881_v37, %v11880_v23  ;;  %v11883_v9 = vpop.f32.mrb[242].mxu1  ;;  %v5460_v2 = vld [vmem:[#allocation3 + $0x8a] sm:$0xff]  ;;  %v12808_v23 = vld [vmem:[%s17125_s5] sm:$0xff]  }
 0x332   : > { %12100 = vmatprep.subr.bf16.mxu1 %v12791_v15  ;;  %v11884_v3 = vpop.f32.mrb[243].mxu1 }
 0x333   : > { %5943 = vmatmul.mubr.bf16.gmra.mrb[44].mxu0 %v5729_v34  ;;  %5638 = vmatmul.mubr.bf16.gmra.mrb[4].mxu1 %v15484_v48  ;;  %v15554_v50 = vadd.f32 %v11946_v31, %v11882_v24  ;;  %v11885_v36 = vadd.f32 %v11884_v3, %v11883_v9  ;;  %v5451_v48 = vld [vmem:[#allocation3 + $0x42] sm:$0xff] }
 0x334   : > { %5950 = vmatprep.mubr.bf16.mxu0 %v15439_v14  ;;  %5645 = vmatprep.mubr.bf16.mxu1 %v15547_v6  ;;  %v5464_v58 = vpack.c.bf16 %v5452_v33, %v5451_v48  ;;  %v12805_v9 = vld [vmem:[%s17125_s5 + $0xc8] sm:$0xff]   ;;  %v12814_v48 = vld [vmem:[%s17125_s5 + $0x10] sm:$0xff]   ;;  %v12815_v33 = vld [vmem:[%s17125_s5 + $0xd8] sm:$0xff]  }
 0x335   : > { %12101 = vmatpush3.bf16.msra.mxu1 %v12792_v7  ;;  %v15560_v44 = vadd.f32 %v11949_v28, %v11885_v36  ;;  %v12804_v28 = vld [vmem:[%s17125_s5 + $0x80] sm:$0xff]   ;;  %v12810_v3 = vld [vmem:[%s17125_s5 + $0x8] sm:$0xff]   ;;  %v12811_v36 = vld [vmem:[%s17125_s5 + $0xd0] sm:$0xff]  }
 0x336   : > { %12102 = vmatprep.subr.bf16.mxu1 %v12793_v35  ;;  %12161 = vmatpush3.bf16.msra.mxu0 %v12804_v28  ;;  %v12807_v35 = vld [vmem:[%s17125_s5 + $0x88] sm:$0xff]  }
 0x337   : > { %v11950_v20 = vpop.f32.mrb[20].mxu0  ;;  %12162 = vmatprep.subr.bf16.mxu0 %v12805_v9 }
 0x338   : > { %v11951_v46 = vpop.f32.mrb[21].mxu0 }
 0x339   : > { %12103 = vmatpush3.bf16.msra.mxu1 %v12794_v1  ;;  %v15568_v55 = vadd.f32 %v11951_v46, %v11950_v20  ;;  %v11953_v18 = vpop.f32.mrb[22].mxu0  ;;  %v12812_v1 = vld [vmem:[%s17125_s5 + $0x50] sm:$0xff]   ;;  %v12816_v20 = vld [vmem:[%s17125_s5 + $0x58] sm:$0xff]  }
 0x33a   : > { %12104 = vmatprep.subr.bf16.mxu1 %v12795_v10  ;;  %v11954_v54 = vpop.f32.mrb[23].mxu0  ;;  %12163 = vmatpush3.bf16.msra.mxu0 %v12807_v35  ;;  %v12813_v10 = vld [vmem:[%s17125_s5 + $0x90] sm:$0xff]   ;;  %v12817_v46 = vld [vmem:[%s17125_s5 + $0x98] sm:$0xff]  }
 0x33b   : > { %5951 = vmatmul.mubr.bf16.gmra.mrb[48].mxu0 %v15425_v22  ;;  %5646 = vmatmul.mubr.bf16.gmra.mrb[8].mxu1 %v15500_v19  ;;  %v15575_v25 = vadd.f32 %v11954_v54, %v11953_v18  ;;  %v12800_v22 = vld [vmem:[%s17123_s3 + $0x230] sm:$0xff]   ;;  %v5756_v19 = vpack.c.bf16 %v5747_v27, %v5746_v63  ;;  %v12819_v18 = vld [vmem:[%s17125_s5 + $0xe0] sm:$0xff]  }
 0x33c   : > { %5958 = vmatprep.mubr.bf16.mxu0 %v15480_v26  ;;  %5653 = vmatprep.mubr.bf16.mxu1 %v5464_v58  ;;  %v12821_v54 = vld [vmem:[%s17125_s5 + $0xa0] sm:$0xff]  }
 0x33d   : > { %12105 = vmatpush3.bf16.msra.mxu1 %v12796_v40  ;;  %12164 = vmatprep.subr.bf16.mxu0 %v12811_v36  ;;  %v12818_v40 = vld [vmem:[%s17125_s5 + $0x18] sm:$0xff]  }
 0x33e   : > { %12106 = vmatprep.subr.bf16.mxu1 %v12797_v49  ;;  %12165 = vmatpush3.bf16.msra.mxu0 %v12813_v10 }
 0x33f   : > { %12166 = vmatprep.subr.bf16.mxu0 %v12815_v33 }
 0x341   : > { %12107 = vmatpush3.bf16.msra.mxu1 %v12798_v47 }
 0x342   : > { %12108 = vmatprep.subr.bf16.mxu1 %v12799_v5  ;;  %12167 = vmatpush3.bf16.msra.mxu0 %v12817_v46 }
 0x343   : > { %5959 = vmatmul.mubr.bf16.gmra.mrb[52].mxu0 %v15464_v53  ;;  %5654 = vmatmul.mubr.bf16.gmra.mrb[12].mxu1 %v15515_v45  ;;  %v15601_v53 = vpack.c.bf16 %v15494_v59, %v15494_v59  ;;  %v5459_v45 = vld [vmem:[#allocation3 + $0x82] sm:$0xff] }
 0x344   : > { %5966 = vmatprep.mubr.bf16.mxu0 %v5756_v19  ;;  %5661 = vmatprep.mubr.bf16.mxu1 %v15430_v32  ;;  %v5468_v31 = vpack.c.bf16 %v5460_v2, %v5459_v45  ;;  %v12827_v2 = vld [vmem:[%s17125_s5 + $0xf0] sm:$0xff]  }
 0x345   : > { %12109 = vmatpush3.bf16.msra.mxu1 %v12800_v22  ;;  %12168 = vmatprep.subr.bf16.mxu0 %v12819_v18 }
 0x346   : > { %12110 = vmatprep.subr.bf16.mxu1 %v12801_v0  ;;  %12169 = vmatpush3.bf16.msra.mxu0 %v12821_v54  ;;  %v12824_v0 = vld [vmem:[%s17125_s5 + $0x68] sm:$0xff]  }
 0x349   : > { %12111 = vmatpush3.bf16.msra.mxu1 %v12802_v43 }
 0x34a   : > { %12194 = vmatprep.subr.bf16.mxu1 %v12806_v39 }
 0x34b   : > { %5967 = vmatmul.mubr.bf16.gmra.mrb[56].mxu0 %v15507_v52  ;;  %5662 = vmatmul.mubr.bf16.gmra.mrb[16].mxu1 %v15528_v29 }
 0x34c   : > { %5669 = vmatprep.mubr.bf16.mxu1 %v15469_v42  ;;  %5974 = vmatprep.mubr.bf16.mxu0 %v5757_v38 }
 0x353   : > { %5670 = vmatmul.mubr.bf16.gmra.mrb[20].mxu1 %v15439_v14  ;;  %5975 = vmatmul.mubr.bf16.gmra.mrb[60].mxu0 %v15601_v53  ;;  %v6013_v14 = vld [vmem:[#allocation3 + $0x92] sm:$0xff] }
 0x354   : > { %5677 = vmatprep.mubr.bf16.mxu1 %v15510_v62 }
 0x35b   : > { %5678 = vmatmul.mubr.bf16.gmra.mrb[24].mxu1 %v15480_v26  ;;  %v6014_v26 = vld [vmem:[#allocation3 + $0x9a] sm:$0xff] }
 0x35c   : > { %5685 = vmatprep.mubr.bf16.mxu1 %v5468_v31  ;;  %v6022_v59 = vpack.c.bf16 %v6014_v26, %v6013_v14 }
 0x363   : > { %5686 = vmatmul.mubr.bf16.gmra.mrb[28].mxu1 %v5756_v19  ;;  %v12823_v19 = vld [vmem:[%s17125_s5 + $0xe8] sm:$0xff]  }
 0x364   : > { %6183 = vmatprep.mubr.bf16.mxu1 %v15530_v51  ;;  %12170 = vmatprep.subr.bf16.mxu0 %v12823_v19 }
 0x365   : > { %12171 = vmatpush3.bf16.msra.mxu0 %v12825_v21 }
 0x366   : > { %12172 = vmatprep.subr.bf16.mxu0 %v12827_v2 }
 0x36b   : > { %6184 = vmatmul.mubr.bf16.vlgmr.msra.gmra.mrb[32].mxu1 %v15530_v51 }
 0x36c   : > { %6191 = vmatprep.mubr.bf16.mxu1 %v15547_v6  ;;  %12195 = vmatpush3.bf16.msra.mxu1 %v12808_v23 }
 0x373   : > { %6192 = vmatmul.mubr.bf16.gmra.mrb[36].mxu1 %v15547_v6  ;;  %v12809_v6 = vld [vmem:[%s17125_s5 + $0x48] sm:$0xff]  }
 0x374   : > { %6199 = vmatprep.mubr.bf16.mxu1 %v5464_v58  ;;  %12196 = vmatprep.subr.bf16.mxu1 %v12809_v6 }
 0x375   : > { %12197 = vmatpush3.bf16.msra.mxu1 %v12810_v3 }
 0x376   : > { %12198 = vmatprep.subr.bf16.mxu1 %v12812_v1 }
 0x379   : > { %12199 = vmatpush3.bf16.msra.mxu1 %v12814_v48 }
 0x37a   : > { %12200 = vmatprep.subr.bf16.mxu1 %v12816_v20 }
 0x37b   : > { %6200 = vmatmul.mubr.bf16.gmra.mrb[40].mxu1 %v5464_v58  ;;  %v12820_v58 = vld [vmem:[%s17125_s5 + $0x60] sm:$0xff]  }
 0x37c   : > { %6207 = vmatprep.mubr.bf16.mxu1 %v15430_v32 }
 0x37d   : > { %12201 = vmatpush3.bf16.msra.mxu1 %v12818_v40 }
 0x37e   : > { %12202 = vmatprep.subr.bf16.mxu1 %v12820_v58 }
 0x383   : > { %6208 = vmatmul.mubr.bf16.gmra.mrb[44].mxu1 %v15430_v32 }
 0x384   : > { %6215 = vmatprep.mubr.bf16.mxu1 %v15469_v42 }
 0x38b   : > { %6216 = vmatmul.mubr.bf16.gmra.mrb[48].mxu1 %v15469_v42 }
 0x38c   : > { %6223 = vmatprep.mubr.bf16.mxu1 %v15510_v62 }
 0x393   : > { %6224 = vmatmul.mubr.bf16.gmra.mrb[52].mxu1 %v15510_v62 }
 0x394   : > { %6231 = vmatprep.mubr.bf16.mxu1 %v5468_v31 }
 0x39b   : > { %6232 = vmatmul.mubr.bf16.gmra.mrb[56].mxu1 %v5468_v31  ;;  %v12828_v31 = vld [vmem:[%s17125_s5 + $0x70] sm:$0xff]  }
 0x39c   : > { %6239 = vmatprep.mubr.bf16.mxu1 %v6022_v59 }
 0x3a3   : > { %6240 = vmatmul.mubr.bf16.gmra.mrb[60].mxu1 %v6022_v59  ;;  %v12829_v59 = vld [vmem:[%s17125_s5 + $0xb0] sm:$0xff]  }
 0x3a4   : > { %12173 = vmatpush3.bf16.msra.mxu0 %v12829_v59 }
 0x3c6   : > { %v11886_v52 = vpop.f32.mrb[244].mxu1 }
 0x3c7   : > { %v11887_v29 = vpop.f32.mrb[245].mxu1 }
 0x3c8   : > { %v11888_v51 = vadd.f32 %v11887_v29, %v11886_v52  ;;  %v11889_v16 = vpop.f32.mrb[246].mxu1  ;;  %v12830_v52 = vld [vmem:[%s17125_s5 + $0x30] sm:$0xff]  }
 0x3c9   : > { %v11890_v32 = vpop.f32.mrb[247].mxu1 }
 0x3ca   : > { %v15618_v41 = vadd.f32 %v15568_v55, %v11888_v51  ;;  %v11891_v42 = vadd.f32 %v11890_v32, %v11889_v16  ;;  %v12831_v16 = vld [vmem:[%s17125_s5 + $0xf8] sm:$0xff]  }
 0x3cb   : > { %v12832_v32 = vld [vmem:[%s17125_s5 + $0x78] sm:$0xff]   ;;  %12174 = vmatprep.subr.bf16.mxu0 %v12831_v16 }
 0x3cc   : > { %v15621_v15 = vadd.f32 %v15575_v25, %v11891_v42  ;;  %v12822_v25 = vld [vmem:[%s17125_s5 + $0x20] sm:$0xff]   ;;  %v12833_v42 = vld [vmem:[%s17125_s5 + $0xb8] sm:$0xff]  }
 0x3cd   : > { %12203 = vmatpush3.bf16.msra.mxu1 %v12822_v25  ;;  %12175 = vmatpush3.bf16.msra.mxu0 %v12833_v42 }
 0x3ce   : > { %v11956_v62 = vpop.f32.mrb[24].mxu0  ;;  %12204 = vmatprep.subr.bf16.mxu1 %v12824_v0 }
 0x3cf   : > { %v11957_v13 = vpop.f32.mrb[25].mxu0 }
 0x3d0   : > { %v11958_v34 = vadd.f32 %v11957_v13, %v11956_v62  ;;  %v11959_v37 = vpop.f32.mrb[26].mxu0  ;;  %v12834_v62 = vld [vmem:[%s17125_s5 + $0x38] sm:$0xff]  }
 0x3d1   : > { %v11960_v7 = vpop.f32.mrb[27].mxu0  ;;  %12205 = vmatpush3.bf16.msra.mxu1 %v12826_v8 }
 0x3d2   : > { %v11961_v24 = vadd.f32 %v11960_v7, %v11959_v37  ;;  %12206 = vmatprep.subr.bf16.mxu1 %v12828_v31  ;;  %v12835_v31 = vld [vmem:[%s17125_s5 + $0x140] sm:$0xff]  }
 0x3d3   : > { %12228 = vmatprep.subr.bf16.mxu0 %v12835_v31 }
 0x3d5   : > { %12207 = vmatpush3.bf16.msra.mxu1 %v12830_v52 }
 0x3d6   : > { %12208 = vmatprep.subr.bf16.mxu1 %v12832_v32 }
 0x3d9   : > { %12209 = vmatpush3.bf16.msra.mxu1 %v12834_v62 }
 0x3de   : > { %v11892_v55 = vpop.f32.mrb[248].mxu1 }
 0x3df   : > { %v11893_v49 = vpop.f32.mrb[249].mxu1 }
 0x3e0   : > { %v11894_v47 = vadd.f32 %v11893_v49, %v11892_v55  ;;  %v11895_v5 = vpop.f32.mrb[250].mxu1 }
 0x3e1   : > { %v11896_v63 = vpop.f32.mrb[251].mxu1 }
 0x3e2   : > { %v15683_v27 = vadd.f32 %v11958_v34, %v11894_v47  ;;  %v11897_v22 = vadd.f32 %v11896_v63, %v11895_v5 }
 0x3e4   : > { %v15697_v43 = vadd.f32 %v11961_v24, %v11897_v22 }
 0x3e6   : > { %v11962_v38 = vpop.f32.mrb[28].mxu0 }
 0x3e7   : > { %v11963_v45 = vpop.f32.mrb[29].mxu0 }
 0x3e8   : > { %v11964_v14 = vadd.f32 %v11963_v45, %v11962_v38  ;;  %v11965_v26 = vpop.f32.mrb[30].mxu0 }
 0x3e9   : > { %v11966_v29 = vpop.f32.mrb[31].mxu0 }
 0x3ea   : > { %v11967_v51 = vadd.f32 %v11966_v29, %v11965_v26 }
 0x3ee   : > { %v12048_v11 = vpop.f32.mrb[32].mxu0 }
 0x3ef   : > { %v12049_v39 = vpop.f32.mrb[33].mxu0 }
 0x3f0   : > { %v12050_v13 = vadd.f32 %v12049_v39, %v12048_v11  ;;  %v12051_v28 = vpop.f32.mrb[34].mxu0 }
 0x3f1   : > { %v12052_v23 = vpop.f32.mrb[35].mxu0 }
 0x3f2   : > { %v12053_v34 = vadd.f32 %v12052_v23, %v12051_v28 }
 0x3f6   : > { %v12054_v37 = vpop.f32.mrb[36].mxu0  ;;  %v11898_v7 = vpop.f32.mrb[252].mxu1 }
 0x3f7   : > { %v12055_v24 = vpop.f32.mrb[37].mxu0  ;;  %v11899_v9 = vpop.f32.mrb[253].mxu1 }
 0x3f8   : > { %v12056_v6 = vadd.f32 %v12055_v24, %v12054_v37  ;;  %v12057_v35 = vpop.f32.mrb[38].mxu0  ;;  %v11900_v3 = vadd.f32 %v11899_v9, %v11898_v7  ;;  %v11901_v36 = vpop.f32.mrb[254].mxu1 }
 0x3f9   : > { %v12058_v1 = vpop.f32.mrb[39].mxu0  ;;  %v11902_v10 = vpop.f32.mrb[255].mxu1 }
 0x3fa   : > { %v12059_v48 = vadd.f32 %v12058_v1, %v12057_v35  ;;  %v15723_v33 = vadd.f32 %v11964_v14, %v11900_v3  ;;  %v11903_v20 = vadd.f32 %v11902_v10, %v11901_v36  ;;  %v12837_v14 = vld [vmem:[%s17125_s5 + $0x1c0] sm:$0xff]  }
 0x3fb   : > { %12262 = vmatprep.subr.bf16.mxu1 %v12837_v14 }
 0x3fc   : > { %v15725_v46 = vadd.f32 %v11967_v51, %v11903_v20 }
 0x3fe   : > { %v12060_v40 = vpop.f32.mrb[40].mxu0  ;;  %v11984_v55 = vpop.f32.mrb[0].mxu1 }
 0x3ff   : > { %v12061_v18 = vpop.f32.mrb[41].mxu0  ;;  %v11985_v58 = vpop.f32.mrb[1].mxu1 }
 0x400   : > { %v12062_v49 = vadd.f32 %v12061_v18, %v12060_v40  ;;  %v12063_v54 = vpop.f32.mrb[42].mxu0  ;;  %v11986_v25 = vadd.f32 %v11985_v58, %v11984_v55  ;;  %v11987_v47 = vpop.f32.mrb[2].mxu1 }
 0x401   : > { %v12064_v5 = vpop.f32.mrb[43].mxu0  ;;  %v11988_v63 = vpop.f32.mrb[3].mxu1 }
 0x402   : > { %v12065_v22 = vadd.f32 %v12064_v5, %v12063_v54  ;;  %v5694_v19 = vadd.f32 %v11986_v25, %v15478_v30  ;;  %v11989_v0 = vadd.f32 %v11988_v63, %v11987_v47 }
 0x404   : > { %v5695_v21 = vadd.f32 %v11989_v0, %v15487_v57  ;;  %v15729_v8 = vadd.f32 %v12050_v13, %v5694_v19 }
 0x406   : > { %v12066_v38 = vpop.f32.mrb[44].mxu0  ;;  %v11990_v45 = vpop.f32.mrb[4].mxu1  ;;  %v15731_v2 = vadd.f32 %v12053_v34, %v5695_v21 }
 0x407   : > { %v12067_v26 = vpop.f32.mrb[45].mxu0  ;;  %v11991_v59 = vpop.f32.mrb[5].mxu1 }
 0x408   : > { %v12068_v30 = vadd.f32 %v12067_v26, %v12066_v38  ;;  %v12069_v52 = vpop.f32.mrb[46].mxu0  ;;  %v11992_v29 = vadd.f32 %v11991_v59, %v11990_v45  ;;  %v11993_v57 = vpop.f32.mrb[6].mxu1 }
 0x409   : > { %v12070_v51 = vpop.f32.mrb[47].mxu0  ;;  %v11994_v16 = vpop.f32.mrb[7].mxu1 }
 0x40a   : > { %v12071_v32 = vadd.f32 %v12070_v51, %v12069_v52  ;;  %v5696_v42 = vadd.f32 %v11992_v29, %v15492_v12  ;;  %v11995_v62 = vadd.f32 %v11994_v16, %v11993_v57 }
 0x40c   : > { %v5697_v11 = vadd.f32 %v11995_v62, %v15498_v4  ;;  %v15741_v39 = vadd.f32 %v12056_v6, %v5696_v42 }
 0x40e   : > { %v12072_v13 = vpop.f32.mrb[48].mxu0  ;;  %v11996_v28 = vpop.f32.mrb[8].mxu1  ;;  %v15743_v23 = vadd.f32 %v12059_v48, %v5697_v11 }
 0x40f   : > { %v12073_v34 = vpop.f32.mrb[49].mxu0  ;;  %v11997_v37 = vpop.f32.mrb[9].mxu1 }
 0x410   : > { %v12074_v7 = vadd.f32 %v12073_v34, %v12072_v13  ;;  %v12075_v24 = vpop.f32.mrb[50].mxu0  ;;  %v11998_v9 = vadd.f32 %v11997_v37, %v11996_v28  ;;  %v11999_v35 = vpop.f32.mrb[10].mxu1 }
 0x411   : > { %v12076_v3 = vpop.f32.mrb[51].mxu0  ;;  %v12000_v36 = vpop.f32.mrb[11].mxu1 }
 0x412   : > { %v12077_v1 = vadd.f32 %v12076_v3, %v12075_v24  ;;  %v5698_v12 = vadd.f32 %v11998_v9, %v15504_v61  ;;  %v12001_v10 = vadd.f32 %v12000_v36, %v11999_v35 }
 0x414   : > { %v5699_v4 = vadd.f32 %v12001_v10, %v15513_v56  ;;  %v15747_v6 = vadd.f32 %v12062_v49, %v5698_v12 }
 0x416   : > { %v12078_v20 = vpop.f32.mrb[52].mxu0  ;;  %v12002_v40 = vpop.f32.mrb[12].mxu1  ;;  %v15749_v48 = vadd.f32 %v12065_v22, %v5699_v4 }
 0x417   : > { %v12079_v55 = vpop.f32.mrb[53].mxu0  ;;  %v12003_v18 = vpop.f32.mrb[13].mxu1 }
 0x418   : > { %v12080_v58 = vadd.f32 %v12079_v55, %v12078_v20  ;;  %v12081_v54 = vpop.f32.mrb[54].mxu0  ;;  %v12004_v25 = vadd.f32 %v12003_v18, %v12002_v40  ;;  %v12005_v47 = vpop.f32.mrb[14].mxu1 }
 0x419   : > { %v12082_v5 = vpop.f32.mrb[55].mxu0  ;;  %v12006_v63 = vpop.f32.mrb[15].mxu1 }
 0x41a   : > { %v12083_v19 = vadd.f32 %v12082_v5, %v12081_v54  ;;  %v5700_v61 = vadd.f32 %v12004_v25, %v15520_v60  ;;  %v12007_v0 = vadd.f32 %v12006_v63, %v12005_v47 }
 0x41c   : > { %v5701_v56 = vadd.f32 %v12007_v0, %v15526_v17  ;;  %v15753_v49 = vadd.f32 %v12068_v30, %v5700_v61 }
 0x41e   : > { %v12084_v21 = vpop.f32.mrb[56].mxu0  ;;  %v12008_v38 = vpop.f32.mrb[16].mxu1  ;;  %v15755_v22 = vadd.f32 %v12071_v32, %v5701_v56 }
 0x41f   : > { %v12085_v45 = vpop.f32.mrb[57].mxu0  ;;  %v12009_v31 = vpop.f32.mrb[17].mxu1 }
 0x420   : > { %v12086_v14 = vadd.f32 %v12085_v45, %v12084_v21  ;;  %v12087_v26 = vpop.f32.mrb[58].mxu0  ;;  %v12010_v59 = vadd.f32 %v12009_v31, %v12008_v38  ;;  %v12011_v52 = vpop.f32.mrb[18].mxu1  ;;  %v15784_v31 = vld [vmem:[%s17124_s4] ss:$0 sm:$0xff] }
 0x421   : > { %v12088_v29 = vpop.f32.mrb[59].mxu0  ;;  %v12012_v57 = vpop.f32.mrb[19].mxu1 }
 0x422   : > { %v12089_v51 = vadd.f32 %v12088_v29, %v12087_v26  ;;  %v5702_v60 = vadd.f32 %v12010_v59, %v15554_v50  ;;  %v12013_v16 = vadd.f32 %v12012_v57, %v12011_v52  ;;  %v15792_v52 = vld [vmem:[%s17124_s4 + $0x1] ss:$0 sm:$0xff] }
 0x424   : > { %v5703_v17 = vadd.f32 %v12013_v16, %v15560_v44  ;;  %v15759_v30 = vadd.f32 %v12074_v7, %v5702_v60  ;;  %v15798_v60 = vld [vmem:[%s17124_s4 + $0x2] ss:$0 sm:$0xff] }
 0x426   : > { %v12014_v42 = vpop.f32.mrb[20].mxu1  ;;  %v12090_v62 = vpop.f32.mrb[60].mxu0  ;;  %v15761_v32 = vadd.f32 %v12077_v1, %v5703_v17 }
 0x427   : > { %v12015_v11 = vpop.f32.mrb[21].mxu1  ;;  %v12091_v13 = vpop.f32.mrb[61].mxu0 }
 0x428   : > { %v12016_v28 = vadd.f32 %v12015_v11, %v12014_v42  ;;  %v12017_v34 = vpop.f32.mrb[22].mxu1  ;;  %v12092_v37 = vadd.f32 %v12091_v13, %v12090_v62  ;;  %v12093_v24 = vpop.f32.mrb[62].mxu0 }
 0x429   : > { %v12018_v9 = vpop.f32.mrb[23].mxu1  ;;  %v12094_v35 = vpop.f32.mrb[63].mxu0 }
 0x42a   : > { %v5704_v3 = vadd.f32 %v12016_v28, %v15618_v41  ;;  %v12019_v50 = vadd.f32 %v12018_v9, %v12017_v34  ;;  %v12095_v36 = vadd.f32 %v12094_v35, %v12093_v24 }
 0x42c   : > { %v5705_v44 = vadd.f32 %v12019_v50, %v15621_v15  ;;  %v15765_v7 = vadd.f32 %v12080_v58, %v5704_v3 }
 0x42e   : > { %v12020_v12 = vpop.f32.mrb[24].mxu1  ;;  %v15767_v10 = vadd.f32 %v12083_v19, %v5705_v44 }
 0x42f   : > { %v12021_v1 = vpop.f32.mrb[25].mxu1 }
 0x430   : > { %v12022_v4 = vadd.f32 %v12021_v1, %v12020_v12  ;;  %v12023_v20 = vpop.f32.mrb[26].mxu1 }
 0x431   : > { %v12024_v40 = vpop.f32.mrb[27].mxu1 }
 0x432   : > { %v5706_v55 = vadd.f32 %v12022_v4, %v15683_v27  ;;  %v12025_v18 = vadd.f32 %v12024_v40, %v12023_v20 }
 0x434   : > { %v5707_v54 = vadd.f32 %v12025_v18, %v15697_v43  ;;  %v15771_v25 = vadd.f32 %v12086_v14, %v5706_v55 }
 0x436   : > { %v12026_v41 = vpop.f32.mrb[28].mxu1  ;;  %v15773_v47 = vadd.f32 %v12089_v51, %v5707_v54 }
 0x437   : > { %v12027_v15 = vpop.f32.mrb[29].mxu1 }
 0x438   : > { %v12028_v58 = vadd.f32 %v12027_v15, %v12026_v41  ;;  %v12029_v5 = vpop.f32.mrb[30].mxu1 }
 0x439   : > { %v12030_v63 = vpop.f32.mrb[31].mxu1 }
 0x43a   : > { %v5708_v19 = vadd.f32 %v12028_v58, %v15723_v33  ;;  %v12031_v61 = vadd.f32 %v12030_v63, %v12029_v5 }
 0x43c   : > { %v5709_v0 = vadd.f32 %v12031_v61, %v15725_v46  ;;  %v15777_v56 = vadd.f32 %v12092_v37, %v5708_v19 }
 0x43e   : > { %v15779_v27 = vadd.f32 %v12095_v36, %v5709_v0  ;;  %v12112_v21 = vpop.f32.mrb[32].mxu1 }
 0x43f   : > { %v12113_v43 = vpop.f32.mrb[33].mxu1 }
 0x440   : > { %v12114_v38 = vadd.f32 %v12113_v43, %v12112_v21  ;;  %v12115_v45 = vpop.f32.mrb[34].mxu1 }
 0x441   : > { %v12116_v14 = vpop.f32.mrb[35].mxu1 }
 0x442   : > { %v6248_v26 = vadd.f32 %v12114_v38, %v15729_v8  ;;  %v12117_v33 = vadd.f32 %v12116_v14, %v12115_v45 }
 0x444   : > { %v6268_v59 = vadd.f32 %v15784_v31, %v6248_v26  ;;  %v6249_v46 = vadd.f32 %v12117_v33, %v15731_v2 }
 0x446   : > { %v6284_v29 = vmax.f32 %v6268_v59, 0.0  ;;  %v6269_v57 = vadd.f32 %v15784_v31, %v6249_v46  ;;  %v12118_v51 = vpop.f32.mrb[36].mxu1 }
 0x447   : > { %v12119_v8 = vpop.f32.mrb[37].mxu1 }
 0x448   : > { %v6304_v16 = vmul.f32 %v15792_v52, %v6284_v29  ;;  %v6285_v17 = vmax.f32 %v6269_v57, 0.0  ;;  %v12120_v42 = vadd.f32 %v12119_v8, %v12118_v51  ;;  %v12121_v2 = vpop.f32.mrb[38].mxu1 }
 0x449   : > { %v12122_v62 = vpop.f32.mrb[39].mxu1 }
 0x44a   : > { %v6324_v11 = vadd.f32 %v15798_v60, %v6304_v16  ;;  %v6305_v13 = vmul.f32 %v15792_v52, %v6285_v17  ;;  %v6250_v28 = vadd.f32 %v12120_v42, %v15741_v39  ;;  %v12123_v34 = vadd.f32 %v12122_v62, %v12121_v2 }
 0x44c   : > { %6340 = vst [vmem:[#allocation4] sm:$0xff] %v6324_v11  ;;  %v6325_v37 = vadd.f32 %v15798_v60, %v6305_v13  ;;  %v6270_v24 = vadd.f32 %v15784_v31, %v6250_v28  ;;  %v6251_v9 = vadd.f32 %v12123_v34, %v15743_v23 }
 0x44e   : > { %6341 = vst [vmem:[#allocation4 + $0x8] sm:$0xff] %v6325_v37  ;;  %v6286_v35 = vmax.f32 %v6270_v24, 0.0  ;;  %v6271_v3 = vadd.f32 %v15784_v31, %v6251_v9  ;;  %v12124_v50 = vpop.f32.mrb[40].mxu1 }
 0x44f   : > { %v12125_v36 = vpop.f32.mrb[41].mxu1 }
 0x450   : > { %v6306_v44 = vmul.f32 %v15792_v52, %v6286_v35  ;;  %v6287_v12 = vmax.f32 %v6271_v3, 0.0  ;;  %v12126_v1 = vadd.f32 %v12125_v36, %v12124_v50  ;;  %v12127_v4 = vpop.f32.mrb[42].mxu1 }
 0x451   : > { %v12128_v39 = vpop.f32.mrb[43].mxu1 }
 0x452   : > { %v6326_v20 = vadd.f32 %v15798_v60, %v6306_v44  ;;  %v6307_v40 = vmul.f32 %v15792_v52, %v6287_v12  ;;  %v6252_v55 = vadd.f32 %v12126_v1, %v15747_v6  ;;  %v12129_v18 = vadd.f32 %v12128_v39, %v12127_v4 }
 0x454   : > { %6342 = vst [vmem:[#allocation4 + $0x10] sm:$0xff] %v6326_v20  ;;  %v6327_v23 = vadd.f32 %v15798_v60, %v6307_v40  ;;  %v6272_v54 = vadd.f32 %v15784_v31, %v6252_v55  ;;  %v6253_v41 = vadd.f32 %v12129_v18, %v15749_v48  ;;  %v6415_v40 = vld [vmem:[#allocation5 + $0x1] sm:$0xff] }
 0x455   : > { %v6357_v48 = vld [vmem:[#allocation4 + $0x7] ss:$2 sm:$0xf]  ;;  %v6359_v26 = vld [vmem:[#allocation4 + $0x8] ss:$2 sm:$0xf] }
 0x456   : > { %6343 = vst [vmem:[#allocation4 + $0x18] sm:$0xff] %v6327_v23  ;;  %v6288_v15 = vmax.f32 %v6272_v54, 0.0  ;;  %v6273_v58 = vadd.f32 %v15784_v31, %v6253_v41  ;;  %v12130_v5 = vpop.f32.mrb[44].mxu1  ;;  %v6364_v17 = vmax.f32 %v6357_v48, %v6359_v26  ;;  %v6455_v55 = vld [vmem:[#allocation5 + $0x2] sm:$0xff] }
 0x457   : > { %v12131_v63 = vpop.f32.mrb[45].mxu1  ;;  %v12839_v48 = vld [vmem:[%s17125_s5 + $0x148] sm:$0xff]  }
 0x458   : > { %v6308_v19 = vmul.f32 %v15792_v52, %v6288_v15  ;;  %v6289_v61 = vmax.f32 %v6273_v58, 0.0  ;;  %v12132_v0 = vadd.f32 %v12131_v63, %v12130_v5  ;;  %v12133_v21 = vpop.f32.mrb[46].mxu1  ;;  %v12836_v63 = vld [vmem:[%s17125_s5 + $0x100] sm:$0xff]   ;;  %v12841_v26 = vld [vmem:[%s17125_s5 + $0x1c8] sm:$0xff]  }
 0x459   : > { %v12134_v6 = vpop.f32.mrb[47].mxu1 }
 0x45a   : > { %v6328_v43 = vadd.f32 %v15798_v60, %v6308_v19  ;;  %v6309_v38 = vmul.f32 %v15792_v52, %v6289_v61  ;;  %v6254_v45 = vadd.f32 %v12132_v0, %v15753_v49  ;;  %v12135_v14 = vadd.f32 %v12134_v6, %v12133_v21  ;;  %v12838_v19 = vld [vmem:[%s17125_s5 + $0x180] sm:$0xff]   ;;  %v15848_v21 = vld [vmem:[#allocation3 + $0x10] sm:$0xff] }
 0x45c   : > { %6344 = vst [vmem:[#allocation4 + $0x20] sm:$0xff] %v6328_v43  ;;  %v6329_v33 = vadd.f32 %v15798_v60, %v6309_v38  ;;  %v6274_v59 = vadd.f32 %v15784_v31, %v6254_v45  ;;  %v6255_v46 = vadd.f32 %v12135_v14, %v15755_v22 }
 0x45d   : > { %v6361_v29 = vld [vmem:[#allocation4 + $0x17] ss:$2 sm:$0xf]  ;;  %v6363_v57 = vld [vmem:[#allocation4 + $0x18] ss:$2 sm:$0xf] }
 0x45e   : > { %6345 = vst [vmem:[#allocation4 + $0x28] sm:$0xff] %v6329_v33  ;;  %v6290_v51 = vmax.f32 %v6274_v59, 0.0  ;;  %v6275_v8 = vadd.f32 %v15784_v31, %v6255_v46  ;;  %v12136_v16 = vpop.f32.mrb[48].mxu1  ;;  %v6365_v42 = vmax.f32 %v6361_v29, %v6363_v57 }
 0x45f   : > { %v12137_v49 = vpop.f32.mrb[49].mxu1 }
 0x460   : > { %v6310_v2 = vmul.f32 %v15792_v52, %v6290_v51  ;;  %v6291_v62 = vmax.f32 %v6275_v8, 0.0  ;;  %v12138_v11 = vadd.f32 %v12137_v49, %v12136_v16  ;;  %v12139_v13 = vpop.f32.mrb[50].mxu1  ;;  %v6366_v28 = vmax.f32 %v6364_v17, %v6365_v42  ;;  %v12840_v16 = vld [vmem:[%s17125_s5 + $0x108] sm:$0xff]  }
 0x461   : > { %v12140_v34 = vpop.f32.mrb[51].mxu1  ;;  %v12842_v17 = vld [vmem:[%s17125_s5 + $0x188] sm:$0xff]  }
 0x462   : > { %v6330_v37 = vadd.f32 %v15798_v60, %v6310_v2  ;;  %v6311_v22 = vmul.f32 %v15792_v52, %v6291_v62  ;;  %v6256_v24 = vadd.f32 %v12138_v11, %v15759_v30  ;;  %v12141_v9 = vadd.f32 %v12140_v34, %v12139_v13  ;;  %6367 = vst [vmem:[#allocation5 + $0x10] sm:$0xf] %v6366_v28  ;;  %v12843_v11 = vld [vmem:[%s17125_s5 + $0x150] sm:$0xff]  }
 0x463   : > { %v12845_v13 = vld [vmem:[%s17125_s5 + $0x1d0] sm:$0xff]  }
 0x464   : > { %6346 = vst [vmem:[#allocation4 + $0x30] sm:$0xff] %v6330_v37  ;;  %v6331_v35 = vadd.f32 %v15798_v60, %v6311_v22  ;;  %v6276_v3 = vadd.f32 %v15784_v31, %v6256_v24  ;;  %v6257_v50 = vadd.f32 %v12141_v9, %v15761_v32  ;;  %v12844_v9 = vld [vmem:[%s17125_s5 + $0x110] sm:$0xff]  }
 0x465   : > { %v6369_v61 = vld [vmem:[#allocation4 + $0x27] ss:$2 sm:$0xf]  ;;  %v6371_v0 = vld [vmem:[#allocation4 + $0x28] ss:$2 sm:$0xf] }
 0x466   : > { %6347 = vst [vmem:[#allocation4 + $0x38] sm:$0xff] %v6331_v35  ;;  %v6292_v36 = vmax.f32 %v6276_v3, 0.0  ;;  %v6277_v44 = vadd.f32 %v15784_v31, %v6257_v50  ;;  %v12142_v12 = vpop.f32.mrb[52].mxu1  ;;  %v6376_v57 = vmax.f32 %v6369_v61, %v6371_v0  ;;  %v12846_v35 = vld [vmem:[%s17125_s5 + $0x190] sm:$0xff]   ;;  %v12852_v0 = vld [vmem:[%s17125_s5 + $0x120] sm:$0xff]  }
 0x467   : > { %v12143_v1 = vpop.f32.mrb[53].mxu1 }
 0x468   : > { %v6312_v4 = vmul.f32 %v15792_v52, %v6292_v36  ;;  %v6293_v39 = vmax.f32 %v6277_v44, 0.0  ;;  %v12144_v20 = vadd.f32 %v12143_v1, %v12142_v12  ;;  %v12145_v30 = vpop.f32.mrb[54].mxu1  ;;  %v12849_v44 = vld [vmem:[%s17125_s5 + $0x1d8] sm:$0xff]  }
 0x469   : > { %v12146_v18 = vpop.f32.mrb[55].mxu1  ;;  %v15833_v23 = vld [vmem:[#allocation5 + $0x10] sm:$0xff] }
 0x46a   : > { %v15835_v54 = vld [vmem:[#allocation5 + $0x9] sm:$0xff]  ;;  %v6332_v32 = vadd.f32 %v15798_v60, %v6312_v4  ;;  %v6313_v15 = vmul.f32 %v15792_v52, %v6293_v39  ;;  %v6258_v58 = vadd.f32 %v12144_v20, %v15765_v7  ;;  %v12147_v5 = vadd.f32 %v12146_v18, %v12145_v30 }
 0x46b   : > { %v15837_v41 = vld [vmem:[#allocation5 + $0xa] sm:$0xff]  ;;  %v6464_v6 = vpack.c.bf16 %v15833_v23, %v15848_v21  ;;  %v6420_v43 = vpack.c.bf16 %v15835_v54, %v6415_v40 }
 0x46c   : > { %v6460_v7 = vpack.c.bf16 %v15837_v41, %v6455_v55  ;;  %6348 = vst [vmem:[#allocation4 + $0x40] sm:$0xff] %v6332_v32  ;;  %v6333_v38 = vadd.f32 %v15798_v60, %v6313_v15  ;;  %v6278_v45 = vadd.f32 %v15784_v31, %v6258_v58  ;;  %v6259_v14 = vadd.f32 %v12147_v5, %v15767_v10  ;;  %v12850_v20 = vld [vmem:[%s17125_s5 + $0x198] sm:$0xff]   ;;  %v12851_v32 = vld [vmem:[%s17125_s5 + $0x160] sm:$0xff]  }
 0x46d   : > { %v6373_v33 = vld [vmem:[#allocation4 + $0x37] ss:$2 sm:$0xf]  ;;  %v6375_v59 = vld [vmem:[#allocation4 + $0x38] ss:$2 sm:$0xf]  ;;  %6627 = vmatprep.mubr.bf16.mxu0 %v6464_v6  ;;  %6779 = vmatprep.mubr.bf16.mxu1 %v6420_v43 }
 0x46e   : > { %6349 = vst [vmem:[#allocation4 + $0x48] sm:$0xff] %v6333_v38  ;;  %v6294_v46 = vmax.f32 %v6278_v45, 0.0  ;;  %v6279_v29 = vadd.f32 %v15784_v31, %v6259_v14  ;;  %6628 = vmatmul.mubr.bf16.vlgmr.msra.gmra.mrb[64].mxu0 %v6460_v7  ;;  %6780 = vmatmul.mubr.bf16.vlgmr.msra.gmra.mrb[64].mxu1 %v15601_v53  ;;  %v12148_v10 = vpop.f32.mrb[56].mxu1  ;;  %v6377_v51 = vmax.f32 %v6373_v33, %v6375_v59  ;;  %v12853_v15 = vld [vmem:[%s17125_s5 + $0x1e0] sm:$0xff]   ;;  %v12855_v14 = vld [vmem:[%s17125_s5 + $0x168] sm:$0xff]  }
 0x46f   : > { %v12149_v8 = vpop.f32.mrb[57].mxu1  ;;  %12229 = vmatpush3.bf16.msra.mxu0 %v12836_v63  ;;  %12263 = vmatpush3.bf16.msra.mxu1 %v12838_v19  ;;  %v12854_v6 = vld [vmem:[%s17125_s5 + $0x1a0] sm:$0xff]  }
 0x470   : > { %v6314_v42 = vmul.f32 %v15792_v52, %v6294_v46  ;;  %v6295_v49 = vmax.f32 %v6279_v29, 0.0  ;;  %v12150_v2 = vadd.f32 %v12149_v8, %v12148_v10  ;;  %v12151_v62 = vpop.f32.mrb[58].mxu1  ;;  %12230 = vmatprep.subr.bf16.mxu0 %v12839_v48  ;;  %12264 = vmatprep.subr.bf16.mxu1 %v12841_v26  ;;  %v6378_v53 = vmax.f32 %v6376_v57, %v6377_v51  ;;  %v12857_v48 = vld [vmem:[%s17125_s5 + $0x1e8] sm:$0xff]  }
 0x471   : > { %v12152_v28 = vpop.f32.mrb[59].mxu1  ;;  %v12858_v57 = vld [vmem:[%s17125_s5 + $0x1a8] sm:$0xff]  }
 0x472   : > { %v6334_v34 = vadd.f32 %v15798_v60, %v6314_v42  ;;  %v6315_v37 = vmul.f32 %v15792_v52, %v6295_v49  ;;  %v6260_v22 = vadd.f32 %v12150_v2, %v15771_v25  ;;  %v12153_v24 = vadd.f32 %v12152_v28, %v12151_v62  ;;  %6379 = vst [vmem:[#allocation5 + $0x18] sm:$0xf] %v6378_v53  ;;  %v12847_v25 = vld [vmem:[%s17125_s5 + $0x158] sm:$0xff]   ;;  %v12860_v2 = vld [vmem:[%s17125_s5 + $0x130] sm:$0xff]  }
 0x473   : > { %12231 = vmatpush3.bf16.msra.mxu0 %v12840_v16  ;;  %12265 = vmatpush3.bf16.msra.mxu1 %v12842_v17  ;;  %v12861_v17 = vld [vmem:[%s17125_s5 + $0x1f0] sm:$0xff]  }
 0x474   : > { %6350 = vst [vmem:[#allocation4 + $0x50] sm:$0xff] %v6334_v34  ;;  %v6335_v3 = vadd.f32 %v15798_v60, %v6315_v37  ;;  %v6280_v50 = vadd.f32 %v15784_v31, %v6260_v22  ;;  %v6261_v36 = vadd.f32 %v12153_v24, %v15773_v47  ;;  %12232 = vmatprep.subr.bf16.mxu0 %v12843_v11  ;;  %v12848_v47 = vld [vmem:[%s17125_s5 + $0x118] sm:$0xff]   ;;  %v12862_v62 = vld [vmem:[%s17125_s5 + $0x1b0] sm:$0xff]  }
 0x475   : > { %12266 = vmatprep.subr.bf16.mxu1 %v12845_v13  ;;  %v6381_v43 = vld [vmem:[#allocation4 + $0x47] ss:$2 sm:$0xf]  ;;  %v6383_v7 = vld [vmem:[#allocation4 + $0x48] ss:$2 sm:$0xf] }
 0x476   : > { %6351 = vst [vmem:[#allocation4 + $0x58] sm:$0xff] %v6335_v3  ;;  %v6296_v12 = vmax.f32 %v6280_v50, 0.0  ;;  %v6281_v1 = vadd.f32 %v15784_v31, %v6261_v36  ;;  %v12154_v4 = vpop.f32.mrb[60].mxu1  ;;  %v6388_v29 = vmax.f32 %v6381_v43, %v6383_v7  ;;  %v12865_v11 = vld [vmem:[%s17125_s5 + $0x1f8] sm:$0xff]   ;;  %v12867_v36 = vld [vmem:[%s17125_s5 + $0x240] sm:$0xff]  }
 0x477   : > { %v12155_v39 = vpop.f32.mrb[61].mxu1  ;;  %12233 = vmatpush3.bf16.msra.mxu0 %v12844_v9  ;;  %12267 = vmatpush3.bf16.msra.mxu1 %v12846_v35  ;;  %v12864_v13 = vld [vmem:[%s17125_s5 + $0x138] sm:$0xff]  }
 0x478   : > { %v6316_v30 = vmul.f32 %v15792_v52, %v6296_v12  ;;  %v6297_v40 = vmax.f32 %v6281_v1, 0.0  ;;  %v12156_v55 = vadd.f32 %v12155_v39, %v12154_v4  ;;  %v12157_v18 = vpop.f32.mrb[62].mxu1  ;;  %12234 = vmatprep.subr.bf16.mxu0 %v12847_v25  ;;  %12268 = vmatprep.subr.bf16.mxu1 %v12849_v44  ;;  %v7020_v43 = vld [vmem:[#allocation5 + $0x31] sm:$0xff] }
 0x479   : > { %v12158_v58 = vpop.f32.mrb[63].mxu1  ;;  %v6410_v28 = vld [vmem:[#allocation5 + $0x18] sm:$0xff] }
 0x47a   : > { %v6336_v5 = vadd.f32 %v15798_v60, %v6316_v30  ;;  %v6317_v63 = vmul.f32 %v15792_v52, %v6297_v40  ;;  %v6262_v19 = vadd.f32 %v12156_v55, %v15777_v56  ;;  %v12159_v61 = vadd.f32 %v12158_v58, %v12157_v18  ;;  %v6417_v34 = vld [vmem:[#allocation5 + $0x11] sm:$0xff] }
 0x47b   : > { %12235 = vmatpush3.bf16.msra.mxu0 %v12848_v47  ;;  %12269 = vmatpush3.bf16.msra.mxu1 %v12850_v20  ;;  %v6457_v37 = vld [vmem:[#allocation5 + $0x12] sm:$0xff]  ;;  %v6413_v25 = vpack.c.bf16 %v6410_v28, %v15833_v23 }
 0x47c   : > { %6352 = vst [vmem:[#allocation4 + $0x60] sm:$0xff] %v6336_v5  ;;  %v6337_v38 = vadd.f32 %v15798_v60, %v6317_v63  ;;  %v6282_v45 = vadd.f32 %v15784_v31, %v6262_v19  ;;  %v6263_v56 = vadd.f32 %v12159_v61, %v15779_v27  ;;  %12236 = vmatprep.subr.bf16.mxu0 %v12851_v32  ;;  %v12856_v27 = vld [vmem:[%s17125_s5 + $0x128] sm:$0xff]   ;;  %v12868_v5 = vld [vmem:[%s17125_s5 + $0x200] sm:$0xff]  }
 0x47d   : > { %12270 = vmatprep.subr.bf16.mxu1 %v12853_v15  ;;  %v6385_v26 = vld [vmem:[#allocation4 + $0x57] ss:$2 sm:$0xf]  ;;  %v6387_v33 = vld [vmem:[#allocation4 + $0x58] ss:$2 sm:$0xf]  ;;  %v6816_v58 = vpack.c.bf16 %v6457_v37, %v15837_v41  ;;  %v6808_v19 = vpack.c.bf16 %v6417_v34, %v15835_v54 }
 0x47e   : > { %6353 = vst [vmem:[#allocation4 + $0x68] sm:$0xff] %v6337_v38  ;;  %v6298_v59 = vmax.f32 %v6282_v45, 0.0  ;;  %v6283_v46 = vadd.f32 %v15784_v31, %v6263_v56  ;;  %v6389_v10 = vmax.f32 %v6385_v26, %v6387_v33  ;;  %v12859_v31 = vld [vmem:[%s17125_s5 + $0x170] sm:$0xff]   ;;  %v12869_v61 = vld [vmem:[%s17125_s5 + $0x248] sm:$0xff]   ;;  %v12874_v33 = vld [vmem:[%s17125_s5 + $0x218] sm:$0xff]  }
 0x47f   : > { %12237 = vmatpush3.bf16.msra.mxu0 %v12852_v0  ;;  %12271 = vmatpush3.bf16.msra.mxu1 %v12854_v6  ;;  %v12870_v6 = vld [vmem:[%s17125_s5 + $0x208] sm:$0xff]   ;;  %v12871_v54 = vld [vmem:[%s17125_s5 + $0x250] sm:$0xff]  }
 0x480   : > { %v6318_v51 = vmul.f32 %v15792_v52, %v6298_v59  ;;  %v6299_v8 = vmax.f32 %v6283_v46, 0.0  ;;  %v6390_v16 = vmax.f32 %v6388_v29, %v6389_v10  ;;  %12238 = vmatprep.subr.bf16.mxu0 %v12855_v14  ;;  %12272 = vmatprep.subr.bf16.mxu1 %v12857_v48  ;;  %v12872_v38 = vld [vmem:[%s17125_s5 + $0x210] sm:$0xff]   ;;  %v12873_v14 = vld [vmem:[%s17125_s5 + $0x258] sm:$0xff]   ;;  %v7023_v48 = vpack.c.bf16 %v7020_v43, %v7020_v43  ;;  %v12875_v59 = vld [vmem:[%s17125_s5 + $0x260] sm:$0xff]  }
 0x481   : > { %v7015_v46 = vpack.c.bf16 %v15848_v21, %v15848_v21  ;;  %v12876_v29 = vld [vmem:[%s17125_s5 + $0x220] sm:$0xff]   ;;  %v12878_v21 = vld [vmem:[%s17125_s5 + $0x228] sm:$0xff]  }
 0x482   : > { %v6338_v42 = vadd.f32 %v15798_v60, %v6318_v51  ;;  %v6319_v49 = vmul.f32 %v15792_v52, %v6299_v8  ;;  %6391 = vst [vmem:[#allocation5 + $0x20] sm:$0xf] %v6390_v16  ;;  %v12863_v52 = vld [vmem:[%s17125_s5 + $0x178] sm:$0xff]   ;;  %v12880_v51 = vld [vmem:[%s17125_s5 + $0x230] sm:$0xff]  }
 0x483   : > { %12239 = vmatpush3.bf16.msra.mxu0 %v12856_v27  ;;  %12273 = vmatpush3.bf16.msra.mxu1 %v12858_v57  ;;  %v12877_v27 = vld [vmem:[%s17125_s5 + $0x268] sm:$0xff]   ;;  %v12879_v57 = vld [vmem:[%s17125_s5 + $0x270] sm:$0xff]   ;;  %v12881_v8 = vld [vmem:[%s17125_s5 + $0x278] sm:$0xff]  }
 0x484   : > { %6354 = vst [vmem:[#allocation4 + $0x70] sm:$0xff] %v6338_v42  ;;  %v6339_v53 = vadd.f32 %v15798_v60, %v6319_v49  ;;  %12240 = vmatprep.subr.bf16.mxu0 %v12859_v31  ;;  %12274 = vmatprep.subr.bf16.mxu1 %v12861_v17  ;;  %v12866_v60 = vld [vmem:[%s17125_s5 + $0x1b8] sm:$0xff]   ;;  %v7479_v49 = vld [vmem:[%s17127_s7] sm:$0xff] }
 0x485   : > { %v6393_v44 = vld [vmem:[#allocation4 + $0x67] ss:$2 sm:$0xf]  ;;  %v6395_v12 = vld [vmem:[#allocation4 + $0x68] ss:$2 sm:$0xf] }
 0x486   : > { %6355 = vst [vmem:[#allocation4 + $0x78] sm:$0xff] %v6339_v53  ;;  %v6400_v39 = vmax.f32 %v6393_v44, %v6395_v12  ;;  %v12882_v16 = vld [vmem:[%s17125_s5 + $0x238] sm:$0xff]   ;;  %v7500_v12 = vld [vmem:[%s17127_s7 + $0xa8] sm:$0xff] }
 0x487   : > { %12241 = vmatpush3.bf16.msra.mxu0 %v12860_v2  ;;  %12275 = vmatpush3.bf16.msra.mxu1 %v12862_v62  ;;  %v7217_v17 = vld [vmem:[#allocation5 + $0x32] sm:$0xff]  ;;  %v7480_v62 = vld [vmem:[%s17127_s7 + $0x8] sm:$0xff] }
 0x488   : > { %12242 = vmatprep.subr.bf16.mxu0 %v12863_v52  ;;  %12276 = vmatprep.subr.bf16.mxu1 %v12865_v11  ;;  %v7220_v42 = vpack.c.bf16 %v7217_v17, %v7217_v17  ;;  %v7483_v2 = vld [vmem:[%s17127_s7 + $0x20] sm:$0xff]  ;;  %v7484_v52 = vld [vmem:[%s17127_s7 + $0x28] sm:$0xff] }
 0x489   : > { %v6411_v22 = vld [vmem:[#allocation5 + $0x20] sm:$0xff]  ;;  %v10558_v53 = vcombine.high %v7479_v49, %v7483_v2  ;;  %v10557_v11 = vcombine.low %v7479_v49, %v7483_v2  ;;  %v7543_v49 = vld [vmem:[%s17127_s7 + $0x200] sm:$0xff] }
 0x48a   : > { %v6418_v24 = vld [vmem:[#allocation5 + $0x19] sm:$0xff]  ;;  %v6465_v35 = vpack.c.bf16 %v6411_v22, %v6410_v28  ;;  %v6414_v15 = vpack.c.bf16 %v6411_v22, %v6411_v22 }
 0x48b   : > { %v6458_v9 = vld [vmem:[#allocation5 + $0x1a] sm:$0xff]  ;;  %v6421_v3 = vpack.c.bf16 %v6418_v24, %v6417_v34  ;;  %12243 = vmatpush3.bf16.msra.mxu0 %v12864_v13  ;;  %12277 = vmatpush3.bf16.msra.mxu1 %v12866_v60  ;;  %v10559_v13 = vcombine.low %v7480_v62, %v7484_v52  ;;  %v10560_v60 = vcombine.high %v7480_v62, %v7484_v52 }
 0x48c   : > { %v15963_v50 = vpack.c.bf16 %v6458_v9, %v6457_v37  ;;  %6635 = vmatprep.mubr.bf16.mxu0 %v6465_v35  ;;  %12296 = vmatprep.subr.bf16.mxu0 %v12867_v36  ;;  %v7487_v28 = vld [vmem:[%s17127_s7 + $0x40] sm:$0xff]  ;;  %v7488_v37 = vld [vmem:[%s17127_s7 + $0x48] sm:$0xff] }
 0x48d   : > { %6787 = vmatprep.mubr.bf16.mxu1 %v6421_v3  ;;  %v6397_v1 = vld [vmem:[#allocation4 + $0x77] ss:$2 sm:$0xf]  ;;  %v6399_v4 = vld [vmem:[#allocation4 + $0x78] ss:$2 sm:$0xf]  ;;  %9057 = vmatprep.subr.bf16.mxu1 %v10558_v53 }
 0x48e   : > { %6636 = vmatmul.mubr.bf16.gmra.mrb[68].mxu0 %v15963_v50  ;;  %6788 = vmatmul.mubr.bf16.gmra.mrb[68].mxu1 %v6413_v25  ;;  %v6401_v47 = vmax.f32 %v6397_v1, %v6399_v4  ;;  %v7491_v34 = vld [vmem:[%s17127_s7 + $0x60] sm:$0xff]  ;;  %v7544_v62 = vld [vmem:[%s17127_s7 + $0x208] sm:$0xff] }
 0x48f   : > { %v7499_v36 = vld [vmem:[%s17127_s7 + $0xa0] sm:$0xff]  ;;  %v7548_v52 = vld [vmem:[%s17127_s7 + $0x228] sm:$0xff] }
 0x490   : > { %v6402_v20 = vmax.f32 %v6400_v39, %v6401_v47  ;;  %v7503_v47 = vld [vmem:[%s17127_s7 + $0xc0] sm:$0xff] }
 0x491   : > { %v7547_v2 = vld [vmem:[%s17127_s7 + $0x220] sm:$0xff] }
 0x492   : > { %6403 = vst [vmem:[#allocation5 + $0x28] sm:$0xf] %v6402_v20  ;;  %v7507_v20 = vld [vmem:[%s17127_s7 + $0xe0] sm:$0xff]  ;;  %v10622_v53 = vcombine.high %v7543_v49, %v7547_v2 }
 0x499   : > { %v6463_v30 = vld [vmem:[#allocation5 + $0x28] sm:$0xff] }
 0x49a   : > { %v6419_v40 = vld [vmem:[#allocation5 + $0x21] sm:$0xff]  ;;  %v6466_v23 = vpack.c.bf16 %v6463_v30, %v6463_v30  ;;  %v7019_v63 = vld [vmem:[#allocation5 + $0x29] sm:$0xff]  ;;  %v7014_v56 = vpack.c.bf16 %v6463_v30, %v6411_v22  ;;  %v10566_v22 = vcombine.high %v7487_v28, %v7491_v34 }
 0x49b   : > { %v15970_v55 = vld [vmem:[#allocation5 + $0x22] sm:$0xff]  ;;  %v6422_v18 = vpack.c.bf16 %v6419_v40, %v6419_v40  ;;  %v7022_v41 = vpack.c.bf16 %v7019_v63, %v6419_v40  ;;  %v6815_v7 = vld [vmem:[#allocation5 + $0x2a] sm:$0xff]  ;;  %v6809_v45 = vpack.c.bf16 %v6419_v40, %v6418_v24  ;;  %v6810_v10 = vpack.c.bf16 %v7019_v63, %v7019_v63 }
 0x49c   : > { %v6462_v32 = vpack.c.bf16 %v15970_v55, %v15970_v55  ;;  %6643 = vmatprep.mubr.bf16.mxu0 %v6466_v23  ;;  %v6817_v0 = vpack.c.bf16 %v15970_v55, %v6458_v9  ;;  %v6818_v26 = vpack.c.bf16 %v6815_v7, %v6815_v7  ;;  %v7219_v31 = vpack.c.bf16 %v6815_v7, %v15970_v55  ;;  %v7492_v24 = vld [vmem:[%s17127_s7 + $0x68] sm:$0xff] }
 0x49d   : > { %6795 = vmatprep.mubr.bf16.mxu1 %v6422_v18  ;;  %v10565_v9 = vcombine.low %v7487_v28, %v7491_v34  ;;  %v10567_v35 = vcombine.low %v7488_v37, %v7492_v24  ;;  %v7504_v30 = vld [vmem:[%s17127_s7 + $0xc8] sm:$0xff]  ;;  %v10582_v40 = vcombine.high %v7503_v47, %v7507_v20  ;;  %v10581_v23 = vcombine.low %v7503_v47, %v7507_v20  ;;  %v7551_v28 = vld [vmem:[%s17127_s7 + $0x240] sm:$0xff] }
 0x49e   : > { %6644 = vmatmul.mubr.bf16.gmra.mrb[72].mxu0 %v6462_v32  ;;  %6796 = vmatmul.mubr.bf16.gmra.mrb[72].mxu1 %v6414_v15  ;;  %v7508_v55 = vld [vmem:[%s17127_s7 + $0xe8] sm:$0xff]  ;;  %v7511_v15 = vld [vmem:[%s17127_s7 + $0x100] sm:$0xff] }
 0x49f   : > { %6979 = vmatprep.mubr.bf16.mxu0 %v6816_v58  ;;  %7184 = vmatprep.mubr.bf16.mxu1 %v6421_v3  ;;  %v10568_v3 = vcombine.high %v7488_v37, %v7492_v24  ;;  %v10583_v18 = vcombine.low %v7504_v30, %v7508_v55  ;;  %v10584_v32 = vcombine.high %v7504_v30, %v7508_v55  ;;  %v7515_v58 = vld [vmem:[%s17127_s7 + $0x120] sm:$0xff]  ;;  %v7520_v7 = vld [vmem:[%s17127_s7 + $0x148] sm:$0xff] }
 0x4a0   : > { %v10589_v63 = vcombine.low %v7511_v15, %v7515_v58  ;;  %v7555_v34 = vld [vmem:[%s17127_s7 + $0x260] sm:$0xff]  ;;  %v7552_v37 = vld [vmem:[%s17127_s7 + $0x248] sm:$0xff] }
 0x4a1   : > { %v7556_v24 = vld [vmem:[%s17127_s7 + $0x268] sm:$0xff]  ;;  %v7567_v47 = vld [vmem:[%s17127_s7 + $0x2c0] sm:$0xff] }
 0x4a2   : > { %v7571_v20 = vld [vmem:[%s17127_s7 + $0x2e0] sm:$0xff]  ;;  %v7568_v30 = vld [vmem:[%s17127_s7 + $0x2c8] sm:$0xff] }
 0x4a3   : > { %v7572_v55 = vld [vmem:[%s17127_s7 + $0x2e8] sm:$0xff] }
 0x4a6   : > { %6980 = vmatmul.mubr.bf16.vlgmr.msra.gmra.mrb[76].mxu0 %v6808_v19  ;;  %7185 = vmatmul.mubr.bf16.vlgmr.msra.gmra.mrb[76].mxu1 %v6413_v25  ;;  %v7496_v25 = vld [vmem:[%s17127_s7 + $0x88] sm:$0xff]  ;;  %v10590_v19 = vcombine.high %v7511_v15, %v7515_v58  ;;  %v7575_v15 = vld [vmem:[%s17127_s7 + $0x300] sm:$0xff] }
 0x4a7   : > { %12297 = vmatpush3.bf16.msra.mxu0 %v12868_v5  ;;  %6987 = vmatprep.mubr.bf16.mxu0 %v6817_v0  ;;  %v10575_v4 = vcombine.low %v7496_v25, %v7500_v12  ;;  %v10576_v39 = vcombine.high %v7496_v25, %v7500_v12  ;;  %v7512_v5 = vld [vmem:[%s17127_s7 + $0x108] sm:$0xff]  ;;  %v7519_v0 = vld [vmem:[%s17127_s7 + $0x140] sm:$0xff] }
 0x4a8   : > { %7192 = vmatprep.mubr.bf16.mxu1 %v7022_v41  ;;  %12298 = vmatprep.subr.bf16.mxu0 %v12869_v61  ;;  %v7516_v61 = vld [vmem:[%s17127_s7 + $0x128] sm:$0xff]  ;;  %v7523_v41 = vld [vmem:[%s17127_s7 + $0x160] sm:$0xff] }
 0x4a9   : > { %9058 = vmatpush1.bf16.msra.mxu1 %v10557_v11  ;;  %v10598_v43 = vcombine.high %v7519_v0, %v7523_v41  ;;  %v10621_v11 = vcombine.low %v7543_v49, %v7547_v2  ;;  %v7560_v25 = vld [vmem:[%s17127_s7 + $0x288] sm:$0xff]  ;;  %v7579_v58 = vld [vmem:[%s17127_s7 + $0x320] sm:$0xff] }
 0x4aa   : > { %9059 = vmatprep.subr.bf16.mxu1 %v10566_v22  ;;  %v10630_v22 = vcombine.high %v7551_v28, %v7555_v34  ;;  %v7564_v12 = vld [vmem:[%s17127_s7 + $0x2a8] sm:$0xff]  ;;  %v16222_v49 = vld [vmem:[%s17127_s7 + $0x400] sm:$0xff] }
 0x4ab   : > { %12299 = vmatpush3.bf16.msra.mxu0 %v12870_v6  ;;  %v10591_v6 = vcombine.low %v7512_v5, %v7516_v61  ;;  %v16227_v2 = vld [vmem:[%s17127_s7 + $0x420] sm:$0xff] }
 0x4ac   : > { %12300 = vmatprep.subr.bf16.mxu0 %v12871_v54  ;;  %v10592_v54 = vcombine.high %v7512_v5, %v7516_v61  ;;  %v7576_v5 = vld [vmem:[%s17127_s7 + $0x308] sm:$0xff]  ;;  %v10653_v61 = vcombine.low %v7575_v15, %v7579_v58 }
 0x4ad   : > { %9060 = vmatpush1.bf16.msra.mxu1 %v10565_v9  ;;  %v10629_v9 = vcombine.low %v7551_v28, %v7555_v34 }
 0x4ae   : > { %6988 = vmatmul.mubr.bf16.gmra.mrb[80].mxu0 %v6809_v45  ;;  %7193 = vmatmul.mubr.bf16.gmra.mrb[80].mxu1 %v7014_v56  ;;  %v7527_v45 = vld [vmem:[%s17127_s7 + $0x180] sm:$0xff] }
 0x4af   : > { %12301 = vmatpush3.bf16.msra.mxu0 %v12872_v38  ;;  %6995 = vmatprep.mubr.bf16.mxu0 %v6818_v26  ;;  %v7524_v38 = vld [vmem:[%s17127_s7 + $0x168] sm:$0xff] }
 0x4b0   : > { %12302 = vmatprep.subr.bf16.mxu0 %v12873_v14  ;;  %7200 = vmatprep.mubr.bf16.mxu1 %v7023_v48  ;;  %v10600_v56 = vcombine.high %v7520_v7, %v7524_v38  ;;  %v7531_v14 = vld [vmem:[%s17127_s7 + $0x1a0] sm:$0xff]  ;;  %v7528_v48 = vld [vmem:[%s17127_s7 + $0x188] sm:$0xff] }
 0x4b1   : > { %v7532_v26 = vld [vmem:[%s17127_s7 + $0x1a8] sm:$0xff] }
 0x4b3   : > { %12303 = vmatpush3.bf16.msra.mxu0 %v12874_v33  ;;  %v10597_v33 = vcombine.low %v7519_v0, %v7523_v41 }
 0x4b4   : > { %12304 = vmatprep.subr.bf16.mxu0 %v12875_v59  ;;  %v10599_v59 = vcombine.low %v7520_v7, %v7524_v38  ;;  %v7588_v38 = vld [vmem:[%s17127_s7 + $0x368] sm:$0xff] }
 0x4b6   : > { %6996 = vmatmul.mubr.bf16.gmra.mrb[84].mxu0 %v6810_v10  ;;  %7201 = vmatmul.mubr.bf16.gmra.mrb[84].mxu1 %v7015_v46  ;;  %v10606_v46 = vcombine.high %v7527_v45, %v7531_v14  ;;  %v10605_v10 = vcombine.low %v7527_v45, %v7531_v14 }
 0x4b7   : > { %12305 = vmatpush3.bf16.msra.mxu0 %v12876_v29  ;;  %7381 = vmatprep.mubr.bf16.mxu0 %v15963_v50  ;;  %v10608_v29 = vcombine.high %v7528_v48, %v7532_v26 }
 0x4b8   : > { %12306 = vmatprep.subr.bf16.mxu0 %v12877_v27  ;;  %v10607_v27 = vcombine.low %v7528_v48, %v7532_v26  ;;  %v7591_v48 = vld [vmem:[%s17127_s7 + $0x380] sm:$0xff] }
 0x4b9   : > { %v7595_v26 = vld [vmem:[%s17127_s7 + $0x3a0] sm:$0xff] }
 0x4bb   : > { %12307 = vmatpush3.bf16.msra.mxu0 %v12878_v21  ;;  %v7535_v21 = vld [vmem:[%s17127_s7 + $0x1c0] sm:$0xff] }
 0x4bc   : > { %12308 = vmatprep.subr.bf16.mxu0 %v12879_v57  ;;  %v7539_v57 = vld [vmem:[%s17127_s7 + $0x1e0] sm:$0xff] }
 0x4bf   : > { %12309 = vmatpush3.bf16.msra.mxu0 %v12880_v51  ;;  %v7536_v51 = vld [vmem:[%s17127_s7 + $0x1c8] sm:$0xff] }
 0x4c0   : > { %12310 = vmatprep.subr.bf16.mxu0 %v12881_v8  ;;  %v10614_v8 = vcombine.high %v7535_v21, %v7539_v57 }
 0x4c3   : > { %12311 = vmatpush3.bf16.msra.mxu0 %v12882_v16  ;;  %v7540_v16 = vld [vmem:[%s17127_s7 + $0x1e8] sm:$0xff] }
 0x4c4   : > { %9139 = vmatprep.subr.bf16.mxu0 %v10560_v60  ;;  %v10615_v17 = vcombine.low %v7536_v51, %v7540_v16  ;;  %v10624_v60 = vcombine.high %v7544_v62, %v7548_v52 }
 0x4c6   : > { %7382 = vmatmul.mubr.bf16.vlgmr.msra.gmra.mrb[88].mxu0 %v15963_v50  ;;  %v7495_v50 = vld [vmem:[%s17127_s7 + $0x80] sm:$0xff] }
 0x4c7   : > { %7389 = vmatprep.mubr.bf16.mxu0 %v7219_v31  ;;  %9140 = vmatpush1.bf16.msra.mxu0 %v10559_v13  ;;  %v10574_v44 = vcombine.high %v7495_v50, %v7499_v36  ;;  %v10573_v1 = vcombine.low %v7495_v50, %v7499_v36  ;;  %v10623_v13 = vcombine.low %v7544_v62, %v7548_v52  ;;  %v7559_v50 = vld [vmem:[%s17127_s7 + $0x280] sm:$0xff]  ;;  %v16232_v62 = vld [vmem:[%s17127_s7 + $0x408] sm:$0xff] }
 0x4c8   : > { %9141 = vmatprep.subr.bf16.mxu0 %v10568_v3  ;;  %v10632_v3 = vcombine.high %v7552_v37, %v7556_v24  ;;  %v7563_v36 = vld [vmem:[%s17127_s7 + $0x2a0] sm:$0xff]  ;;  %v10686_v52 = vcombine.high %v16222_v49, %v16227_v2 }
 0x4c9   : > { %9061 = vmatprep.subr.bf16.mxu1 %v10574_v44  ;;  %v10638_v44 = vcombine.high %v7559_v50, %v7563_v36 }
 0x4ca   : > { %9062 = vmatpush1.bf16.msra.mxu1 %v10573_v1  ;;  %v10637_v1 = vcombine.low %v7559_v50, %v7563_v36 }
 0x4cb   : > { %9142 = vmatpush1.bf16.msra.mxu0 %v10567_v35  ;;  %9063 = vmatprep.subr.bf16.mxu1 %v10582_v40  ;;  %v10631_v35 = vcombine.low %v7552_v37, %v7556_v24  ;;  %v10646_v40 = vcombine.high %v7567_v47, %v7571_v20 }
 0x4cc   : > { %9143 = vmatprep.subr.bf16.mxu0 %v10576_v39  ;;  %v10640_v39 = vcombine.high %v7560_v25, %v7564_v12 }
 0x4ce   : > { %7390 = vmatmul.mubr.bf16.gmra.mrb[92].mxu0 %v7219_v31  ;;  %9064 = vmatpush1.bf16.msra.mxu1 %v10581_v23  ;;  %v10613_v31 = vcombine.low %v7535_v21, %v7539_v57  ;;  %v10645_v23 = vcombine.low %v7567_v47, %v7571_v20 }
 0x4cf   : > { %7397 = vmatprep.mubr.bf16.mxu0 %v7220_v42  ;;  %9144 = vmatpush1.bf16.msra.mxu0 %v10575_v4  ;;  %v10639_v4 = vcombine.low %v7560_v25, %v7564_v12 }
 0x4d0   : > { %9145 = vmatprep.subr.bf16.mxu0 %v10584_v32  ;;  %9065 = vmatprep.subr.bf16.mxu1 %v10590_v19  ;;  %v10648_v32 = vcombine.high %v7568_v30, %v7572_v55  ;;  %v7580_v19 = vld [vmem:[%s17127_s7 + $0x328] sm:$0xff] }
 0x4d1   : > { %v10655_v0 = vcombine.low %v7576_v5, %v7580_v19  ;;  %v10656_v41 = vcombine.high %v7576_v5, %v7580_v19 }
 0x4d2   : > { %9066 = vmatpush1.bf16.msra.mxu1 %v10589_v63  ;;  %v10654_v63 = vcombine.high %v7575_v15, %v7579_v58 }
 0x4d3   : > { %9146 = vmatpush1.bf16.msra.mxu0 %v10583_v18  ;;  %9067 = vmatprep.subr.bf16.mxu1 %v10598_v43  ;;  %v10647_v18 = vcombine.low %v7568_v30, %v7572_v55  ;;  %v7584_v43 = vld [vmem:[%s17127_s7 + $0x348] sm:$0xff] }
 0x4d4   : > { %9147 = vmatprep.subr.bf16.mxu0 %v10592_v54  ;;  %v7587_v54 = vld [vmem:[%s17127_s7 + $0x360] sm:$0xff]  ;;  %v10664_v14 = vcombine.high %v7584_v43, %v7588_v38 }
 0x4d6   : > { %7398 = vmatmul.mubr.bf16.gmra.mrb[96].mxu0 %v7220_v42  ;;  %9068 = vmatpush1.bf16.msra.mxu1 %v10597_v33  ;;  %v10616_v42 = vcombine.high %v7536_v51, %v7540_v16  ;;  %v7592_v33 = vld [vmem:[%s17127_s7 + $0x388] sm:$0xff] }
 0x4d7   : > { %9148 = vmatpush1.bf16.msra.mxu0 %v10591_v6  ;;  %9069 = vmatprep.subr.bf16.mxu1 %v10606_v46  ;;  %v7583_v6 = vld [vmem:[%s17127_s7 + $0x340] sm:$0xff]  ;;  %v10670_v46 = vcombine.high %v7591_v48, %v7595_v26  ;;  %v7604_v16 = vld [vmem:[%s17127_s7 + $0x3e8] sm:$0xff] }
 0x4d8   : > { %9149 = vmatprep.subr.bf16.mxu0 %v10600_v56  ;;  %v10662_v7 = vcombine.high %v7583_v6, %v7587_v54  ;;  %v10661_v45 = vcombine.low %v7583_v6, %v7587_v54  ;;  %v10663_v56 = vcombine.low %v7584_v43, %v7588_v38 }
 0x4da   : > { %9070 = vmatpush1.bf16.msra.mxu1 %v10605_v10  ;;  %v7599_v10 = vld [vmem:[%s17127_s7 + $0x3c0] sm:$0xff] }
 0x4db   : > { %9150 = vmatpush1.bf16.msra.mxu0 %v10599_v59  ;;  %9071 = vmatprep.subr.bf16.mxu1 %v10614_v8  ;;  %v10669_v59 = vcombine.low %v7591_v48, %v7595_v26  ;;  %v7600_v8 = vld [vmem:[%s17127_s7 + $0x3c8] sm:$0xff] }
 0x4dc   : > { %9151 = vmatprep.subr.bf16.mxu0 %v10608_v29  ;;  %v7596_v29 = vld [vmem:[%s17127_s7 + $0x3a8] sm:$0xff] }
 0x4dd   : > { %v10671_v21 = vcombine.low %v7592_v33, %v7596_v29  ;;  %v10672_v57 = vcombine.high %v7592_v33, %v7596_v29 }
 0x4de   : > { %9072 = vmatpush1.bf16.msra.mxu1 %v10613_v31  ;;  %v10680_v31 = vcombine.high %v7600_v8, %v7604_v16 }
 0x4df   : > { %9152 = vmatpush1.bf16.msra.mxu0 %v10607_v27  ;;  %9073 = vmatprep.subr.bf16.mxu1 %v10622_v53  ;;  %v7603_v27 = vld [vmem:[%s17127_s7 + $0x3e0] sm:$0xff]  ;;  %v10685_v53 = vcombine.low %v16222_v49, %v16227_v2  ;;  %v7632_v2 = vld [vmem:[%s17127_s7 + $0x4c8] sm:$0xff] }
 0x4e0   : > { %9153 = vmatprep.subr.bf16.mxu0 %v10616_v42  ;;  %v10678_v51 = vcombine.high %v7599_v10, %v7603_v27  ;;  %v10679_v42 = vcombine.low %v7600_v8, %v7604_v16  ;;  %v7635_v49 = vld [vmem:[%s17127_s7 + $0x4e0] sm:$0xff] }
 0x4e2   : > { %9074 = vmatpush1.bf16.msra.mxu1 %v10621_v11  ;;  %v16241_v11 = vld [vmem:[%s17127_s7 + $0x428] sm:$0xff] }
 0x4e3   : > { %9154 = vmatpush1.bf16.msra.mxu0 %v10615_v17  ;;  %9075 = vmatprep.subr.bf16.mxu1 %v10630_v22  ;;  %v10677_v17 = vcombine.low %v7599_v10, %v7603_v27 }
 0x4e4   : > { %9155 = vmatprep.subr.bf16.mxu0 %v10624_v60  ;;  %v10688_v60 = vcombine.high %v16232_v62, %v16241_v11 }
 0x4e6   : > { %9076 = vmatpush1.bf16.msra.mxu1 %v10629_v9 }
 0x4e7   : > { %9156 = vmatpush1.bf16.msra.mxu0 %v10623_v13  ;;  %9077 = vmatprep.subr.bf16.mxu1 %v10638_v44  ;;  %v10687_v13 = vcombine.low %v16232_v62, %v16241_v11  ;;  %v7636_v62 = vld [vmem:[%s17127_s7 + $0x4e8] sm:$0xff] }
 0x4e8   : > { %9157 = vmatprep.subr.bf16.mxu0 %v10632_v3 }
 0x4ea   : > { %9078 = vmatpush1.bf16.msra.mxu1 %v10637_v1 }
 0x4eb   : > { %9158 = vmatpush1.bf16.msra.mxu0 %v10631_v35  ;;  %9079 = vmatprep.subr.bf16.mxu1 %v10646_v40 }
 0x4ec   : > { %9159 = vmatprep.subr.bf16.mxu0 %v10640_v39 }
 0x4ee   : > { %9080 = vmatpush1.bf16.msra.mxu1 %v10645_v23 }
 0x4ef   : > { %9160 = vmatpush1.bf16.msra.mxu0 %v10639_v4  ;;  %9081 = vmatprep.subr.bf16.mxu1 %v10654_v63 }
 0x4f0   : > { %9161 = vmatprep.subr.bf16.mxu0 %v10648_v32 }
 0x4f2   : > { %9082 = vmatpush1.bf16.msra.mxu1 %v10653_v61 }
 0x4f3   : > { %9162 = vmatpush1.bf16.msra.mxu0 %v10647_v18  ;;  %9083 = vmatprep.subr.bf16.mxu1 %v10662_v7 }
 0x4f4   : > { %9163 = vmatprep.subr.bf16.mxu0 %v10656_v41 }
 0x4f6   : > { %9084 = vmatpush1.bf16.msra.mxu1 %v10661_v45 }
 0x4f7   : > { %9164 = vmatpush1.bf16.msra.mxu0 %v10655_v0  ;;  %9085 = vmatprep.subr.bf16.mxu1 %v10670_v46 }
 0x4f8   : > { %9165 = vmatprep.subr.bf16.mxu0 %v10664_v14 }
 0x4fa   : > { %9086 = vmatpush1.bf16.msra.mxu1 %v10669_v59 }
 0x4fb   : > { %9166 = vmatpush1.bf16.msra.mxu0 %v10663_v56  ;;  %9087 = vmatprep.subr.bf16.mxu1 %v10678_v51 }
 0x4fc   : > { %9167 = vmatprep.subr.bf16.mxu0 %v10672_v57 }
 0x4fe   : > { %9088 = vmatpush1.bf16.msra.mxu1 %v10677_v17 }
 0x4ff   : > { %9168 = vmatpush1.bf16.msra.mxu0 %v10671_v21  ;;  %9098 = vmatprep.subr.bf16.mxu1 %v10686_v52 }
 0x500   : > { %9169 = vmatprep.subr.bf16.mxu0 %v10680_v31 }
 0x503   : > { %9170 = vmatpush1.bf16.msra.mxu0 %v10679_v42 }
 0x504   : > { %9180 = vmatprep.subr.bf16.mxu0 %v10688_v60 }
 0x541   : > { %v12176_v28 = vpop.f32.mrb[64].mxu0  ;;  %v12210_v34 = vpop.f32.mrb[64].mxu1 }
 0x542   : > { %v12177_v37 = vpop.f32.mrb[65].mxu0  ;;  %v12211_v22 = vpop.f32.mrb[65].mxu1 }
 0x543   : > { %v12178_v24 = vadd.f32 %v12177_v37, %v12176_v28  ;;  %v12212_v9 = vadd.f32 %v12211_v22, %v12210_v34  ;;  %v12179_v35 = vpop.f32.mrb[66].mxu0  ;;  %v12213_v3 = vpop.f32.mrb[66].mxu1 }
 0x544   : > { %v12180_v50 = vpop.f32.mrb[67].mxu0  ;;  %v12214_v36 = vpop.f32.mrb[67].mxu1 }
 0x545   : > { %v6782_v25 = vadd.f32 %v12212_v9, %v12178_v24  ;;  %v12181_v44 = vadd.f32 %v12180_v50, %v12179_v35  ;;  %v12215_v12 = vadd.f32 %v12214_v36, %v12213_v3 }
 0x547   : > { %v6785_v1 = vadd.f32 %v12215_v12, %v12181_v44 }
 0x561   : > { %v12182_v4 = vpop.f32.mrb[68].mxu0  ;;  %v12216_v39 = vpop.f32.mrb[68].mxu1 }
 0x562   : > { %v12183_v47 = vpop.f32.mrb[69].mxu0  ;;  %v12217_v20 = vpop.f32.mrb[69].mxu1 }
 0x563   : > { %v12184_v30 = vadd.f32 %v12183_v47, %v12182_v4  ;;  %v12218_v40 = vadd.f32 %v12217_v20, %v12216_v39  ;;  %v12185_v55 = vpop.f32.mrb[70].mxu0  ;;  %v12219_v23 = vpop.f32.mrb[70].mxu1 }
 0x564   : > { %v12186_v18 = vpop.f32.mrb[71].mxu0  ;;  %v12220_v32 = vpop.f32.mrb[71].mxu1 }
 0x565   : > { %v6790_v15 = vadd.f32 %v12218_v40, %v12184_v30  ;;  %v12187_v58 = vadd.f32 %v12186_v18, %v12185_v55  ;;  %v12221_v5 = vadd.f32 %v12220_v32, %v12219_v23 }
 0x567   : > { %v6793_v63 = vadd.f32 %v12221_v5, %v12187_v58 }
 0x571   : > { %v12188_v19 = vpop.f32.mrb[72].mxu0  ;;  %v12222_v61 = vpop.f32.mrb[72].mxu1 }
 0x572   : > { %v12189_v0 = vpop.f32.mrb[73].mxu0  ;;  %v12223_v41 = vpop.f32.mrb[73].mxu1 }
 0x573   : > { %v12190_v6 = vadd.f32 %v12189_v0, %v12188_v19  ;;  %v12224_v54 = vadd.f32 %v12223_v41, %v12222_v61  ;;  %v12191_v43 = vpop.f32.mrb[74].mxu0  ;;  %v12225_v7 = vpop.f32.mrb[74].mxu1 }
 0x574   : > { %v12192_v38 = vpop.f32.mrb[75].mxu0  ;;  %v12226_v45 = vpop.f32.mrb[75].mxu1  ;;  %v10555_v7 = vld [vmem:[%s17126_s6 + $0x1] ss:$0 sm:$0xff] }
 0x575   : > { %v6798_v56 = vadd.f32 %v12224_v54, %v12190_v6 }
 0x579   : > { %v12244_v14 = vpop.f32.mrb[76].mxu0  ;;  %v12278_v48 = vpop.f32.mrb[76].mxu1 }
 0x57a   : > { %v12245_v26 = vpop.f32.mrb[77].mxu0  ;;  %v12279_v33 = vpop.f32.mrb[77].mxu1 }
 0x57b   : > { %v12246_v59 = vadd.f32 %v12245_v26, %v12244_v14  ;;  %v12280_v46 = vadd.f32 %v12279_v33, %v12278_v48  ;;  %v12247_v29 = vpop.f32.mrb[78].mxu0  ;;  %v12281_v10 = vpop.f32.mrb[78].mxu1  ;;  %v10556_v14 = vld [vmem:[%s17126_s6 + $0x2] ss:$0 sm:$0xff] }
 0x57c   : > { %v12248_v27 = vpop.f32.mrb[79].mxu0  ;;  %v12282_v21 = vpop.f32.mrb[79].mxu1 }
 0x57d   : > { %v7003_v57 = vadd.f32 %v12246_v59, %v6782_v25  ;;  %v12249_v51 = vadd.f32 %v12248_v27, %v12247_v29  ;;  %v12283_v8 = vadd.f32 %v12282_v21, %v12281_v10 }
 0x57f   : > { %v7208_v16 = vadd.f32 %v12280_v46, %v7003_v57  ;;  %v7004_v31 = vadd.f32 %v12249_v51, %v6785_v1 }
 0x581   : > { %v7209_v17 = vadd.f32 %v12283_v8, %v7004_v31  ;;  %v12250_v42 = vpop.f32.mrb[80].mxu0  ;;  %v12284_v52 = vpop.f32.mrb[80].mxu1 }
 0x582   : > { %v12251_v60 = vpop.f32.mrb[81].mxu0  ;;  %v12285_v28 = vpop.f32.mrb[81].mxu1 }
 0x583   : > { %v12252_v34 = vadd.f32 %v12251_v60, %v12250_v42  ;;  %v12286_v37 = vadd.f32 %v12285_v28, %v12284_v52  ;;  %v12253_v22 = vpop.f32.mrb[82].mxu0  ;;  %v12287_v24 = vpop.f32.mrb[82].mxu1 }
 0x584   : > { %v12254_v9 = vpop.f32.mrb[83].mxu0  ;;  %v12288_v35 = vpop.f32.mrb[83].mxu1 }
 0x585   : > { %v7005_v3 = vadd.f32 %v12252_v34, %v6790_v15  ;;  %v12255_v50 = vadd.f32 %v12254_v9, %v12253_v22  ;;  %v12289_v36 = vadd.f32 %v12288_v35, %v12287_v24 }
 0x587   : > { %v7210_v44 = vadd.f32 %v12286_v37, %v7005_v3  ;;  %v7006_v25 = vadd.f32 %v12255_v50, %v6793_v63  ;;  %v10554_v63 = vld [vmem:[%s17126_s6] ss:$0 sm:$0xff] }
 0x589   : > { %v7211_v12 = vadd.f32 %v12289_v36, %v7006_v25  ;;  %v12256_v4 = vpop.f32.mrb[84].mxu0  ;;  %v12290_v39 = vpop.f32.mrb[84].mxu1 }
 0x58a   : > { %v12257_v1 = vpop.f32.mrb[85].mxu0  ;;  %v12291_v47 = vpop.f32.mrb[85].mxu1 }
 0x58b   : > { %v12258_v20 = vadd.f32 %v12257_v1, %v12256_v4  ;;  %v12259_v30 = vpop.f32.mrb[86].mxu0  ;;  %v12292_v40 = vadd.f32 %v12291_v47, %v12290_v39  ;;  %v12293_v55 = vpop.f32.mrb[86].mxu1 }
 0x58c   : > { %v12260_v23 = vpop.f32.mrb[87].mxu0  ;;  %v12294_v18 = vpop.f32.mrb[87].mxu1 }
 0x58d   : > { %v7007_v32 = vadd.f32 %v12258_v20, %v6798_v56  ;;  %v7619_v23 = vld [vmem:[%s17127_s7 + $0x460] sm:$0xff]  ;;  %v7616_v18 = vld [vmem:[%s17127_s7 + $0x448] sm:$0xff] }
 0x58f   : > { %v7212_v58 = vadd.f32 %v12292_v40, %v7007_v32  ;;  %v7615_v40 = vld [vmem:[%s17127_s7 + $0x440] sm:$0xff]  ;;  %v7620_v32 = vld [vmem:[%s17127_s7 + $0x468] sm:$0xff] }
 0x599   : > { %v12312_v5 = vpop.f32.mrb[88].mxu0 }
 0x59a   : > { %v12313_v19 = vpop.f32.mrb[89].mxu0 }
 0x59b   : > { %v12314_v15 = vadd.f32 %v12313_v19, %v12312_v5  ;;  %v12315_v61 = vpop.f32.mrb[90].mxu0 }
 0x59c   : > { %v12316_v0 = vpop.f32.mrb[91].mxu0 }
 0x59d   : > { %v7405_v41 = vadd.f32 %v12314_v15, %v7208_v16  ;;  %v12317_v6 = vadd.f32 %v12316_v0, %v12315_v61  ;;  %v7623_v15 = vld [vmem:[%s17127_s7 + $0x480] sm:$0xff]  ;;  %v10696_v0 = vcombine.high %v7616_v18, %v7620_v32 }
 0x59f   : > { %v7414_v54 = vadd.f32 %v10554_v63, %v7405_v41  ;;  %v7406_v43 = vadd.f32 %v12317_v6, %v7209_v17 }
 0x5a1   : > { %v7419_v38 = vmax.f32 %v7414_v54, 0.0  ;;  %v7415_v45 = vadd.f32 %v10554_v63, %v7406_v43  ;;  %v12318_v56 = vpop.f32.mrb[92].mxu0  ;;  %v7627_v54 = vld [vmem:[%s17127_s7 + $0x4a0] sm:$0xff] }
 0x5a2   : > { %v12319_v48 = vpop.f32.mrb[93].mxu0 }
 0x5a3   : > { %v7428_v26 = vmul.f32 %v10555_v7, %v7419_v38  ;;  %v7420_v33 = vmax.f32 %v7415_v45, 0.0  ;;  %v12320_v59 = vadd.f32 %v12319_v48, %v12318_v56  ;;  %v12321_v46 = vpop.f32.mrb[94].mxu0  ;;  %v7624_v38 = vld [vmem:[%s17127_s7 + $0x488] sm:$0xff]  ;;  %v10693_v56 = vcombine.low %v7615_v40, %v7619_v23 }
 0x5a4   : > { %v12322_v29 = vpop.f32.mrb[95].mxu0  ;;  %v7628_v45 = vld [vmem:[%s17127_s7 + $0x4a8] sm:$0xff] }
 0x5a5   : > { %v7437_v10 = vadd.f32 %v10556_v14, %v7428_v26  ;;  %v7429_v27 = vmul.f32 %v10555_v7, %v7420_v33  ;;  %v7407_v21 = vadd.f32 %v12320_v59, %v7210_v44  ;;  %v12323_v57 = vadd.f32 %v12322_v29, %v12321_v46  ;;  %v7631_v59 = vld [vmem:[%s17127_s7 + $0x4c0] sm:$0xff] }
 0x5a6   : > { %v10702_v26 = vcombine.high %v7623_v15, %v7627_v54  ;;  %v10704_v33 = vcombine.high %v7624_v38, %v7628_v45  ;;  %v10710_v29 = vcombine.high %v7631_v59, %v7635_v49 }
 0x5a7   : > { %7442 = vst [vmem:[#allocation6] sm:$0xff] %v7437_v10  ;;  %v7438_v51 = vadd.f32 %v10556_v14, %v7429_v27  ;;  %v7416_v8 = vadd.f32 %v10554_v63, %v7407_v21  ;;  %v7408_v16 = vadd.f32 %v12323_v57, %v7211_v12  ;;  %v10712_v10 = vcombine.high %v7632_v2, %v7636_v62  ;;  %v7639_v27 = vld [vmem:[%s17127_s7 + $0x500] sm:$0xff]  ;;  %v7640_v57 = vld [vmem:[%s17127_s7 + $0x508] sm:$0xff] }
 0x5a8   : > { %v7643_v21 = vld [vmem:[%s17127_s7 + $0x520] sm:$0xff] }
 0x5a9   : > { %7443 = vst [vmem:[#allocation6 + $0x8] sm:$0xff] %v7438_v51  ;;  %v7421_v31 = vmax.f32 %v7416_v8, 0.0  ;;  %v7417_v17 = vadd.f32 %v10554_v63, %v7408_v16  ;;  %v12324_v42 = vpop.f32.mrb[96].mxu0  ;;  %v7644_v51 = vld [vmem:[%s17127_s7 + $0x528] sm:$0xff]  ;;  %v10709_v8 = vcombine.low %v7631_v59, %v7635_v49  ;;  %v10711_v16 = vcombine.low %v7632_v2, %v7636_v62 }
 0x5aa   : > { %v12325_v52 = vpop.f32.mrb[97].mxu0  ;;  %v7692_v59 = vld [vmem:[%s17127_s7 + $0x6a8] sm:$0xff] }
 0x5ab   : > { %v7430_v60 = vmul.f32 %v10555_v7, %v7421_v31  ;;  %v7422_v28 = vmax.f32 %v7417_v17, 0.0  ;;  %v12326_v34 = vadd.f32 %v12325_v52, %v12324_v42  ;;  %v12327_v37 = vpop.f32.mrb[98].mxu0  ;;  %v10718_v31 = vcombine.high %v7639_v27, %v7643_v21  ;;  %v7647_v42 = vld [vmem:[%s17127_s7 + $0x540] sm:$0xff] }
 0x5ac   : > { %v12328_v22 = vpop.f32.mrb[99].mxu0  ;;  %v10720_v17 = vcombine.high %v7640_v57, %v7644_v51  ;;  %v7651_v52 = vld [vmem:[%s17127_s7 + $0x560] sm:$0xff]  ;;  %v10719_v37 = vcombine.low %v7640_v57, %v7644_v51 }
 0x5ad   : > { %v7439_v24 = vadd.f32 %v10556_v14, %v7430_v60  ;;  %v7431_v9 = vmul.f32 %v10555_v7, %v7422_v28  ;;  %v7409_v35 = vadd.f32 %v12326_v34, %v7212_v58  ;;  %v7648_v60 = vld [vmem:[%s17127_s7 + $0x548] sm:$0xff]  ;;  %v10717_v34 = vcombine.low %v7639_v27, %v7643_v21 }
 0x5ae   : > { %v7652_v28 = vld [vmem:[%s17127_s7 + $0x568] sm:$0xff]  ;;  %v10726_v22 = vcombine.high %v7647_v42, %v7651_v52 }
 0x5af   : > { %7444 = vst [vmem:[#allocation6 + $0x10] sm:$0xff] %v7439_v24  ;;  %v7440_v3 = vadd.f32 %v10556_v14, %v7431_v9  ;;  %v7418_v50 = vadd.f32 %v10554_v63, %v7409_v35  ;;  %v10694_v63 = vcombine.high %v7615_v40, %v7619_v23  ;;  %v10728_v24 = vcombine.high %v7648_v60, %v7652_v28  ;;  %v7655_v9 = vld [vmem:[%s17127_s7 + $0x580] sm:$0xff] }
 0x5b0   : > { %v7448_v25 = vld [vmem:[#allocation6 + $0x7] ss:$2 sm:$0x3]  ;;  %v7450_v12 = vld [vmem:[#allocation6 + $0x8] ss:$2 sm:$0x3] }
 0x5b1   : > { %7445 = vst [vmem:[#allocation6 + $0x18] sm:$0xff] %v7440_v3  ;;  %v7423_v36 = vmax.f32 %v7418_v50, 0.0  ;;  %v7455_v47 = vmax.f32 %v7448_v25, %v7450_v12  ;;  %v7659_v35 = vld [vmem:[%s17127_s7 + $0x5a0] sm:$0xff]  ;;  %v7656_v3 = vld [vmem:[%s17127_s7 + $0x588] sm:$0xff] }
 0x5b2   : > { %v7660_v50 = vld [vmem:[%s17127_s7 + $0x5a8] sm:$0xff]  ;;  %v10734_v25 = vcombine.high %v7655_v9, %v7659_v35  ;;  %v7671_v23 = vld [vmem:[%s17127_s7 + $0x600] sm:$0xff] }
 0x5b3   : > { %v7432_v44 = vmul.f32 %v10555_v7, %v7423_v36  ;;  %v10725_v36 = vcombine.low %v7647_v42, %v7651_v52  ;;  %v10736_v12 = vcombine.high %v7656_v3, %v7660_v50 }
 0x5b5   : > { %v7441_v4 = vadd.f32 %v10556_v14, %v7432_v44  ;;  %v10695_v14 = vcombine.low %v7616_v18, %v7620_v32  ;;  %v10727_v44 = vcombine.low %v7648_v60, %v7652_v28  ;;  %v7675_v18 = vld [vmem:[%s17127_s7 + $0x620] sm:$0xff]  ;;  %v7672_v32 = vld [vmem:[%s17127_s7 + $0x608] sm:$0xff] }
 0x5b6   : > { %v7452_v39 = vld [vmem:[#allocation6 + $0xf] ss:$2 sm:$0x3]  ;;  %v7454_v1 = vld [vmem:[#allocation6 + $0x10] ss:$2 sm:$0x3] }
 0x5b7   : > { %7446 = vst [vmem:[#allocation6 + $0x20] sm:$0xff] %v7441_v4  ;;  %v7456_v20 = vmax.f32 %v7452_v39, %v7454_v1  ;;  %v7663_v4 = vld [vmem:[%s17127_s7 + $0x5c0] sm:$0xff]  ;;  %v7664_v1 = vld [vmem:[%s17127_s7 + $0x5c8] sm:$0xff] }
 0x5b8   : > { %v7459_v58 = vld [vmem:[#allocation6 + $0x17] ss:$2 sm:$0x3]  ;;  %v7461_v5 = vld [vmem:[#allocation6 + $0x18] ss:$2 sm:$0x3] }
 0x5b9   : > { %v7457_v30 = vmax.f32 %v7455_v47, %v7456_v20  ;;  %v7466_v43 = vmax.f32 %v7459_v58, %v7461_v5  ;;  %v7667_v39 = vld [vmem:[%s17127_s7 + $0x5e0] sm:$0xff]  ;;  %v7668_v47 = vld [vmem:[%s17127_s7 + $0x5e8] sm:$0xff]  ;;  %v10733_v20 = vcombine.low %v7655_v9, %v7659_v35 }
 0x5ba   : > { %v10742_v40 = vcombine.high %v7663_v4, %v7667_v39  ;;  %v7676_v58 = vld [vmem:[%s17127_s7 + $0x628] sm:$0xff]  ;;  %v10741_v5 = vcombine.low %v7663_v4, %v7667_v39 }
 0x5bb   : > { %v7470_v55 = vrot.slane %v7457_v30, 1  ;;  %v16273_v61 = vpack.c.bf16 %v7457_v30, %v7457_v30  ;;  %v10735_v30 = vcombine.low %v7656_v3, %v7660_v50 }
 0x5bd   : > { %v16268_v19 = vpack.c.bf16 %v7470_v55, %v7470_v55  ;;  %v10744_v55 = vcombine.high %v7664_v1, %v7668_v47 }
 0x5be   : > { %v7463_v41 = vld [vmem:[#allocation6 + $0x1f] ss:$2 sm:$0x3]  ;;  %v7465_v6 = vld [vmem:[#allocation6 + $0x20] ss:$2 sm:$0x3] }
 0x5bf   : > { %9089 = vmatprep.mubr.bf16.mxu1 %v16268_v19  ;;  %9171 = vmatprep.mubr.bf16.mxu0 %v16268_v19  ;;  %v7467_v7 = vmax.f32 %v7463_v41, %v7465_v6  ;;  %v7679_v41 = vld [vmem:[%s17127_s7 + $0x640] sm:$0xff] }
 0x5c0   : > { %9090 = vmatmul.mubr.bf16.vlgmr.msra.gmra.mrb[88].mxu1 %v16273_v61  ;;  %9172 = vmatmul.mubr.bf16.vlgmr.msra.gmra.mrb[100].mxu0 %v16273_v61  ;;  %v7683_v6 = vld [vmem:[%s17127_s7 + $0x660] sm:$0xff] }
 0x5c1   : > { %9099 = vmatpush1.bf16.msra.mxu1 %v10685_v53  ;;  %9181 = vmatpush1.bf16.msra.mxu0 %v10687_v13  ;;  %v16294_v48 = vmax.f32 %v7466_v43, %v7467_v7  ;;  %v10701_v53 = vcombine.low %v7623_v15, %v7627_v54  ;;  %v10703_v13 = vcombine.low %v7624_v38, %v7628_v45  ;;  %v7680_v54 = vld [vmem:[%s17127_s7 + $0x648] sm:$0xff] }
 0x5c2   : > { %9100 = vmatprep.subr.bf16.mxu1 %v10694_v63  ;;  %9182 = vmatprep.subr.bf16.mxu0 %v10696_v0  ;;  %v10743_v15 = vcombine.low %v7664_v1, %v7668_v47  ;;  %v10750_v63 = vcombine.high %v7671_v23, %v7675_v18  ;;  %v10752_v0 = vcombine.high %v7672_v32, %v7676_v58  ;;  %v7684_v43 = vld [vmem:[%s17127_s7 + $0x668] sm:$0xff] }
 0x5c3   : > { %v7473_v46 = vrot.slane %v16294_v48, 1  ;;  %v10749_v7 = vcombine.low %v7671_v23, %v7675_v18  ;;  %v10751_v38 = vcombine.low %v7672_v32, %v7676_v58  ;;  %v10758_v45 = vcombine.high %v7679_v41, %v7683_v6 }
 0x5c4   : > { %v10759_v49 = vcombine.low %v7680_v54, %v7684_v43 }
 0x5c5   : > { %9101 = vmatpush1.bf16.msra.mxu1 %v10693_v56  ;;  %9183 = vmatpush1.bf16.msra.mxu0 %v10695_v14  ;;  %v16309_v11 = vpack.c.bf16 %v7473_v46, %v7473_v46  ;;  %v10760_v56 = vcombine.high %v7680_v54, %v7684_v43  ;;  %v7687_v14 = vld [vmem:[%s17127_s7 + $0x680] sm:$0xff]  ;;  %v10757_v46 = vcombine.low %v7679_v41, %v7683_v6 }
 0x5c6   : > { %9102 = vmatprep.subr.bf16.mxu1 %v10702_v26  ;;  %9184 = vmatprep.subr.bf16.mxu0 %v10704_v33  ;;  %v7691_v26 = vld [vmem:[%s17127_s7 + $0x6a0] sm:$0xff]  ;;  %v7688_v33 = vld [vmem:[%s17127_s7 + $0x688] sm:$0xff] }
 0x5c7   : > { %9130 = vmatprep.mubr.bf16.mxu1 %v16309_v11  ;;  %9212 = vmatprep.mubr.bf16.mxu0 %v16309_v11  ;;  %v10766_v2 = vcombine.high %v7687_v14, %v7691_v26  ;;  %v10768_v62 = vcombine.high %v7688_v33, %v7692_v59  ;;  %v10765_v27 = vcombine.low %v7687_v14, %v7691_v26 }
 0x5c8   : > { %v10767_v21 = vcombine.low %v7688_v33, %v7692_v59  ;;  %v16483_v26 = vpack.c.bf16 %v16294_v48, %v16294_v48  ;;  %v7498_v48 = vld [vmem:[%s17127_s7 + $0x98] sm:$0xff] }
 0x5c9   : > { %9103 = vmatpush1.bf16.msra.mxu1 %v10701_v53  ;;  %9185 = vmatpush1.bf16.msra.mxu0 %v10703_v13  ;;  %v7695_v53 = vld [vmem:[%s17127_s7 + $0x6c0] sm:$0xff] }
 0x5ca   : > { %9104 = vmatprep.subr.bf16.mxu1 %v10710_v29  ;;  %9186 = vmatprep.subr.bf16.mxu0 %v10712_v10  ;;  %v7699_v13 = vld [vmem:[%s17127_s7 + $0x6e0] sm:$0xff]  ;;  %v7696_v29 = vld [vmem:[%s17127_s7 + $0x6c8] sm:$0xff] }
 0x5cb   : > { %v7700_v10 = vld [vmem:[%s17127_s7 + $0x6e8] sm:$0xff]  ;;  %v10774_v57 = vcombine.high %v7695_v53, %v7699_v13  ;;  %v10773_v42 = vcombine.low %v7695_v53, %v7699_v13 }
 0x5cc   : > { %v10776_v51 = vcombine.high %v7696_v29, %v7700_v10  ;;  %v10775_v52 = vcombine.low %v7696_v29, %v7700_v10 }
 0x5cd   : > { %9105 = vmatpush1.bf16.msra.mxu1 %v10709_v8  ;;  %9187 = vmatpush1.bf16.msra.mxu0 %v10711_v16  ;;  %v7703_v8 = vld [vmem:[%s17127_s7 + $0x700] sm:$0xff] }
 0x5ce   : > { %9106 = vmatprep.subr.bf16.mxu1 %v10718_v31  ;;  %9188 = vmatprep.subr.bf16.mxu0 %v10720_v17  ;;  %v7707_v16 = vld [vmem:[%s17127_s7 + $0x720] sm:$0xff]  ;;  %v7704_v31 = vld [vmem:[%s17127_s7 + $0x708] sm:$0xff] }
 0x5cf   : > { %v7708_v17 = vld [vmem:[%s17127_s7 + $0x728] sm:$0xff]  ;;  %v10782_v60 = vcombine.high %v7703_v8, %v7707_v16  ;;  %v10781_v9 = vcombine.low %v7703_v8, %v7707_v16 }
 0x5d0   : > { %v10784_v28 = vcombine.high %v7704_v31, %v7708_v17  ;;  %v10783_v35 = vcombine.low %v7704_v31, %v7708_v17  ;;  %v7513_v17 = vld [vmem:[%s17127_s7 + $0x110] sm:$0xff] }
 0x5d1   : > { %9107 = vmatpush1.bf16.msra.mxu1 %v10717_v34  ;;  %9189 = vmatpush1.bf16.msra.mxu0 %v10719_v37  ;;  %v7711_v34 = vld [vmem:[%s17127_s7 + $0x740] sm:$0xff] }
 0x5d2   : > { %9108 = vmatprep.subr.bf16.mxu1 %v10726_v22  ;;  %9190 = vmatprep.subr.bf16.mxu0 %v10728_v24  ;;  %v7715_v37 = vld [vmem:[%s17127_s7 + $0x760] sm:$0xff]  ;;  %v7712_v22 = vld [vmem:[%s17127_s7 + $0x748] sm:$0xff] }
 0x5d3   : > { %v7716_v24 = vld [vmem:[%s17127_s7 + $0x768] sm:$0xff]  ;;  %v10790_v3 = vcombine.high %v7711_v34, %v7715_v37  ;;  %v10789_v4 = vcombine.low %v7711_v34, %v7715_v37 }
 0x5d4   : > { %v10792_v50 = vcombine.high %v7712_v22, %v7716_v24  ;;  %v10791_v39 = vcombine.low %v7712_v22, %v7716_v24  ;;  %v7521_v24 = vld [vmem:[%s17127_s7 + $0x150] sm:$0xff] }
 0x5d5   : > { %9109 = vmatpush1.bf16.msra.mxu1 %v10725_v36  ;;  %9191 = vmatpush1.bf16.msra.mxu0 %v10727_v44  ;;  %v7719_v36 = vld [vmem:[%s17127_s7 + $0x780] sm:$0xff] }
 0x5d6   : > { %9110 = vmatprep.subr.bf16.mxu1 %v10734_v25  ;;  %9192 = vmatprep.subr.bf16.mxu0 %v10736_v12  ;;  %v7723_v44 = vld [vmem:[%s17127_s7 + $0x7a0] sm:$0xff]  ;;  %v7720_v25 = vld [vmem:[%s17127_s7 + $0x788] sm:$0xff] }
 0x5d7   : > { %v7724_v12 = vld [vmem:[%s17127_s7 + $0x7a8] sm:$0xff]  ;;  %v10798_v1 = vcombine.high %v7719_v36, %v7723_v44  ;;  %v10797_v23 = vcombine.low %v7719_v36, %v7723_v44 }
 0x5d8   : > { %v10800_v47 = vcombine.high %v7720_v25, %v7724_v12  ;;  %v10799_v18 = vcombine.low %v7720_v25, %v7724_v12  ;;  %v7529_v12 = vld [vmem:[%s17127_s7 + $0x190] sm:$0xff] }
 0x5d9   : > { %9111 = vmatpush1.bf16.msra.mxu1 %v10733_v20  ;;  %9193 = vmatpush1.bf16.msra.mxu0 %v10735_v30  ;;  %v7727_v20 = vld [vmem:[%s17127_s7 + $0x7c0] sm:$0xff] }
 0x5da   : > { %9112 = vmatprep.subr.bf16.mxu1 %v10742_v40  ;;  %9194 = vmatprep.subr.bf16.mxu0 %v10744_v55  ;;  %v7731_v30 = vld [vmem:[%s17127_s7 + $0x7e0] sm:$0xff]  ;;  %v7728_v40 = vld [vmem:[%s17127_s7 + $0x7c8] sm:$0xff] }
 0x5db   : > { %v7732_v55 = vld [vmem:[%s17127_s7 + $0x7e8] sm:$0xff]  ;;  %v10806_v32 = vcombine.high %v7727_v20, %v7731_v30  ;;  %v10805_v41 = vcombine.low %v7727_v20, %v7731_v30 }
 0x5dc   : > { %v10808_v58 = vcombine.high %v7728_v40, %v7732_v55  ;;  %v10807_v6 = vcombine.low %v7728_v40, %v7732_v55  ;;  %v7537_v55 = vld [vmem:[%s17127_s7 + $0x1d0] sm:$0xff] }
 0x5dd   : > { %9113 = vmatpush1.bf16.msra.mxu1 %v10741_v5  ;;  %9195 = vmatpush1.bf16.msra.mxu0 %v10743_v15  ;;  %v7481_v5 = vld [vmem:[%s17127_s7 + $0x10] sm:$0xff] }
 0x5de   : > { %9114 = vmatprep.subr.bf16.mxu1 %v10750_v63  ;;  %9196 = vmatprep.subr.bf16.mxu0 %v10752_v0  ;;  %v7485_v15 = vld [vmem:[%s17127_s7 + $0x30] sm:$0xff]  ;;  %v7482_v63 = vld [vmem:[%s17127_s7 + $0x18] sm:$0xff] }
 0x5df   : > { %v7486_v0 = vld [vmem:[%s17127_s7 + $0x38] sm:$0xff]  ;;  %v10562_v54 = vcombine.high %v7481_v5, %v7485_v15  ;;  %v10561_v14 = vcombine.low %v7481_v5, %v7485_v15 }
 0x5e0   : > { %v10564_v43 = vcombine.high %v7482_v63, %v7486_v0  ;;  %v10563_v33 = vcombine.low %v7482_v63, %v7486_v0  ;;  %v7545_v0 = vld [vmem:[%s17127_s7 + $0x210] sm:$0xff] }
 0x5e1   : > { %9115 = vmatpush1.bf16.msra.mxu1 %v10749_v7  ;;  %9197 = vmatpush1.bf16.msra.mxu0 %v10751_v38  ;;  %v7489_v7 = vld [vmem:[%s17127_s7 + $0x50] sm:$0xff] }
 0x5e2   : > { %9116 = vmatprep.subr.bf16.mxu1 %v10758_v45  ;;  %9198 = vmatprep.subr.bf16.mxu0 %v10760_v56  ;;  %v7493_v38 = vld [vmem:[%s17127_s7 + $0x70] sm:$0xff]  ;;  %v7490_v45 = vld [vmem:[%s17127_s7 + $0x58] sm:$0xff] }
 0x5e3   : > { %v7494_v56 = vld [vmem:[%s17127_s7 + $0x78] sm:$0xff]  ;;  %v10570_v59 = vcombine.high %v7489_v7, %v7493_v38  ;;  %v10569_v53 = vcombine.low %v7489_v7, %v7493_v38 }
 0x5e4   : > { %v10571_v13 = vcombine.low %v7490_v45, %v7494_v56 }
 0x5e5   : > { %9117 = vmatpush1.bf16.msra.mxu1 %v10757_v46  ;;  %9199 = vmatpush1.bf16.msra.mxu0 %v10759_v49  ;;  %v10572_v46 = vcombine.high %v7490_v45, %v7494_v56  ;;  %v7497_v49 = vld [vmem:[%s17127_s7 + $0x90] sm:$0xff] }
 0x5e6   : > { %9118 = vmatprep.subr.bf16.mxu1 %v10766_v2  ;;  %9200 = vmatprep.subr.bf16.mxu0 %v10768_v62  ;;  %v7501_v2 = vld [vmem:[%s17127_s7 + $0xb0] sm:$0xff]  ;;  %v7502_v62 = vld [vmem:[%s17127_s7 + $0xb8] sm:$0xff] }
 0x5e7   : > { %v10578_v29 = vcombine.high %v7497_v49, %v7501_v2  ;;  %v10580_v10 = vcombine.high %v7498_v48, %v7502_v62  ;;  %v10579_v8 = vcombine.low %v7498_v48, %v7502_v62  ;;  %v7553_v56 = vld [vmem:[%s17127_s7 + $0x250] sm:$0xff] }
 0x5e8   : > { %v7561_v62 = vld [vmem:[%s17127_s7 + $0x290] sm:$0xff] }
 0x5e9   : > { %9119 = vmatpush1.bf16.msra.mxu1 %v10765_v27  ;;  %9201 = vmatpush1.bf16.msra.mxu0 %v10767_v21  ;;  %v7505_v27 = vld [vmem:[%s17127_s7 + $0xd0] sm:$0xff] }
 0x5ea   : > { %9120 = vmatprep.subr.bf16.mxu1 %v10774_v57  ;;  %9202 = vmatprep.subr.bf16.mxu0 %v10776_v51  ;;  %v7509_v21 = vld [vmem:[%s17127_s7 + $0xf0] sm:$0xff]  ;;  %v7506_v57 = vld [vmem:[%s17127_s7 + $0xd8] sm:$0xff]  ;;  %v10577_v51 = vcombine.low %v7497_v49, %v7501_v2 }
 0x5eb   : > { %v10586_v16 = vcombine.high %v7505_v27, %v7509_v21 }
 0x5ed   : > { %9121 = vmatpush1.bf16.msra.mxu1 %v10773_v42  ;;  %9203 = vmatpush1.bf16.msra.mxu0 %v10775_v52  ;;  %v7517_v42 = vld [vmem:[%s17127_s7 + $0x130] sm:$0xff]  ;;  %v7514_v52 = vld [vmem:[%s17127_s7 + $0x118] sm:$0xff] }
 0x5ee   : > { %9122 = vmatprep.subr.bf16.mxu1 %v10782_v60  ;;  %9204 = vmatprep.subr.bf16.mxu0 %v10784_v28  ;;  %v7518_v60 = vld [vmem:[%s17127_s7 + $0x138] sm:$0xff]  ;;  %v10585_v28 = vcombine.low %v7505_v27, %v7509_v21  ;;  %v10594_v37 = vcombine.high %v7513_v17, %v7517_v42 }
 0x5ef   : > { %v10596_v22 = vcombine.high %v7514_v52, %v7518_v60  ;;  %v10595_v36 = vcombine.low %v7514_v52, %v7518_v60  ;;  %v7577_v60 = vld [vmem:[%s17127_s7 + $0x310] sm:$0xff] }
 0x5f1   : > { %9123 = vmatpush1.bf16.msra.mxu1 %v10781_v9  ;;  %9205 = vmatpush1.bf16.msra.mxu0 %v10783_v35  ;;  %v7525_v9 = vld [vmem:[%s17127_s7 + $0x170] sm:$0xff]  ;;  %v7522_v35 = vld [vmem:[%s17127_s7 + $0x158] sm:$0xff] }
 0x5f2   : > { %9124 = vmatprep.subr.bf16.mxu1 %v10790_v3  ;;  %9206 = vmatprep.subr.bf16.mxu0 %v10792_v50  ;;  %v7526_v3 = vld [vmem:[%s17127_s7 + $0x178] sm:$0xff]  ;;  %v10593_v50 = vcombine.low %v7513_v17, %v7517_v42  ;;  %v10602_v44 = vcombine.high %v7521_v24, %v7525_v9 }
 0x5f3   : > { %v10604_v25 = vcombine.high %v7522_v35, %v7526_v3  ;;  %v10603_v20 = vcombine.low %v7522_v35, %v7526_v3  ;;  %v7585_v3 = vld [vmem:[%s17127_s7 + $0x350] sm:$0xff] }
 0x5f5   : > { %9125 = vmatpush1.bf16.msra.mxu1 %v10789_v4  ;;  %9207 = vmatpush1.bf16.msra.mxu0 %v10791_v39  ;;  %v7533_v4 = vld [vmem:[%s17127_s7 + $0x1b0] sm:$0xff]  ;;  %v7530_v39 = vld [vmem:[%s17127_s7 + $0x198] sm:$0xff] }
 0x5f6   : > { %9126 = vmatprep.subr.bf16.mxu1 %v10798_v1  ;;  %9208 = vmatprep.subr.bf16.mxu0 %v10800_v47  ;;  %v7534_v1 = vld [vmem:[%s17127_s7 + $0x1b8] sm:$0xff]  ;;  %v10601_v47 = vcombine.low %v7521_v24, %v7525_v9  ;;  %v10610_v30 = vcombine.high %v7529_v12, %v7533_v4 }
 0x5f7   : > { %v10612_v40 = vcombine.high %v7530_v39, %v7534_v1  ;;  %v10611_v5 = vcombine.low %v7530_v39, %v7534_v1  ;;  %v7593_v1 = vld [vmem:[%s17127_s7 + $0x390] sm:$0xff] }
 0x5f9   : > { %9127 = vmatpush1.bf16.msra.mxu1 %v10797_v23  ;;  %9209 = vmatpush1.bf16.msra.mxu0 %v10799_v18  ;;  %v7541_v23 = vld [vmem:[%s17127_s7 + $0x1f0] sm:$0xff]  ;;  %v7538_v18 = vld [vmem:[%s17127_s7 + $0x1d8] sm:$0xff] }
 0x5fa   : > { %9128 = vmatprep.subr.bf16.mxu1 %v10806_v32  ;;  %9210 = vmatprep.subr.bf16.mxu0 %v10808_v58  ;;  %v7542_v32 = vld [vmem:[%s17127_s7 + $0x1f8] sm:$0xff]  ;;  %v10609_v58 = vcombine.low %v7529_v12, %v7533_v4  ;;  %v10618_v15 = vcombine.high %v7537_v55, %v7541_v23 }
 0x5fb   : > { %v10620_v63 = vcombine.high %v7538_v18, %v7542_v32  ;;  %v10619_v7 = vcombine.low %v7538_v18, %v7542_v32  ;;  %v7601_v32 = vld [vmem:[%s17127_s7 + $0x3d0] sm:$0xff] }
 0x5fd   : > { %9129 = vmatpush1.bf16.msra.mxu1 %v10805_v41  ;;  %9211 = vmatpush1.bf16.msra.mxu0 %v10807_v6  ;;  %v7549_v41 = vld [vmem:[%s17127_s7 + $0x230] sm:$0xff]  ;;  %v7546_v6 = vld [vmem:[%s17127_s7 + $0x218] sm:$0xff] }
 0x5fe   : > { %9221 = vmatprep.subr.bf16.mxu1 %v10562_v54  ;;  %9303 = vmatprep.subr.bf16.mxu0 %v10564_v43  ;;  %v7550_v54 = vld [vmem:[%s17127_s7 + $0x238] sm:$0xff]  ;;  %v10617_v43 = vcombine.low %v7537_v55, %v7541_v23  ;;  %v10626_v38 = vcombine.high %v7545_v0, %v7549_v41 }
 0x5ff   : > { %v10628_v45 = vcombine.high %v7546_v6, %v7550_v54  ;;  %v10627_v49 = vcombine.low %v7546_v6, %v7550_v54  ;;  %v7609_v54 = vld [vmem:[%s17127_s7 + $0x410] sm:$0xff] }
 0x600   : > { %9131 = vmatmul.mubr.bf16.vlgmr.msra.gmra.mrb[88].mxu1 %v16483_v26  ;;  %9213 = vmatmul.mubr.bf16.vlgmr.msra.gmra.mrb[100].mxu0 %v16483_v26 }
 0x601   : > { %9222 = vmatpush1.bf16.msra.mxu1 %v10561_v14  ;;  %9253 = vmatprep.mubr.bf16.mxu1 %v16268_v19  ;;  %v7557_v14 = vld [vmem:[%s17127_s7 + $0x270] sm:$0xff] }
 0x602   : > { %9304 = vmatpush1.bf16.msra.mxu0 %v10563_v33  ;;  %9335 = vmatprep.mubr.bf16.mxu0 %v16268_v19  ;;  %v7510_v19 = vld [vmem:[%s17127_s7 + $0xf8] sm:$0xff]  ;;  %v10634_v2 = vcombine.high %v7553_v56, %v7557_v14 }
 0x603   : > { %9223 = vmatprep.subr.bf16.mxu1 %v10570_v59  ;;  %9305 = vmatprep.subr.bf16.mxu0 %v10572_v46  ;;  %v10588_v31 = vcombine.high %v7506_v57, %v7510_v19  ;;  %v10587_v34 = vcombine.low %v7506_v57, %v7510_v19  ;;  %v7554_v33 = vld [vmem:[%s17127_s7 + $0x258] sm:$0xff]  ;;  %v10625_v46 = vcombine.low %v7545_v0, %v7549_v41  ;;  %v7569_v19 = vld [vmem:[%s17127_s7 + $0x2d0] sm:$0xff] }
 0x604   : > { %v7558_v59 = vld [vmem:[%s17127_s7 + $0x278] sm:$0xff] }
 0x605   : > { %9224 = vmatpush1.bf16.msra.mxu1 %v10569_v53  ;;  %v10636_v48 = vcombine.high %v7554_v33, %v7558_v59  ;;  %v7565_v53 = vld [vmem:[%s17127_s7 + $0x2b0] sm:$0xff]  ;;  %v10635_v27 = vcombine.low %v7554_v33, %v7558_v59 }
 0x606   : > { %9306 = vmatpush1.bf16.msra.mxu0 %v10571_v13  ;;  %9225 = vmatprep.subr.bf16.mxu1 %v10578_v29  ;;  %v7562_v13 = vld [vmem:[%s17127_s7 + $0x298] sm:$0xff]  ;;  %v10642_v21 = vcombine.high %v7561_v62, %v7565_v53  ;;  %v7617_v59 = vld [vmem:[%s17127_s7 + $0x450] sm:$0xff] }
 0x607   : > { %9307 = vmatprep.subr.bf16.mxu0 %v10580_v10  ;;  %v7566_v29 = vld [vmem:[%s17127_s7 + $0x2b8] sm:$0xff]  ;;  %v10633_v10 = vcombine.low %v7553_v56, %v7557_v14 }
 0x608   : > { %v10644_v57 = vcombine.high %v7562_v13, %v7566_v29  ;;  %v10643_v17 = vcombine.low %v7562_v13, %v7566_v29  ;;  %v7625_v13 = vld [vmem:[%s17127_s7 + $0x490] sm:$0xff] }
 0x609   : > { %9226 = vmatpush1.bf16.msra.mxu1 %v10577_v51  ;;  %v7573_v51 = vld [vmem:[%s17127_s7 + $0x2f0] sm:$0xff] }
 0x60a   : > { %9308 = vmatpush1.bf16.msra.mxu0 %v10579_v8  ;;  %9227 = vmatprep.subr.bf16.mxu1 %v10586_v16  ;;  %v7570_v8 = vld [vmem:[%s17127_s7 + $0x2d8] sm:$0xff]  ;;  %v10650_v42 = vcombine.high %v7569_v19, %v7573_v51  ;;  %v7629_v29 = vld [vmem:[%s17127_s7 + $0x4b0] sm:$0xff] }
 0x60b   : > { %9309 = vmatprep.subr.bf16.mxu0 %v10588_v31  ;;  %v7574_v16 = vld [vmem:[%s17127_s7 + $0x2f8] sm:$0xff]  ;;  %v10641_v31 = vcombine.low %v7561_v62, %v7565_v53 }
 0x60c   : > { %v10652_v52 = vcombine.high %v7570_v8, %v7574_v16  ;;  %v10651_v24 = vcombine.low %v7570_v8, %v7574_v16  ;;  %v7633_v16 = vld [vmem:[%s17127_s7 + $0x4d0] sm:$0xff] }
 0x60d   : > { %9228 = vmatpush1.bf16.msra.mxu1 %v10585_v28  ;;  %v7581_v28 = vld [vmem:[%s17127_s7 + $0x330] sm:$0xff] }
 0x60e   : > { %9310 = vmatpush1.bf16.msra.mxu0 %v10587_v34  ;;  %9229 = vmatprep.subr.bf16.mxu1 %v10594_v37  ;;  %v7578_v34 = vld [vmem:[%s17127_s7 + $0x318] sm:$0xff]  ;;  %v10658_v9 = vcombine.high %v7577_v60, %v7581_v28 }
 0x60f   : > { %9311 = vmatprep.subr.bf16.mxu0 %v10596_v22  ;;  %v7582_v37 = vld [vmem:[%s17127_s7 + $0x338] sm:$0xff]  ;;  %v10649_v22 = vcombine.low %v7569_v19, %v7573_v51  ;;  %v10706_v51 = vcombine.high %v7625_v13, %v7629_v29 }
 0x610   : > { %v10660_v35 = vcombine.high %v7578_v34, %v7582_v37  ;;  %v10659_v12 = vcombine.low %v7578_v34, %v7582_v37  ;;  %v7645_v34 = vld [vmem:[%s17127_s7 + $0x530] sm:$0xff]  ;;  %v7642_v37 = vld [vmem:[%s17127_s7 + $0x518] sm:$0xff] }
 0x611   : > { %9230 = vmatpush1.bf16.msra.mxu1 %v10593_v50  ;;  %v7589_v50 = vld [vmem:[%s17127_s7 + $0x370] sm:$0xff] }
 0x612   : > { %9312 = vmatpush1.bf16.msra.mxu0 %v10595_v36  ;;  %9231 = vmatprep.subr.bf16.mxu1 %v10602_v44  ;;  %v7586_v36 = vld [vmem:[%s17127_s7 + $0x358] sm:$0xff]  ;;  %v10666_v4 = vcombine.high %v7585_v3, %v7589_v50 }
 0x613   : > { %9313 = vmatprep.subr.bf16.mxu0 %v10604_v25  ;;  %v7590_v44 = vld [vmem:[%s17127_s7 + $0x378] sm:$0xff]  ;;  %v10657_v25 = vcombine.low %v7577_v60, %v7581_v28  ;;  %v7641_v28 = vld [vmem:[%s17127_s7 + $0x510] sm:$0xff] }
 0x614   : > { %v10668_v39 = vcombine.high %v7586_v36, %v7590_v44  ;;  %v10667_v55 = vcombine.low %v7586_v36, %v7590_v44  ;;  %v7653_v36 = vld [vmem:[%s17127_s7 + $0x570] sm:$0xff]  ;;  %v7650_v44 = vld [vmem:[%s17127_s7 + $0x558] sm:$0xff] }
 0x615   : > { %9232 = vmatpush1.bf16.msra.mxu1 %v10601_v47  ;;  %v7597_v47 = vld [vmem:[%s17127_s7 + $0x3b0] sm:$0xff] }
 0x616   : > { %9314 = vmatpush1.bf16.msra.mxu0 %v10603_v20  ;;  %9233 = vmatprep.subr.bf16.mxu1 %v10610_v30  ;;  %v7594_v20 = vld [vmem:[%s17127_s7 + $0x398] sm:$0xff]  ;;  %v10674_v23 = vcombine.high %v7593_v1, %v7597_v47 }
 0x617   : > { %9315 = vmatprep.subr.bf16.mxu0 %v10612_v40  ;;  %v7598_v30 = vld [vmem:[%s17127_s7 + $0x3b8] sm:$0xff]  ;;  %v10665_v40 = vcombine.low %v7585_v3, %v7589_v50  ;;  %v7649_v50 = vld [vmem:[%s17127_s7 + $0x550] sm:$0xff] }
 0x618   : > { %v10676_v18 = vcombine.high %v7594_v20, %v7598_v30  ;;  %v10675_v0 = vcombine.low %v7594_v20, %v7598_v30  ;;  %v7661_v20 = vld [vmem:[%s17127_s7 + $0x5b0] sm:$0xff]  ;;  %v7658_v30 = vld [vmem:[%s17127_s7 + $0x598] sm:$0xff] }
 0x619   : > { %9234 = vmatpush1.bf16.msra.mxu1 %v10609_v58  ;;  %v7605_v58 = vld [vmem:[%s17127_s7 + $0x3f0] sm:$0xff] }
 0x61a   : > { %9316 = vmatpush1.bf16.msra.mxu0 %v10611_v5  ;;  %9235 = vmatprep.subr.bf16.mxu1 %v10618_v15  ;;  %v7602_v5 = vld [vmem:[%s17127_s7 + $0x3d8] sm:$0xff]  ;;  %v10682_v41 = vcombine.high %v7601_v32, %v7605_v58 }
 0x61b   : > { %9317 = vmatprep.subr.bf16.mxu0 %v10620_v63  ;;  %v7606_v15 = vld [vmem:[%s17127_s7 + $0x3f8] sm:$0xff]  ;;  %v10673_v63 = vcombine.low %v7593_v1, %v7597_v47  ;;  %v7657_v47 = vld [vmem:[%s17127_s7 + $0x590] sm:$0xff] }
 0x61c   : > { %v10684_v6 = vcombine.high %v7602_v5, %v7606_v15  ;;  %v10683_v56 = vcombine.low %v7602_v5, %v7606_v15  ;;  %v7669_v5 = vld [vmem:[%s17127_s7 + $0x5f0] sm:$0xff]  ;;  %v7666_v15 = vld [vmem:[%s17127_s7 + $0x5d8] sm:$0xff] }
 0x61d   : > { %9236 = vmatpush1.bf16.msra.mxu1 %v10617_v43  ;;  %v7613_v43 = vld [vmem:[%s17127_s7 + $0x430] sm:$0xff] }
 0x61e   : > { %9318 = vmatpush1.bf16.msra.mxu0 %v10619_v7  ;;  %9237 = vmatprep.subr.bf16.mxu1 %v10626_v38  ;;  %v7610_v7 = vld [vmem:[%s17127_s7 + $0x418] sm:$0xff]  ;;  %v10690_v14 = vcombine.high %v7609_v54, %v7613_v43 }
 0x61f   : > { %9319 = vmatprep.subr.bf16.mxu0 %v10628_v45  ;;  %v7614_v38 = vld [vmem:[%s17127_s7 + $0x438] sm:$0xff]  ;;  %v10681_v45 = vcombine.low %v7601_v32, %v7605_v58  ;;  %v7665_v58 = vld [vmem:[%s17127_s7 + $0x5d0] sm:$0xff] }
 0x620   : > { %v10692_v33 = vcombine.high %v7610_v7, %v7614_v38  ;;  %v10691_v62 = vcombine.low %v7610_v7, %v7614_v38  ;;  %v7677_v7 = vld [vmem:[%s17127_s7 + $0x630] sm:$0xff]  ;;  %v7674_v38 = vld [vmem:[%s17127_s7 + $0x618] sm:$0xff] }
 0x621   : > { %9238 = vmatpush1.bf16.msra.mxu1 %v10625_v46  ;;  %v7621_v46 = vld [vmem:[%s17127_s7 + $0x470] sm:$0xff] }
 0x622   : > { %9320 = vmatpush1.bf16.msra.mxu0 %v10627_v49  ;;  %9239 = vmatprep.subr.bf16.mxu1 %v10634_v2  ;;  %v10689_v49 = vcombine.low %v7609_v54, %v7613_v43  ;;  %v7618_v2 = vld [vmem:[%s17127_s7 + $0x458] sm:$0xff]  ;;  %v10698_v53 = vcombine.high %v7617_v59, %v7621_v46  ;;  %v7673_v43 = vld [vmem:[%s17127_s7 + $0x610] sm:$0xff] }
 0x623   : > { %9321 = vmatprep.subr.bf16.mxu0 %v10636_v48  ;;  %v7622_v48 = vld [vmem:[%s17127_s7 + $0x478] sm:$0xff] }
 0x624   : > { %v10699_v19 = vcombine.low %v7618_v2, %v7622_v48 }
 0x625   : > { %9240 = vmatpush1.bf16.msra.mxu1 %v10633_v10  ;;  %v10700_v10 = vcombine.high %v7618_v2, %v7622_v48  ;;  %v7682_v2 = vld [vmem:[%s17127_s7 + $0x658] sm:$0xff] }
 0x626   : > { %9322 = vmatpush1.bf16.msra.mxu0 %v10635_v27  ;;  %9241 = vmatprep.subr.bf16.mxu1 %v10642_v21  ;;  %v7626_v27 = vld [vmem:[%s17127_s7 + $0x498] sm:$0xff] }
 0x627   : > { %9323 = vmatprep.subr.bf16.mxu0 %v10644_v57  ;;  %v7630_v21 = vld [vmem:[%s17127_s7 + $0x4b8] sm:$0xff]  ;;  %v10697_v57 = vcombine.low %v7617_v59, %v7621_v46  ;;  %v7681_v46 = vld [vmem:[%s17127_s7 + $0x650] sm:$0xff] }
 0x628   : > { %v10708_v8 = vcombine.high %v7626_v27, %v7630_v21  ;;  %v7686_v48 = vld [vmem:[%s17127_s7 + $0x678] sm:$0xff] }
 0x629   : > { %9242 = vmatpush1.bf16.msra.mxu1 %v10641_v31  ;;  %v7637_v31 = vld [vmem:[%s17127_s7 + $0x4f0] sm:$0xff] }
 0x62a   : > { %9324 = vmatpush1.bf16.msra.mxu0 %v10643_v17  ;;  %9243 = vmatprep.subr.bf16.mxu1 %v10650_v42  ;;  %v7638_v17 = vld [vmem:[%s17127_s7 + $0x4f8] sm:$0xff]  ;;  %v10707_v42 = vcombine.low %v7626_v27, %v7630_v21  ;;  %v7693_v27 = vld [vmem:[%s17127_s7 + $0x6b0] sm:$0xff] }
 0x62b   : > { %9325 = vmatprep.subr.bf16.mxu0 %v10652_v52  ;;  %v10714_v52 = vcombine.high %v7633_v16, %v7637_v31  ;;  %v7690_v21 = vld [vmem:[%s17127_s7 + $0x698] sm:$0xff] }
 0x62d   : > { %9244 = vmatpush1.bf16.msra.mxu1 %v10649_v22  ;;  %v7646_v22 = vld [vmem:[%s17127_s7 + $0x538] sm:$0xff] }
 0x62e   : > { %9326 = vmatpush1.bf16.msra.mxu0 %v10651_v24  ;;  %9245 = vmatprep.subr.bf16.mxu1 %v10658_v9  ;;  %v10713_v24 = vcombine.low %v7633_v16, %v7637_v31  ;;  %v10724_v3 = vcombine.high %v7642_v37, %v7646_v22  ;;  %v7697_v31 = vld [vmem:[%s17127_s7 + $0x6d0] sm:$0xff] }
 0x62f   : > { %9327 = vmatprep.subr.bf16.mxu0 %v10660_v35  ;;  %v10722_v35 = vcombine.high %v7641_v28, %v7645_v34 }
 0x631   : > { %9246 = vmatpush1.bf16.msra.mxu1 %v10657_v25  ;;  %v7654_v25 = vld [vmem:[%s17127_s7 + $0x578] sm:$0xff] }
 0x632   : > { %9328 = vmatpush1.bf16.msra.mxu0 %v10659_v12  ;;  %9247 = vmatprep.subr.bf16.mxu1 %v10666_v4  ;;  %v10721_v12 = vcombine.low %v7641_v28, %v7645_v34  ;;  %v10723_v4 = vcombine.low %v7642_v37, %v7646_v22  ;;  %v10732_v1 = vcombine.high %v7650_v44, %v7654_v25  ;;  %v7705_v34 = vld [vmem:[%s17127_s7 + $0x710] sm:$0xff]  ;;  %v7706_v22 = vld [vmem:[%s17127_s7 + $0x718] sm:$0xff] }
 0x633   : > { %9329 = vmatprep.subr.bf16.mxu0 %v10668_v39  ;;  %v10730_v39 = vcombine.high %v7649_v50, %v7653_v36  ;;  %v7709_v37 = vld [vmem:[%s17127_s7 + $0x730] sm:$0xff] }
 0x635   : > { %9248 = vmatpush1.bf16.msra.mxu1 %v10665_v40  ;;  %v7662_v40 = vld [vmem:[%s17127_s7 + $0x5b8] sm:$0xff] }
 0x636   : > { %9330 = vmatpush1.bf16.msra.mxu0 %v10667_v55  ;;  %9249 = vmatprep.subr.bf16.mxu1 %v10674_v23  ;;  %v10729_v55 = vcombine.low %v7649_v50, %v7653_v36  ;;  %v10731_v23 = vcombine.low %v7650_v44, %v7654_v25  ;;  %v10740_v32 = vcombine.high %v7658_v30, %v7662_v40  ;;  %v7713_v36 = vld [vmem:[%s17127_s7 + $0x750] sm:$0xff]  ;;  %v7714_v25 = vld [vmem:[%s17127_s7 + $0x758] sm:$0xff] }
 0x637   : > { %9331 = vmatprep.subr.bf16.mxu0 %v10676_v18  ;;  %v10738_v18 = vcombine.high %v7657_v47, %v7661_v20  ;;  %v7717_v44 = vld [vmem:[%s17127_s7 + $0x770] sm:$0xff] }
 0x639   : > { %9250 = vmatpush1.bf16.msra.mxu1 %v10673_v63  ;;  %v7670_v63 = vld [vmem:[%s17127_s7 + $0x5f8] sm:$0xff] }
 0x63a   : > { %9332 = vmatpush1.bf16.msra.mxu0 %v10675_v0  ;;  %9251 = vmatprep.subr.bf16.mxu1 %v10682_v41  ;;  %v10737_v0 = vcombine.low %v7657_v47, %v7661_v20  ;;  %v10739_v41 = vcombine.low %v7658_v30, %v7662_v40  ;;  %v10748_v54 = vcombine.high %v7666_v15, %v7670_v63  ;;  %v7721_v20 = vld [vmem:[%s17127_s7 + $0x790] sm:$0xff]  ;;  %v7722_v40 = vld [vmem:[%s17127_s7 + $0x798] sm:$0xff] }
 0x63b   : > { %9333 = vmatprep.subr.bf16.mxu0 %v10684_v6  ;;  %v10746_v6 = vcombine.high %v7665_v58, %v7669_v5  ;;  %v7725_v30 = vld [vmem:[%s17127_s7 + $0x7b0] sm:$0xff] }
 0x63d   : > { %9252 = vmatpush1.bf16.msra.mxu1 %v10681_v45  ;;  %v7678_v45 = vld [vmem:[%s17127_s7 + $0x638] sm:$0xff] }
 0x63e   : > { %9334 = vmatpush1.bf16.msra.mxu0 %v10683_v56  ;;  %9262 = vmatprep.subr.bf16.mxu1 %v10690_v14  ;;  %v10745_v56 = vcombine.low %v7665_v58, %v7669_v5  ;;  %v10747_v14 = vcombine.low %v7666_v15, %v7670_v63  ;;  %v10756_v59 = vcombine.high %v7674_v38, %v7678_v45  ;;  %v7729_v5 = vld [vmem:[%s17127_s7 + $0x7d0] sm:$0xff]  ;;  %v7730_v63 = vld [vmem:[%s17127_s7 + $0x7d8] sm:$0xff] }
 0x63f   : > { %9344 = vmatprep.subr.bf16.mxu0 %v10692_v33  ;;  %v10754_v33 = vcombine.high %v7673_v43, %v7677_v7  ;;  %v7733_v15 = vld [vmem:[%s17127_s7 + $0x7f0] sm:$0xff] }
 0x640   : > { %9254 = vmatmul.mubr.bf16.vlgmr.msra.gmra.mrb[92].mxu1 %v16273_v61 }
 0x641   : > { %9336 = vmatmul.mubr.bf16.vlgmr.msra.gmra.mrb[104].mxu0 %v16273_v61  ;;  %9263 = vmatpush1.bf16.msra.mxu1 %v10689_v49  ;;  %v7634_v61 = vld [vmem:[%s17127_s7 + $0x4d8] sm:$0xff]  ;;  %v7685_v49 = vld [vmem:[%s17127_s7 + $0x670] sm:$0xff] }
 0x642   : > { %9294 = vmatprep.mubr.bf16.mxu1 %v16309_v11  ;;  %9345 = vmatpush1.bf16.msra.mxu0 %v10691_v62  ;;  %v10716_v60 = vcombine.high %v7634_v61, %v7638_v17  ;;  %v10715_v9 = vcombine.low %v7634_v61, %v7638_v17  ;;  %v10753_v62 = vcombine.low %v7673_v43, %v7677_v7  ;;  %v7701_v61 = vld [vmem:[%s17127_s7 + $0x6f0] sm:$0xff]  ;;  %v7698_v17 = vld [vmem:[%s17127_s7 + $0x6d8] sm:$0xff] }
 0x643   : > { %9376 = vmatprep.mubr.bf16.mxu0 %v16309_v11  ;;  %9264 = vmatprep.subr.bf16.mxu1 %v10698_v53  ;;  %v10705_v11 = vcombine.low %v7625_v13, %v7629_v29  ;;  %v10755_v53 = vcombine.low %v7674_v38, %v7678_v45  ;;  %v10762_v13 = vcombine.high %v7681_v46, %v7685_v49  ;;  %v12883_v45 = vld [vmem:[%s17129_s9 + $0x40] sm:$0xff]  }
 0x644   : > { %9346 = vmatprep.subr.bf16.mxu0 %v10700_v10  ;;  %v10764_v29 = vcombine.high %v7682_v2, %v7686_v48  ;;  %v7689_v10 = vld [vmem:[%s17127_s7 + $0x690] sm:$0xff]  ;;  %v10809_v7 = vcombine.low %v7729_v5, %v7733_v15 }
 0x645   : > { %9265 = vmatpush1.bf16.msra.mxu1 %v10697_v57  ;;  %v7694_v57 = vld [vmem:[%s17127_s7 + $0x6b8] sm:$0xff] }
 0x646   : > { %9347 = vmatpush1.bf16.msra.mxu0 %v10699_v19  ;;  %9266 = vmatprep.subr.bf16.mxu1 %v10706_v51  ;;  %v10761_v19 = vcombine.low %v7681_v46, %v7685_v49  ;;  %v10763_v51 = vcombine.low %v7682_v2, %v7686_v48  ;;  %v10772_v16 = vcombine.high %v7690_v21, %v7694_v57  ;;  %v12888_v46 = vld [vmem:[%s17129_s9 + $0xc8] sm:$0xff]   ;;  %v12891_v48 = vld [vmem:[%s17129_s9 + $0x50] sm:$0xff]  }
 0x647   : > { %9348 = vmatprep.subr.bf16.mxu0 %v10708_v8  ;;  %v10770_v8 = vcombine.high %v7689_v10, %v7693_v27  ;;  %v12889_v49 = vld [vmem:[%s17129_s9 + $0x8] sm:$0xff]  }
 0x648   : > { %v12890_v2 = vld [vmem:[%s17129_s9 + $0x88] sm:$0xff]  }
 0x649   : > { %9267 = vmatpush1.bf16.msra.mxu1 %v10705_v11  ;;  %v7702_v11 = vld [vmem:[%s17127_s7 + $0x6f8] sm:$0xff] }
 0x64a   : > { %9349 = vmatpush1.bf16.msra.mxu0 %v10707_v42  ;;  %9268 = vmatprep.subr.bf16.mxu1 %v10714_v52  ;;  %v10769_v42 = vcombine.low %v7689_v10, %v7693_v27  ;;  %v10771_v52 = vcombine.low %v7690_v21, %v7694_v57  ;;  %v10780_v28 = vcombine.high %v7698_v17, %v7702_v11  ;;  %v12897_v10 = vld [vmem:[%s17129_s9 + $0x18] sm:$0xff]   ;;  %v12899_v21 = vld [vmem:[%s17129_s9 + $0x60] sm:$0xff]  }
 0x64b   : > { %9350 = vmatprep.subr.bf16.mxu0 %v10716_v60  ;;  %v10778_v60 = vcombine.high %v7697_v31, %v7701_v61  ;;  %v12898_v27 = vld [vmem:[%s17129_s9 + $0x98] sm:$0xff]   ;;  %v12900_v57 = vld [vmem:[%s17129_s9 + $0xe0] sm:$0xff]  }
 0x64d   : > { %9269 = vmatpush1.bf16.msra.mxu1 %v10713_v24  ;;  %v7710_v24 = vld [vmem:[%s17127_s7 + $0x738] sm:$0xff] }
 0x64e   : > { %9351 = vmatpush1.bf16.msra.mxu0 %v10715_v9  ;;  %9270 = vmatprep.subr.bf16.mxu1 %v10722_v35  ;;  %v10777_v9 = vcombine.low %v7697_v31, %v7701_v61  ;;  %v10779_v35 = vcombine.low %v7698_v17, %v7702_v11  ;;  %v10788_v50 = vcombine.high %v7706_v22, %v7710_v24  ;;  %v12905_v31 = vld [vmem:[%s17129_s9 + $0x28] sm:$0xff]   ;;  %v12907_v17 = vld [vmem:[%s17129_s9 + $0x70] sm:$0xff]  }
 0x64f   : > { %9352 = vmatprep.subr.bf16.mxu0 %v10724_v3  ;;  %v10786_v3 = vcombine.high %v7705_v34, %v7709_v37  ;;  %v12906_v61 = vld [vmem:[%s17129_s9 + $0xa8] sm:$0xff]   ;;  %v12908_v11 = vld [vmem:[%s17129_s9 + $0xf0] sm:$0xff]  }
 0x651   : > { %9271 = vmatpush1.bf16.msra.mxu1 %v10721_v12  ;;  %v7718_v12 = vld [vmem:[%s17127_s7 + $0x778] sm:$0xff] }
 0x652   : > { %9353 = vmatpush1.bf16.msra.mxu0 %v10723_v4  ;;  %9272 = vmatprep.subr.bf16.mxu1 %v10730_v39  ;;  %v10785_v4 = vcombine.low %v7705_v34, %v7709_v37  ;;  %v10787_v39 = vcombine.low %v7706_v22, %v7710_v24  ;;  %v10796_v47 = vcombine.high %v7714_v25, %v7718_v12  ;;  %v12913_v34 = vld [vmem:[%s17129_s9 + $0x38] sm:$0xff]   ;;  %v12915_v22 = vld [vmem:[%s17129_s9 + $0x140] sm:$0xff]  }
 0x653   : > { %9354 = vmatprep.subr.bf16.mxu0 %v10732_v1  ;;  %v10794_v1 = vcombine.high %v7713_v36, %v7717_v44  ;;  %v12914_v37 = vld [vmem:[%s17129_s9 + $0xb8] sm:$0xff]   ;;  %v12916_v24 = vld [vmem:[%s17129_s9 + $0x1c0] sm:$0xff]  }
 0x655   : > { %9273 = vmatpush1.bf16.msra.mxu1 %v10729_v55  ;;  %v7726_v55 = vld [vmem:[%s17127_s7 + $0x7b8] sm:$0xff] }
 0x656   : > { %9355 = vmatpush1.bf16.msra.mxu0 %v10731_v23  ;;  %9274 = vmatprep.subr.bf16.mxu1 %v10738_v18  ;;  %v10793_v23 = vcombine.low %v7713_v36, %v7717_v44  ;;  %v10795_v18 = vcombine.low %v7714_v25, %v7718_v12  ;;  %v10804_v58 = vcombine.high %v7722_v40, %v7726_v55  ;;  %v16964_v36 = vld [vmem:[%s17128_s8] sm:$0xff] }
 0x657   : > { %9356 = vmatprep.subr.bf16.mxu0 %v10740_v32  ;;  %v10802_v32 = vcombine.high %v7721_v20, %v7725_v30 }
 0x659   : > { %9275 = vmatpush1.bf16.msra.mxu1 %v10737_v0  ;;  %v7734_v0 = vld [vmem:[%s17127_s7 + $0x7f8] sm:$0xff] }
 0x65a   : > { %9357 = vmatpush1.bf16.msra.mxu0 %v10739_v41  ;;  %9276 = vmatprep.subr.bf16.mxu1 %v10746_v6  ;;  %v10801_v41 = vcombine.low %v7721_v20, %v7725_v30  ;;  %v10803_v6 = vcombine.low %v7722_v40, %v7726_v55  ;;  %v10812_v43 = vcombine.high %v7730_v63, %v7734_v0 }
 0x65b   : > { %9358 = vmatprep.subr.bf16.mxu0 %v10748_v54  ;;  %v10810_v54 = vcombine.high %v7729_v5, %v7733_v15  ;;  %v10811_v38 = vcombine.low %v7730_v63, %v7734_v0 }
 0x65d   : > { %9277 = vmatpush1.bf16.msra.mxu1 %v10745_v56  ;;  %v12884_v56 = vld [vmem:[%s17129_s9 + $0xc0] sm:$0xff]  }
 0x65e   : > { %9359 = vmatpush1.bf16.msra.mxu0 %v10747_v14  ;;  %9278 = vmatprep.subr.bf16.mxu1 %v10754_v33  ;;  %v12885_v14 = vld [vmem:[%s17129_s9] sm:$0xff]  }
 0x65f   : > { %9360 = vmatprep.subr.bf16.mxu0 %v10756_v59  ;;  %v12886_v33 = vld [vmem:[%s17129_s9 + $0x80] sm:$0xff]   ;;  %v12887_v59 = vld [vmem:[%s17129_s9 + $0x48] sm:$0xff]  }
 0x661   : > { %9279 = vmatpush1.bf16.msra.mxu1 %v10753_v62  ;;  %v12893_v62 = vld [vmem:[%s17129_s9 + $0x10] sm:$0xff]  }
 0x662   : > { %9361 = vmatpush1.bf16.msra.mxu0 %v10755_v53  ;;  %9280 = vmatprep.subr.bf16.mxu1 %v10762_v13  ;;  %v12894_v53 = vld [vmem:[%s17129_s9 + $0x90] sm:$0xff]   ;;  %v12895_v13 = vld [vmem:[%s17129_s9 + $0x58] sm:$0xff]  }
 0x663   : > { %9362 = vmatprep.subr.bf16.mxu0 %v10764_v29  ;;  %v12896_v29 = vld [vmem:[%s17129_s9 + $0xd8] sm:$0xff]  }
 0x665   : > { %9281 = vmatpush1.bf16.msra.mxu1 %v10761_v19  ;;  %v12901_v19 = vld [vmem:[%s17129_s9 + $0x20] sm:$0xff]  }
 0x666   : > { %9363 = vmatpush1.bf16.msra.mxu0 %v10763_v51  ;;  %9282 = vmatprep.subr.bf16.mxu1 %v10770_v8  ;;  %v12902_v51 = vld [vmem:[%s17129_s9 + $0xa0] sm:$0xff]   ;;  %v12903_v8 = vld [vmem:[%s17129_s9 + $0x68] sm:$0xff]  }
 0x667   : > { %9364 = vmatprep.subr.bf16.mxu0 %v10772_v16  ;;  %v12904_v16 = vld [vmem:[%s17129_s9 + $0xe8] sm:$0xff]  }
 0x669   : > { %9283 = vmatpush1.bf16.msra.mxu1 %v10769_v42  ;;  %v12909_v42 = vld [vmem:[%s17129_s9 + $0x30] sm:$0xff]  }
 0x66a   : > { %9365 = vmatpush1.bf16.msra.mxu0 %v10771_v52  ;;  %9284 = vmatprep.subr.bf16.mxu1 %v10778_v60  ;;  %v12910_v52 = vld [vmem:[%s17129_s9 + $0xb0] sm:$0xff]   ;;  %v12911_v60 = vld [vmem:[%s17129_s9 + $0x78] sm:$0xff]  }
 0x66b   : > { %9366 = vmatprep.subr.bf16.mxu0 %v10780_v28  ;;  %v12912_v28 = vld [vmem:[%s17129_s9 + $0xf8] sm:$0xff]  }
 0x66d   : > { %9285 = vmatpush1.bf16.msra.mxu1 %v10777_v9  ;;  %v9017_v9 = vlaneseq }
 0x66e   : > { %9367 = vmatpush1.bf16.msra.mxu0 %v10779_v35  ;;  %9286 = vmatprep.subr.bf16.mxu1 %v10786_v3 }
 0x66f   : > { %9368 = vmatprep.subr.bf16.mxu0 %v10788_v50  ;;  %v16957_v35 = vshrl.u32 %v9017_v9, 7 }
 0x671   : > { %9287 = vmatpush1.bf16.msra.mxu1 %v10785_v4  ;;  %v9019_v3 = vsub.s32 0, %v16957_v35  ;;  %v9027_v50 = vsub.s32 2, %v16957_v35  ;;  %v9023_v44 = vsub.s32 1, %v16957_v35  ;;  %v9031_v25 = vsub.s32 3, %v16957_v35 }
 0x672   : > { %9369 = vmatpush1.bf16.msra.mxu0 %v10787_v39  ;;  %9288 = vmatprep.subr.bf16.mxu1 %v10794_v1  ;;  %v9047_v9 = vsub.s32 7, %v16957_v35 }
 0x673   : > { %9370 = vmatprep.subr.bf16.mxu0 %v10796_v47  ;;  %v9020_v12 = vrot.slane %v16964_v36, %v9019_v3  ;;  %v9028_v4 = vrot.slane %v16964_v36, %v9027_v50  ;;  %v9024_v39 = vrot.slane %v16964_v36, %v9023_v44  ;;  %v9032_v1 = vrot.slane %v16964_v36, %v9031_v25 }
 0x674   : > { %v9048_v25 = vrot.slane %v16964_v36, %v9047_v9 }
 0x675   : > { %9289 = vmatpush1.bf16.msra.mxu1 %v10793_v23 }
 0x676   : > { %9371 = vmatpush1.bf16.msra.mxu0 %v10795_v18  ;;  %9290 = vmatprep.subr.bf16.mxu1 %v10802_v32 }
 0x677   : > { %9372 = vmatprep.subr.bf16.mxu0 %v10804_v58 }
 0x679   : > { %9291 = vmatpush1.bf16.msra.mxu1 %v10801_v41 }
 0x67a   : > { %9373 = vmatpush1.bf16.msra.mxu0 %v10803_v6  ;;  %9292 = vmatprep.subr.bf16.mxu1 %v10810_v54 }
 0x67b   : > { %9374 = vmatprep.subr.bf16.mxu0 %v10812_v43 }
 0x67d   : > { %9293 = vmatpush1.bf16.msra.mxu1 %v10809_v7 }
 0x67e   : > { %9375 = vmatpush1.bf16.msra.mxu0 %v10811_v38  ;;  %12330 = vmatprep.subr.bf16.mxu1 %v12883_v45  ;;  %v12917_v38 = vld [vmem:[%s17129_s9 + $0x100] sm:$0xff]  }
 0x67f   : > { %12352 = vmatprep.subr.bf16.mxu0 %v12884_v56  ;;  %v12918_v45 = vld [vmem:[%s17129_s9 + $0x180] sm:$0xff]  }
 0x680   : > { %9295 = vmatmul.mubr.bf16.vlgmr.msra.gmra.mrb[92].mxu1 %v16483_v26 }
 0x681   : > { %9377 = vmatmul.mubr.bf16.vlgmr.msra.gmra.mrb[104].mxu0 %v16483_v26  ;;  %12331 = vmatpush3.bf16.msra.mxu1 %v12885_v14  ;;  %v12892_v26 = vld [vmem:[%s17129_s9 + $0xd0] sm:$0xff]  }
 0x682   : > { %12353 = vmatpush3.bf16.msra.mxu0 %v12886_v33  ;;  %12332 = vmatprep.subr.bf16.mxu1 %v12887_v59  ;;  %v12919_v33 = vld [vmem:[%s17129_s9 + $0x148] sm:$0xff]  }
 0x683   : > { %12354 = vmatprep.subr.bf16.mxu0 %v12888_v46  ;;  %v12920_v59 = vld [vmem:[%s17129_s9 + $0x1c8] sm:$0xff]  }
 0x684   : > { %v12921_v46 = vld [vmem:[%s17129_s9 + $0x108] sm:$0xff]  }
 0x685   : > { %12333 = vmatpush3.bf16.msra.mxu1 %v12889_v49  ;;  %v12922_v49 = vld [vmem:[%s17129_s9 + $0x188] sm:$0xff]  }
 0x686   : > { %12355 = vmatpush3.bf16.msra.mxu0 %v12890_v2  ;;  %12334 = vmatprep.subr.bf16.mxu1 %v12891_v48  ;;  %v12923_v2 = vld [vmem:[%s17129_s9 + $0x150] sm:$0xff]  }
 0x687   : > { %12356 = vmatprep.subr.bf16.mxu0 %v12892_v26  ;;  %v12924_v48 = vld [vmem:[%s17129_s9 + $0x1d0] sm:$0xff]  }
 0x688   : > { %v12925_v26 = vld [vmem:[%s17129_s9 + $0x110] sm:$0xff]  }
 0x689   : > { %12335 = vmatpush3.bf16.msra.mxu1 %v12893_v62  ;;  %v12926_v62 = vld [vmem:[%s17129_s9 + $0x190] sm:$0xff]  }
 0x68a   : > { %12357 = vmatpush3.bf16.msra.mxu0 %v12894_v53  ;;  %12336 = vmatprep.subr.bf16.mxu1 %v12895_v13  ;;  %v12927_v53 = vld [vmem:[%s17129_s9 + $0x158] sm:$0xff]  }
 0x68b   : > { %12358 = vmatprep.subr.bf16.mxu0 %v12896_v29  ;;  %v12928_v13 = vld [vmem:[%s17129_s9 + $0x1d8] sm:$0xff]  }
 0x68c   : > { %v12929_v29 = vld [vmem:[%s17129_s9 + $0x118] sm:$0xff]  }
 0x68d   : > { %12337 = vmatpush3.bf16.msra.mxu1 %v12897_v10  ;;  %v12930_v10 = vld [vmem:[%s17129_s9 + $0x198] sm:$0xff]  }
 0x68e   : > { %12359 = vmatpush3.bf16.msra.mxu0 %v12898_v27  ;;  %12338 = vmatprep.subr.bf16.mxu1 %v12899_v21  ;;  %v12931_v27 = vld [vmem:[%s17129_s9 + $0x160] sm:$0xff]  }
 0x68f   : > { %12360 = vmatprep.subr.bf16.mxu0 %v12900_v57  ;;  %v12932_v21 = vld [vmem:[%s17129_s9 + $0x1e0] sm:$0xff]  }
 0x690   : > { %v12933_v57 = vld [vmem:[%s17129_s9 + $0x120] sm:$0xff]  }
 0x691   : > { %12339 = vmatpush3.bf16.msra.mxu1 %v12901_v19  ;;  %v12934_v19 = vld [vmem:[%s17129_s9 + $0x1a0] sm:$0xff]  }
 0x692   : > { %12361 = vmatpush3.bf16.msra.mxu0 %v12902_v51  ;;  %12340 = vmatprep.subr.bf16.mxu1 %v12903_v8  ;;  %v12935_v51 = vld [vmem:[%s17129_s9 + $0x168] sm:$0xff]  }
 0x693   : > { %12362 = vmatprep.subr.bf16.mxu0 %v12904_v16  ;;  %v12936_v8 = vld [vmem:[%s17129_s9 + $0x1e8] sm:$0xff]  }
 0x694   : > { %v12937_v16 = vld [vmem:[%s17129_s9 + $0x128] sm:$0xff]  }
 0x695   : > { %12341 = vmatpush3.bf16.msra.mxu1 %v12905_v31  ;;  %v12938_v31 = vld [vmem:[%s17129_s9 + $0x1a8] sm:$0xff]  }
 0x696   : > { %12363 = vmatpush3.bf16.msra.mxu0 %v12906_v61  ;;  %12342 = vmatprep.subr.bf16.mxu1 %v12907_v17  ;;  %v12939_v61 = vld [vmem:[%s17129_s9 + $0x170] sm:$0xff]  }
 0x697   : > { %12364 = vmatprep.subr.bf16.mxu0 %v12908_v11  ;;  %v12940_v17 = vld [vmem:[%s17129_s9 + $0x1f0] sm:$0xff]  }
 0x698   : > { %v12941_v11 = vld [vmem:[%s17129_s9 + $0x130] sm:$0xff]  }
 0x699   : > { %12343 = vmatpush3.bf16.msra.mxu1 %v12909_v42  ;;  %v12942_v42 = vld [vmem:[%s17129_s9 + $0x1b0] sm:$0xff]  }
 0x69a   : > { %12365 = vmatpush3.bf16.msra.mxu0 %v12910_v52  ;;  %12344 = vmatprep.subr.bf16.mxu1 %v12911_v60  ;;  %v12943_v52 = vld [vmem:[%s17129_s9 + $0x178] sm:$0xff]  }
 0x69b   : > { %12366 = vmatprep.subr.bf16.mxu0 %v12912_v28  ;;  %v12944_v60 = vld [vmem:[%s17129_s9 + $0x1f8] sm:$0xff]  }
 0x69c   : > { %v12945_v28 = vld [vmem:[%s17129_s9 + $0x138] sm:$0xff]  }
 0x69d   : > { %12345 = vmatpush3.bf16.msra.mxu1 %v12913_v34  ;;  %v12946_v34 = vld [vmem:[%s17129_s9 + $0x1b8] sm:$0xff]  }
 0x69e   : > { %12367 = vmatpush3.bf16.msra.mxu0 %v12914_v37  ;;  %12374 = vmatprep.subr.bf16.mxu1 %v12915_v22  ;;  %v9035_v37 = vsub.s32 4, %v16957_v35  ;;  %v9043_v22 = vsub.s32 6, %v16957_v35 }
 0x69f   : > { %12396 = vmatprep.subr.bf16.mxu0 %v12916_v24  ;;  %v9039_v24 = vsub.s32 5, %v16957_v35 }
 0x6a0   : > { %v9036_v3 = vrot.slane %v16964_v36, %v9035_v37  ;;  %v9044_v50 = vrot.slane %v16964_v36, %v9043_v22 }
 0x6a1   : > { %v9040_v44 = vrot.slane %v16964_v36, %v9039_v24 }
 0x6d3   : > { %v9132_v47 = vpop.f32.mrb[88].mxu1  ;;  %v9214_v20 = vpop.f32.mrb[100].mxu0 }
 0x6d4   : > { %v12418_v30 = vadd.f32 %v9132_v47, %v9020_v12  ;;  %v12420_v40 = vadd.f32 %v9214_v20, %v9028_v4  ;;  %v9134_v55 = vpop.f32.mrb[89].mxu1  ;;  %v9216_v23 = vpop.f32.mrb[101].mxu0 }
 0x6d5   : > { %v12419_v18 = vadd.f32 %v9134_v55, %v9024_v39  ;;  %v12421_v32 = vadd.f32 %v9216_v23, %v9032_v1  ;;  %v9136_v58 = vpop.f32.mrb[90].mxu1  ;;  %v9218_v5 = vpop.f32.mrb[102].mxu0 }
 0x6d6   : > { %v9385_v15 = vmax.f32 %v12418_v30, 0.0  ;;  %v9387_v63 = vmax.f32 %v12420_v40, 0.0  ;;  %v9137_v0 = vpop.f32.mrb[91].mxu1  ;;  %v9219_v41 = vpop.f32.mrb[103].mxu0 }
 0x6d7   : > { %v9386_v6 = vmax.f32 %v12419_v18, 0.0  ;;  %v9388_v54 = vmax.f32 %v12421_v32, 0.0 }
 0x6d8   : > { %v9393_v56 = vpack.c.bf16 %v9385_v15, %v9385_v15  ;;  %v9395_v14 = vpack.c.bf16 %v9387_v63, %v9387_v63 }
 0x6d9   : > { %v9394_v43 = vpack.c.bf16 %v9386_v6, %v9386_v6  ;;  %v9396_v7 = vpack.c.bf16 %v9388_v54, %v9388_v54 }
 0x6db   : > { %9946 = vmatprep.mubr.bf16.mxu1 %v9394_v43  ;;  %9986 = vmatprep.mubr.bf16.mxu0 %v9396_v7  ;;  %v9529_v43 = vld [vmem:[%s17130_s10] sm:$0x1] }
 0x6dc   : > { %9947 = vmatmul.mubr.bf16.vlgmr.msra.gmra.mrb[96].mxu1 %v9393_v56  ;;  %9987 = vmatmul.mubr.bf16.vlgmr.msra.gmra.mrb[108].mxu0 %v9395_v14 }
 0x6dd   : > { %12375 = vmatpush3.bf16.msra.mxu1 %v12917_v38  ;;  %12397 = vmatpush3.bf16.msra.mxu0 %v12918_v45 }
 0x6de   : > { %12376 = vmatprep.subr.bf16.mxu1 %v12919_v33  ;;  %12398 = vmatprep.subr.bf16.mxu0 %v12920_v59 }
 0x6e1   : > { %12377 = vmatpush3.bf16.msra.mxu1 %v12921_v46  ;;  %12399 = vmatpush3.bf16.msra.mxu0 %v12922_v49 }
 0x6e2   : > { %12378 = vmatprep.subr.bf16.mxu1 %v12923_v2  ;;  %12400 = vmatprep.subr.bf16.mxu0 %v12924_v48 }
 0x6e5   : > { %12379 = vmatpush3.bf16.msra.mxu1 %v12925_v26  ;;  %12401 = vmatpush3.bf16.msra.mxu0 %v12926_v62 }
 0x6e6   : > { %12380 = vmatprep.subr.bf16.mxu1 %v12927_v53  ;;  %12402 = vmatprep.subr.bf16.mxu0 %v12928_v13 }
 0x6e9   : > { %12381 = vmatpush3.bf16.msra.mxu1 %v12929_v29  ;;  %12403 = vmatpush3.bf16.msra.mxu0 %v12930_v10 }
 0x6ea   : > { %12382 = vmatprep.subr.bf16.mxu1 %v12931_v27  ;;  %12404 = vmatprep.subr.bf16.mxu0 %v12932_v21 }
 0x6ed   : > { %12383 = vmatpush3.bf16.msra.mxu1 %v12933_v57  ;;  %12405 = vmatpush3.bf16.msra.mxu0 %v12934_v19 }
 0x6ee   : > { %12384 = vmatprep.subr.bf16.mxu1 %v12935_v51  ;;  %12406 = vmatprep.subr.bf16.mxu0 %v12936_v8 }
 0x6f1   : > { %12385 = vmatpush3.bf16.msra.mxu1 %v12937_v16  ;;  %12407 = vmatpush3.bf16.msra.mxu0 %v12938_v31 }
 0x6f2   : > { %12386 = vmatprep.subr.bf16.mxu1 %v12939_v61  ;;  %12408 = vmatprep.subr.bf16.mxu0 %v12940_v17 }
 0x6f5   : > { %12387 = vmatpush3.bf16.msra.mxu1 %v12941_v11  ;;  %12409 = vmatpush3.bf16.msra.mxu0 %v12942_v42 }
 0x6f6   : > { %12388 = vmatprep.subr.bf16.mxu1 %v12943_v52  ;;  %12410 = vmatprep.subr.bf16.mxu0 %v12944_v60 }
 0x6f9   : > { %12389 = vmatpush3.bf16.msra.mxu1 %v12945_v28  ;;  %12411 = vmatpush3.bf16.msra.mxu0 %v12946_v34 }
 0x753   : > { %v9296_v12 = vpop.f32.mrb[92].mxu1 }
 0x754   : > { %v12422_v4 = vadd.f32 %v9296_v12, %v9036_v3  ;;  %v9378_v39 = vpop.f32.mrb[104].mxu0  ;;  %v9298_v1 = vpop.f32.mrb[93].mxu1 }
 0x755   : > { %v12424_v47 = vadd.f32 %v9378_v39, %v9044_v50  ;;  %v12423_v20 = vadd.f32 %v9298_v1, %v9040_v44  ;;  %v9380_v30 = vpop.f32.mrb[105].mxu0  ;;  %v9300_v40 = vpop.f32.mrb[94].mxu1 }
 0x756   : > { %v9389_v55 = vmax.f32 %v12422_v4, 0.0  ;;  %v12425_v23 = vadd.f32 %v9380_v30, %v9048_v25  ;;  %v9382_v18 = vpop.f32.mrb[106].mxu0  ;;  %v9301_v35 = vpop.f32.mrb[95].mxu1 }
 0x757   : > { %v9391_v32 = vmax.f32 %v12424_v47, 0.0  ;;  %v9390_v58 = vmax.f32 %v12423_v20, 0.0  ;;  %v9383_v5 = vpop.f32.mrb[107].mxu0 }
 0x758   : > { %v9392_v15 = vmax.f32 %v12425_v23, 0.0  ;;  %v9397_v0 = vpack.c.bf16 %v9389_v55, %v9389_v55 }
 0x759   : > { %v9398_v63 = vpack.c.bf16 %v9390_v58, %v9390_v58  ;;  %v9399_v36 = vpack.c.bf16 %v9391_v32, %v9391_v32 }
 0x75a   : > { %v9400_v41 = vpack.c.bf16 %v9392_v15, %v9392_v15 }
 0x75b   : > { %10026 = vmatprep.mubr.bf16.mxu1 %v9398_v63 }
 0x75c   : > { %10066 = vmatprep.mubr.bf16.mxu0 %v9400_v41  ;;  %10027 = vmatmul.mubr.bf16.vlgmr.msra.gmra.mrb[100].mxu1 %v9397_v0 }
 0x75d   : > { %10067 = vmatmul.mubr.bf16.vlgmr.msra.gmra.mrb[112].mxu0 %v9399_v36 }
 0x7af   : > { %v12346_v6 = vpop.f32.mrb[96].mxu1  ;;  %v12368_v54 = vpop.f32.mrb[108].mxu0 }
 0x7b0   : > { %v12347_v7 = vpop.f32.mrb[97].mxu1  ;;  %v12369_v38 = vpop.f32.mrb[109].mxu0 }
 0x7b1   : > { %v12348_v45 = vadd.f32 %v12347_v7, %v12346_v6  ;;  %v12370_v56 = vadd.f32 %v12369_v38, %v12368_v54  ;;  %v12349_v14 = vpop.f32.mrb[98].mxu1  ;;  %v12371_v33 = vpop.f32.mrb[110].mxu0 }
 0x7b2   : > { %v12350_v59 = vpop.f32.mrb[99].mxu1  ;;  %v12372_v46 = vpop.f32.mrb[111].mxu0 }
 0x7b3   : > { %v9949_v49 = vadd.f32 %v12348_v45, %v9529_v43 }
 0x7b5   : > { %v9989_v2 = vadd.f32 %v12370_v56, %v9949_v49 }
 0x82f   : > { %v12390_v48 = vpop.f32.mrb[100].mxu1 }
 0x830   : > { %v12412_v26 = vpop.f32.mrb[112].mxu0  ;;  %v12391_v62 = vpop.f32.mrb[101].mxu1 }
 0x831   : > { %v12392_v53 = vadd.f32 %v12391_v62, %v12390_v48  ;;  %v12413_v13 = vpop.f32.mrb[113].mxu0  ;;  %v12393_v29 = vpop.f32.mrb[102].mxu1 }
 0x832   : > { %v12414_v10 = vadd.f32 %v12413_v13, %v12412_v26  ;;  %v12415_v27 = vpop.f32.mrb[114].mxu0  ;;  %v12394_v21 = vpop.f32.mrb[103].mxu1 }
 0x833   : > { %v10029_v57 = vadd.f32 %v12392_v53, %v9989_v2  ;;  %v12416_v19 = vpop.f32.mrb[115].mxu0 }
 0x835   : > { %v10069_v51 = vadd.f32 %v12414_v10, %v10029_v57 }
 0x837   : > { %10074 = vst [vmem:[%s378_s22] sm:$0x1] %v10069_v51 }
 0x838   : > { %12973 = shalt.err (!%p12970_p3)
}
 0x839   : > { %s12974_s15 = scalar_lea.hbm %s17078_s26, 16  ;;  %s12978_s13 = scalar_lea.hbm %s17131_s11, 32 }
 0x83a   : > { %p12975_p4 = scmp.ne.s32.totalorder %s17078_s26, %s12974_s15  ;;  %p12979_p9 = scmp.lt.u32.totalorder %s17078_s26, %s17131_s11 }
 0x83b   : > { %p12980_p10 = scmp.lt.u32.totalorder %s12978_s13, %s12974_s15  ;;  %p12982_p12 = scmp.lt.u32.totalorder %s12974_s15, %s17078_s26 }
 0x83c   : > { %p12976_p7 = pnand %p12975_p4, %p13124_p5 }
 0x83d   : > { %p12981_p11 = por %p12980_p10, %p12979_p9 }
 0x83e   : > { %p12977_p8 = pneg %p12976_p7 }
 0x83f   : > { %p12983_p13 = por %p12982_p12, %p12981_p11 }
 0x841   : > { %p12984_p0 = pnand %p12983_p13, %p12977_p8 }
 0x843   : > { %12987 = shalt.err (!%p12984_p0)
}
 0x844   : > { %12443 = dma.vmem_to_hbm [thread:$0]  (%p13124_p5), %s17080_s24, 16, %s17078_s26, %s10076_s29  }
 0x845 PF: > { %p12449_p1 = scmp.ge.s32.totalorder %s13022_s20, 2  ;;  %s10100_s30 = sand.u32 1, %s13010_s17  }
 0x846   : > { %s10101_s14 = scalar_lea.sflag [#allocation8], %s10100_s30 }
 0x847   : > { %p12446_p2 = pnand %p12449_p1, %p13128_p6 }
 0x849   : > { %13005 = dma.done.wait (!%p12446_p2), %s10101_s14, 16  }
 0x84a   : > { %13007 = vsyncadd (!%p12446_p2), %s10101_s14, 4294967280  ;;  %s17160_s12 = sld [smem:[#allocation10_spill]]  ;;  %p21_p3 = scmp.ge.s32.totalorder %s13111_s23, 4  }
 0x84b   : > { %s17161_s17 = smov %s13014_s18  ;;  %s17162_s18 = smov %s13018_s19 }
 0x84c   : > { %s17164_s20 = smov %s13111_s23  ;;  %23 = sbr.rel (!%p21_p3) target bundleno = 3 (0x3), region = 155 }
 0x850   : > { %s17163_s19 = smov %s17160_s12 }
 0x853   :  { %10105 = vsyncpa [#allocation8], 1 }
 0x854   :  { %10107 = vsyncpa [#allocation8 + $0x1], 1 }

</bundles_post_ra>
